<compile_context>
chip_gen: v6e
topology: v6e:2x2x1
jax: 0.10.0
libtpu: 0.0.40
codegen_flags: <defaults>
</compile_context>

<pallas_src>
import functools
import math

import jax
import jax.numpy as jnp
from jax import lax
from jax.experimental import pallas as pl
from jax.experimental.pallas import tpu as pltpu

BN_EPS = 1e-5


# ----------------------------------------------------------------------------
# Pallas kernels
# ----------------------------------------------------------------------------
def _mm_bias_kernel(x_ref, w_ref, b_ref, o_ref, acc_ref, *, relu):
    """out = [relu]( x @ w + bias ), K-accumulated in an f32 scratch."""
    @pl.when(pl.program_id(2) == 0)
    def _():
        acc_ref[...] = jnp.zeros_like(acc_ref)

    acc_ref[...] += jnp.dot(x_ref[...], w_ref[...],
                            preferred_element_type=jnp.float32)

    @pl.when(pl.program_id(2) == pl.num_programs(2) - 1)
    def _():
        y = acc_ref[...] + b_ref[...]
        if relu:
            y = jnp.maximum(y, 0.0)
        o_ref[...] = y.astype(o_ref.dtype)


def _mm_bias_res_relu_kernel(x_ref, w_ref, b_ref, r_ref, o_ref, acc_ref):
    """out = relu( x @ w + bias + residual )."""
    @pl.when(pl.program_id(2) == 0)
    def _():
        acc_ref[...] = jnp.zeros_like(acc_ref)

    acc_ref[...] += jnp.dot(x_ref[...], w_ref[...],
                            preferred_element_type=jnp.float32)

    @pl.when(pl.program_id(2) == pl.num_programs(2) - 1)
    def _():
        y = acc_ref[...] + b_ref[...] + r_ref[...].astype(jnp.float32)
        o_ref[...] = jnp.maximum(y, 0.0).astype(o_ref.dtype)


def _pool_fc_kernel(x_ref, w_ref, b_ref, logits_ref, feat_ref, acc_ref, *, inv_len):
    """Global average pool over L (tiled/accumulated) + Linear in the finalize step."""
    @pl.when(pl.program_id(0) == 0)
    def _():
        acc_ref[...] = jnp.zeros_like(acc_ref)

    acc_ref[...] += jnp.sum(x_ref[...].astype(jnp.float32), axis=1)

    @pl.when(pl.program_id(0) == pl.num_programs(0) - 1)
    def _():
        feats = acc_ref[...] * inv_len
        feat_ref[...] = feats
        logits_ref[...] = (
            jnp.dot(feats, w_ref[...], preferred_element_type=jnp.float32)
            + b_ref[...]
        )


# ----------------------------------------------------------------------------
# Tiling helpers
# ----------------------------------------------------------------------------
def _round_up(x, m):
    return ((x + m - 1) // m) * m


def _pick_m_tile(m, target=512):
    if m <= target:
        return m, m                      # full extent, no padding
    return target, _round_up(m, target)


def _pick_n_tile(n, target=256):
    np_ = _round_up(n, 128)              # lane-dense (128-multiple) output tiles
    tn = min(target, np_)
    if np_ % tn != 0:
        np_ = _round_up(np_, tn)
    return tn, np_


def _pick_k_tile(k, target=512):
    if k <= target:
        return k, k
    for t in (512, 384, 256, 128):
        if k % t == 0:
            return t, k
    return target, _round_up(k, target)


# ----------------------------------------------------------------------------
# Pallas wrappers
# ----------------------------------------------------------------------------
def _fused_matmul_bias(cols, w_mat, bias, residual=None, relu=True):
    """out = [relu]( cols @ w_mat + bias [+ residual] ), tiled over M, N, K."""
    M, K = cols.shape
    _, N = w_mat.shape
    TM, Mp = _pick_m_tile(M)
    TN, Np = _pick_n_tile(N)
    TK, Kp = _pick_k_tile(K)

    if Mp != M or Kp != K:
        cols = jnp.pad(cols, ((0, Mp - M), (0, Kp - K)))
    if Kp != K or Np != N:
        w_mat = jnp.pad(w_mat, ((0, Kp - K), (0, Np - N)))
    bias2d = bias.reshape(1, N)
    if Np != N:
        bias2d = jnp.pad(bias2d, ((0, 0), (0, Np - N)))

    grid = (Mp // TM, Np // TN, Kp // TK)

    in_specs = [
        pl.BlockSpec((TM, TK), lambda i, j, k: (i, k)),   # activation / im2col tile
        pl.BlockSpec((TK, TN), lambda i, j, k: (k, j)),   # BN-folded weight tile
        pl.BlockSpec((1, TN), lambda i, j, k: (0, j)),    # bias tile
    ]
    args = [cols, w_mat, bias2d]

    if residual is not None:
        r = residual
        if Mp != M or Np != N:
            r = jnp.pad(r, ((0, Mp - M), (0, Np - N)))
        in_specs.append(pl.BlockSpec((TM, TN), lambda i, j, k: (i, j)))
        args.append(r)
        kernel = _mm_bias_res_relu_kernel
    else:
        kernel = functools.partial(_mm_bias_kernel, relu=relu)

    bytes_accessed = (Mp * Kp + Kp * Np + Mp * Np) * 2 + Np * 4
    if residual is not None:
        bytes_accessed += Mp * Np * 2
    cost = pl.CostEstimate(flops=2 * Mp * Np * Kp, transcendentals=0,
                           bytes_accessed=bytes_accessed)

    out = pl.pallas_call(
        kernel,
        out_shape=jax.ShapeDtypeStruct((Mp, Np), jnp.bfloat16),
        grid=grid,
        in_specs=in_specs,
        out_specs=pl.BlockSpec((TM, TN), lambda i, j, k: (i, j)),
        scratch_shapes=[pltpu.VMEM((TM, TN), jnp.float32)],
        compiler_params=pltpu.CompilerParams(
            dimension_semantics=("parallel", "parallel", "arbitrary")),
        cost_estimate=cost,
    )(*args)

    if Mp != M or Np != N:
        out = out[:M, :N]
    return out


def _im2col(x_blc, k, stride, pad):
    """(B, L, C) -> (B*L_out, k*C) patches via k static strided slices (no gather).

    Ordering is kernel-position major, channel minor, matching the weight reshape.
    """
    B, L, C = x_blc.shape
    L_out = (L + 2 * pad - k) // stride + 1
    xp = jnp.pad(x_blc, ((0, 0), (pad, pad), (0, 0)))
    span = (L_out - 1) * stride + 1
    taps = [lax.slice_in_dim(xp, j, j + span, stride=stride, axis=1)
            for j in range(k)]
    cols = jnp.concatenate(taps, axis=-1)               # (B, L_out, k*C)
    return cols.reshape(B * L_out, k * C), L_out


def fused_conv_bn(x_blc, w, b, bn, *, stride, pad, relu, residual=None):
    """Conv1d(w,b) + BatchNorm(bn) [+ residual] [+ ReLU] via the tiled Pallas matmul."""
    g, beta, m, v = bn
    B, _, Cin = x_blc.shape
    Cout, _, k = w.shape
    cols, L_out = _im2col(x_blc, k, stride, pad)
    # PyTorch conv weight (Cout, Cin, k) -> (k*Cin, Cout), matching im2col ordering.
    w_mat = jnp.transpose(w, (2, 1, 0)).reshape(k * Cin, Cout)
    scale = g / jnp.sqrt(v + BN_EPS)
    w_mat = (w_mat * scale[None, :]).astype(jnp.bfloat16)   # fold BN scale into weights
    bias = ((b - m) * scale + beta).astype(jnp.float32)
    res2d = None if residual is None else residual.reshape(B * L_out, Cout)
    out = _fused_matmul_bias(cols, w_mat, bias, residual=res2d, relu=relu)
    return out.reshape(B, L_out, Cout)


def residual_block(x, bp):
    res = fused_conv_bn(x, bp["scw"], bp["scb"], bp["scbn"],
                        stride=bp["stride"], pad=0, relu=False)
    h = fused_conv_bn(x, bp["c1w"], bp["c1b"], bp["bn1"],
                      stride=bp["stride"], pad=1, relu=True)
    return fused_conv_bn(h, bp["c2w"], bp["c2b"], bp["bn2"],
                         stride=1, pad=1, relu=True, residual=res)


def pool_fc(x_blc, fc_w, fc_b):
    """Global average pool over L (streamed, L-tiled) + Linear."""
    B, L, C = x_blc.shape
    nc = fc_w.shape[0]
    if L <= 512:
        TL, Lp = L, L
    else:
        TL = 256
        Lp = _round_up(L, TL)
    xin = x_blc if Lp == L else jnp.pad(x_blc, ((0, 0), (0, Lp - L), (0, 0)))

    kernel = functools.partial(_pool_fc_kernel, inv_len=1.0 / L)
    logits, feats = pl.pallas_call(
        kernel,
        out_shape=(jax.ShapeDtypeStruct((B, nc), jnp.float32),
                   jax.ShapeDtypeStruct((B, C), jnp.float32)),
        grid=(Lp // TL,),
        in_specs=[
            pl.BlockSpec((B, TL, C), lambda l: (0, l, 0)),
            pl.BlockSpec((C, nc), lambda l: (0, 0)),
            pl.BlockSpec((1, nc), lambda l: (0, 0)),
        ],
        out_specs=(pl.BlockSpec((B, nc), lambda l: (0, 0)),
                   pl.BlockSpec((B, C), lambda l: (0, 0))),
        scratch_shapes=[pltpu.VMEM((B, C), jnp.float32)],
        compiler_params=pltpu.CompilerParams(
            dimension_semantics=("arbitrary",)),
    )(xin, fc_w.T.astype(jnp.float32), fc_b.reshape(1, nc).astype(jnp.float32))
    return logits, feats


def deep_resnet_forward(params, x_ncl):
    """x_ncl: (B, 1, L) float32, same convention as the PyTorch module."""
    x = jnp.transpose(x_ncl, (0, 2, 1)).astype(jnp.bfloat16)   # (B, L, 1) channels-last
    x = fused_conv_bn(x, params["conv1_w"], params["conv1_b"], params["bn1"],
                      stride=1, pad=3, relu=True)
    for bp in params["blocks"]:
        x = residual_block(x, bp)
    logits, feats = pool_fc(x, params["fc_w"], params["fc_b"])
    return logits, feats


# ----------------------------------------------------------------------------
# Deterministic parameter initialization (shapes from DeepResNet.__init__)
# ----------------------------------------------------------------------------
def _conv_params(key, cout, cin, k):
    k1, k2 = jax.random.split(key)
    bound = 1.0 / math.sqrt(cin * k)
    w = jax.random.uniform(k1, (cout, cin, k), jnp.float32, -bound, bound)
    b = jax.random.uniform(k2, (cout,), jnp.float32, -bound, bound)
    return w, b


def _bn_params(key, c):
    k1, k2, k3, k4 = jax.random.split(key, 4)
    g = 1.0 + 0.1 * jax.random.normal(k1, (c,), jnp.float32)
    beta = 0.1 * jax.random.normal(k2, (c,), jnp.float32)
    m = 0.1 * jax.random.normal(k3, (c,), jnp.float32)
    v = jax.random.uniform(k4, (c,), jnp.float32, 0.5, 1.5)
    return g, beta, m, v


def _block_params(key, cin, cout, stride):
    ks = jax.random.split(key, 6)
    c1w, c1b = _conv_params(ks[0], cout, cin, 3)
    c2w, c2b = _conv_params(ks[2], cout, cout, 3)
    scw, scb = _conv_params(ks[4], cout, cin, 1)
    return dict(stride=stride,
                c1w=c1w, c1b=c1b, bn1=_bn_params(ks[1], cout),
                c2w=c2w, c2b=c2b, bn2=_bn_params(ks[3], cout),
                scw=scw, scb=scb, scbn=_bn_params(ks[5], cout))


def init_params(key, num_classes):
    ks = jax.random.split(key, 8)
    conv1_w, conv1_b = _conv_params(ks[0], 64, 1, 7)
    blocks = [
        _block_params(ks[2], 64, 128, 1),
        _block_params(ks[3], 128, 256, 2),
        _block_params(ks[4], 256, 512, 2),
        _block_params(ks[5], 512, 1024, 2),
    ]
    bound = 1.0 / math.sqrt(1024)
    fc_w = jax.random.uniform(ks[6], (num_classes, 1024), jnp.float32, -bound, bound)
    fc_b = jax.random.uniform(ks[7], (num_classes,), jnp.float32, -bound, bound)
    return dict(conv1_w=conv1_w, conv1_b=conv1_b, bn1=_bn_params(ks[1], 64),
                blocks=blocks, fc_w=fc_w, fc_b=fc_b)


# ----------------------------------------------------------------------------
# Pure-JAX f32 reference (correctness check only)
# ----------------------------------------------------------------------------
def _ref_forward(params, x_ncl):
    x = jnp.transpose(x_ncl, (0, 2, 1)).astype(jnp.float32)

    def conv_bn(x, w, b, bn, stride, pad, relu, residual=None):
        g, beta, m, v = bn
        y = lax.conv_general_dilated(
            x, jnp.transpose(w, (2, 1, 0)), window_strides=(stride,),
            padding=[(pad, pad)], dimension_numbers=("NWC", "WIO", "NWC"),
            precision=lax.Precision.HIGHEST)
        y = y + b[None, None, :]
        y = (y - m[None, None, :]) / jnp.sqrt(v[None, None, :] + BN_EPS) \
            * g[None, None, :] + beta[None, None, :]
        if residual is not None:
            y = y + residual
        if relu:
            y = jnp.maximum(y, 0.0)
        return y

    x = conv_bn(x, params["conv1_w"], params["conv1_b"], params["bn1"], 1, 3, True)
    for bp in params["blocks"]:
        res = conv_bn(x, bp["scw"], bp["scb"], bp["scbn"], bp["stride"], 0, False)
        h = conv_bn(x, bp["c1w"], bp["c1b"], bp["bn1"], bp["stride"], 1, True)
        x = conv_bn(h, bp["c2w"], bp["c2b"], bp["bn2"], 1, 1, True, residual=res)
    feats = jnp.mean(x, axis=1)
    logits = feats @ params["fc_w"].T + params["fc_b"]
    return logits, feats


# ----------------------------------------------------------------------------
if __name__ == "__main__":
    key = jax.random.PRNGKey(0)
    pkey, xkey = jax.random.split(key)
    num_classes = 10
    batch, length = 2, 16

    params = init_params(pkey, num_classes)
    x = jax.random.normal(xkey, (batch, 1, length), jnp.float32)   # NCL like PyTorch

    fwd = jax.jit(lambda inp: deep_resnet_forward(params, inp))
    logits, feats = fwd(x)
    jax.block_until_ready((logits, feats))

    assert logits.shape == (batch, num_classes)
    assert feats.shape == (batch, 1024)

    # Tolerance loosened vs pure-f32: matmul inputs/activations are bf16 (f32 accumulation).
    ref_logits, ref_feats = _ref_forward(params, x)
    if not (jnp.allclose(logits, ref_logits, rtol=1e-1, atol=1e-1)
            and jnp.allclose(feats, ref_feats, rtol=1e-1, atol=1e-1)):
        raise AssertionError(
            "Pallas output mismatch vs JAX reference: "
            f"max|dlogits|={float(jnp.max(jnp.abs(logits - ref_logits)))}, "
            f"max|dfeats|={float(jnp.max(jnp.abs(feats - ref_feats)))}")

    print("KERNEL_OK")
</pallas_src>

<mosaic_0001>
module attributes {stable_mosaic.version = 11 : i64} {
  func.func @_mm_bias_kernel(%arg0: i32, %arg1: i32, %arg2: i32, %arg3: memref<32x64xbf16, #tpu.memory_space<vmem>>, %arg4: memref<64x128xbf16, #tpu.memory_space<vmem>>, %arg5: memref<1x128xf32, #tpu.memory_space<vmem>>, %arg6: memref<32x128xbf16, #tpu.memory_space<vmem>>, %arg7: memref<32x128xf32, #tpu.memory_space<vmem>>) attributes {dimension_semantics = [#tpu.dimension_semantics<parallel>, #tpu.dimension_semantics<parallel>, #tpu.dimension_semantics<arbitrary>], iteration_bounds = array<i64: 1, 1, 1>, scalar_prefetch = 0 : i64, scratch_operands = 1 : i64, tpu.core_type = #tpu.core_type<tc>, window_params = [{transform_indices = @transform_0, window_bounds = array<i64: 32, 64>}, {transform_indices = @transform_1, window_bounds = array<i64: 64, 128>}, {transform_indices = @transform_2, window_bounds = array<i64: 1, 128>}, {transform_indices = @transform_3, window_bounds = array<i64: 32, 128>}]} {
    %c0_i32 = arith.constant 0 : i32
    %0 = arith.cmpi eq, %arg2, %c0_i32 : i32
    %1 = arith.extui %0 : i1 to i32
    %c0_i32_0 = arith.constant 0 : i32
    %2 = arith.cmpi ne, %1, %c0_i32_0 : i32
    scf.if %2 {
      %cst_10 = arith.constant 0.000000e+00 : f32
      %12 = vector.broadcast %cst_10 : f32 to vector<32x128xf32>
      %c0_11 = arith.constant 0 : index
      %c0_12 = arith.constant 0 : index
      %13 = vector.load %arg7[%c0_11, %c0_12] : memref<32x128xf32, #tpu.memory_space<vmem>>, vector<32x128xf32>
      tpu.vector_store %arg7[%c0_11, %c0_12], %12 {strides = array<i32>} : memref<32x128xf32, #tpu.memory_space<vmem>>, vector<32x128xf32>,
    } else {
    }
    %c0 = arith.constant 0 : index
    %c0_1 = arith.constant 0 : index
    %3 = vector.load %arg7[%c0, %c0_1] : memref<32x128xf32, #tpu.memory_space<vmem>>, vector<32x128xf32>
    %c0_2 = arith.constant 0 : index
    %c0_3 = arith.constant 0 : index
    %4 = vector.load %arg3[%c0_2, %c0_3] : memref<32x64xbf16, #tpu.memory_space<vmem>>, vector<32x64xbf16>
    %c0_4 = arith.constant 0 : index
    %c0_5 = arith.constant 0 : index
    %5 = vector.load %arg4[%c0_4, %c0_5] : memref<64x128xbf16, #tpu.memory_space<vmem>>, vector<64x128xbf16>
    %cst = arith.constant dense<0.000000e+00> : vector<32x128xf32>
    %6 = tpu.matmul %4, %5, %cst {dimension_numbers = #tpu.dot_dimension_numbers<[1], [0], [0], [1], [0, 0, 1, 1], [], []>} : vector<32x64xbf16>, vector<64x128xbf16>, vector<32x128xf32> -> vector<32x128xf32>
    %7 = arith.addf %3, %6 : vector<32x128xf32>
    %c0_6 = arith.constant 0 : index
    %c0_7 = arith.constant 0 : index
    %8 = vector.load %arg7[%c0_6, %c0_7] : memref<32x128xf32, #tpu.memory_space<vmem>>, vector<32x128xf32>
    tpu.vector_store %arg7[%c0_6, %c0_7], %7 {strides = array<i32>} : memref<32x128xf32, #tpu.memory_space<vmem>>, vector<32x128xf32>,
    %c0_i32_8 = arith.constant 0 : i32
    %9 = arith.cmpi eq, %arg2, %c0_i32_8 : i32
    %10 = arith.extui %9 : i1 to i32
    %c0_i32_9 = arith.constant 0 : i32
    %11 = arith.cmpi ne, %10, %c0_i32_9 : i32
    scf.if %11 {
      %c0_10 = arith.constant 0 : index
      %c0_11 = arith.constant 0 : index
      %12 = vector.load %arg7[%c0_10, %c0_11] : memref<32x128xf32, #tpu.memory_space<vmem>>, vector<32x128xf32>
      %c0_12 = arith.constant 0 : index
      %c0_13 = arith.constant 0 : index
      %13 = vector.load %arg5[%c0_12, %c0_13] : memref<1x128xf32, #tpu.memory_space<vmem>>, vector<1x128xf32>
      %14 = vector.broadcast %13 : vector<1x128xf32> to vector<32x128xf32>
      %15 = arith.addf %12, %14 : vector<32x128xf32>
      %16 = arith.truncf %15 : vector<32x128xf32> to vector<32x128xbf16>
      %c0_14 = arith.constant 0 : index
      %c0_15 = arith.constant 0 : index
      %17 = vector.load %arg6[%c0_14, %c0_15] : memref<32x128xbf16, #tpu.memory_space<vmem>>, vector<32x128xbf16>
      tpu.vector_store %arg6[%c0_14, %c0_15], %16 {strides = array<i32>} : memref<32x128xbf16, #tpu.memory_space<vmem>>, vector<32x128xbf16>,
    } else {
    }
    return
  }
  func.func @transform_0(%arg0: i32, %arg1: i32, %arg2: i32) -> (i32, i32) {
    %c0_i32 = arith.constant 0 : i32
    return %arg0, %arg2 : i32, i32
  }
  func.func @transform_1(%arg0: i32, %arg1: i32, %arg2: i32) -> (i32, i32) {
    %c0_i32 = arith.constant 0 : i32
    return %arg2, %arg1 : i32, i32
  }
  func.func @transform_2(%arg0: i32, %arg1: i32, %arg2: i32) -> (i32, i32) {
    %c0_i32 = arith.constant 0 : i32
    %c0_i32_0 = arith.constant 0 : i32
    return %c0_i32, %arg1 : i32, i32
  }
  func.func @transform_3(%arg0: i32, %arg1: i32, %arg2: i32) -> (i32, i32) {
    %c0_i32 = arith.constant 0 : i32
    return %arg0, %arg1 : i32, i32
  }
}

module attributes {stable_mosaic.version = 11 : i64} {
  func.func @_mm_bias_kernel(%arg0: i32, %arg1: i32, %arg2: i32, %arg3: memref<32x7xbf16, #tpu.memory_space<vmem>>, %arg4: memref<7x128xbf16, #tpu.memory_space<vmem>>, %arg5: memref<1x128xf32, #tpu.memory_space<vmem>>, %arg6: memref<32x128xbf16, #tpu.memory_space<vmem>>, %arg7: memref<32x128xf32, #tpu.memory_space<vmem>>) attributes {dimension_semantics = [#tpu.dimension_semantics<parallel>, #tpu.dimension_semantics<parallel>, #tpu.dimension_semantics<arbitrary>], iteration_bounds = array<i64: 1, 1, 1>, scalar_prefetch = 0 : i64, scratch_operands = 1 : i64, tpu.core_type = #tpu.core_type<tc>, window_params = [{transform_indices = @transform_0, window_bounds = array<i64: 32, 7>}, {transform_indices = @transform_1, window_bounds = array<i64: 7, 128>}, {transform_indices = @transform_2, window_bounds = array<i64: 1, 128>}, {transform_indices = @transform_3, window_bounds = array<i64: 32, 128>}]} {
    %c0_i32 = arith.constant 0 : i32
    %0 = arith.cmpi eq, %arg2, %c0_i32 : i32
    %1 = arith.extui %0 : i1 to i32
    %c0_i32_0 = arith.constant 0 : i32
    %2 = arith.cmpi ne, %1, %c0_i32_0 : i32
    scf.if %2 {
      %cst_10 = arith.constant 0.000000e+00 : f32
      %12 = vector.broadcast %cst_10 : f32 to vector<32x128xf32>
      %c0_11 = arith.constant 0 : index
      %c0_12 = arith.constant 0 : index
      %13 = vector.load %arg7[%c0_11, %c0_12] : memref<32x128xf32, #tpu.memory_space<vmem>>, vector<32x128xf32>
      tpu.vector_store %arg7[%c0_11, %c0_12], %12 {strides = array<i32>} : memref<32x128xf32, #tpu.memory_space<vmem>>, vector<32x128xf32>,
    } else {
    }
    %c0 = arith.constant 0 : index
    %c0_1 = arith.constant 0 : index
    %3 = vector.load %arg7[%c0, %c0_1] : memref<32x128xf32, #tpu.memory_space<vmem>>, vector<32x128xf32>
    %c0_2 = arith.constant 0 : index
    %c0_3 = arith.constant 0 : index
    %4 = vector.load %arg3[%c0_2, %c0_3] : memref<32x7xbf16, #tpu.memory_space<vmem>>, vector<32x7xbf16>
    %c0_4 = arith.constant 0 : index
    %c0_5 = arith.constant 0 : index
    %5 = vector.load %arg4[%c0_4, %c0_5] : memref<7x128xbf16, #tpu.memory_space<vmem>>, vector<7x128xbf16>
    %cst = arith.constant dense<0.000000e+00> : vector<32x128xf32>
    %6 = tpu.matmul %4, %5, %cst {dimension_numbers = #tpu.dot_dimension_numbers<[1], [0], [0], [1], [0, 0, 1, 1], [], []>} : vector<32x7xbf16>, vector<7x128xbf16>, vector<32x128xf32> -> vector<32x128xf32>
    %7 = arith.addf %3, %6 : vector<32x128xf32>
    %c0_6 = arith.constant 0 : index
    %c0_7 = arith.constant 0 : index
    %8 = vector.load %arg7[%c0_6, %c0_7] : memref<32x128xf32, #tpu.memory_space<vmem>>, vector<32x128xf32>
    tpu.vector_store %arg7[%c0_6, %c0_7], %7 {strides = array<i32>} : memref<32x128xf32, #tpu.memory_space<vmem>>, vector<32x128xf32>,
    %c0_i32_8 = arith.constant 0 : i32
    %9 = arith.cmpi eq, %arg2, %c0_i32_8 : i32
    %10 = arith.extui %9 : i1 to i32
    %c0_i32_9 = arith.constant 0 : i32
    %11 = arith.cmpi ne, %10, %c0_i32_9 : i32
    scf.if %11 {
      %c0_10 = arith.constant 0 : index
      %c0_11 = arith.constant 0 : index
      %12 = vector.load %arg7[%c0_10, %c0_11] : memref<32x128xf32, #tpu.memory_space<vmem>>, vector<32x128xf32>
      %c0_12 = arith.constant 0 : index
      %c0_13 = arith.constant 0 : index
      %13 = vector.load %arg5[%c0_12, %c0_13] : memref<1x128xf32, #tpu.memory_space<vmem>>, vector<1x128xf32>
      %14 = vector.broadcast %13 : vector<1x128xf32> to vector<32x128xf32>
      %15 = arith.addf %12, %14 : vector<32x128xf32>
      %cst_14 = arith.constant 0.000000e+00 : f32
      %16 = vector.broadcast %cst_14 : f32 to vector<32x128xf32>
      %17 = arith.maximumf %15, %16 : vector<32x128xf32>
      %18 = arith.truncf %17 : vector<32x128xf32> to vector<32x128xbf16>
      %c0_15 = arith.constant 0 : index
      %c0_16 = arith.constant 0 : index
      %19 = vector.load %arg6[%c0_15, %c0_16] : memref<32x128xbf16, #tpu.memory_space<vmem>>, vector<32x128xbf16>
      tpu.vector_store %arg6[%c0_15, %c0_16], %18 {strides = array<i32>} : memref<32x128xbf16, #tpu.memory_space<vmem>>, vector<32x128xbf16>,
    } else {
    }
    return
  }
  func.func @transform_0(%arg0: i32, %arg1: i32, %arg2: i32) -> (i32, i32) {
    %c0_i32 = arith.constant 0 : i32
    return %arg0, %arg2 : i32, i32
  }
  func.func @transform_1(%arg0: i32, %arg1: i32, %arg2: i32) -> (i32, i32) {
    %c0_i32 = arith.constant 0 : i32
    return %arg2, %arg1 : i32, i32
  }
  func.func @transform_2(%arg0: i32, %arg1: i32, %arg2: i32) -> (i32, i32) {
    %c0_i32 = arith.constant 0 : i32
    %c0_i32_0 = arith.constant 0 : i32
    return %c0_i32, %arg1 : i32, i32
  }
  func.func @transform_3(%arg0: i32, %arg1: i32, %arg2: i32) -> (i32, i32) {
    %c0_i32 = arith.constant 0 : i32
    return %arg0, %arg1 : i32, i32
  }
}

module attributes {stable_mosaic.version = 11 : i64} {
  func.func @_mm_bias_kernel(%arg0: i32, %arg1: i32, %arg2: i32, %arg3: memref<32x192xbf16, #tpu.memory_space<vmem>>, %arg4: memref<192x128xbf16, #tpu.memory_space<vmem>>, %arg5: memref<1x128xf32, #tpu.memory_space<vmem>>, %arg6: memref<32x128xbf16, #tpu.memory_space<vmem>>, %arg7: memref<32x128xf32, #tpu.memory_space<vmem>>) attributes {dimension_semantics = [#tpu.dimension_semantics<parallel>, #tpu.dimension_semantics<parallel>, #tpu.dimension_semantics<arbitrary>], iteration_bounds = array<i64: 1, 1, 1>, scalar_prefetch = 0 : i64, scratch_operands = 1 : i64, tpu.core_type = #tpu.core_type<tc>, window_params = [{transform_indices = @transform_0, window_bounds = array<i64: 32, 192>}, {transform_indices = @transform_1, window_bounds = array<i64: 192, 128>}, {transform_indices = @transform_2, window_bounds = array<i64: 1, 128>}, {transform_indices = @transform_3, window_bounds = array<i64: 32, 128>}]} {
    %c0_i32 = arith.constant 0 : i32
    %0 = arith.cmpi eq, %arg2, %c0_i32 : i32
    %1 = arith.extui %0 : i1 to i32
    %c0_i32_0 = arith.constant 0 : i32
    %2 = arith.cmpi ne, %1, %c0_i32_0 : i32
    scf.if %2 {
      %cst_10 = arith.constant 0.000000e+00 : f32
      %12 = vector.broadcast %cst_10 : f32 to vector<32x128xf32>
      %c0_11 = arith.constant 0 : index
      %c0_12 = arith.constant 0 : index
      %13 = vector.load %arg7[%c0_11, %c0_12] : memref<32x128xf32, #tpu.memory_space<vmem>>, vector<32x128xf32>
      tpu.vector_store %arg7[%c0_11, %c0_12], %12 {strides = array<i32>} : memref<32x128xf32, #tpu.memory_space<vmem>>, vector<32x128xf32>,
    } else {
    }
    %c0 = arith.constant 0 : index
    %c0_1 = arith.constant 0 : index
    %3 = vector.load %arg7[%c0, %c0_1] : memref<32x128xf32, #tpu.memory_space<vmem>>, vector<32x128xf32>
    %c0_2 = arith.constant 0 : index
    %c0_3 = arith.constant 0 : index
    %4 = vector.load %arg3[%c0_2, %c0_3] : memref<32x192xbf16, #tpu.memory_space<vmem>>, vector<32x192xbf16>
    %c0_4 = arith.constant 0 : index
    %c0_5 = arith.constant 0 : index
    %5 = vector.load %arg4[%c0_4, %c0_5] : memref<192x128xbf16, #tpu.memory_space<vmem>>, vector<192x128xbf16>
    %cst = arith.constant dense<0.000000e+00> : vector<32x128xf32>
    %6 = tpu.matmul %4, %5, %cst {dimension_numbers = #tpu.dot_dimension_numbers<[1], [0], [0], [1], [0, 0, 1, 1], [], []>} : vector<32x192xbf16>, vector<192x128xbf16>, vector<32x128xf32> -> vector<32x128xf32>
    %7 = arith.addf %3, %6 : vector<32x128xf32>
    %c0_6 = arith.constant 0 : index
    %c0_7 = arith.constant 0 : index
    %8 = vector.load %arg7[%c0_6, %c0_7] : memref<32x128xf32, #tpu.memory_space<vmem>>, vector<32x128xf32>
    tpu.vector_store %arg7[%c0_6, %c0_7], %7 {strides = array<i32>} : memref<32x128xf32, #tpu.memory_space<vmem>>, vector<32x128xf32>,
    %c0_i32_8 = arith.constant 0 : i32
    %9 = arith.cmpi eq, %arg2, %c0_i32_8 : i32
    %10 = arith.extui %9 : i1 to i32
    %c0_i32_9 = arith.constant 0 : i32
    %11 = arith.cmpi ne, %10, %c0_i32_9 : i32
    scf.if %11 {
      %c0_10 = arith.constant 0 : index
      %c0_11 = arith.constant 0 : index
      %12 = vector.load %arg7[%c0_10, %c0_11] : memref<32x128xf32, #tpu.memory_space<vmem>>, vector<32x128xf32>
      %c0_12 = arith.constant 0 : index
      %c0_13 = arith.constant 0 : index
      %13 = vector.load %arg5[%c0_12, %c0_13] : memref<1x128xf32, #tpu.memory_space<vmem>>, vector<1x128xf32>
      %14 = vector.broadcast %13 : vector<1x128xf32> to vector<32x128xf32>
      %15 = arith.addf %12, %14 : vector<32x128xf32>
      %cst_14 = arith.constant 0.000000e+00 : f32
      %16 = vector.broadcast %cst_14 : f32 to vector<32x128xf32>
      %17 = arith.maximumf %15, %16 : vector<32x128xf32>
      %18 = arith.truncf %17 : vector<32x128xf32> to vector<32x128xbf16>
      %c0_15 = arith.constant 0 : index
      %c0_16 = arith.constant 0 : index
      %19 = vector.load %arg6[%c0_15, %c0_16] : memref<32x128xbf16, #tpu.memory_space<vmem>>, vector<32x128xbf16>
      tpu.vector_store %arg6[%c0_15, %c0_16], %18 {strides = array<i32>} : memref<32x128xbf16, #tpu.memory_space<vmem>>, vector<32x128xbf16>,
    } else {
    }
    return
  }
  func.func @transform_0(%arg0: i32, %arg1: i32, %arg2: i32) -> (i32, i32) {
    %c0_i32 = arith.constant 0 : i32
    return %arg0, %arg2 : i32, i32
  }
  func.func @transform_1(%arg0: i32, %arg1: i32, %arg2: i32) -> (i32, i32) {
    %c0_i32 = arith.constant 0 : i32
    return %arg2, %arg1 : i32, i32
  }
  func.func @transform_2(%arg0: i32, %arg1: i32, %arg2: i32) -> (i32, i32) {
    %c0_i32 = arith.constant 0 : i32
    %c0_i32_0 = arith.constant 0 : i32
    return %c0_i32, %arg1 : i32, i32
  }
  func.func @transform_3(%arg0: i32, %arg1: i32, %arg2: i32) -> (i32, i32) {
    %c0_i32 = arith.constant 0 : i32
    return %arg0, %arg1 : i32, i32
  }
}

module attributes {stable_mosaic.version = 11 : i64} {
  func.func @_mm_bias_res_relu_kernel(%arg0: i32, %arg1: i32, %arg2: i32, %arg3: memref<32x384xbf16, #tpu.memory_space<vmem>>, %arg4: memref<384x128xbf16, #tpu.memory_space<vmem>>, %arg5: memref<1x128xf32, #tpu.memory_space<vmem>>, %arg6: memref<32x128xbf16, #tpu.memory_space<vmem>>, %arg7: memref<32x128xbf16, #tpu.memory_space<vmem>>, %arg8: memref<32x128xf32, #tpu.memory_space<vmem>>) attributes {dimension_semantics = [#tpu.dimension_semantics<parallel>, #tpu.dimension_semantics<parallel>, #tpu.dimension_semantics<arbitrary>], iteration_bounds = array<i64: 1, 1, 1>, scalar_prefetch = 0 : i64, scratch_operands = 1 : i64, tpu.core_type = #tpu.core_type<tc>, window_params = [{transform_indices = @transform_0, window_bounds = array<i64: 32, 384>}, {transform_indices = @transform_1, window_bounds = array<i64: 384, 128>}, {transform_indices = @transform_2, window_bounds = array<i64: 1, 128>}, {transform_indices = @transform_3, window_bounds = array<i64: 32, 128>}, {transform_indices = @transform_4, window_bounds = array<i64: 32, 128>}]} {
    %c0_i32 = arith.constant 0 : i32
    %0 = arith.cmpi eq, %arg2, %c0_i32 : i32
    %1 = arith.extui %0 : i1 to i32
    %c0_i32_0 = arith.constant 0 : i32
    %2 = arith.cmpi ne, %1, %c0_i32_0 : i32
    scf.if %2 {
      %cst_10 = arith.constant 0.000000e+00 : f32
      %12 = vector.broadcast %cst_10 : f32 to vector<32x128xf32>
      %c0_11 = arith.constant 0 : index
      %c0_12 = arith.constant 0 : index
      %13 = vector.load %arg8[%c0_11, %c0_12] : memref<32x128xf32, #tpu.memory_space<vmem>>, vector<32x128xf32>
      tpu.vector_store %arg8[%c0_11, %c0_12], %12 {strides = array<i32>} : memref<32x128xf32, #tpu.memory_space<vmem>>, vector<32x128xf32>,
    } else {
    }
    %c0 = arith.constant 0 : index
    %c0_1 = arith.constant 0 : index
    %3 = vector.load %arg8[%c0, %c0_1] : memref<32x128xf32, #tpu.memory_space<vmem>>, vector<32x128xf32>
    %c0_2 = arith.constant 0 : index
    %c0_3 = arith.constant 0 : index
    %4 = vector.load %arg3[%c0_2, %c0_3] : memref<32x384xbf16, #tpu.memory_space<vmem>>, vector<32x384xbf16>
    %c0_4 = arith.constant 0 : index
    %c0_5 = arith.constant 0 : index
    %5 = vector.load %arg4[%c0_4, %c0_5] : memref<384x128xbf16, #tpu.memory_space<vmem>>, vector<384x128xbf16>
    %cst = arith.constant dense<0.000000e+00> : vector<32x128xf32>
    %6 = tpu.matmul %4, %5, %cst {dimension_numbers = #tpu.dot_dimension_numbers<[1], [0], [0], [1], [0, 0, 1, 1], [], []>} : vector<32x384xbf16>, vector<384x128xbf16>, vector<32x128xf32> -> vector<32x128xf32>
    %7 = arith.addf %3, %6 : vector<32x128xf32>
    %c0_6 = arith.constant 0 : index
    %c0_7 = arith.constant 0 : index
    %8 = vector.load %arg8[%c0_6, %c0_7] : memref<32x128xf32, #tpu.memory_space<vmem>>, vector<32x128xf32>
    tpu.vector_store %arg8[%c0_6, %c0_7], %7 {strides = array<i32>} : memref<32x128xf32, #tpu.memory_space<vmem>>, vector<32x128xf32>,
    %c0_i32_8 = arith.constant 0 : i32
    %9 = arith.cmpi eq, %arg2, %c0_i32_8 : i32
    %10 = arith.extui %9 : i1 to i32
    %c0_i32_9 = arith.constant 0 : i32
    %11 = arith.cmpi ne, %10, %c0_i32_9 : i32
    scf.if %11 {
      %c0_10 = arith.constant 0 : index
      %c0_11 = arith.constant 0 : index
      %12 = vector.load %arg8[%c0_10, %c0_11] : memref<32x128xf32, #tpu.memory_space<vmem>>, vector<32x128xf32>
      %c0_12 = arith.constant 0 : index
      %c0_13 = arith.constant 0 : index
      %13 = vector.load %arg5[%c0_12, %c0_13] : memref<1x128xf32, #tpu.memory_space<vmem>>, vector<1x128xf32>
      %14 = vector.broadcast %13 : vector<1x128xf32> to vector<32x128xf32>
      %15 = arith.addf %12, %14 : vector<32x128xf32>
      %c0_14 = arith.constant 0 : index
      %c0_15 = arith.constant 0 : index
      %16 = vector.load %arg6[%c0_14, %c0_15] : memref<32x128xbf16, #tpu.memory_space<vmem>>, vector<32x128xbf16>
      %17 = arith.extf %16 : vector<32x128xbf16> to vector<32x128xf32>
      %18 = arith.addf %15, %17 : vector<32x128xf32>
      %cst_16 = arith.constant 0.000000e+00 : f32
      %19 = vector.broadcast %cst_16 : f32 to vector<32x128xf32>
      %20 = arith.maximumf %18, %19 : vector<32x128xf32>
      %21 = arith.truncf %20 : vector<32x128xf32> to vector<32x128xbf16>
      %c0_17 = arith.constant 0 : index
      %c0_18 = arith.constant 0 : index
      %22 = vector.load %arg7[%c0_17, %c0_18] : memref<32x128xbf16, #tpu.memory_space<vmem>>, vector<32x128xbf16>
      tpu.vector_store %arg7[%c0_17, %c0_18], %21 {strides = array<i32>} : memref<32x128xbf16, #tpu.memory_space<vmem>>, vector<32x128xbf16>,
    } else {
    }
    return
  }
  func.func @transform_0(%arg0: i32, %arg1: i32, %arg2: i32) -> (i32, i32) {
    %c0_i32 = arith.constant 0 : i32
    return %arg0, %arg2 : i32, i32
  }
  func.func @transform_1(%arg0: i32, %arg1: i32, %arg2: i32) -> (i32, i32) {
    %c0_i32 = arith.constant 0 : i32
    return %arg2, %arg1 : i32, i32
  }
  func.func @transform_2(%arg0: i32, %arg1: i32, %arg2: i32) -> (i32, i32) {
    %c0_i32 = arith.constant 0 : i32
    %c0_i32_0 = arith.constant 0 : i32
    return %c0_i32, %arg1 : i32, i32
  }
  func.func @transform_3(%arg0: i32, %arg1: i32, %arg2: i32) -> (i32, i32) {
    %c0_i32 = arith.constant 0 : i32
    return %arg0, %arg1 : i32, i32
  }
  func.func @transform_4(%arg0: i32, %arg1: i32, %arg2: i32) -> (i32, i32) {
    %c0_i32 = arith.constant 0 : i32
    return %arg0, %arg1 : i32, i32
  }
}

module attributes {stable_mosaic.version = 11 : i64} {
  func.func @_mm_bias_kernel(%arg0: i32, %arg1: i32, %arg2: i32, %arg3: memref<16x128xbf16, #tpu.memory_space<vmem>>, %arg4: memref<128x256xbf16, #tpu.memory_space<vmem>>, %arg5: memref<1x256xf32, #tpu.memory_space<vmem>>, %arg6: memref<16x256xbf16, #tpu.memory_space<vmem>>, %arg7: memref<16x256xf32, #tpu.memory_space<vmem>>) attributes {dimension_semantics = [#tpu.dimension_semantics<parallel>, #tpu.dimension_semantics<parallel>, #tpu.dimension_semantics<arbitrary>], iteration_bounds = array<i64: 1, 1, 1>, scalar_prefetch = 0 : i64, scratch_operands = 1 : i64, tpu.core_type = #tpu.core_type<tc>, window_params = [{transform_indices = @transform_0, window_bounds = array<i64: 16, 128>}, {transform_indices = @transform_1, window_bounds = array<i64: 128, 256>}, {transform_indices = @transform_2, window_bounds = array<i64: 1, 256>}, {transform_indices = @transform_3, window_bounds = array<i64: 16, 256>}]} {
    %c0_i32 = arith.constant 0 : i32
    %0 = arith.cmpi eq, %arg2, %c0_i32 : i32
    %1 = arith.extui %0 : i1 to i32
    %c0_i32_0 = arith.constant 0 : i32
    %2 = arith.cmpi ne, %1, %c0_i32_0 : i32
    scf.if %2 {
      %cst_10 = arith.constant 0.000000e+00 : f32
      %12 = vector.broadcast %cst_10 : f32 to vector<16x256xf32>
      %c0_11 = arith.constant 0 : index
      %c0_12 = arith.constant 0 : index
      %13 = vector.load %arg7[%c0_11, %c0_12] : memref<16x256xf32, #tpu.memory_space<vmem>>, vector<16x256xf32>
      tpu.vector_store %arg7[%c0_11, %c0_12], %12 {strides = array<i32>} : memref<16x256xf32, #tpu.memory_space<vmem>>, vector<16x256xf32>,
    } else {
    }
    %c0 = arith.constant 0 : index
    %c0_1 = arith.constant 0 : index
    %3 = vector.load %arg7[%c0, %c0_1] : memref<16x256xf32, #tpu.memory_space<vmem>>, vector<16x256xf32>
    %c0_2 = arith.constant 0 : index
    %c0_3 = arith.constant 0 : index
    %4 = vector.load %arg3[%c0_2, %c0_3] : memref<16x128xbf16, #tpu.memory_space<vmem>>, vector<16x128xbf16>
    %c0_4 = arith.constant 0 : index
    %c0_5 = arith.constant 0 : index
    %5 = vector.load %arg4[%c0_4, %c0_5] : memref<128x256xbf16, #tpu.memory_space<vmem>>, vector<128x256xbf16>
    %cst = arith.constant dense<0.000000e+00> : vector<16x256xf32>
    %6 = tpu.matmul %4, %5, %cst {dimension_numbers = #tpu.dot_dimension_numbers<[1], [0], [0], [1], [0, 0, 1, 1], [], []>} : vector<16x128xbf16>, vector<128x256xbf16>, vector<16x256xf32> -> vector<16x256xf32>
    %7 = arith.addf %3, %6 : vector<16x256xf32>
    %c0_6 = arith.constant 0 : index
    %c0_7 = arith.constant 0 : index
    %8 = vector.load %arg7[%c0_6, %c0_7] : memref<16x256xf32, #tpu.memory_space<vmem>>, vector<16x256xf32>
    tpu.vector_store %arg7[%c0_6, %c0_7], %7 {strides = array<i32>} : memref<16x256xf32, #tpu.memory_space<vmem>>, vector<16x256xf32>,
    %c0_i32_8 = arith.constant 0 : i32
    %9 = arith.cmpi eq, %arg2, %c0_i32_8 : i32
    %10 = arith.extui %9 : i1 to i32
    %c0_i32_9 = arith.constant 0 : i32
    %11 = arith.cmpi ne, %10, %c0_i32_9 : i32
    scf.if %11 {
      %c0_10 = arith.constant 0 : index
      %c0_11 = arith.constant 0 : index
      %12 = vector.load %arg7[%c0_10, %c0_11] : memref<16x256xf32, #tpu.memory_space<vmem>>, vector<16x256xf32>
      %c0_12 = arith.constant 0 : index
      %c0_13 = arith.constant 0 : index
      %13 = vector.load %arg5[%c0_12, %c0_13] : memref<1x256xf32, #tpu.memory_space<vmem>>, vector<1x256xf32>
      %14 = vector.broadcast %13 : vector<1x256xf32> to vector<16x256xf32>
      %15 = arith.addf %12, %14 : vector<16x256xf32>
      %16 = arith.truncf %15 : vector<16x256xf32> to vector<16x256xbf16>
      %c0_14 = arith.constant 0 : index
      %c0_15 = arith.constant 0 : index
      %17 = vector.load %arg6[%c0_14, %c0_15] : memref<16x256xbf16, #tpu.memory_space<vmem>>, vector<16x256xbf16>
      tpu.vector_store %arg6[%c0_14, %c0_15], %16 {strides = array<i32>} : memref<16x256xbf16, #tpu.memory_space<vmem>>, vector<16x256xbf16>,
    } else {
    }
    return
  }
  func.func @transform_0(%arg0: i32, %arg1: i32, %arg2: i32) -> (i32, i32) {
    %c0_i32 = arith.constant 0 : i32
    return %arg0, %arg2 : i32, i32
  }
  func.func @transform_1(%arg0: i32, %arg1: i32, %arg2: i32) -> (i32, i32) {
    %c0_i32 = arith.constant 0 : i32
    return %arg2, %arg1 : i32, i32
  }
  func.func @transform_2(%arg0: i32, %arg1: i32, %arg2: i32) -> (i32, i32) {
    %c0_i32 = arith.constant 0 : i32
    %c0_i32_0 = arith.constant 0 : i32
    return %c0_i32, %arg1 : i32, i32
  }
  func.func @transform_3(%arg0: i32, %arg1: i32, %arg2: i32) -> (i32, i32) {
    %c0_i32 = arith.constant 0 : i32
    return %arg0, %arg1 : i32, i32
  }
}

module attributes {stable_mosaic.version = 11 : i64} {
  func.func @_mm_bias_kernel(%arg0: i32, %arg1: i32, %arg2: i32, %arg3: memref<16x384xbf16, #tpu.memory_space<vmem>>, %arg4: memref<384x256xbf16, #tpu.memory_space<vmem>>, %arg5: memref<1x256xf32, #tpu.memory_space<vmem>>, %arg6: memref<16x256xbf16, #tpu.memory_space<vmem>>, %arg7: memref<16x256xf32, #tpu.memory_space<vmem>>) attributes {dimension_semantics = [#tpu.dimension_semantics<parallel>, #tpu.dimension_semantics<parallel>, #tpu.dimension_semantics<arbitrary>], iteration_bounds = array<i64: 1, 1, 1>, scalar_prefetch = 0 : i64, scratch_operands = 1 : i64, tpu.core_type = #tpu.core_type<tc>, window_params = [{transform_indices = @transform_0, window_bounds = array<i64: 16, 384>}, {transform_indices = @transform_1, window_bounds = array<i64: 384, 256>}, {transform_indices = @transform_2, window_bounds = array<i64: 1, 256>}, {transform_indices = @transform_3, window_bounds = array<i64: 16, 256>}]} {
    %c0_i32 = arith.constant 0 : i32
    %0 = arith.cmpi eq, %arg2, %c0_i32 : i32
    %1 = arith.extui %0 : i1 to i32
    %c0_i32_0 = arith.constant 0 : i32
    %2 = arith.cmpi ne, %1, %c0_i32_0 : i32
    scf.if %2 {
      %cst_10 = arith.constant 0.000000e+00 : f32
      %12 = vector.broadcast %cst_10 : f32 to vector<16x256xf32>
      %c0_11 = arith.constant 0 : index
      %c0_12 = arith.constant 0 : index
      %13 = vector.load %arg7[%c0_11, %c0_12] : memref<16x256xf32, #tpu.memory_space<vmem>>, vector<16x256xf32>
      tpu.vector_store %arg7[%c0_11, %c0_12], %12 {strides = array<i32>} : memref<16x256xf32, #tpu.memory_space<vmem>>, vector<16x256xf32>,
    } else {
    }
    %c0 = arith.constant 0 : index
    %c0_1 = arith.constant 0 : index
    %3 = vector.load %arg7[%c0, %c0_1] : memref<16x256xf32, #tpu.memory_space<vmem>>, vector<16x256xf32>
    %c0_2 = arith.constant 0 : index
    %c0_3 = arith.constant 0 : index
    %4 = vector.load %arg3[%c0_2, %c0_3] : memref<16x384xbf16, #tpu.memory_space<vmem>>, vector<16x384xbf16>
    %c0_4 = arith.constant 0 : index
    %c0_5 = arith.constant 0 : index
    %5 = vector.load %arg4[%c0_4, %c0_5] : memref<384x256xbf16, #tpu.memory_space<vmem>>, vector<384x256xbf16>
    %cst = arith.constant dense<0.000000e+00> : vector<16x256xf32>
    %6 = tpu.matmul %4, %5, %cst {dimension_numbers = #tpu.dot_dimension_numbers<[1], [0], [0], [1], [0, 0, 1, 1], [], []>} : vector<16x384xbf16>, vector<384x256xbf16>, vector<16x256xf32> -> vector<16x256xf32>
    %7 = arith.addf %3, %6 : vector<16x256xf32>
    %c0_6 = arith.constant 0 : index
    %c0_7 = arith.constant 0 : index
    %8 = vector.load %arg7[%c0_6, %c0_7] : memref<16x256xf32, #tpu.memory_space<vmem>>, vector<16x256xf32>
    tpu.vector_store %arg7[%c0_6, %c0_7], %7 {strides = array<i32>} : memref<16x256xf32, #tpu.memory_space<vmem>>, vector<16x256xf32>,
    %c0_i32_8 = arith.constant 0 : i32
    %9 = arith.cmpi eq, %arg2, %c0_i32_8 : i32
    %10 = arith.extui %9 : i1 to i32
    %c0_i32_9 = arith.constant 0 : i32
    %11 = arith.cmpi ne, %10, %c0_i32_9 : i32
    scf.if %11 {
      %c0_10 = arith.constant 0 : index
      %c0_11 = arith.constant 0 : index
      %12 = vector.load %arg7[%c0_10, %c0_11] : memref<16x256xf32, #tpu.memory_space<vmem>>, vector<16x256xf32>
      %c0_12 = arith.constant 0 : index
      %c0_13 = arith.constant 0 : index
      %13 = vector.load %arg5[%c0_12, %c0_13] : memref<1x256xf32, #tpu.memory_space<vmem>>, vector<1x256xf32>
      %14 = vector.broadcast %13 : vector<1x256xf32> to vector<16x256xf32>
      %15 = arith.addf %12, %14 : vector<16x256xf32>
      %cst_14 = arith.constant 0.000000e+00 : f32
      %16 = vector.broadcast %cst_14 : f32 to vector<16x256xf32>
      %17 = arith.maximumf %15, %16 : vector<16x256xf32>
      %18 = arith.truncf %17 : vector<16x256xf32> to vector<16x256xbf16>
      %c0_15 = arith.constant 0 : index
      %c0_16 = arith.constant 0 : index
      %19 = vector.load %arg6[%c0_15, %c0_16] : memref<16x256xbf16, #tpu.memory_space<vmem>>, vector<16x256xbf16>
      tpu.vector_store %arg6[%c0_15, %c0_16], %18 {strides = array<i32>} : memref<16x256xbf16, #tpu.memory_space<vmem>>, vector<16x256xbf16>,
    } else {
    }
    return
  }
  func.func @transform_0(%arg0: i32, %arg1: i32, %arg2: i32) -> (i32, i32) {
    %c0_i32 = arith.constant 0 : i32
    return %arg0, %arg2 : i32, i32
  }
  func.func @transform_1(%arg0: i32, %arg1: i32, %arg2: i32) -> (i32, i32) {
    %c0_i32 = arith.constant 0 : i32
    return %arg2, %arg1 : i32, i32
  }
  func.func @transform_2(%arg0: i32, %arg1: i32, %arg2: i32) -> (i32, i32) {
    %c0_i32 = arith.constant 0 : i32
    %c0_i32_0 = arith.constant 0 : i32
    return %c0_i32, %arg1 : i32, i32
  }
  func.func @transform_3(%arg0: i32, %arg1: i32, %arg2: i32) -> (i32, i32) {
    %c0_i32 = arith.constant 0 : i32
    return %arg0, %arg1 : i32, i32
  }
}

module attributes {stable_mosaic.version = 11 : i64} {
  func.func @_mm_bias_res_relu_kernel(%arg0: i32, %arg1: i32, %arg2: i32, %arg3: memref<16x384xbf16, #tpu.memory_space<vmem>>, %arg4: memref<384x256xbf16, #tpu.memory_space<vmem>>, %arg5: memref<1x256xf32, #tpu.memory_space<vmem>>, %arg6: memref<16x256xbf16, #tpu.memory_space<vmem>>, %arg7: memref<16x256xbf16, #tpu.memory_space<vmem>>, %arg8: memref<16x256xf32, #tpu.memory_space<vmem>>) attributes {dimension_semantics = [#tpu.dimension_semantics<parallel>, #tpu.dimension_semantics<parallel>, #tpu.dimension_semantics<arbitrary>], iteration_bounds = array<i64: 1, 1, 2>, scalar_prefetch = 0 : i64, scratch_operands = 1 : i64, tpu.core_type = #tpu.core_type<tc>, window_params = [{transform_indices = @transform_0, window_bounds = array<i64: 16, 384>}, {transform_indices = @transform_1, window_bounds = array<i64: 384, 256>}, {transform_indices = @transform_2, window_bounds = array<i64: 1, 256>}, {transform_indices = @transform_3, window_bounds = array<i64: 16, 256>}, {transform_indices = @transform_4, window_bounds = array<i64: 16, 256>}]} {
    %c0_i32 = arith.constant 0 : i32
    %0 = arith.cmpi eq, %arg2, %c0_i32 : i32
    %1 = arith.extui %0 : i1 to i32
    %c0_i32_0 = arith.constant 0 : i32
    %2 = arith.cmpi ne, %1, %c0_i32_0 : i32
    scf.if %2 {
      %cst_9 = arith.constant 0.000000e+00 : f32
      %12 = vector.broadcast %cst_9 : f32 to vector<16x256xf32>
      %c0_10 = arith.constant 0 : index
      %c0_11 = arith.constant 0 : index
      %13 = vector.load %arg8[%c0_10, %c0_11] : memref<16x256xf32, #tpu.memory_space<vmem>>, vector<16x256xf32>
      tpu.vector_store %arg8[%c0_10, %c0_11], %12 {strides = array<i32>} : memref<16x256xf32, #tpu.memory_space<vmem>>, vector<16x256xf32>,
    } else {
    }
    %c0 = arith.constant 0 : index
    %c0_1 = arith.constant 0 : index
    %3 = vector.load %arg8[%c0, %c0_1] : memref<16x256xf32, #tpu.memory_space<vmem>>, vector<16x256xf32>
    %c0_2 = arith.constant 0 : index
    %c0_3 = arith.constant 0 : index
    %4 = vector.load %arg3[%c0_2, %c0_3] : memref<16x384xbf16, #tpu.memory_space<vmem>>, vector<16x384xbf16>
    %c0_4 = arith.constant 0 : index
    %c0_5 = arith.constant 0 : index
    %5 = vector.load %arg4[%c0_4, %c0_5] : memref<384x256xbf16, #tpu.memory_space<vmem>>, vector<384x256xbf16>
    %cst = arith.constant dense<0.000000e+00> : vector<16x256xf32>
    %6 = tpu.matmul %4, %5, %cst {dimension_numbers = #tpu.dot_dimension_numbers<[1], [0], [0], [1], [0, 0, 1, 1], [], []>} : vector<16x384xbf16>, vector<384x256xbf16>, vector<16x256xf32> -> vector<16x256xf32>
    %7 = arith.addf %3, %6 : vector<16x256xf32>
    %c0_6 = arith.constant 0 : index
    %c0_7 = arith.constant 0 : index
    %8 = vector.load %arg8[%c0_6, %c0_7] : memref<16x256xf32, #tpu.memory_space<vmem>>, vector<16x256xf32>
    tpu.vector_store %arg8[%c0_6, %c0_7], %7 {strides = array<i32>} : memref<16x256xf32, #tpu.memory_space<vmem>>, vector<16x256xf32>,
    %c1_i32 = arith.constant 1 : i32
    %9 = arith.cmpi eq, %arg2, %c1_i32 : i32
    %10 = arith.extui %9 : i1 to i32
    %c0_i32_8 = arith.constant 0 : i32
    %11 = arith.cmpi ne, %10, %c0_i32_8 : i32
    scf.if %11 {
      %c0_9 = arith.constant 0 : index
      %c0_10 = arith.constant 0 : index
      %12 = vector.load %arg8[%c0_9, %c0_10] : memref<16x256xf32, #tpu.memory_space<vmem>>, vector<16x256xf32>
      %c0_11 = arith.constant 0 : index
      %c0_12 = arith.constant 0 : index
      %13 = vector.load %arg5[%c0_11, %c0_12] : memref<1x256xf32, #tpu.memory_space<vmem>>, vector<1x256xf32>
      %14 = vector.broadcast %13 : vector<1x256xf32> to vector<16x256xf32>
      %15 = arith.addf %12, %14 : vector<16x256xf32>
      %c0_13 = arith.constant 0 : index
      %c0_14 = arith.constant 0 : index
      %16 = vector.load %arg6[%c0_13, %c0_14] : memref<16x256xbf16, #tpu.memory_space<vmem>>, vector<16x256xbf16>
      %17 = arith.extf %16 : vector<16x256xbf16> to vector<16x256xf32>
      %18 = arith.addf %15, %17 : vector<16x256xf32>
      %cst_15 = arith.constant 0.000000e+00 : f32
      %19 = vector.broadcast %cst_15 : f32 to vector<16x256xf32>
      %20 = arith.maximumf %18, %19 : vector<16x256xf32>
      %21 = arith.truncf %20 : vector<16x256xf32> to vector<16x256xbf16>
      %c0_16 = arith.constant 0 : index
      %c0_17 = arith.constant 0 : index
      %22 = vector.load %arg7[%c0_16, %c0_17] : memref<16x256xbf16, #tpu.memory_space<vmem>>, vector<16x256xbf16>
      tpu.vector_store %arg7[%c0_16, %c0_17], %21 {strides = array<i32>} : memref<16x256xbf16, #tpu.memory_space<vmem>>, vector<16x256xbf16>,
    } else {
    }
    return
  }
  func.func @transform_0(%arg0: i32, %arg1: i32, %arg2: i32) -> (i32, i32) {
    %c0_i32 = arith.constant 0 : i32
    return %arg0, %arg2 : i32, i32
  }
  func.func @transform_1(%arg0: i32, %arg1: i32, %arg2: i32) -> (i32, i32) {
    %c0_i32 = arith.constant 0 : i32
    return %arg2, %arg1 : i32, i32
  }
  func.func @transform_2(%arg0: i32, %arg1: i32, %arg2: i32) -> (i32, i32) {
    %c0_i32 = arith.constant 0 : i32
    %c0_i32_0 = arith.constant 0 : i32
    return %c0_i32, %arg1 : i32, i32
  }
  func.func @transform_3(%arg0: i32, %arg1: i32, %arg2: i32) -> (i32, i32) {
    %c0_i32 = arith.constant 0 : i32
    return %arg0, %arg1 : i32, i32
  }
  func.func @transform_4(%arg0: i32, %arg1: i32, %arg2: i32) -> (i32, i32) {
    %c0_i32 = arith.constant 0 : i32
    return %arg0, %arg1 : i32, i32
  }
}

module attributes {stable_mosaic.version = 11 : i64} {
  func.func @_mm_bias_kernel(%arg0: i32, %arg1: i32, %arg2: i32, %arg3: memref<8x256xbf16, #tpu.memory_space<vmem>>, %arg4: memref<256x256xbf16, #tpu.memory_space<vmem>>, %arg5: memref<1x256xf32, #tpu.memory_space<vmem>>, %arg6: memref<8x256xbf16, #tpu.memory_space<vmem>>, %arg7: memref<8x256xf32, #tpu.memory_space<vmem>>) attributes {dimension_semantics = [#tpu.dimension_semantics<parallel>, #tpu.dimension_semantics<parallel>, #tpu.dimension_semantics<arbitrary>], iteration_bounds = array<i64: 1, 2, 1>, scalar_prefetch = 0 : i64, scratch_operands = 1 : i64, tpu.core_type = #tpu.core_type<tc>, window_params = [{transform_indices = @transform_0, window_bounds = array<i64: 8, 256>}, {transform_indices = @transform_1, window_bounds = array<i64: 256, 256>}, {transform_indices = @transform_2, window_bounds = array<i64: 1, 256>}, {transform_indices = @transform_3, window_bounds = array<i64: 8, 256>}]} {
    %c0_i32 = arith.constant 0 : i32
    %0 = arith.cmpi eq, %arg2, %c0_i32 : i32
    %1 = arith.extui %0 : i1 to i32
    %c0_i32_0 = arith.constant 0 : i32
    %2 = arith.cmpi ne, %1, %c0_i32_0 : i32
    scf.if %2 {
      %cst_10 = arith.constant 0.000000e+00 : f32
      %12 = vector.broadcast %cst_10 : f32 to vector<8x256xf32>
      %c0_11 = arith.constant 0 : index
      %c0_12 = arith.constant 0 : index
      %13 = vector.load %arg7[%c0_11, %c0_12] : memref<8x256xf32, #tpu.memory_space<vmem>>, vector<8x256xf32>
      tpu.vector_store %arg7[%c0_11, %c0_12], %12 {strides = array<i32>} : memref<8x256xf32, #tpu.memory_space<vmem>>, vector<8x256xf32>,
    } else {
    }
    %c0 = arith.constant 0 : index
    %c0_1 = arith.constant 0 : index
    %3 = vector.load %arg7[%c0, %c0_1] : memref<8x256xf32, #tpu.memory_space<vmem>>, vector<8x256xf32>
    %c0_2 = arith.constant 0 : index
    %c0_3 = arith.constant 0 : index
    %4 = vector.load %arg3[%c0_2, %c0_3] : memref<8x256xbf16, #tpu.memory_space<vmem>>, vector<8x256xbf16>
    %c0_4 = arith.constant 0 : index
    %c0_5 = arith.constant 0 : index
    %5 = vector.load %arg4[%c0_4, %c0_5] : memref<256x256xbf16, #tpu.memory_space<vmem>>, vector<256x256xbf16>
    %cst = arith.constant dense<0.000000e+00> : vector<8x256xf32>
    %6 = tpu.matmul %4, %5, %cst {dimension_numbers = #tpu.dot_dimension_numbers<[1], [0], [0], [1], [0, 0, 1, 1], [], []>} : vector<8x256xbf16>, vector<256x256xbf16>, vector<8x256xf32> -> vector<8x256xf32>
    %7 = arith.addf %3, %6 : vector<8x256xf32>
    %c0_6 = arith.constant 0 : index
    %c0_7 = arith.constant 0 : index
    %8 = vector.load %arg7[%c0_6, %c0_7] : memref<8x256xf32, #tpu.memory_space<vmem>>, vector<8x256xf32>
    tpu.vector_store %arg7[%c0_6, %c0_7], %7 {strides = array<i32>} : memref<8x256xf32, #tpu.memory_space<vmem>>, vector<8x256xf32>,
    %c0_i32_8 = arith.constant 0 : i32
    %9 = arith.cmpi eq, %arg2, %c0_i32_8 : i32
    %10 = arith.extui %9 : i1 to i32
    %c0_i32_9 = arith.constant 0 : i32
    %11 = arith.cmpi ne, %10, %c0_i32_9 : i32
    scf.if %11 {
      %c0_10 = arith.constant 0 : index
      %c0_11 = arith.constant 0 : index
      %12 = vector.load %arg7[%c0_10, %c0_11] : memref<8x256xf32, #tpu.memory_space<vmem>>, vector<8x256xf32>
      %c0_12 = arith.constant 0 : index
      %c0_13 = arith.constant 0 : index
      %13 = vector.load %arg5[%c0_12, %c0_13] : memref<1x256xf32, #tpu.memory_space<vmem>>, vector<1x256xf32>
      %14 = vector.broadcast %13 : vector<1x256xf32> to vector<8x256xf32>
      %15 = arith.addf %12, %14 : vector<8x256xf32>
      %16 = arith.truncf %15 : vector<8x256xf32> to vector<8x256xbf16>
      %c0_14 = arith.constant 0 : index
      %c0_15 = arith.constant 0 : index
      %17 = vector.load %arg6[%c0_14, %c0_15] : memref<8x256xbf16, #tpu.memory_space<vmem>>, vector<8x256xbf16>
      tpu.vector_store %arg6[%c0_14, %c0_15], %16 {strides = array<i32>} : memref<8x256xbf16, #tpu.memory_space<vmem>>, vector<8x256xbf16>,
    } else {
    }
    return
  }
  func.func @transform_0(%arg0: i32, %arg1: i32, %arg2: i32) -> (i32, i32) {
    %c0_i32 = arith.constant 0 : i32
    return %arg0, %arg2 : i32, i32
  }
  func.func @transform_1(%arg0: i32, %arg1: i32, %arg2: i32) -> (i32, i32) {
    %c0_i32 = arith.constant 0 : i32
    return %arg2, %arg1 : i32, i32
  }
  func.func @transform_2(%arg0: i32, %arg1: i32, %arg2: i32) -> (i32, i32) {
    %c0_i32 = arith.constant 0 : i32
    %c0_i32_0 = arith.constant 0 : i32
    return %c0_i32, %arg1 : i32, i32
  }
  func.func @transform_3(%arg0: i32, %arg1: i32, %arg2: i32) -> (i32, i32) {
    %c0_i32 = arith.constant 0 : i32
    return %arg0, %arg1 : i32, i32
  }
}

module attributes {stable_mosaic.version = 11 : i64} {
  func.func @_mm_bias_kernel(%arg0: i32, %arg1: i32, %arg2: i32, %arg3: memref<8x384xbf16, #tpu.memory_space<vmem>>, %arg4: memref<384x256xbf16, #tpu.memory_space<vmem>>, %arg5: memref<1x256xf32, #tpu.memory_space<vmem>>, %arg6: memref<8x256xbf16, #tpu.memory_space<vmem>>, %arg7: memref<8x256xf32, #tpu.memory_space<vmem>>) attributes {dimension_semantics = [#tpu.dimension_semantics<parallel>, #tpu.dimension_semantics<parallel>, #tpu.dimension_semantics<arbitrary>], iteration_bounds = array<i64: 1, 2, 2>, scalar_prefetch = 0 : i64, scratch_operands = 1 : i64, tpu.core_type = #tpu.core_type<tc>, window_params = [{transform_indices = @transform_0, window_bounds = array<i64: 8, 384>}, {transform_indices = @transform_1, window_bounds = array<i64: 384, 256>}, {transform_indices = @transform_2, window_bounds = array<i64: 1, 256>}, {transform_indices = @transform_3, window_bounds = array<i64: 8, 256>}]} {
    %c0_i32 = arith.constant 0 : i32
    %0 = arith.cmpi eq, %arg2, %c0_i32 : i32
    %1 = arith.extui %0 : i1 to i32
    %c0_i32_0 = arith.constant 0 : i32
    %2 = arith.cmpi ne, %1, %c0_i32_0 : i32
    scf.if %2 {
      %cst_9 = arith.constant 0.000000e+00 : f32
      %12 = vector.broadcast %cst_9 : f32 to vector<8x256xf32>
      %c0_10 = arith.constant 0 : index
      %c0_11 = arith.constant 0 : index
      %13 = vector.load %arg7[%c0_10, %c0_11] : memref<8x256xf32, #tpu.memory_space<vmem>>, vector<8x256xf32>
      tpu.vector_store %arg7[%c0_10, %c0_11], %12 {strides = array<i32>} : memref<8x256xf32, #tpu.memory_space<vmem>>, vector<8x256xf32>,
    } else {
    }
    %c0 = arith.constant 0 : index
    %c0_1 = arith.constant 0 : index
    %3 = vector.load %arg7[%c0, %c0_1] : memref<8x256xf32, #tpu.memory_space<vmem>>, vector<8x256xf32>
    %c0_2 = arith.constant 0 : index
    %c0_3 = arith.constant 0 : index
    %4 = vector.load %arg3[%c0_2, %c0_3] : memref<8x384xbf16, #tpu.memory_space<vmem>>, vector<8x384xbf16>
    %c0_4 = arith.constant 0 : index
    %c0_5 = arith.constant 0 : index
    %5 = vector.load %arg4[%c0_4, %c0_5] : memref<384x256xbf16, #tpu.memory_space<vmem>>, vector<384x256xbf16>
    %cst = arith.constant dense<0.000000e+00> : vector<8x256xf32>
    %6 = tpu.matmul %4, %5, %cst {dimension_numbers = #tpu.dot_dimension_numbers<[1], [0], [0], [1], [0, 0, 1, 1], [], []>} : vector<8x384xbf16>, vector<384x256xbf16>, vector<8x256xf32> -> vector<8x256xf32>
    %7 = arith.addf %3, %6 : vector<8x256xf32>
    %c0_6 = arith.constant 0 : index
    %c0_7 = arith.constant 0 : index
    %8 = vector.load %arg7[%c0_6, %c0_7] : memref<8x256xf32, #tpu.memory_space<vmem>>, vector<8x256xf32>
    tpu.vector_store %arg7[%c0_6, %c0_7], %7 {strides = array<i32>} : memref<8x256xf32, #tpu.memory_space<vmem>>, vector<8x256xf32>,
    %c1_i32 = arith.constant 1 : i32
    %9 = arith.cmpi eq, %arg2, %c1_i32 : i32
    %10 = arith.extui %9 : i1 to i32
    %c0_i32_8 = arith.constant 0 : i32
    %11 = arith.cmpi ne, %10, %c0_i32_8 : i32
    scf.if %11 {
      %c0_9 = arith.constant 0 : index
      %c0_10 = arith.constant 0 : index
      %12 = vector.load %arg7[%c0_9, %c0_10] : memref<8x256xf32, #tpu.memory_space<vmem>>, vector<8x256xf32>
      %c0_11 = arith.constant 0 : index
      %c0_12 = arith.constant 0 : index
      %13 = vector.load %arg5[%c0_11, %c0_12] : memref<1x256xf32, #tpu.memory_space<vmem>>, vector<1x256xf32>
      %14 = vector.broadcast %13 : vector<1x256xf32> to vector<8x256xf32>
      %15 = arith.addf %12, %14 : vector<8x256xf32>
      %cst_13 = arith.constant 0.000000e+00 : f32
      %16 = vector.broadcast %cst_13 : f32 to vector<8x256xf32>
      %17 = arith.maximumf %15, %16 : vector<8x256xf32>
      %18 = arith.truncf %17 : vector<8x256xf32> to vector<8x256xbf16>
      %c0_14 = arith.constant 0 : index
      %c0_15 = arith.constant 0 : index
      %19 = vector.load %arg6[%c0_14, %c0_15] : memref<8x256xbf16, #tpu.memory_space<vmem>>, vector<8x256xbf16>
      tpu.vector_store %arg6[%c0_14, %c0_15], %18 {strides = array<i32>} : memref<8x256xbf16, #tpu.memory_space<vmem>>, vector<8x256xbf16>,
    } else {
    }
    return
  }
  func.func @transform_0(%arg0: i32, %arg1: i32, %arg2: i32) -> (i32, i32) {
    %c0_i32 = arith.constant 0 : i32
    return %arg0, %arg2 : i32, i32
  }
  func.func @transform_1(%arg0: i32, %arg1: i32, %arg2: i32) -> (i32, i32) {
    %c0_i32 = arith.constant 0 : i32
    return %arg2, %arg1 : i32, i32
  }
  func.func @transform_2(%arg0: i32, %arg1: i32, %arg2: i32) -> (i32, i32) {
    %c0_i32 = arith.constant 0 : i32
    %c0_i32_0 = arith.constant 0 : i32
    return %c0_i32, %arg1 : i32, i32
  }
  func.func @transform_3(%arg0: i32, %arg1: i32, %arg2: i32) -> (i32, i32) {
    %c0_i32 = arith.constant 0 : i32
    return %arg0, %arg1 : i32, i32
  }
}

module attributes {stable_mosaic.version = 11 : i64} {
  func.func @_mm_bias_res_relu_kernel(%arg0: i32, %arg1: i32, %arg2: i32, %arg3: memref<8x512xbf16, #tpu.memory_space<vmem>>, %arg4: memref<512x256xbf16, #tpu.memory_space<vmem>>, %arg5: memref<1x256xf32, #tpu.memory_space<vmem>>, %arg6: memref<8x256xbf16, #tpu.memory_space<vmem>>, %arg7: memref<8x256xbf16, #tpu.memory_space<vmem>>, %arg8: memref<8x256xf32, #tpu.memory_space<vmem>>) attributes {dimension_semantics = [#tpu.dimension_semantics<parallel>, #tpu.dimension_semantics<parallel>, #tpu.dimension_semantics<arbitrary>], iteration_bounds = array<i64: 1, 2, 3>, scalar_prefetch = 0 : i64, scratch_operands = 1 : i64, tpu.core_type = #tpu.core_type<tc>, window_params = [{transform_indices = @transform_0, window_bounds = array<i64: 8, 512>}, {transform_indices = @transform_1, window_bounds = array<i64: 512, 256>}, {transform_indices = @transform_2, window_bounds = array<i64: 1, 256>}, {transform_indices = @transform_3, window_bounds = array<i64: 8, 256>}, {transform_indices = @transform_4, window_bounds = array<i64: 8, 256>}]} {
    %c0_i32 = arith.constant 0 : i32
    %0 = arith.cmpi eq, %arg2, %c0_i32 : i32
    %1 = arith.extui %0 : i1 to i32
    %c0_i32_0 = arith.constant 0 : i32
    %2 = arith.cmpi ne, %1, %c0_i32_0 : i32
    scf.if %2 {
      %cst_9 = arith.constant 0.000000e+00 : f32
      %12 = vector.broadcast %cst_9 : f32 to vector<8x256xf32>
      %c0_10 = arith.constant 0 : index
      %c0_11 = arith.constant 0 : index
      %13 = vector.load %arg8[%c0_10, %c0_11] : memref<8x256xf32, #tpu.memory_space<vmem>>, vector<8x256xf32>
      tpu.vector_store %arg8[%c0_10, %c0_11], %12 {strides = array<i32>} : memref<8x256xf32, #tpu.memory_space<vmem>>, vector<8x256xf32>,
    } else {
    }
    %c0 = arith.constant 0 : index
    %c0_1 = arith.constant 0 : index
    %3 = vector.load %arg8[%c0, %c0_1] : memref<8x256xf32, #tpu.memory_space<vmem>>, vector<8x256xf32>
    %c0_2 = arith.constant 0 : index
    %c0_3 = arith.constant 0 : index
    %4 = vector.load %arg3[%c0_2, %c0_3] : memref<8x512xbf16, #tpu.memory_space<vmem>>, vector<8x512xbf16>
    %c0_4 = arith.constant 0 : index
    %c0_5 = arith.constant 0 : index
    %5 = vector.load %arg4[%c0_4, %c0_5] : memref<512x256xbf16, #tpu.memory_space<vmem>>, vector<512x256xbf16>
    %cst = arith.constant dense<0.000000e+00> : vector<8x256xf32>
    %6 = tpu.matmul %4, %5, %cst {dimension_numbers = #tpu.dot_dimension_numbers<[1], [0], [0], [1], [0, 0, 1, 1], [], []>} : vector<8x512xbf16>, vector<512x256xbf16>, vector<8x256xf32> -> vector<8x256xf32>
    %7 = arith.addf %3, %6 : vector<8x256xf32>
    %c0_6 = arith.constant 0 : index
    %c0_7 = arith.constant 0 : index
    %8 = vector.load %arg8[%c0_6, %c0_7] : memref<8x256xf32, #tpu.memory_space<vmem>>, vector<8x256xf32>
    tpu.vector_store %arg8[%c0_6, %c0_7], %7 {strides = array<i32>} : memref<8x256xf32, #tpu.memory_space<vmem>>, vector<8x256xf32>,
    %c2_i32 = arith.constant 2 : i32
    %9 = arith.cmpi eq, %arg2, %c2_i32 : i32
    %10 = arith.extui %9 : i1 to i32
    %c0_i32_8 = arith.constant 0 : i32
    %11 = arith.cmpi ne, %10, %c0_i32_8 : i32
    scf.if %11 {
      %c0_9 = arith.constant 0 : index
      %c0_10 = arith.constant 0 : index
      %12 = vector.load %arg8[%c0_9, %c0_10] : memref<8x256xf32, #tpu.memory_space<vmem>>, vector<8x256xf32>
      %c0_11 = arith.constant 0 : index
      %c0_12 = arith.constant 0 : index
      %13 = vector.load %arg5[%c0_11, %c0_12] : memref<1x256xf32, #tpu.memory_space<vmem>>, vector<1x256xf32>
      %14 = vector.broadcast %13 : vector<1x256xf32> to vector<8x256xf32>
      %15 = arith.addf %12, %14 : vector<8x256xf32>
      %c0_13 = arith.constant 0 : index
      %c0_14 = arith.constant 0 : index
      %16 = vector.load %arg6[%c0_13, %c0_14] : memref<8x256xbf16, #tpu.memory_space<vmem>>, vector<8x256xbf16>
      %17 = arith.extf %16 : vector<8x256xbf16> to vector<8x256xf32>
      %18 = arith.addf %15, %17 : vector<8x256xf32>
      %cst_15 = arith.constant 0.000000e+00 : f32
      %19 = vector.broadcast %cst_15 : f32 to vector<8x256xf32>
      %20 = arith.maximumf %18, %19 : vector<8x256xf32>
      %21 = arith.truncf %20 : vector<8x256xf32> to vector<8x256xbf16>
      %c0_16 = arith.constant 0 : index
      %c0_17 = arith.constant 0 : index
      %22 = vector.load %arg7[%c0_16, %c0_17] : memref<8x256xbf16, #tpu.memory_space<vmem>>, vector<8x256xbf16>
      tpu.vector_store %arg7[%c0_16, %c0_17], %21 {strides = array<i32>} : memref<8x256xbf16, #tpu.memory_space<vmem>>, vector<8x256xbf16>,
    } else {
    }
    return
  }
  func.func @transform_0(%arg0: i32, %arg1: i32, %arg2: i32) -> (i32, i32) {
    %c0_i32 = arith.constant 0 : i32
    return %arg0, %arg2 : i32, i32
  }
  func.func @transform_1(%arg0: i32, %arg1: i32, %arg2: i32) -> (i32, i32) {
    %c0_i32 = arith.constant 0 : i32
    return %arg2, %arg1 : i32, i32
  }
  func.func @transform_2(%arg0: i32, %arg1: i32, %arg2: i32) -> (i32, i32) {
    %c0_i32 = arith.constant 0 : i32
    %c0_i32_0 = arith.constant 0 : i32
    return %c0_i32, %arg1 : i32, i32
  }
  func.func @transform_3(%arg0: i32, %arg1: i32, %arg2: i32) -> (i32, i32) {
    %c0_i32 = arith.constant 0 : i32
    return %arg0, %arg1 : i32, i32
  }
  func.func @transform_4(%arg0: i32, %arg1: i32, %arg2: i32) -> (i32, i32) {
    %c0_i32 = arith.constant 0 : i32
    return %arg0, %arg1 : i32, i32
  }
}

module attributes {stable_mosaic.version = 11 : i64} {
  func.func @_mm_bias_kernel(%arg0: i32, %arg1: i32, %arg2: i32, %arg3: memref<4x512xbf16, #tpu.memory_space<vmem>>, %arg4: memref<512x256xbf16, #tpu.memory_space<vmem>>, %arg5: memref<1x256xf32, #tpu.memory_space<vmem>>, %arg6: memref<4x256xbf16, #tpu.memory_space<vmem>>, %arg7: memref<4x256xf32, #tpu.memory_space<vmem>>) attributes {dimension_semantics = [#tpu.dimension_semantics<parallel>, #tpu.dimension_semantics<parallel>, #tpu.dimension_semantics<arbitrary>], iteration_bounds = array<i64: 1, 4, 1>, scalar_prefetch = 0 : i64, scratch_operands = 1 : i64, tpu.core_type = #tpu.core_type<tc>, window_params = [{transform_indices = @transform_0, window_bounds = array<i64: 4, 512>}, {transform_indices = @transform_1, window_bounds = array<i64: 512, 256>}, {transform_indices = @transform_2, window_bounds = array<i64: 1, 256>}, {transform_indices = @transform_3, window_bounds = array<i64: 4, 256>}]} {
    %c0_i32 = arith.constant 0 : i32
    %0 = arith.cmpi eq, %arg2, %c0_i32 : i32
    %1 = arith.extui %0 : i1 to i32
    %c0_i32_0 = arith.constant 0 : i32
    %2 = arith.cmpi ne, %1, %c0_i32_0 : i32
    scf.if %2 {
      %cst_10 = arith.constant 0.000000e+00 : f32
      %12 = vector.broadcast %cst_10 : f32 to vector<4x256xf32>
      %c0_11 = arith.constant 0 : index
      %c0_12 = arith.constant 0 : index
      %13 = vector.load %arg7[%c0_11, %c0_12] : memref<4x256xf32, #tpu.memory_space<vmem>>, vector<4x256xf32>
      tpu.vector_store %arg7[%c0_11, %c0_12], %12 {strides = array<i32>} : memref<4x256xf32, #tpu.memory_space<vmem>>, vector<4x256xf32>,
    } else {
    }
    %c0 = arith.constant 0 : index
    %c0_1 = arith.constant 0 : index
    %3 = vector.load %arg7[%c0, %c0_1] : memref<4x256xf32, #tpu.memory_space<vmem>>, vector<4x256xf32>
    %c0_2 = arith.constant 0 : index
    %c0_3 = arith.constant 0 : index
    %4 = vector.load %arg3[%c0_2, %c0_3] : memref<4x512xbf16, #tpu.memory_space<vmem>>, vector<4x512xbf16>
    %c0_4 = arith.constant 0 : index
    %c0_5 = arith.constant 0 : index
    %5 = vector.load %arg4[%c0_4, %c0_5] : memref<512x256xbf16, #tpu.memory_space<vmem>>, vector<512x256xbf16>
    %cst = arith.constant dense<0.000000e+00> : vector<4x256xf32>
    %6 = tpu.matmul %4, %5, %cst {dimension_numbers = #tpu.dot_dimension_numbers<[1], [0], [0], [1], [0, 0, 1, 1], [], []>} : vector<4x512xbf16>, vector<512x256xbf16>, vector<4x256xf32> -> vector<4x256xf32>
    %7 = arith.addf %3, %6 : vector<4x256xf32>
    %c0_6 = arith.constant 0 : index
    %c0_7 = arith.constant 0 : index
    %8 = vector.load %arg7[%c0_6, %c0_7] : memref<4x256xf32, #tpu.memory_space<vmem>>, vector<4x256xf32>
    tpu.vector_store %arg7[%c0_6, %c0_7], %7 {strides = array<i32>} : memref<4x256xf32, #tpu.memory_space<vmem>>, vector<4x256xf32>,
    %c0_i32_8 = arith.constant 0 : i32
    %9 = arith.cmpi eq, %arg2, %c0_i32_8 : i32
    %10 = arith.extui %9 : i1 to i32
    %c0_i32_9 = arith.constant 0 : i32
    %11 = arith.cmpi ne, %10, %c0_i32_9 : i32
    scf.if %11 {
      %c0_10 = arith.constant 0 : index
      %c0_11 = arith.constant 0 : index
      %12 = vector.load %arg7[%c0_10, %c0_11] : memref<4x256xf32, #tpu.memory_space<vmem>>, vector<4x256xf32>
      %c0_12 = arith.constant 0 : index
      %c0_13 = arith.constant 0 : index
      %13 = vector.load %arg5[%c0_12, %c0_13] : memref<1x256xf32, #tpu.memory_space<vmem>>, vector<1x256xf32>
      %14 = vector.broadcast %13 : vector<1x256xf32> to vector<4x256xf32>
      %15 = arith.addf %12, %14 : vector<4x256xf32>
      %16 = arith.truncf %15 : vector<4x256xf32> to vector<4x256xbf16>
      %c0_14 = arith.constant 0 : index
      %c0_15 = arith.constant 0 : index
      %17 = vector.load %arg6[%c0_14, %c0_15] : memref<4x256xbf16, #tpu.memory_space<vmem>>, vector<4x256xbf16>
      tpu.vector_store %arg6[%c0_14, %c0_15], %16 {strides = array<i32>} : memref<4x256xbf16, #tpu.memory_space<vmem>>, vector<4x256xbf16>,
    } else {
    }
    return
  }
  func.func @transform_0(%arg0: i32, %arg1: i32, %arg2: i32) -> (i32, i32) {
    %c0_i32 = arith.constant 0 : i32
    return %arg0, %arg2 : i32, i32
  }
  func.func @transform_1(%arg0: i32, %arg1: i32, %arg2: i32) -> (i32, i32) {
    %c0_i32 = arith.constant 0 : i32
    return %arg2, %arg1 : i32, i32
  }
  func.func @transform_2(%arg0: i32, %arg1: i32, %arg2: i32) -> (i32, i32) {
    %c0_i32 = arith.constant 0 : i32
    %c0_i32_0 = arith.constant 0 : i32
    return %c0_i32, %arg1 : i32, i32
  }
  func.func @transform_3(%arg0: i32, %arg1: i32, %arg2: i32) -> (i32, i32) {
    %c0_i32 = arith.constant 0 : i32
    return %arg0, %arg1 : i32, i32
  }
}

module attributes {stable_mosaic.version = 11 : i64} {
  func.func @_mm_bias_kernel(%arg0: i32, %arg1: i32, %arg2: i32, %arg3: memref<4x512xbf16, #tpu.memory_space<vmem>>, %arg4: memref<512x256xbf16, #tpu.memory_space<vmem>>, %arg5: memref<1x256xf32, #tpu.memory_space<vmem>>, %arg6: memref<4x256xbf16, #tpu.memory_space<vmem>>, %arg7: memref<4x256xf32, #tpu.memory_space<vmem>>) attributes {dimension_semantics = [#tpu.dimension_semantics<parallel>, #tpu.dimension_semantics<parallel>, #tpu.dimension_semantics<arbitrary>], iteration_bounds = array<i64: 1, 4, 3>, scalar_prefetch = 0 : i64, scratch_operands = 1 : i64, tpu.core_type = #tpu.core_type<tc>, window_params = [{transform_indices = @transform_0, window_bounds = array<i64: 4, 512>}, {transform_indices = @transform_1, window_bounds = array<i64: 512, 256>}, {transform_indices = @transform_2, window_bounds = array<i64: 1, 256>}, {transform_indices = @transform_3, window_bounds = array<i64: 4, 256>}]} {
    %c0_i32 = arith.constant 0 : i32
    %0 = arith.cmpi eq, %arg2, %c0_i32 : i32
    %1 = arith.extui %0 : i1 to i32
    %c0_i32_0 = arith.constant 0 : i32
    %2 = arith.cmpi ne, %1, %c0_i32_0 : i32
    scf.if %2 {
      %cst_9 = arith.constant 0.000000e+00 : f32
      %12 = vector.broadcast %cst_9 : f32 to vector<4x256xf32>
      %c0_10 = arith.constant 0 : index
      %c0_11 = arith.constant 0 : index
      %13 = vector.load %arg7[%c0_10, %c0_11] : memref<4x256xf32, #tpu.memory_space<vmem>>, vector<4x256xf32>
      tpu.vector_store %arg7[%c0_10, %c0_11], %12 {strides = array<i32>} : memref<4x256xf32, #tpu.memory_space<vmem>>, vector<4x256xf32>,
    } else {
    }
    %c0 = arith.constant 0 : index
    %c0_1 = arith.constant 0 : index
    %3 = vector.load %arg7[%c0, %c0_1] : memref<4x256xf32, #tpu.memory_space<vmem>>, vector<4x256xf32>
    %c0_2 = arith.constant 0 : index
    %c0_3 = arith.constant 0 : index
    %4 = vector.load %arg3[%c0_2, %c0_3] : memref<4x512xbf16, #tpu.memory_space<vmem>>, vector<4x512xbf16>
    %c0_4 = arith.constant 0 : index
    %c0_5 = arith.constant 0 : index
    %5 = vector.load %arg4[%c0_4, %c0_5] : memref<512x256xbf16, #tpu.memory_space<vmem>>, vector<512x256xbf16>
    %cst = arith.constant dense<0.000000e+00> : vector<4x256xf32>
    %6 = tpu.matmul %4, %5, %cst {dimension_numbers = #tpu.dot_dimension_numbers<[1], [0], [0], [1], [0, 0, 1, 1], [], []>} : vector<4x512xbf16>, vector<512x256xbf16>, vector<4x256xf32> -> vector<4x256xf32>
    %7 = arith.addf %3, %6 : vector<4x256xf32>
    %c0_6 = arith.constant 0 : index
    %c0_7 = arith.constant 0 : index
    %8 = vector.load %arg7[%c0_6, %c0_7] : memref<4x256xf32, #tpu.memory_space<vmem>>, vector<4x256xf32>
    tpu.vector_store %arg7[%c0_6, %c0_7], %7 {strides = array<i32>} : memref<4x256xf32, #tpu.memory_space<vmem>>, vector<4x256xf32>,
    %c2_i32 = arith.constant 2 : i32
    %9 = arith.cmpi eq, %arg2, %c2_i32 : i32
    %10 = arith.extui %9 : i1 to i32
    %c0_i32_8 = arith.constant 0 : i32
    %11 = arith.cmpi ne, %10, %c0_i32_8 : i32
    scf.if %11 {
      %c0_9 = arith.constant 0 : index
      %c0_10 = arith.constant 0 : index
      %12 = vector.load %arg7[%c0_9, %c0_10] : memref<4x256xf32, #tpu.memory_space<vmem>>, vector<4x256xf32>
      %c0_11 = arith.constant 0 : index
      %c0_12 = arith.constant 0 : index
      %13 = vector.load %arg5[%c0_11, %c0_12] : memref<1x256xf32, #tpu.memory_space<vmem>>, vector<1x256xf32>
      %14 = vector.broadcast %13 : vector<1x256xf32> to vector<4x256xf32>
      %15 = arith.addf %12, %14 : vector<4x256xf32>
      %cst_13 = arith.constant 0.000000e+00 : f32
      %16 = vector.broadcast %cst_13 : f32 to vector<4x256xf32>
      %17 = arith.maximumf %15, %16 : vector<4x256xf32>
      %18 = arith.truncf %17 : vector<4x256xf32> to vector<4x256xbf16>
      %c0_14 = arith.constant 0 : index
      %c0_15 = arith.constant 0 : index
      %19 = vector.load %arg6[%c0_14, %c0_15] : memref<4x256xbf16, #tpu.memory_space<vmem>>, vector<4x256xbf16>
      tpu.vector_store %arg6[%c0_14, %c0_15], %18 {strides = array<i32>} : memref<4x256xbf16, #tpu.memory_space<vmem>>, vector<4x256xbf16>,
    } else {
    }
    return
  }
  func.func @transform_0(%arg0: i32, %arg1: i32, %arg2: i32) -> (i32, i32) {
    %c0_i32 = arith.constant 0 : i32
    return %arg0, %arg2 : i32, i32
  }
  func.func @transform_1(%arg0: i32, %arg1: i32, %arg2: i32) -> (i32, i32) {
    %c0_i32 = arith.constant 0 : i32
    return %arg2, %arg1 : i32, i32
  }
  func.func @transform_2(%arg0: i32, %arg1: i32, %arg2: i32) -> (i32, i32) {
    %c0_i32 = arith.constant 0 : i32
    %c0_i32_0 = arith.constant 0 : i32
    return %c0_i32, %arg1 : i32, i32
  }
  func.func @transform_3(%arg0: i32, %arg1: i32, %arg2: i32) -> (i32, i32) {
    %c0_i32 = arith.constant 0 : i32
    return %arg0, %arg1 : i32, i32
  }
}

module attributes {stable_mosaic.version = 11 : i64} {
  func.func @_mm_bias_res_relu_kernel(%arg0: i32, %arg1: i32, %arg2: i32, %arg3: memref<4x512xbf16, #tpu.memory_space<vmem>>, %arg4: memref<512x256xbf16, #tpu.memory_space<vmem>>, %arg5: memref<1x256xf32, #tpu.memory_space<vmem>>, %arg6: memref<4x256xbf16, #tpu.memory_space<vmem>>, %arg7: memref<4x256xbf16, #tpu.memory_space<vmem>>, %arg8: memref<4x256xf32, #tpu.memory_space<vmem>>) attributes {dimension_semantics = [#tpu.dimension_semantics<parallel>, #tpu.dimension_semantics<parallel>, #tpu.dimension_semantics<arbitrary>], iteration_bounds = array<i64: 1, 4, 6>, scalar_prefetch = 0 : i64, scratch_operands = 1 : i64, tpu.core_type = #tpu.core_type<tc>, window_params = [{transform_indices = @transform_0, window_bounds = array<i64: 4, 512>}, {transform_indices = @transform_1, window_bounds = array<i64: 512, 256>}, {transform_indices = @transform_2, window_bounds = array<i64: 1, 256>}, {transform_indices = @transform_3, window_bounds = array<i64: 4, 256>}, {transform_indices = @transform_4, window_bounds = array<i64: 4, 256>}]} {
    %c0_i32 = arith.constant 0 : i32
    %0 = arith.cmpi eq, %arg2, %c0_i32 : i32
    %1 = arith.extui %0 : i1 to i32
    %c0_i32_0 = arith.constant 0 : i32
    %2 = arith.cmpi ne, %1, %c0_i32_0 : i32
    scf.if %2 {
      %cst_9 = arith.constant 0.000000e+00 : f32
      %12 = vector.broadcast %cst_9 : f32 to vector<4x256xf32>
      %c0_10 = arith.constant 0 : index
      %c0_11 = arith.constant 0 : index
      %13 = vector.load %arg8[%c0_10, %c0_11] : memref<4x256xf32, #tpu.memory_space<vmem>>, vector<4x256xf32>
      tpu.vector_store %arg8[%c0_10, %c0_11], %12 {strides = array<i32>} : memref<4x256xf32, #tpu.memory_space<vmem>>, vector<4x256xf32>,
    } else {
    }
    %c0 = arith.constant 0 : index
    %c0_1 = arith.constant 0 : index
    %3 = vector.load %arg8[%c0, %c0_1] : memref<4x256xf32, #tpu.memory_space<vmem>>, vector<4x256xf32>
    %c0_2 = arith.constant 0 : index
    %c0_3 = arith.constant 0 : index
    %4 = vector.load %arg3[%c0_2, %c0_3] : memref<4x512xbf16, #tpu.memory_space<vmem>>, vector<4x512xbf16>
    %c0_4 = arith.constant 0 : index
    %c0_5 = arith.constant 0 : index
    %5 = vector.load %arg4[%c0_4, %c0_5] : memref<512x256xbf16, #tpu.memory_space<vmem>>, vector<512x256xbf16>
    %cst = arith.constant dense<0.000000e+00> : vector<4x256xf32>
    %6 = tpu.matmul %4, %5, %cst {dimension_numbers = #tpu.dot_dimension_numbers<[1], [0], [0], [1], [0, 0, 1, 1], [], []>} : vector<4x512xbf16>, vector<512x256xbf16>, vector<4x256xf32> -> vector<4x256xf32>
    %7 = arith.addf %3, %6 : vector<4x256xf32>
    %c0_6 = arith.constant 0 : index
    %c0_7 = arith.constant 0 : index
    %8 = vector.load %arg8[%c0_6, %c0_7] : memref<4x256xf32, #tpu.memory_space<vmem>>, vector<4x256xf32>
    tpu.vector_store %arg8[%c0_6, %c0_7], %7 {strides = array<i32>} : memref<4x256xf32, #tpu.memory_space<vmem>>, vector<4x256xf32>,
    %c5_i32 = arith.constant 5 : i32
    %9 = arith.cmpi eq, %arg2, %c5_i32 : i32
    %10 = arith.extui %9 : i1 to i32
    %c0_i32_8 = arith.constant 0 : i32
    %11 = arith.cmpi ne, %10, %c0_i32_8 : i32
    scf.if %11 {
      %c0_9 = arith.constant 0 : index
      %c0_10 = arith.constant 0 : index
      %12 = vector.load %arg8[%c0_9, %c0_10] : memref<4x256xf32, #tpu.memory_space<vmem>>, vector<4x256xf32>
      %c0_11 = arith.constant 0 : index
      %c0_12 = arith.constant 0 : index
      %13 = vector.load %arg5[%c0_11, %c0_12] : memref<1x256xf32, #tpu.memory_space<vmem>>, vector<1x256xf32>
      %14 = vector.broadcast %13 : vector<1x256xf32> to vector<4x256xf32>
      %15 = arith.addf %12, %14 : vector<4x256xf32>
      %c0_13 = arith.constant 0 : index
      %c0_14 = arith.constant 0 : index
      %16 = vector.load %arg6[%c0_13, %c0_14] : memref<4x256xbf16, #tpu.memory_space<vmem>>, vector<4x256xbf16>
      %17 = arith.extf %16 : vector<4x256xbf16> to vector<4x256xf32>
      %18 = arith.addf %15, %17 : vector<4x256xf32>
      %cst_15 = arith.constant 0.000000e+00 : f32
      %19 = vector.broadcast %cst_15 : f32 to vector<4x256xf32>
      %20 = arith.maximumf %18, %19 : vector<4x256xf32>
      %21 = arith.truncf %20 : vector<4x256xf32> to vector<4x256xbf16>
      %c0_16 = arith.constant 0 : index
      %c0_17 = arith.constant 0 : index
      %22 = vector.load %arg7[%c0_16, %c0_17] : memref<4x256xbf16, #tpu.memory_space<vmem>>, vector<4x256xbf16>
      tpu.vector_store %arg7[%c0_16, %c0_17], %21 {strides = array<i32>} : memref<4x256xbf16, #tpu.memory_space<vmem>>, vector<4x256xbf16>,
    } else {
    }
    return
  }
  func.func @transform_0(%arg0: i32, %arg1: i32, %arg2: i32) -> (i32, i32) {
    %c0_i32 = arith.constant 0 : i32
    return %arg0, %arg2 : i32, i32
  }
  func.func @transform_1(%arg0: i32, %arg1: i32, %arg2: i32) -> (i32, i32) {
    %c0_i32 = arith.constant 0 : i32
    return %arg2, %arg1 : i32, i32
  }
  func.func @transform_2(%arg0: i32, %arg1: i32, %arg2: i32) -> (i32, i32) {
    %c0_i32 = arith.constant 0 : i32
    %c0_i32_0 = arith.constant 0 : i32
    return %c0_i32, %arg1 : i32, i32
  }
  func.func @transform_3(%arg0: i32, %arg1: i32, %arg2: i32) -> (i32, i32) {
    %c0_i32 = arith.constant 0 : i32
    return %arg0, %arg1 : i32, i32
  }
  func.func @transform_4(%arg0: i32, %arg1: i32, %arg2: i32) -> (i32, i32) {
    %c0_i32 = arith.constant 0 : i32
    return %arg0, %arg1 : i32, i32
  }
}

module attributes {stable_mosaic.version = 11 : i64} {
  func.func @_pool_fc_kernel(%arg0: i32, %arg1: memref<2x2x1024xbf16, #tpu.memory_space<vmem>>, %arg2: memref<1024x10xf32, #tpu.memory_space<vmem>>, %arg3: memref<1x10xf32, #tpu.memory_space<vmem>>, %arg4: memref<2x10xf32, #tpu.memory_space<vmem>>, %arg5: memref<2x1024xf32, #tpu.memory_space<vmem>>, %arg6: memref<2x1024xf32, #tpu.memory_space<vmem>>) attributes {dimension_semantics = [#tpu.dimension_semantics<arbitrary>], iteration_bounds = array<i64: 1>, scalar_prefetch = 0 : i64, scratch_operands = 1 : i64, tpu.core_type = #tpu.core_type<tc>, window_params = [{transform_indices = @transform_0, window_bounds = array<i64: 2, 2, 1024>}, {pipeline_mode = #tpu.pipeline_mode<synchronous>, transform_indices = @transform_1, window_bounds = array<i64: 1024, 10>}, {pipeline_mode = #tpu.pipeline_mode<synchronous>, transform_indices = @transform_2, window_bounds = array<i64: 1, 10>}, {pipeline_mode = #tpu.pipeline_mode<synchronous>, transform_indices = @transform_3, window_bounds = array<i64: 2, 10>}, {pipeline_mode = #tpu.pipeline_mode<synchronous>, transform_indices = @transform_4, window_bounds = array<i64: 2, 1024>}]} {
    %c0_i32 = arith.constant 0 : i32
    %0 = arith.cmpi eq, %arg0, %c0_i32 : i32
    %1 = arith.extui %0 : i1 to i32
    %c0_i32_0 = arith.constant 0 : i32
    %2 = arith.cmpi ne, %1, %c0_i32_0 : i32
    scf.if %2 {
      %cst_9 = arith.constant 0.000000e+00 : f32
      %12 = vector.broadcast %cst_9 : f32 to vector<2x1024xf32>
      %c0_10 = arith.constant 0 : index
      %c0_11 = arith.constant 0 : index
      %13 = vector.load %arg6[%c0_10, %c0_11] : memref<2x1024xf32, #tpu.memory_space<vmem>>, vector<2x1024xf32>
      tpu.vector_store %arg6[%c0_10, %c0_11], %12 {strides = array<i32>} : memref<2x1024xf32, #tpu.memory_space<vmem>>, vector<2x1024xf32>,
    } else {
    }
    %c0 = arith.constant 0 : index
    %c0_1 = arith.constant 0 : index
    %3 = vector.load %arg6[%c0, %c0_1] : memref<2x1024xf32, #tpu.memory_space<vmem>>, vector<2x1024xf32>
    %c0_2 = arith.constant 0 : index
    %c0_3 = arith.constant 0 : index
    %c0_4 = arith.constant 0 : index
    %4 = vector.load %arg1[%c0_2, %c0_3, %c0_4] : memref<2x2x1024xbf16, #tpu.memory_space<vmem>>, vector<2x2x1024xbf16>
    %5 = arith.extf %4 : vector<2x2x1024xbf16> to vector<2x2x1024xf32>
    %cst = arith.constant dense<0.000000e+00> : vector<2x1024xf32>
    %6 = vector.multi_reduction <add>, %5, %cst [1] : vector<2x2x1024xf32> to vector<2x1024xf32>
    %7 = arith.addf %3, %6 : vector<2x1024xf32>
    %c0_5 = arith.constant 0 : index
    %c0_6 = arith.constant 0 : index
    %8 = vector.load %arg6[%c0_5, %c0_6] : memref<2x1024xf32, #tpu.memory_space<vmem>>, vector<2x1024xf32>
    tpu.vector_store %arg6[%c0_5, %c0_6], %7 {strides = array<i32>} : memref<2x1024xf32, #tpu.memory_space<vmem>>, vector<2x1024xf32>,
    %c0_i32_7 = arith.constant 0 : i32
    %9 = arith.cmpi eq, %arg0, %c0_i32_7 : i32
    %10 = arith.extui %9 : i1 to i32
    %c0_i32_8 = arith.constant 0 : i32
    %11 = arith.cmpi ne, %10, %c0_i32_8 : i32
    scf.if %11 {
      %c0_9 = arith.constant 0 : index
      %c0_10 = arith.constant 0 : index
      %12 = vector.load %arg6[%c0_9, %c0_10] : memref<2x1024xf32, #tpu.memory_space<vmem>>, vector<2x1024xf32>
      %cst_11 = arith.constant 5.000000e-01 : f32
      %13 = vector.broadcast %cst_11 : f32 to vector<2x1024xf32>
      %14 = arith.mulf %12, %13 : vector<2x1024xf32>
      %c0_12 = arith.constant 0 : index
      %c0_13 = arith.constant 0 : index
      %15 = vector.load %arg5[%c0_12, %c0_13] : memref<2x1024xf32, #tpu.memory_space<vmem>>, vector<2x1024xf32>
      tpu.vector_store %arg5[%c0_12, %c0_13], %14 {strides = array<i32>} : memref<2x1024xf32, #tpu.memory_space<vmem>>, vector<2x1024xf32>,
      %c0_14 = arith.constant 0 : index
      %c0_15 = arith.constant 0 : index
      %16 = vector.load %arg2[%c0_14, %c0_15] : memref<1024x10xf32, #tpu.memory_space<vmem>>, vector<1024x10xf32>
      %cst_16 = arith.constant dense<0.000000e+00> : vector<2x10xf32>
      %17 = tpu.matmul %14, %16, %cst_16 {dimension_numbers = #tpu.dot_dimension_numbers<[1], [0], [0], [1], [0, 0, 1, 1], [], []>} : vector<2x1024xf32>, vector<1024x10xf32>, vector<2x10xf32> -> vector<2x10xf32>
      %c0_17 = arith.constant 0 : index
      %c0_18 = arith.constant 0 : index
      %18 = vector.load %arg3[%c0_17, %c0_18] : memref<1x10xf32, #tpu.memory_space<vmem>>, vector<1x10xf32>
      %19 = vector.broadcast %18 : vector<1x10xf32> to vector<2x10xf32>
      %20 = arith.addf %17, %19 : vector<2x10xf32>
      %c0_19 = arith.constant 0 : index
      %c0_20 = arith.constant 0 : index
      %21 = vector.load %arg4[%c0_19, %c0_20] : memref<2x10xf32, #tpu.memory_space<vmem>>, vector<2x10xf32>
      tpu.vector_store %arg4[%c0_19, %c0_20], %20 {strides = array<i32>} : memref<2x10xf32, #tpu.memory_space<vmem>>, vector<2x10xf32>,
    } else {
    }
    return
  }
  func.func @transform_0(%arg0: i32) -> (i32, i32, i32) {
    %c0_i32 = arith.constant 0 : i32
    %c0_i32_0 = arith.constant 0 : i32
    %c0_i32_1 = arith.constant 0 : i32
    return %c0_i32, %arg0, %c0_i32_0 : i32, i32, i32
  }
  func.func @transform_1(%arg0: i32) -> (i32, i32) {
    %c0_i32 = arith.constant 0 : i32
    %c0_i32_0 = arith.constant 0 : i32
    %c0_i32_1 = arith.constant 0 : i32
    return %c0_i32, %c0_i32_0 : i32, i32
  }
  func.func @transform_2(%arg0: i32) -> (i32, i32) {
    %c0_i32 = arith.constant 0 : i32
    %c0_i32_0 = arith.constant 0 : i32
    %c0_i32_1 = arith.constant 0 : i32
    return %c0_i32, %c0_i32_0 : i32, i32
  }
  func.func @transform_3(%arg0: i32) -> (i32, i32) {
    %c0_i32 = arith.constant 0 : i32
    %c0_i32_0 = arith.constant 0 : i32
    %c0_i32_1 = arith.constant 0 : i32
    return %c0_i32, %c0_i32_0 : i32, i32
  }
  func.func @transform_4(%arg0: i32) -> (i32, i32) {
    %c0_i32 = arith.constant 0 : i32
    %c0_i32_0 = arith.constant 0 : i32
    %c0_i32_1 = arith.constant 0 : i32
    return %c0_i32, %c0_i32_0 : i32, i32
  }
}

</mosaic_0001>

<bundles_post_ra>
// kernel: _lambda_.16
= control target key start
LH: loop header
LB: loop body
LE: loop exit
PB: predicated region body
PF: predicated region fallthrough
CT: control target
= control target key end

     0   :  { %8 = vsyncpa [#allocation4], 0  ;;  %s461_s0 = inlined_call_operand.vmem [shape: bf16[32,192], index: 0, kind: input, shape index: {}]   ;;  %s462_s1 = inlined_call_operand.hbm [shape: bf16[192,128], index: 1, kind: input, shape index: {}]   ;;  %s463_s2 = inlined_call_operand.hbm [shape: f32[1,128], index: 2, kind: input, shape index: {}]   ;;  %s464_s3 = inlined_call_operand.vmem [shape: bf16[32,128], index: 3, kind: output, shape index: {}]  }
   0x1   :  { %9 = vsyncpa [#allocation6], 0  ;;  %s412_s12 = smov [#allocation3]  }
   0x2   :  { %s17_s13 = sshll.u32 %s412_s12, 4  ;;  %s18_s13 = int_to_ptr.vmem [resolvable:$true] %s17_s13 }
   0x3   :  { %s376_s14 = scalar_lea.vmem %s18_s13, 1536  ;;  %p381_p1 = scmp.lt.s32.totalorder %s18_s13, %s18_s13 }
   0x4   :  { %p377_p0 = scmp.ne.s32.totalorder %s18_s13, %s376_s14  ;;  %p382_p2 = scmp.lt.s32.totalorder %s376_s14, %s376_s14 }
   0x6   :  { %p383_p3 = por %p382_p2, %p381_p1 }
   0x8   :  { %p384_p4 = pnand %p383_p3, %p377_p0 }
   0xa   :  { %387 = shalt.err (!%p384_p4)
}
   0xb   :  { %s413_s15 = smov 64   ;;  %s414_s16 = smov 4  }
   0xc   :  { %23 = dma.hbm_to_vmem [thread:$0]  %s462_s1, 1536, %s18_s13, [#allocation4], %s413_s15, %s413_s15, %s414_s16  }
   0xd   :  { %s415_s19 = smov [#allocation5]  }
   0xe   :  { %s30_s20 = sshll.u32 %s415_s19, 4  ;;  %s31_s20 = int_to_ptr.vmem [resolvable:$true] %s30_s20 }
   0xf   :  { %s396_s21 = scalar_lea.vmem %s31_s20, 16  ;;  %s400_s22 = scalar_lea.vmem %s31_s20, 32 }
  0x10   :  { %p397_p5 = scmp.ne.s32.totalorder %s31_s20, %s396_s21  ;;  %p401_p6 = scmp.lt.s32.totalorder %s31_s20, %s31_s20 }
  0x11   :  { %p402_p7 = scmp.lt.s32.totalorder %s400_s22, %s396_s21 }
  0x13   :  { %p403_p8 = por %p402_p7, %p401_p6 }
  0x15   :  { %p404_p9 = pnand %p403_p8, %p397_p5 }
  0x17   :  { %407 = shalt.err (!%p404_p9)
}
  0x18   :  { %33 = dma.hbm_to_vmem [thread:$0]  %s463_s2, 16, %s31_s20, [#allocation6]  }
  0x19   :  { %408 = dma.done.wait [#allocation4], 1536  }
  0x1a   :  { %409 = vsyncadd [#allocation4], 4294965760 }
  0x1b   :  { %410 = dma.done.wait [#allocation6], 16  }
  0x1c   :  { %411 = vsyncadd [#allocation6], 4294967280  ;;  %v416_v0 = vmov 0   ;;  %v350_v1 = vld [vmem:[#allocation3 + $0x38] sm:$0xff]   ;;  %v351_v2 = vld [vmem:[#allocation3 + $0x30] sm:$0xff]   ;;  %vm171_vm0 = vcmask 523264  }
  0x1d   :  { %178 = vmatprep.subr.bf16.mxu0 %v416_v0  ;;  %321 = vmatprep.subr.bf16.mxu1 %v416_v0  ;;  %v352_v3 = vld [vmem:[#allocation3 + $0x28] sm:$0xff]   ;;  %v353_v4 = vld [vmem:[#allocation3 + $0x20] sm:$0xff]   ;;  %v354_v6 = vld [vmem:[#allocation3 + $0x18] sm:$0xff]  }
  0x1e   :  { %179 = vmatpush1.bf16.msra.mxu0 %v350_v1  ;;  %333 = vmatpush1.bf16.msra.mxu1 %v350_v1  ;;  %v364_v5 = vld [vmem:[%s461_s0 + $0x4] ss:$8 sps:$4 sm:$0xff]   ;;  %v367_v7 = vld [vmem:[%s461_s0 + $0x14] ss:$8 sps:$4 sm:$0xff]   ;;  %v362_v15 = vld [vmem:[%s461_s0] ss:$8 sps:$4 sm:$0xff]  }
  0x1f   :  { %180 = vmatprep.subr.bf16.mxu0 %v416_v0  ;;  %322 = vmatprep.subr.bf16.mxu1 %v416_v0  ;;  %v355_v8 = vld [vmem:[#allocation3 + $0x10] sm:$0xff]   ;;  %v356_v9 = vld [vmem:[#allocation3 + $0x8] sm:$0xff]   ;;  %v357_v10 = vld [vmem:[#allocation3] sm:$0xff]  }
  0x20   :  { %299 = vmatprep.mubr.msk.bf16.mxu0 %vm171_vm0, %v364_v5  ;;  %300 = vmatprep.mubr.msk.bf16.mxu1 %vm171_vm0, %v367_v7  ;;  %v358_v11 = vld [vmem:[#allocation3 + $0x58] sm:$0xff]   ;;  %v359_v12 = vld [vmem:[#allocation3 + $0x50] sm:$0xff]   ;;  %v360_v13 = vld [vmem:[#allocation3 + $0x48] sm:$0xff]  }
  0x21   :  { %v361_v14 = vld [vmem:[#allocation3 + $0x40] sm:$0xff]   ;;  %v365_v16 = vld [vmem:[%s461_s0 + $0x10] ss:$8 sps:$4 sm:$0xff]  }
  0x22   :  { %181 = vmatpush1.bf16.msra.mxu0 %v351_v2  ;;  %334 = vmatpush1.bf16.msra.mxu1 %v351_v2  ;;  %v301_v18 = vld [vmem:[#allocation5] ss:$0 sm:$0xff] }
  0x23   :  { %182 = vmatprep.subr.bf16.mxu0 %v416_v0  ;;  %323 = vmatprep.subr.bf16.mxu1 %v416_v0 }
  0x26   :  { %183 = vmatpush1.bf16.msra.mxu0 %v352_v3  ;;  %335 = vmatpush1.bf16.msra.mxu1 %v352_v3 }
  0x27   :  { %184 = vmatprep.subr.bf16.mxu0 %v416_v0  ;;  %324 = vmatprep.subr.bf16.mxu1 %v416_v0 }
  0x2a   :  { %185 = vmatpush1.bf16.msra.mxu0 %v353_v4  ;;  %336 = vmatpush1.bf16.msra.mxu1 %v353_v4 }
  0x2b   :  { %186 = vmatprep.subr.bf16.mxu0 %v416_v0  ;;  %325 = vmatprep.subr.bf16.mxu1 %v416_v0 }
  0x2e   :  { %187 = vmatpush1.bf16.msra.mxu0 %v354_v6  ;;  %337 = vmatpush1.bf16.msra.mxu1 %v354_v6 }
  0x2f   :  { %188 = vmatprep.subr.bf16.mxu0 %v416_v0  ;;  %326 = vmatprep.subr.bf16.mxu1 %v416_v0 }
  0x32   :  { %189 = vmatpush1.bf16.msra.mxu0 %v355_v8  ;;  %338 = vmatpush1.bf16.msra.mxu1 %v355_v8 }
  0x33   :  { %190 = vmatprep.subr.bf16.mxu0 %v416_v0  ;;  %327 = vmatprep.subr.bf16.mxu1 %v416_v0 }
  0x36   :  { %191 = vmatpush1.bf16.msra.mxu0 %v356_v9  ;;  %339 = vmatpush1.bf16.msra.mxu1 %v356_v9 }
  0x37   :  { %192 = vmatprep.subr.bf16.mxu0 %v416_v0  ;;  %328 = vmatprep.subr.bf16.mxu1 %v416_v0 }
  0x3a   :  { %193 = vmatpush1.bf16.msra.mxu0 %v357_v10  ;;  %340 = vmatpush1.bf16.msra.mxu1 %v357_v10 }
  0x3b   :  { %202 = vmatprep.subr.bf16.mxu0 %v416_v0  ;;  %329 = vmatprep.subr.bf16.mxu1 %v416_v0 }
  0x3e   :  { %203 = vmatpush2.bf16.msra.mxu0 %v358_v11  ;;  %341 = vmatpush2.bf16.msra.mxu1 %v358_v11 }
  0x3f   :  { %204 = vmatprep.subr.bf16.mxu0 %v416_v0  ;;  %330 = vmatprep.subr.bf16.mxu1 %v416_v0 }
  0x42   :  { %205 = vmatpush2.bf16.msra.mxu0 %v359_v12  ;;  %342 = vmatpush2.bf16.msra.mxu1 %v359_v12 }
  0x43   :  { %206 = vmatprep.subr.bf16.mxu0 %v416_v0  ;;  %331 = vmatprep.subr.bf16.mxu1 %v416_v0 }
  0x46   :  { %207 = vmatpush2.bf16.msra.mxu0 %v360_v13  ;;  %343 = vmatpush2.bf16.msra.mxu1 %v360_v13 }
  0x47   :  { %208 = vmatprep.subr.bf16.mxu0 %v416_v0  ;;  %332 = vmatprep.subr.bf16.mxu1 %v416_v0 }
  0x4a   :  { %209 = vmatpush2.bf16.msra.mxu0 %v361_v14  ;;  %344 = vmatpush2.bf16.msra.mxu1 %v361_v14 }
  0x4d   :  { %211 = vmatmul.mubr.bf16.vlgmr.msra.gmra.mxu0 %v362_v15  ;;  %219 = vmatmul.mubr.bf16.vlgmr.msra.gmra.mxu1 %v365_v16 }
 0x10d   :  { %v212_v17 = vpop.f32.mrf.mxu0  ;;  %v220_v19 = vpop.f32.mrf.mxu1 }
 0x10e   :  { %v249_v22 = vadd.f32 %v301_v18, %v212_v17  ;;  %v251_v23 = vadd.f32 %v301_v18, %v220_v19 }
 0x10f   :  { %v214_v20 = vpop.f32.mrf.mxu0  ;;  %v222_v21 = vpop.f32.mrf.mxu1 }
 0x110   :  { %v253_v30 = vmax.f32 %v249_v22, 0.0  ;;  %v255_v31 = vmax.f32 %v251_v23, 0.0 }
 0x111   :  { %v215_v24 = vpop.f32.mrf.mxu0  ;;  %v223_v25 = vpop.f32.mrf.mxu1 }
 0x112   :  { %v250_v26 = vadd.f32 %v301_v18, %v215_v24  ;;  %v252_v27 = vadd.f32 %v301_v18, %v223_v25 }
 0x113   :  { %v217_v28 = vpop.f32.mrf.mxu0  ;;  %v225_v29 = vpop.f32.mrf.mxu1 }
 0x114   :  { %v254_v32 = vmax.f32 %v250_v26, 0.0  ;;  %v256_v33 = vmax.f32 %v252_v27, 0.0 }
 0x116   :  { %v313_v34 = vpack.c.bf16 %v254_v32, %v253_v30  ;;  %v318_v35 = vpack.c.bf16 %v256_v33, %v255_v31 }
 0x118   :  { %314 = vst [vmem:[%s464_s3] sm:$0xff] %v313_v34   ;;  %320 = vst [vmem:[%s464_s3 + $0x8] sm:$0xff] %v318_v35  }
 0x119   :  { %281 = vsyncpa [#allocation4], 1 }
 0x11a   :  { %282 = vsyncpa [#allocation6], 1 }

// kernel: _lambda_.14
= control target key start
LH: loop header
LB: loop body
LE: loop exit
PB: predicated region body
PF: predicated region fallthrough
CT: control target
= control target key end

     0   :  { %8 = vsyncpa [#allocation4], 0  ;;  %s308_s0 = inlined_call_operand.vmem [shape: bf16[32,7], index: 0, kind: input, shape index: {}]   ;;  %s309_s1 = inlined_call_operand.hbm [shape: bf16[7,128], index: 1, kind: input, shape index: {}]   ;;  %s310_s2 = inlined_call_operand.hbm [shape: f32[1,128], index: 2, kind: input, shape index: {}]   ;;  %s311_s3 = inlined_call_operand.vmem [shape: bf16[32,128], index: 3, kind: output, shape index: {}]  }
   0x1   :  { %9 = vsyncpa [#allocation6], 0  ;;  %s267_s12 = smov [#allocation3]   ;;  %s268_s14 = smov [#allocation5]  }
   0x2   :  { %s18_s13 = sshll.u32 %s267_s12, 4  ;;  %s28_s15 = sshll.u32 %s268_s14, 4  ;;  %s19_s13 = int_to_ptr.vmem [resolvable:$true] %s18_s13  ;;  %s29_s15 = int_to_ptr.vmem [resolvable:$true] %s28_s15 }
   0x3   :  { %s231_s16 = scalar_lea.vmem %s19_s13, 64  ;;  %p236_p1 = scmp.lt.s32.totalorder %s19_s13, %s19_s13 }
   0x4   :  { %p232_p0 = scmp.ne.s32.totalorder %s19_s13, %s231_s16  ;;  %p237_p2 = scmp.lt.s32.totalorder %s231_s16, %s231_s16 }
   0x6   :  { %p238_p3 = por %p237_p2, %p236_p1 }
   0x8   :  { %p239_p4 = pnand %p238_p3, %p232_p0 }
   0xa   :  { %242 = shalt.err (!%p239_p4)
}
   0xb   :  { %21 = dma.hbm_to_vmem [thread:$0]  %s309_s1, 64, %s19_s13, [#allocation4]  }
   0xc   :  { %s251_s19 = scalar_lea.vmem %s29_s15, 16  ;;  %s255_s20 = scalar_lea.vmem %s29_s15, 32 }
   0xd   :  { %p252_p5 = scmp.ne.s32.totalorder %s29_s15, %s251_s19  ;;  %p256_p6 = scmp.lt.s32.totalorder %s29_s15, %s29_s15 }
   0xe   :  { %p257_p7 = scmp.lt.s32.totalorder %s255_s20, %s251_s19 }
  0x10   :  { %p258_p8 = por %p257_p7, %p256_p6 }
  0x12   :  { %p259_p9 = pnand %p258_p8, %p252_p5 }
  0x14   :  { %262 = shalt.err (!%p259_p9)
}
  0x15   :  { %31 = dma.hbm_to_vmem [thread:$0]  %s310_s2, 16, %s29_s15, [#allocation6]  }
  0x16   :  { %263 = dma.done.wait [#allocation4], 64  }
  0x17   :  { %264 = vsyncadd [#allocation4], 4294967232 }
  0x18   :  { %265 = dma.done.wait [#allocation6], 16  }
  0x19   :  { %266 = vsyncadd [#allocation6], 4294967280  ;;  %vm73_vm0 = vcmask 1042432   ;;  %vm74_vm1 = vcmask 1043456   ;;  %v269_v0 = vmov 65535   ;;  %vm66_vm2 = vcmask 56320  }
  0x1a   :  { %v75_v1 = vsel %vm73_vm0, 4294967295, %v269_v0  ;;  %v55_v3 = vld [vmem:[#allocation3] sm:$0xf]  ;;  %v222_v6 = vld [vmem:[%s308_s0 + $0x8] sm:$0xff]   ;;  %v189_v8 = vld [vmem:[#allocation5] ss:$0 sm:$0xff] }
  0x1b   :  { %v76_v2 = vsel %vm74_vm1, %v75_v1, 0  ;;  %v221_v5 = vld [vmem:[%s308_s0] sm:$0xff]  }
  0x1c   :  { %v78_v4 = vand.u32 %v76_v2, %v55_v3  ;;  %214 = vmatprep.mubr.msk.bf16.mxu0 %vm66_vm2, %v221_v5 }
  0x1e   :  { %212 = vmatprep.subr.bf16.mxu0 %v78_v4 }
  0x1f   :  { %213 = vmatpush3.bf16.msra.mxu0 %v78_v4 }
  0x22   :  { %215 = vmatmul.mubr.msk.bf16.vlgmr.msra.gmra.mxu0 %vm66_vm2, %v222_v6 }
  0xe2   :  { %v216_v7 = vpop.f32.mrf.mxu0 }
  0xe3   :  { %v153_v10 = vadd.f32 %v216_v7, %v189_v8 }
  0xe4   :  { %v114_v9 = vpop.f32.mrf.mxu0 }
  0xe5   :  { %v151_v12 = vadd.f32 %v189_v8, %v114_v9  ;;  %v157_v15 = vmax.f32 %v153_v10, 0.0 }
  0xe6   :  { %v217_v11 = vpop.f32.mrf.mxu0 }
  0xe7   :  { %v154_v13 = vadd.f32 %v217_v11, %v189_v8  ;;  %v155_v18 = vmax.f32 %v151_v12, 0.0 }
  0xe8   :  { %v117_v14 = vpop.f32.mrf.mxu0 }
  0xe9   :  { %v158_v16 = vmax.f32 %v154_v13, 0.0  ;;  %v152_v17 = vadd.f32 %v189_v8, %v117_v14 }
  0xeb   :  { %v206_v19 = vpack.c.bf16 %v158_v16, %v157_v15  ;;  %v156_v20 = vmax.f32 %v152_v17, 0.0 }
  0xed   :  { %208 = vst [vmem:[%s311_s3 + $0x8] sm:$0xff] %v206_v19   ;;  %v201_v21 = vpack.c.bf16 %v156_v20, %v155_v18 }
  0xef   :  { %202 = vst [vmem:[%s311_s3] sm:$0xff] %v201_v21  }
  0xf0   :  { %183 = vsyncpa [#allocation4], 1 }
  0xf1   :  { %184 = vsyncpa [#allocation6], 1 }

// kernel: _lambda_.15
= control target key start
LH: loop header
LB: loop body
LE: loop exit
PB: predicated region body
PF: predicated region fallthrough
CT: control target
= control target key end

     0   :  { %8 = vsyncpa [#allocation4], 0  ;;  %s349_s0 = inlined_call_operand.vmem [shape: bf16[32,64], index: 0, kind: input, shape index: {}]   ;;  %s350_s1 = inlined_call_operand.hbm [shape: bf16[64,128], index: 1, kind: input, shape index: {}]   ;;  %s351_s2 = inlined_call_operand.hbm [shape: f32[1,128], index: 2, kind: input, shape index: {}]   ;;  %s352_s3 = inlined_call_operand.vmem [shape: bf16[32,128], index: 3, kind: output, shape index: {}]  }
   0x1   :  { %9 = vsyncpa [#allocation6], 0  ;;  %s307_s12 = smov [#allocation3]  }
   0x2   :  { %s17_s13 = sshll.u32 %s307_s12, 4  ;;  %s18_s13 = int_to_ptr.vmem [resolvable:$true] %s17_s13 }
   0x3   :  { %s271_s14 = scalar_lea.vmem %s18_s13, 512  ;;  %p276_p1 = scmp.lt.s32.totalorder %s18_s13, %s18_s13 }
   0x4   :  { %p272_p0 = scmp.ne.s32.totalorder %s18_s13, %s271_s14  ;;  %p277_p2 = scmp.lt.s32.totalorder %s271_s14, %s271_s14 }
   0x6   :  { %p278_p3 = por %p277_p2, %p276_p1 }
   0x8   :  { %p279_p4 = pnand %p278_p3, %p272_p0 }
   0xa   :  { %282 = shalt.err (!%p279_p4)
}
   0xb   :  { %s308_s15 = smov 64   ;;  %s309_s16 = smov 4  }
   0xc   :  { %23 = dma.hbm_to_vmem [thread:$0]  %s350_s1, 512, %s18_s13, [#allocation4], %s308_s15, %s308_s15, %s309_s16  }
   0xd   :  { %s310_s19 = smov [#allocation5]  }
   0xe   :  { %s30_s20 = sshll.u32 %s310_s19, 4  ;;  %s31_s20 = int_to_ptr.vmem [resolvable:$true] %s30_s20 }
   0xf   :  { %s291_s21 = scalar_lea.vmem %s31_s20, 16  ;;  %s295_s22 = scalar_lea.vmem %s31_s20, 32 }
  0x10   :  { %p292_p5 = scmp.ne.s32.totalorder %s31_s20, %s291_s21  ;;  %p296_p6 = scmp.lt.s32.totalorder %s31_s20, %s31_s20 }
  0x11   :  { %p297_p7 = scmp.lt.s32.totalorder %s295_s22, %s291_s21 }
  0x13   :  { %p298_p8 = por %p297_p7, %p296_p6 }
  0x15   :  { %p299_p9 = pnand %p298_p8, %p292_p5 }
  0x17   :  { %302 = shalt.err (!%p299_p9)
}
  0x18   :  { %33 = dma.hbm_to_vmem [thread:$0]  %s351_s2, 16, %s31_s20, [#allocation6]  }
  0x19   :  { %303 = dma.done.wait [#allocation4], 512  }
  0x1a   :  { %304 = vsyncadd [#allocation4], 4294966784 }
  0x1b   :  { %305 = dma.done.wait [#allocation6], 16  }
  0x1c   :  { %306 = vsyncadd [#allocation6], 4294967280  ;;  %v257_v0 = vld [vmem:[#allocation3 + $0x18] sm:$0xff]   ;;  %v258_v1 = vld [vmem:[#allocation3 + $0x10] sm:$0xff]   ;;  %vm99_vm0 = vcmask 523264  }
  0x1d   :  { %241 = vmatprep.subr.bf16.mxu0 %v257_v0  ;;  %v259_v2 = vld [vmem:[#allocation3 + $0x8] sm:$0xff]   ;;  %v261_v3 = vld [vmem:[%s349_s0] sm:$0xff]  }
  0x1e   :  { %242 = vmatpush3.bf16.msra.mxu0 %v257_v0  ;;  %249 = vmatprep.mubr.msk.bf16.mxu0 %vm99_vm0, %v261_v3  ;;  %v260_v4 = vld [vmem:[#allocation3] sm:$0xff]   ;;  %v262_v5 = vld [vmem:[%s349_s0 + $0x8] sm:$0xff]  }
  0x1f   :  { %243 = vmatprep.subr.bf16.mxu0 %v258_v1  ;;  %v215_v7 = vld [vmem:[#allocation5] ss:$0 sm:$0xff] }
  0x22   :  { %244 = vmatpush3.bf16.msra.mxu0 %v258_v1 }
  0x23   :  { %245 = vmatprep.subr.bf16.mxu0 %v259_v2 }
  0x26   :  { %246 = vmatpush3.bf16.msra.mxu0 %v259_v2 }
  0x27   :  { %247 = vmatprep.subr.bf16.mxu0 %v260_v4 }
  0x2a   :  { %248 = vmatpush3.bf16.msra.mxu0 %v260_v4 }
  0x2d   :  { %250 = vmatmul.mubr.msk.bf16.vlgmr.msra.gmra.mxu0 %vm99_vm0, %v262_v5 }
  0xed   :  { %v251_v6 = vpop.f32.mrf.mxu0 }
  0xee   :  { %v179_v10 = vadd.f32 %v251_v6, %v215_v7 }
  0xef   :  { %v140_v8 = vpop.f32.mrf.mxu0 }
  0xf0   :  { %v177_v13 = vadd.f32 %v215_v7, %v140_v8 }
  0xf1   :  { %v252_v9 = vpop.f32.mrf.mxu0 }
  0xf2   :  { %v180_v11 = vadd.f32 %v252_v9, %v215_v7 }
  0xf3   :  { %v143_v12 = vpop.f32.mrf.mxu0 }
  0xf4   :  { %v232_v14 = vpack.c.bf16 %v180_v11, %v179_v10  ;;  %v178_v15 = vadd.f32 %v215_v7, %v143_v12 }
  0xf6   :  { %234 = vst [vmem:[%s352_s3 + $0x8] sm:$0xff] %v232_v14   ;;  %v227_v16 = vpack.c.bf16 %v178_v15, %v177_v13 }
  0xf8   :  { %228 = vst [vmem:[%s352_s3] sm:$0xff] %v227_v16  }
  0xf9   :  { %205 = vsyncpa [#allocation4], 1 }
  0xfa   :  { %206 = vsyncpa [#allocation6], 1 }

// kernel: _lambda_.17
= control target key start
LH: loop header
LB: loop body
LE: loop exit
PB: predicated region body
PF: predicated region fallthrough
CT: control target
= control target key end

     0   :  { %9 = vsyncpa [#allocation4], 0  ;;  %s716_s0 = inlined_call_operand.vmem [shape: bf16[32,384], index: 0, kind: input, shape index: {}]   ;;  %s717_s1 = inlined_call_operand.hbm [shape: bf16[384,128], index: 1, kind: input, shape index: {}]   ;;  %s718_s2 = inlined_call_operand.hbm [shape: f32[1,128], index: 2, kind: input, shape index: {}]   ;;  %s719_s3 = inlined_call_operand.vmem [shape: bf16[32,128], index: 3, kind: input, shape index: {}]   ;;  %s720_s4 = inlined_call_operand.vmem [shape: bf16[32,128], index: 4, kind: output, shape index: {}]  }
   0x1   :  { %10 = vsyncpa [#allocation6], 0  ;;  %s651_s15 = smov [#allocation3]  }
   0x2   :  { %s18_s16 = sshll.u32 %s651_s15, 4  ;;  %s19_s16 = int_to_ptr.vmem [resolvable:$true] %s18_s16 }
   0x3   :  { %s615_s17 = scalar_lea.vmem %s19_s16, 3072  ;;  %p620_p1 = scmp.lt.s32.totalorder %s19_s16, %s19_s16 }
   0x4   :  { %p616_p0 = scmp.ne.s32.totalorder %s19_s16, %s615_s17  ;;  %p621_p2 = scmp.lt.s32.totalorder %s615_s17, %s615_s17 }
   0x6   :  { %p622_p3 = por %p621_p2, %p620_p1 }
   0x8   :  { %p623_p4 = pnand %p622_p3, %p616_p0 }
   0xa   :  { %626 = shalt.err (!%p623_p4)
}
   0xb   :  { %s652_s18 = smov 64   ;;  %s653_s19 = smov 4  }
   0xc   :  { %24 = dma.hbm_to_vmem [thread:$0]  %s717_s1, 3072, %s19_s16, [#allocation4], %s652_s18, %s652_s18, %s653_s19  }
   0xd   :  { %s654_s22 = smov [#allocation5]  }
   0xe   :  { %s31_s23 = sshll.u32 %s654_s22, 4  ;;  %s32_s23 = int_to_ptr.vmem [resolvable:$true] %s31_s23 }
   0xf   :  { %s635_s24 = scalar_lea.vmem %s32_s23, 16  ;;  %s639_s25 = scalar_lea.vmem %s32_s23, 32 }
  0x10   :  { %p636_p5 = scmp.ne.s32.totalorder %s32_s23, %s635_s24  ;;  %p640_p6 = scmp.lt.s32.totalorder %s32_s23, %s32_s23 }
  0x11   :  { %p641_p7 = scmp.lt.s32.totalorder %s639_s25, %s635_s24 }
  0x13   :  { %p642_p8 = por %p641_p7, %p640_p6 }
  0x15   :  { %p643_p9 = pnand %p642_p8, %p636_p5 }
  0x17   :  { %646 = shalt.err (!%p643_p9)
}
  0x18   :  { %34 = dma.hbm_to_vmem [thread:$0]  %s718_s2, 16, %s32_s23, [#allocation6]  }
  0x19   :  { %647 = dma.done.wait [#allocation4], 3072  }
  0x1a   :  { %648 = vsyncadd [#allocation4], 4294964224 }
  0x1b   :  { %649 = dma.done.wait [#allocation6], 16  }
  0x1c   :  { %650 = vsyncadd [#allocation6], 4294967280  ;;  %v575_v0 = vld [vmem:[#allocation3 + $0x78] sm:$0xff]   ;;  %v578_v3 = vld [vmem:[#allocation3 + $0x70] sm:$0xff]  }
  0x1d   :  { %v576_v1 = vld [vmem:[#allocation3 + $0x38] sm:$0xff]   ;;  %513 = vmatprep.subr.bf16.mxu0 %v575_v0  ;;  %v579_v4 = vld [vmem:[#allocation3 + $0x30] sm:$0xff]   ;;  %v581_v6 = vld [vmem:[#allocation3 + $0x68] sm:$0xff]  }
  0x1e   :  { %v577_v2 = vld [vmem:[#allocation3 + $0xb8] sm:$0xff]   ;;  %514 = vmatpush3.bf16.msra.mxu0 %v576_v1  ;;  %v580_v5 = vld [vmem:[#allocation3 + $0xb0] sm:$0xff]   ;;  %v582_v7 = vld [vmem:[#allocation3 + $0x28] sm:$0xff]  }
  0x1f   :  { %551 = vmatprep.subr.bf16.mxu1 %v577_v2  ;;  %515 = vmatprep.subr.bf16.mxu0 %v578_v3  ;;  %v583_v8 = vld [vmem:[#allocation3 + $0xa8] sm:$0xff]   ;;  %v584_v9 = vld [vmem:[#allocation3 + $0x60] sm:$0xff]   ;;  %v587_v12 = vld [vmem:[#allocation3 + $0x58] sm:$0xff]  }
  0x20   :  { %552 = vmatpush3.bf16.msra.mxu1 %v577_v2  ;;  %v585_v10 = vld [vmem:[#allocation3 + $0x20] sm:$0xff]   ;;  %v589_v13 = vld [vmem:[#allocation3 + $0x98] sm:$0xff]   ;;  %v590_v15 = vld [vmem:[#allocation3 + $0x50] sm:$0xff]  }
  0x21   :  { %553 = vmatprep.subr.bf16.mxu1 %v580_v5  ;;  %v586_v11 = vld [vmem:[#allocation3 + $0xa0] sm:$0xff]   ;;  %v588_v14 = vld [vmem:[#allocation3 + $0x18] sm:$0xff]   ;;  %v592_v16 = vld [vmem:[#allocation3 + $0x90] sm:$0xff]  }
  0x22   :  { %516 = vmatpush3.bf16.msra.mxu0 %v579_v4  ;;  %v591_v17 = vld [vmem:[#allocation3 + $0x10] sm:$0xff]   ;;  %v593_v18 = vld [vmem:[#allocation3 + $0x48] sm:$0xff]   ;;  %v596_v21 = vld [vmem:[#allocation3 + $0x40] sm:$0xff]  }
  0x23   :  { %517 = vmatprep.subr.bf16.mxu0 %v581_v6  ;;  %v594_v19 = vld [vmem:[#allocation3 + $0x8] sm:$0xff]   ;;  %v598_v22 = vld [vmem:[#allocation3 + $0x80] sm:$0xff]  }
  0x24   :  { %554 = vmatpush3.bf16.msra.mxu1 %v580_v5  ;;  %v595_v20 = vld [vmem:[#allocation3 + $0x88] sm:$0xff]   ;;  %v601_v23 = vld [vmem:[%s716_s0 + $0x4] ss:$12 sps:$4 sm:$0xff]   ;;  %v484_v36 = vld [vmem:[#allocation5] ss:$0 sm:$0xff] }
  0x25   :  { %555 = vmatprep.subr.bf16.mxu1 %v583_v8  ;;  %v602_v24 = vld [vmem:[%s716_s0 + $0x8] ss:$12 sps:$4 sm:$0xff]   ;;  %v597_v25 = vld [vmem:[#allocation3] sm:$0xff]   ;;  %320 = vmatprep.mubr.bf16.mxu0 %v601_v23 }
  0x26   :  { %518 = vmatpush3.bf16.msra.mxu0 %v582_v7  ;;  %567 = vmatprep.mubr.bf16.mxu1 %v602_v24  ;;  %v599_v26 = vld [vmem:[%s716_s0] ss:$12 sps:$4 sm:$0xff]   ;;  %v604_v27 = vld [vmem:[%s716_s0 + $0x1c] ss:$12 sps:$4 sm:$0xff]   ;;  %v606_v29 = vld [vmem:[%s716_s0 + $0x18] ss:$12 sps:$4 sm:$0xff]  }
  0x27   :  { %519 = vmatprep.subr.bf16.mxu0 %v584_v9  ;;  %v603_v28 = vld [vmem:[%s716_s0 + $0x20] ss:$12 sps:$4 sm:$0xff]  }
  0x28   :  { %556 = vmatpush3.bf16.msra.mxu1 %v583_v8  ;;  %v494_v37 = vld [vmem:[%s719_s3] sm:$0xff]   ;;  %v511_v52 = vld [vmem:[%s719_s3 + $0x8] sm:$0xff]  }
  0x29   :  { %557 = vmatprep.subr.bf16.mxu1 %v586_v11  ;;  %v495_v42 = vunpack.c.l.bf16 %v494_v37  ;;  %v496_v47 = vunpack.c.h.bf16 %v494_v37  ;;  %v499_v56 = vunpack.c.l.bf16 %v511_v52  ;;  %v500_v0 = vunpack.c.h.bf16 %v511_v52 }
  0x2a   :  { %520 = vmatpush3.bf16.msra.mxu0 %v585_v10 }
  0x2b   :  { %521 = vmatprep.subr.bf16.mxu0 %v587_v12 }
  0x2c   :  { %558 = vmatpush3.bf16.msra.mxu1 %v586_v11 }
  0x2d   :  { %559 = vmatprep.subr.bf16.mxu1 %v589_v13 }
  0x2e   :  { %522 = vmatpush3.bf16.msra.mxu0 %v588_v14 }
  0x2f   :  { %523 = vmatprep.subr.bf16.mxu0 %v590_v15 }
  0x30   :  { %560 = vmatpush3.bf16.msra.mxu1 %v589_v13 }
  0x31   :  { %561 = vmatprep.subr.bf16.mxu1 %v592_v16 }
  0x32   :  { %524 = vmatpush3.bf16.msra.mxu0 %v591_v17 }
  0x33   :  { %525 = vmatprep.subr.bf16.mxu0 %v593_v18 }
  0x34   :  { %562 = vmatpush3.bf16.msra.mxu1 %v592_v16 }
  0x35   :  { %563 = vmatprep.subr.bf16.mxu1 %v595_v20 }
  0x36   :  { %526 = vmatpush3.bf16.msra.mxu0 %v594_v19 }
  0x37   :  { %527 = vmatprep.subr.bf16.mxu0 %v596_v21 }
  0x38   :  { %564 = vmatpush3.bf16.msra.mxu1 %v595_v20 }
  0x39   :  { %565 = vmatprep.subr.bf16.mxu1 %v598_v22 }
  0x3a   :  { %528 = vmatpush3.bf16.msra.mxu0 %v597_v25 }
  0x3c   :  { %566 = vmatpush3.bf16.msra.mxu1 %v598_v22 }
  0x3d   :  { %321 = vmatmul.mubr.bf16.vlgmr.msra.gmra.mxu0 %v599_v26 }
  0x3e   :  { %328 = vmatprep.mubr.bf16.mxu0 %v604_v27 }
  0x3f   :  { %568 = vmatmul.mubr.bf16.vlgmr.msra.gmra.mxu1 %v603_v28 }
  0x45   :  { %329 = vmatmul.mubr.bf16.gmra.mxu0 %v606_v29 }
  0xfd   :  { %v529_v30 = vpop.f32.mrf.mxu0 }
  0xff   :  { %v530_v31 = vpop.f32.mrf.mxu0  ;;  %v569_v32 = vpop.f32.mrf.mxu1 }
 0x100   :  { %v531_v33 = vadd.f32 %v530_v31, %v529_v30 }
 0x101   :  { %v532_v34 = vpop.f32.mrf.mxu0  ;;  %v371_v35 = vpop.f32.mrf.mxu1 }
 0x102   :  { %v372_v38 = vadd.f32 %v531_v33, %v371_v35 }
 0x103   :  { %v533_v39 = vpop.f32.mrf.mxu0  ;;  %v570_v40 = vpop.f32.mrf.mxu1 }
 0x104   :  { %v408_v41 = vadd.f32 %v484_v36, %v372_v38  ;;  %v534_v43 = vadd.f32 %v533_v39, %v532_v34 }
 0x105   :  { %v535_v44 = vpop.f32.mrf.mxu0  ;;  %v374_v45 = vpop.f32.mrf.mxu1 }
 0x106   :  { %v375_v46 = vadd.f32 %v534_v43, %v374_v45  ;;  %v420_v49 = vadd.f32 %v495_v42, %v408_v41 }
 0x107   :  { %v536_v48 = vpop.f32.mrf.mxu0 }
 0x108   :  { %v409_v50 = vadd.f32 %v484_v36, %v375_v46  ;;  %v537_v51 = vadd.f32 %v536_v48, %v535_v44  ;;  %v424_v58 = vmax.f32 %v420_v49, 0.0 }
 0x109   :  { %v538_v53 = vpop.f32.mrf.mxu0 }
 0x10a   :  { %v421_v54 = vadd.f32 %v496_v47, %v409_v50  ;;  %v380_v55 = vadd.f32 %v569_v32, %v537_v51 }
 0x10b   :  { %v539_v57 = vpop.f32.mrf.mxu0 }
 0x10c   :  { %v425_v59 = vmax.f32 %v421_v54, 0.0  ;;  %v410_v60 = vadd.f32 %v484_v36, %v380_v55  ;;  %v540_v61 = vadd.f32 %v539_v57, %v538_v53 }
 0x10e   :  { %v504_v62 = vpack.c.bf16 %v425_v59, %v424_v58  ;;  %v383_v63 = vadd.f32 %v570_v40, %v540_v61  ;;  %v422_v1 = vadd.f32 %v499_v56, %v410_v60 }
 0x110   :  { %505 = vst [vmem:[%s720_s4] sm:$0xff] %v504_v62   ;;  %v411_v2 = vadd.f32 %v484_v36, %v383_v63  ;;  %v426_v4 = vmax.f32 %v422_v1, 0.0 }
 0x112   :  { %v423_v3 = vadd.f32 %v500_v0, %v411_v2 }
 0x114   :  { %v427_v5 = vmax.f32 %v423_v3, 0.0 }
 0x116   :  { %v509_v6 = vpack.c.bf16 %v427_v5, %v426_v4 }
 0x118   :  { %512 = vst [vmem:[%s720_s4 + $0x8] sm:$0xff] %v509_v6  }
 0x119   :  { %452 = vsyncpa [#allocation4], 1 }
 0x11a   :  { %453 = vsyncpa [#allocation6], 1 }

// kernel: _lambda_.18
= control target key start
LH: loop header
LB: loop body
LE: loop exit
PB: predicated region body
PF: predicated region fallthrough
CT: control target
= control target key end

     0   :  { %8 = vsyncpa [#allocation4], 0  ;;  %s386_s0 = inlined_call_operand.vmem [shape: bf16[16,128], index: 0, kind: input, shape index: {}]   ;;  %s387_s1 = inlined_call_operand.hbm [shape: bf16[128,256], index: 1, kind: input, shape index: {}]   ;;  %s388_s2 = inlined_call_operand.hbm [shape: f32[1,256], index: 2, kind: input, shape index: {}]   ;;  %s389_s3 = inlined_call_operand.vmem [shape: bf16[16,256], index: 3, kind: output, shape index: {}]  }
   0x1   :  { %9 = vsyncpa [#allocation6], 0  ;;  %s346_s12 = smov [#allocation3]  }
   0x2   :  { %s17_s13 = sshll.u32 %s346_s12, 4  ;;  %s18_s13 = int_to_ptr.vmem [resolvable:$true] %s17_s13 }
   0x3   :  { %s310_s14 = scalar_lea.vmem %s18_s13, 2048  ;;  %p315_p1 = scmp.lt.s32.totalorder %s18_s13, %s18_s13 }
   0x4   :  { %p311_p0 = scmp.ne.s32.totalorder %s18_s13, %s310_s14  ;;  %p316_p2 = scmp.lt.s32.totalorder %s310_s14, %s310_s14 }
   0x6   :  { %p317_p3 = por %p316_p2, %p315_p1 }
   0x8   :  { %p318_p4 = pnand %p317_p3, %p311_p0 }
   0xa   :  { %321 = shalt.err (!%p318_p4)
}
   0xb   :  { %s347_s15 = smov 128   ;;  %s348_s16 = smov 8  }
   0xc   :  { %23 = dma.hbm_to_vmem [thread:$0]  %s387_s1, 2048, %s18_s13, [#allocation4], %s347_s15, %s347_s15, %s348_s16  }
   0xd   :  { %s349_s19 = smov [#allocation5]  }
   0xe   :  { %s30_s20 = sshll.u32 %s349_s19, 4  ;;  %s31_s20 = int_to_ptr.vmem [resolvable:$true] %s30_s20 }
   0xf   :  { %s330_s21 = scalar_lea.vmem %s31_s20, 32  ;;  %p335_p6 = scmp.lt.s32.totalorder %s31_s20, %s31_s20 }
  0x10   :  { %p331_p5 = scmp.ne.s32.totalorder %s31_s20, %s330_s21  ;;  %p336_p7 = scmp.lt.s32.totalorder %s330_s21, %s330_s21 }
  0x12   :  { %p337_p8 = por %p336_p7, %p335_p6 }
  0x14   :  { %p338_p9 = pnand %p337_p8, %p331_p5 }
  0x16   :  { %341 = shalt.err (!%p338_p9)
}
  0x17   :  { %33 = dma.hbm_to_vmem [thread:$0]  %s388_s2, 32, %s31_s20, [#allocation6]  }
  0x18   :  { %342 = dma.done.wait [#allocation4], 2048  }
  0x19   :  { %343 = vsyncadd [#allocation4], 4294965248 }
  0x1a   :  { %344 = dma.done.wait [#allocation6], 32  }
  0x1b   :  { %345 = vsyncadd [#allocation6], 4294967264  ;;  %v350_v0 = vmov 0   ;;  %v277_v1 = vld [vmem:[#allocation3 + $0x74] ss:$8 sps:$4 sm:$0xff]   ;;  %v301_v17 = vld [vmem:[%s386_s0] sm:$0xff]   ;;  %v217_v18 = vlaneseq }
  0x1c   :  { %189 = vmatprep.mubr.bf16.mxu0 %v350_v0  ;;  %v279_v2 = vld [vmem:[#allocation3 + $0x70] ss:$8 sps:$4 sm:$0xff]   ;;  %157 = vmatprep.subr.bf16.mxu0 %v277_v1  ;;  %v280_v3 = vld [vmem:[#allocation3 + $0x64] ss:$8 sps:$4 sm:$0xff]   ;;  %v282_v4 = vld [vmem:[#allocation3 + $0x60] ss:$8 sps:$4 sm:$0xff]  }
  0x1d   :  { %158 = vmatpush1.bf16.msra.mxu0 %v279_v2  ;;  %v283_v5 = vld [vmem:[#allocation3 + $0x54] ss:$8 sps:$4 sm:$0xff]   ;;  %v285_v6 = vld [vmem:[#allocation3 + $0x50] ss:$8 sps:$4 sm:$0xff]   ;;  %v286_v7 = vld [vmem:[#allocation3 + $0x44] ss:$8 sps:$4 sm:$0xff]  }
  0x1e   :  { %159 = vmatprep.subr.bf16.mxu0 %v280_v3  ;;  %v288_v8 = vld [vmem:[#allocation3 + $0x40] ss:$8 sps:$4 sm:$0xff]   ;;  %v289_v9 = vld [vmem:[#allocation3 + $0x34] ss:$8 sps:$4 sm:$0xff]   ;;  %v291_v10 = vld [vmem:[#allocation3 + $0x30] ss:$8 sps:$4 sm:$0xff]  }
  0x1f   :  { %v292_v11 = vld [vmem:[#allocation3 + $0x24] ss:$8 sps:$4 sm:$0xff]   ;;  %v294_v12 = vld [vmem:[#allocation3 + $0x20] ss:$8 sps:$4 sm:$0xff]   ;;  %v295_v13 = vld [vmem:[#allocation3 + $0x14] ss:$8 sps:$4 sm:$0xff]  }
  0x20   :  { %v297_v14 = vld [vmem:[#allocation3 + $0x10] ss:$8 sps:$4 sm:$0xff]   ;;  %v298_v15 = vld [vmem:[#allocation3 + $0x4] ss:$8 sps:$4 sm:$0xff]   ;;  %v300_v16 = vld [vmem:[#allocation3] ss:$8 sps:$4 sm:$0xff]  }
  0x21   :  { %160 = vmatpush1.bf16.msra.mxu0 %v282_v4  ;;  %v218_v19 = vshrl.u32 %v217_v18, 7  ;;  %v215_v22 = vld [vmem:[#allocation5] sm:$0x3] }
  0x22   :  { %161 = vmatprep.subr.bf16.mxu0 %v283_v5 }
  0x23   :  { %v219_v20 = vsub.s32 0, %v218_v19  ;;  %v223_v21 = vsub.s32 1, %v218_v19 }
  0x25   :  { %162 = vmatpush1.bf16.msra.mxu0 %v285_v6  ;;  %v220_v23 = vrot.slane %v215_v22, %v219_v20  ;;  %v224_v24 = vrot.slane %v215_v22, %v223_v21 }
  0x26   :  { %163 = vmatprep.subr.bf16.mxu0 %v286_v7 }
  0x29   :  { %164 = vmatpush1.bf16.msra.mxu0 %v288_v8 }
  0x2a   :  { %165 = vmatprep.subr.bf16.mxu0 %v289_v9 }
  0x2d   :  { %166 = vmatpush1.bf16.msra.mxu0 %v291_v10 }
  0x2e   :  { %167 = vmatprep.subr.bf16.mxu0 %v292_v11 }
  0x31   :  { %168 = vmatpush1.bf16.msra.mxu0 %v294_v12 }
  0x32   :  { %169 = vmatprep.subr.bf16.mxu0 %v295_v13 }
  0x35   :  { %170 = vmatpush1.bf16.msra.mxu0 %v297_v14 }
  0x36   :  { %171 = vmatprep.subr.bf16.mxu0 %v298_v15 }
  0x39   :  { %172 = vmatpush1.bf16.msra.mxu0 %v300_v16 }
  0x3c   :  { %190 = vmatmul.mubr.bf16.vlgmr.msra.gmra.mxu0 %v301_v17 }
  0xfc   :  { %v191_v25 = vpop.f32.mrf.mxu0 }
  0xfd   :  { %v227_v27 = vadd.f32 %v220_v23, %v191_v25 }
  0xfe   :  { %v193_v26 = vpop.f32.mrf.mxu0 }
  0xff   :  { %v228_v28 = vadd.f32 %v224_v24, %v193_v26 }
 0x100   :  { %v195_v29 = vpop.f32.mrf.mxu0 }
 0x101   :  { %v270_v30 = vpack.c.bf16 %v228_v28, %v227_v27  ;;  %v229_v32 = vadd.f32 %v220_v23, %v195_v29 }
 0x102   :  { %v197_v31 = vpop.f32.mrf.mxu0 }
 0x103   :  { %243 = vst [vmem:[%s389_s3] sm:$0xff] %v270_v30  ;;  %v230_v33 = vadd.f32 %v224_v24, %v197_v31 }
 0x105   :  { %v271_v34 = vpack.c.bf16 %v230_v33, %v229_v32 }
 0x107   :  { %244 = vst [vmem:[%s389_s3 + $0x8] sm:$0xff] %v271_v34 }
 0x108   :  { %249 = vsyncpa [#allocation4], 1 }
 0x109   :  { %250 = vsyncpa [#allocation6], 1 }

// kernel: _lambda_.19
= control target key start
LH: loop header
LB: loop body
LE: loop exit
PB: predicated region body
PF: predicated region fallthrough
CT: control target
= control target key end

     0   :  { %8 = vsyncpa [#allocation4], 0  ;;  %s728_s0 = inlined_call_operand.vmem [shape: bf16[16,384], index: 0, kind: input, shape index: {}]   ;;  %s729_s1 = inlined_call_operand.hbm [shape: bf16[384,256], index: 1, kind: input, shape index: {}]   ;;  %s730_s2 = inlined_call_operand.hbm [shape: f32[1,256], index: 2, kind: input, shape index: {}]   ;;  %s731_s3 = inlined_call_operand.vmem [shape: bf16[16,256], index: 3, kind: output, shape index: {}]  }
   0x1   :  { %9 = vsyncpa [#allocation6], 0  ;;  %s682_s12 = smov [#allocation3]  }
   0x2   :  { %s17_s13 = sshll.u32 %s682_s12, 4  ;;  %s18_s13 = int_to_ptr.vmem [resolvable:$true] %s17_s13 }
   0x3   :  { %s646_s14 = scalar_lea.vmem %s18_s13, 6144  ;;  %p651_p1 = scmp.lt.s32.totalorder %s18_s13, %s18_s13 }
   0x4   :  { %p647_p0 = scmp.ne.s32.totalorder %s18_s13, %s646_s14  ;;  %p652_p2 = scmp.lt.s32.totalorder %s646_s14, %s646_s14 }
   0x6   :  { %p653_p3 = por %p652_p2, %p651_p1 }
   0x8   :  { %p654_p4 = pnand %p653_p3, %p647_p0 }
   0xa   :  { %657 = shalt.err (!%p654_p4)
}
   0xb   :  { %s683_s15 = smov 128   ;;  %s684_s16 = smov 8  }
   0xc   :  { %23 = dma.hbm_to_vmem [thread:$0]  %s729_s1, 6144, %s18_s13, [#allocation4], %s683_s15, %s683_s15, %s684_s16  }
   0xd   :  { %s685_s19 = smov [#allocation5]  }
   0xe   :  { %s30_s20 = sshll.u32 %s685_s19, 4  ;;  %s31_s20 = int_to_ptr.vmem [resolvable:$true] %s30_s20 }
   0xf   :  { %s666_s21 = scalar_lea.vmem %s31_s20, 32  ;;  %p671_p6 = scmp.lt.s32.totalorder %s31_s20, %s31_s20 }
  0x10   :  { %p667_p5 = scmp.ne.s32.totalorder %s31_s20, %s666_s21  ;;  %p672_p7 = scmp.lt.s32.totalorder %s666_s21, %s666_s21 }
  0x12   :  { %p673_p8 = por %p672_p7, %p671_p6 }
  0x14   :  { %p674_p9 = pnand %p673_p8, %p667_p5 }
  0x16   :  { %677 = shalt.err (!%p674_p9)
}
  0x17   :  { %33 = dma.hbm_to_vmem [thread:$0]  %s730_s2, 32, %s31_s20, [#allocation6]  }
  0x18   :  { %678 = dma.done.wait [#allocation4], 6144  }
  0x19   :  { %679 = vsyncadd [#allocation4], 4294961152 }
  0x1a   :  { %680 = dma.done.wait [#allocation6], 32  }
  0x1b   :  { %681 = vsyncadd [#allocation6], 4294967264  ;;  %v686_v0 = vmov 0   ;;  %v562_v1 = vld [vmem:[#allocation3 + $0x74] ss:$8 sps:$4 sm:$0xff]   ;;  %v464_v52 = vlaneseq }
  0x1c   :  { %436 = vmatprep.mubr.bf16.mxu1 %v686_v0  ;;  %v564_v2 = vld [vmem:[#allocation3 + $0x70] ss:$8 sps:$4 sm:$0xff]   ;;  %361 = vmatprep.subr.bf16.mxu0 %v562_v1  ;;  %v565_v3 = vld [vmem:[#allocation3 + $0x64] ss:$8 sps:$4 sm:$0xff]   ;;  %v567_v4 = vld [vmem:[#allocation3 + $0x60] ss:$8 sps:$4 sm:$0xff]  }
  0x1d   :  { %362 = vmatpush1.bf16.msra.mxu0 %v564_v2  ;;  %v568_v5 = vld [vmem:[#allocation3 + $0x54] ss:$8 sps:$4 sm:$0xff]   ;;  %v570_v6 = vld [vmem:[#allocation3 + $0x50] ss:$8 sps:$4 sm:$0xff]   ;;  %v571_v7 = vld [vmem:[#allocation3 + $0x44] ss:$8 sps:$4 sm:$0xff]  }
  0x1e   :  { %363 = vmatprep.subr.bf16.mxu0 %v565_v3  ;;  %v583_v8 = vld [vmem:[#allocation3 + $0x174] ss:$8 sps:$4 sm:$0xff]   ;;  %v585_v9 = vld [vmem:[#allocation3 + $0x170] ss:$8 sps:$4 sm:$0xff]   ;;  %v573_v10 = vld [vmem:[#allocation3 + $0x40] ss:$8 sps:$4 sm:$0xff]  }
  0x1f   :  { %v574_v11 = vld [vmem:[#allocation3 + $0x34] ss:$8 sps:$4 sm:$0xff]   ;;  %404 = vmatprep.subr.bf16.mxu1 %v583_v8  ;;  %v589_v12 = vld [vmem:[#allocation3 + $0x164] ss:$8 sps:$4 sm:$0xff]   ;;  %v591_v13 = vld [vmem:[#allocation3 + $0x160] ss:$8 sps:$4 sm:$0xff]  }
  0x20   :  { %405 = vmatpush1.bf16.msra.mxu1 %v585_v9  ;;  %v576_v14 = vld [vmem:[#allocation3 + $0x30] ss:$8 sps:$4 sm:$0xff]   ;;  %v595_v15 = vld [vmem:[#allocation3 + $0x154] ss:$8 sps:$4 sm:$0xff]   ;;  %v577_v16 = vld [vmem:[#allocation3 + $0x24] ss:$8 sps:$4 sm:$0xff]  }
  0x21   :  { %364 = vmatpush1.bf16.msra.mxu0 %v567_v4  ;;  %406 = vmatprep.subr.bf16.mxu1 %v589_v12  ;;  %v597_v17 = vld [vmem:[#allocation3 + $0x150] ss:$8 sps:$4 sm:$0xff]   ;;  %v601_v18 = vld [vmem:[#allocation3 + $0x144] ss:$8 sps:$4 sm:$0xff]   ;;  %v579_v19 = vld [vmem:[#allocation3 + $0x20] ss:$8 sps:$4 sm:$0xff]  }
  0x22   :  { %365 = vmatprep.subr.bf16.mxu0 %v568_v5  ;;  %v580_v20 = vld [vmem:[#allocation3 + $0x14] ss:$8 sps:$4 sm:$0xff]   ;;  %v603_v21 = vld [vmem:[#allocation3 + $0x140] ss:$8 sps:$4 sm:$0xff]   ;;  %v582_v23 = vld [vmem:[#allocation3 + $0x10] ss:$8 sps:$4 sm:$0xff]  }
  0x23   :  { %v607_v22 = vld [vmem:[#allocation3 + $0x134] ss:$8 sps:$4 sm:$0xff]   ;;  %v586_v24 = vld [vmem:[#allocation3 + $0x4] ss:$8 sps:$4 sm:$0xff]   ;;  %v609_v25 = vld [vmem:[#allocation3 + $0x130] ss:$8 sps:$4 sm:$0xff]  }
  0x24   :  { %407 = vmatpush1.bf16.msra.mxu1 %v591_v13  ;;  %v613_v26 = vld [vmem:[#allocation3 + $0x124] ss:$8 sps:$4 sm:$0xff]   ;;  %v588_v27 = vld [vmem:[#allocation3] ss:$8 sps:$4 sm:$0xff]   ;;  %v592_v28 = vld [vmem:[#allocation3 + $0xf4] ss:$8 sps:$4 sm:$0xff]  }
  0x25   :  { %366 = vmatpush1.bf16.msra.mxu0 %v570_v6  ;;  %408 = vmatprep.subr.bf16.mxu1 %v595_v15  ;;  %v615_v29 = vld [vmem:[#allocation3 + $0x120] ss:$8 sps:$4 sm:$0xff]   ;;  %v619_v30 = vld [vmem:[#allocation3 + $0x114] ss:$8 sps:$4 sm:$0xff]   ;;  %v594_v31 = vld [vmem:[#allocation3 + $0xf0] ss:$8 sps:$4 sm:$0xff]  }
  0x26   :  { %367 = vmatprep.subr.bf16.mxu0 %v571_v7  ;;  %v598_v32 = vld [vmem:[#allocation3 + $0xe4] ss:$8 sps:$4 sm:$0xff]   ;;  %v621_v33 = vld [vmem:[#allocation3 + $0x110] ss:$8 sps:$4 sm:$0xff]   ;;  %v600_v36 = vld [vmem:[#allocation3 + $0xe0] ss:$8 sps:$4 sm:$0xff]  }
  0x27   :  { %v625_v34 = vld [vmem:[#allocation3 + $0x104] ss:$8 sps:$4 sm:$0xff]   ;;  %v604_v37 = vld [vmem:[#allocation3 + $0xd4] ss:$8 sps:$4 sm:$0xff]   ;;  %v627_v38 = vld [vmem:[#allocation3 + $0x100] ss:$8 sps:$4 sm:$0xff]  }
  0x28   :  { %409 = vmatpush1.bf16.msra.mxu1 %v597_v17  ;;  %v637_v35 = vld [vmem:[%s728_s0 + $0x4] ss:$12 sps:$4 sm:$0xff]   ;;  %v631_v41 = vld [vmem:[%s728_s0 + $0x8] ss:$12 sps:$4 sm:$0xff]   ;;  %v635_v51 = vld [vmem:[%s728_s0] ss:$12 sps:$4 sm:$0xff]  }
  0x29   :  { %368 = vmatpush1.bf16.msra.mxu0 %v573_v10  ;;  %410 = vmatprep.subr.bf16.mxu1 %v601_v18  ;;  %v606_v39 = vld [vmem:[#allocation3 + $0xd0] ss:$8 sps:$4 sm:$0xff]   ;;  %v610_v40 = vld [vmem:[#allocation3 + $0xc4] ss:$8 sps:$4 sm:$0xff]   ;;  %v612_v42 = vld [vmem:[#allocation3 + $0xc0] ss:$8 sps:$4 sm:$0xff]  }
  0x2a   :  { %369 = vmatprep.subr.bf16.mxu0 %v574_v11  ;;  %393 = vmatprep.mubr.bf16.mxu0 %v637_v35  ;;  %v616_v43 = vld [vmem:[#allocation3 + $0xb4] ss:$8 sps:$4 sm:$0xff]   ;;  %v618_v44 = vld [vmem:[#allocation3 + $0xb0] ss:$8 sps:$4 sm:$0xff]   ;;  %v622_v45 = vld [vmem:[#allocation3 + $0xa4] ss:$8 sps:$4 sm:$0xff]  }
  0x2b   :  { %v624_v46 = vld [vmem:[#allocation3 + $0xa0] ss:$8 sps:$4 sm:$0xff]   ;;  %v628_v47 = vld [vmem:[#allocation3 + $0x94] ss:$8 sps:$4 sm:$0xff]   ;;  %v630_v48 = vld [vmem:[#allocation3 + $0x90] ss:$8 sps:$4 sm:$0xff]  }
  0x2c   :  { %411 = vmatpush1.bf16.msra.mxu1 %v603_v21  ;;  %v632_v49 = vld [vmem:[#allocation3 + $0x84] ss:$8 sps:$4 sm:$0xff]   ;;  %v634_v50 = vld [vmem:[#allocation3 + $0x80] ss:$8 sps:$4 sm:$0xff]   ;;  %v465_v53 = vshrl.u32 %v464_v52, 7 }
  0x2d   :  { %370 = vmatpush1.bf16.msra.mxu0 %v576_v14  ;;  %412 = vmatprep.subr.bf16.mxu1 %v607_v22  ;;  %v462_v56 = vld [vmem:[#allocation5] sm:$0x3] }
  0x2e   :  { %371 = vmatprep.subr.bf16.mxu0 %v577_v16  ;;  %v466_v55 = vsub.s32 0, %v465_v53  ;;  %v470_v57 = vsub.s32 1, %v465_v53 }
  0x30   :  { %413 = vmatpush1.bf16.msra.mxu1 %v609_v25  ;;  %v467_v59 = vrot.slane %v462_v56, %v466_v55  ;;  %v471_v62 = vrot.slane %v462_v56, %v470_v57 }
  0x31   :  { %372 = vmatpush1.bf16.msra.mxu0 %v579_v19  ;;  %414 = vmatprep.subr.bf16.mxu1 %v613_v26 }
  0x32   :  { %373 = vmatprep.subr.bf16.mxu0 %v580_v20 }
  0x34   :  { %415 = vmatpush1.bf16.msra.mxu1 %v615_v29 }
  0x35   :  { %374 = vmatpush1.bf16.msra.mxu0 %v582_v23  ;;  %416 = vmatprep.subr.bf16.mxu1 %v619_v30 }
  0x36   :  { %375 = vmatprep.subr.bf16.mxu0 %v586_v24 }
  0x38   :  { %417 = vmatpush1.bf16.msra.mxu1 %v621_v33 }
  0x39   :  { %376 = vmatpush1.bf16.msra.mxu0 %v588_v27  ;;  %418 = vmatprep.subr.bf16.mxu1 %v625_v34 }
  0x3a   :  { %377 = vmatprep.subr.bf16.mxu0 %v592_v28 }
  0x3c   :  { %419 = vmatpush1.bf16.msra.mxu1 %v627_v38 }
  0x3d   :  { %378 = vmatpush2.bf16.msra.mxu0 %v594_v31 }
  0x3e   :  { %379 = vmatprep.subr.bf16.mxu0 %v598_v32 }
  0x3f   :  { %437 = vmatmul.mubr.bf16.vlgmr.msra.gmra.mxu1 %v631_v41 }
  0x41   :  { %380 = vmatpush2.bf16.msra.mxu0 %v600_v36 }
  0x42   :  { %381 = vmatprep.subr.bf16.mxu0 %v604_v37 }
  0x45   :  { %382 = vmatpush2.bf16.msra.mxu0 %v606_v39 }
  0x46   :  { %383 = vmatprep.subr.bf16.mxu0 %v610_v40 }
  0x49   :  { %384 = vmatpush2.bf16.msra.mxu0 %v612_v42 }
  0x4a   :  { %385 = vmatprep.subr.bf16.mxu0 %v616_v43 }
  0x4d   :  { %386 = vmatpush2.bf16.msra.mxu0 %v618_v44 }
  0x4e   :  { %387 = vmatprep.subr.bf16.mxu0 %v622_v45 }
  0x51   :  { %388 = vmatpush2.bf16.msra.mxu0 %v624_v46 }
  0x52   :  { %389 = vmatprep.subr.bf16.mxu0 %v628_v47 }
  0x55   :  { %390 = vmatpush2.bf16.msra.mxu0 %v630_v48 }
  0x56   :  { %391 = vmatprep.subr.bf16.mxu0 %v632_v49 }
  0x59   :  { %392 = vmatpush2.bf16.msra.mxu0 %v634_v50 }
  0x5c   :  { %394 = vmatmul.mubr.bf16.vlgmr.msra.gmra.mxu0 %v635_v51 }
  0xff   :  { %v438_v54 = vpop.f32.mrf.mxu1 }
 0x101   :  { %v440_v58 = vpop.f32.mrf.mxu1 }
 0x103   :  { %v442_v63 = vpop.f32.mrf.mxu1 }
 0x105   :  { %v444_v6 = vpop.f32.mrf.mxu1 }
 0x11c   :  { %v395_v60 = vpop.f32.mrf.mxu0 }
 0x11d   :  { %v439_v61 = vadd.f32 %v438_v54, %v395_v60 }
 0x11e   :  { %v397_v0 = vpop.f32.mrf.mxu0 }
 0x11f   :  { %v474_v1 = vadd.f32 %v467_v59, %v439_v61  ;;  %v441_v2 = vadd.f32 %v440_v58, %v397_v0 }
 0x120   :  { %v399_v3 = vpop.f32.mrf.mxu0 }
 0x121   :  { %v475_v4 = vadd.f32 %v471_v62, %v441_v2  ;;  %v443_v5 = vadd.f32 %v442_v63, %v399_v3  ;;  %v478_v8 = vmax.f32 %v474_v1, 0.0 }
 0x122   :  { %v401_v7 = vpop.f32.mrf.mxu0 }
 0x123   :  { %v479_v9 = vmax.f32 %v475_v4, 0.0  ;;  %v476_v10 = vadd.f32 %v467_v59, %v443_v5  ;;  %v445_v11 = vadd.f32 %v444_v6, %v401_v7 }
 0x125   :  { %v555_v12 = vpack.c.bf16 %v479_v9, %v478_v8  ;;  %v477_v13 = vadd.f32 %v471_v62, %v445_v11  ;;  %v480_v14 = vmax.f32 %v476_v10, 0.0 }
 0x127   :  { %494 = vst [vmem:[%s731_s3] sm:$0xff] %v555_v12  ;;  %v481_v15 = vmax.f32 %v477_v13, 0.0 }
 0x129   :  { %v556_v16 = vpack.c.bf16 %v481_v15, %v480_v14 }
 0x12b   :  { %495 = vst [vmem:[%s731_s3 + $0x8] sm:$0xff] %v556_v16 }
 0x12c   :  { %500 = vsyncpa [#allocation4], 1 }
 0x12d   :  { %501 = vsyncpa [#allocation6], 1 }

// kernel: _lambda_.21
= control target key start
LH: loop header
LB: loop body
LE: loop exit
PB: predicated region body
PF: predicated region fallthrough
CT: control target
= control target key end

     0   :  { %8 = vsyncpa [#allocation4], 0  ;;  %s1197_s0 = inlined_call_operand.vmem [shape: bf16[8,256], index: 0, kind: input, shape index: {}]   ;;  %s1198_s1 = inlined_call_operand.hbm [shape: bf16[256,512], index: 1, kind: input, shape index: {}]   ;;  %s1199_s2 = inlined_call_operand.hbm [shape: f32[1,512], index: 2, kind: input, shape index: {}]   ;;  %s1200_s3 = inlined_call_operand.vmem [shape: bf16[8,512], index: 3, kind: output, shape index: {}]  }
   0x1   :  { %10 = vsyncpa [#allocation4 + $0x1], 0 }
   0x2   :  { %11 = vsyncpa [#allocation6], 0 }
   0x3   :  { %13 = vsyncpa [#allocation6 + $0x1], 0  ;;  %s1032_s12 = smov 0   ;;  %s1034_s13 = smov 0  }
   0x4   :  { %s1036_s14 = smov 0   ;;  %s1038_s15 = smov 0  }
   0x5   :  { %s1040_s16 = smov 0   ;;  %s1042_s17 = smov 0  }
   0x6 LB: > { %s726_s18 = sadd.s32 4294967295, %s1005_s17   ;;  %s34_s19 = sadd.s32 1, %s1001_s16  ;;  %s1005_s17 = sphi %s1042_s17, %s19_s17   ;;  %s1001_s16 = sphi %s1040_s16, %s1209_s16   ;;  %s997_s15 = sphi %s1038_s15, %s1208_s15   ;;  %s993_s14 = sphi %s1036_s14, %s1207_s14   ;;  %s989_s13 = sphi %s1034_s13, %s1206_s13   ;;  %s985_s12 = sphi %s1032_s12, %s1205_s12  }
   0x7   : > { %p36_p0 = scmp.ge.s32.totalorder %s34_s19, 2  ;;  %s75_s20 = sadd.s32 1, %s993_s14 }
   0x8   : > { %p82_p1 = scmp.ne.s32.totalorder %s993_s14, %s989_s13  ;;  %p83_p2 = scmp.eq.s32.totalorder %s1005_s17, 0 }
   0x9   : > { %s1211_s19 = smov (%p36_p0, %s34_s19), 0  ;;  %p88_p4 = scmp.ne.s32.totalorder %s989_s13, %s985_s12 }
   0xa   : > { %p1068_p3 = por %p83_p2, %p82_p1  ;;  %s71_s22 = ssub.s32 %s1001_s16, %s1211_s19 }
   0xb   : > { %p89_p5 = scmp.eq.s32.totalorder %s726_s18, 0  ;;  %p73_p6 = scmp.eq.s32.totalorder %s71_s22, 0 }
   0xc   : > { %p793_p8 = scmp.lt.s32.totalorder %s1005_s17, 2  ;;  %s1084_s25 = sand.u32 1, %s993_s14  }
   0xd   : > { %p1075_p7 = por %p89_p5, %p88_p4  ;;  %s779_s26 = sshll.u32 %s1001_s16, 7 }
   0xe   : > { %s1081_s24 = scalar_select %p73_p6, %s993_s14, %s75_s20  }
   0xf   : > { %s731_s27 = sshll.u32 %s1084_s25, 8  ;;  %s192_s30 = scalar_lea.hbm %s1198_s1, %s779_s26 }
  0x10   : > { %s183_s4 = scalar_lea.vmem [#allocation3], %s731_s27  ;;  %p1093_p9 = pnand %p793_p8, %p1068_p3 }
  0x11   : > { %s193_s5 = sshll.u32 %s183_s4, 4  ;;  %p737_p10 = scmp.ge.s32.totalorder %s1005_s17, 1  ;;  %s194_s5 = int_to_ptr.vmem [resolvable:$true] %s193_s5 }
  0x12   : > { %s180_s7 = scalar_lea.sflag [#allocation4], %s1084_s25  ;;  %p897_p11 = pneg %p1093_p9 }
  0x13   : > { %s908_s8 = scalar_lea.vmem %s194_s5, 4096  ;;  %s1007_s9 = smov [#allocation3]  }
  0x14   : > { %p909_p12 = scmp.ne.s32.totalorder %s194_s5, %s908_s8  ;;  %s913_s10 = sshll.u32 %s1007_s9, 4  ;;  %s914_s10 = int_to_ptr.vmem [resolvable:$false] %s913_s10 }
  0x15   : > { %s915_s11 = scalar_lea.vmem %s914_s10, 8192  ;;  %p916_p1 = scmp.lt.s32.totalorder %s194_s5, %s914_s10 }
  0x16   : > { %p911_p13 = pnand %p909_p12, %p897_p11  ;;  %p917_p2 = scmp.lt.s32.totalorder %s915_s11, %s908_s8 }
  0x18   : > { %p912_p0 = pneg %p911_p13  ;;  %p918_p3 = por %p917_p2, %p916_p1 }
  0x1a   : > { %p919_p4 = pnand %p918_p3, %p912_p0 }
  0x1c   : > { %922 = shalt.err (!%p919_p4)
}
  0x1d   : > { %s1008_s12 = smov 256   ;;  %s1009_s18 = smov 128  }
  0x1e   : > { %s1010_s20 = smov 8   ;;  %p220_p5 = scmp.lt.s32.totalorder %s1005_s17, 3 }
  0x1f   : > { %789 = dma.hbm_to_vmem [thread:$0]  (!%p1093_p9), %s192_s30, 4096, %s194_s5, %s180_s7, %s1008_s12, %s1009_s18, %s1010_s20  }
  0x20   : > { %s734_s21 = sshll.u32 %s1084_s25, 1  ;;  %s780_s22 = sshll.u32 %s1001_s16, 5 }
  0x21   : > { %p1111_p6 = pnand %p737_p10, %p220_p5  ;;  %s213_s29 = scalar_lea.hbm %s1199_s2, %s780_s22 }
  0x22   : > { %s207_s4 = scalar_lea.vmem [#allocation5], %s734_s21  ;;  %s204_s9 = scalar_lea.sflag [#allocation6], %s1084_s25 }
  0x23   : > { %s215_s8 = sshll.u32 %s207_s4, 4  ;;  %s1011_s30 = smov [#allocation5]   ;;  %s216_s8 = int_to_ptr.vmem [resolvable:$true] %s215_s8 }
  0x24   : > { %s936_s10 = scalar_lea.vmem %s216_s8, 32  ;;  %s941_s5 = sshll.u32 %s1011_s30, 4  ;;  %s942_s5 = int_to_ptr.vmem [resolvable:$false] %s941_s5 }
  0x25   : > { %p937_p8 = scmp.ne.s32.totalorder %s216_s8, %s936_s10  ;;  %s943_s7 = scalar_lea.vmem %s942_s5, 64 }
  0x26   : > { %p944_p10 = scmp.lt.s32.totalorder %s216_s8, %s942_s5  ;;  %p945_p0 = scmp.lt.s32.totalorder %s943_s7, %s936_s10 }
  0x27   : > { %p939_p12 = pnand %p937_p8, %p897_p11 }
  0x28   : > { %p946_p1 = por %p945_p0, %p944_p10 }
  0x29   : > { %p940_p13 = pneg %p939_p12 }
  0x2b   : > { %p947_p2 = pnand %p946_p1, %p940_p13 }
  0x2d   : > { %950 = shalt.err (!%p947_p2)
}
  0x2e   : > { %792 = dma.hbm_to_vmem [thread:$0]  (!%p1093_p9), %s213_s29, 32, %s216_s8, %s204_s9  }
  0x2f   : > { %224 = sbr.rel (%p1111_p6) target bundleno = 321 (0x141), region = 32  ;;  %s226_s25 = sand.u32 (!%p1111_p6), 1, %s989_s13  }
  0x30   : > { %s738_s11 = sshll.u32 (!%p1111_p6), %s226_s25, 8  ;;  %s227_s12 = scalar_lea.sflag (!%p1111_p6), [#allocation4], %s226_s25 }
  0x31   : > { %s1127_s18 = scalar_lea.vmem (!%p1111_p6), [#allocation3], %s738_s11 }
  0x34   : > { %976 = dma.done.wait (%p1075_p7), %s227_s12, 4096  }
  0x35   : > { %978 = vsyncadd (%p1075_p7), %s227_s12, 4294963200  ;;  %s739_s20 = sshll.u32 %s226_s25, 1  ;;  %s236_s21 = scalar_lea.sflag [#allocation6], %s226_s25 }
  0x36   : > { %s1133_s6 = scalar_lea.vmem [#allocation5], %s739_s20 }
  0x37   : > { %980 = dma.done.wait (%p1075_p7), %s236_s21, 32  }
  0x38   : > { %982 = vsyncadd (%p1075_p7), %s236_s21, 4294967264  ;;  %v845_v0 = vld [vmem:[%s1127_s18 + $0x74] ss:$8 sps:$4 sm:$0xff]   ;;  %v847_v1 = vld [vmem:[%s1127_s18 + $0x70] ss:$8 sps:$4 sm:$0xff]   ;;  %v563_v35 = vlaneseq  ;;  %s740_s26 = sshll.u32 %s997_s15, 1 }
  0x39   : > { %511 = vmatprep.subr.bf16.mxu0 %v845_v0  ;;  %v848_v2 = vld [vmem:[%s1127_s18 + $0x64] ss:$8 sps:$4 sm:$0xff]   ;;  %v850_v3 = vld [vmem:[%s1127_s18 + $0x60] ss:$8 sps:$4 sm:$0xff]   ;;  %v851_v4 = vld [vmem:[%s1127_s18 + $0x54] ss:$8 sps:$4 sm:$0xff]  }
  0x3a   : > { %512 = vmatpush1.bf16.msra.mxu0 %v847_v1  ;;  %v853_v5 = vld [vmem:[%s1127_s18 + $0x50] ss:$8 sps:$4 sm:$0xff]   ;;  %v854_v6 = vld [vmem:[%s1127_s18 + $0x44] ss:$8 sps:$4 sm:$0xff]   ;;  %v856_v7 = vld [vmem:[%s1127_s18 + $0x40] ss:$8 sps:$4 sm:$0xff]  }
  0x3b   : > { %513 = vmatprep.subr.bf16.mxu0 %v848_v2  ;;  %v857_v8 = vld [vmem:[%s1127_s18 + $0x34] ss:$8 sps:$4 sm:$0xff]   ;;  %v859_v9 = vld [vmem:[%s1127_s18 + $0x30] ss:$8 sps:$4 sm:$0xff]   ;;  %v860_v10 = vld [vmem:[%s1127_s18 + $0x24] ss:$8 sps:$4 sm:$0xff]  }
  0x3c   : > { %v862_v11 = vld [vmem:[%s1127_s18 + $0x20] ss:$8 sps:$4 sm:$0xff]   ;;  %v863_v12 = vld [vmem:[%s1127_s18 + $0x14] ss:$8 sps:$4 sm:$0xff]   ;;  %v865_v15 = vld [vmem:[%s1127_s18 + $0x10] ss:$8 sps:$4 sm:$0xff]  }
  0x3d   : > { %v311_v13 = vld [vmem:[%s1197_s0] sm:$0xff]  ;;  %v869_v18 = vld [vmem:[%s1127_s18 + $0xf4] ss:$8 sps:$4 sm:$0xff]   ;;  %v871_v19 = vld [vmem:[%s1127_s18 + $0xf0] ss:$8 sps:$4 sm:$0xff]   ;;  %v564_v36 = vshrl.u32 %v563_v35, 7 }
  0x3e   : > { %514 = vmatpush1.bf16.msra.mxu0 %v850_v3  ;;  %v743_v14 = vcombine.high %v311_v13, %v311_v13  ;;  %v866_v16 = vld [vmem:[%s1127_s18 + $0x4] ss:$8 sps:$4 sm:$0xff]   ;;  %v868_v17 = vld [vmem:[%s1127_s18] ss:$8 sps:$4 sm:$0xff]   ;;  %v875_v22 = vld [vmem:[%s1127_s18 + $0xd4] ss:$8 sps:$4 sm:$0xff]   ;;  %v742_v34 = vcombine.low %v311_v13, %v311_v13 }
  0x3f   : > { %515 = vmatprep.subr.bf16.mxu0 %v851_v4  ;;  %v872_v20 = vld [vmem:[%s1127_s18 + $0xe4] ss:$8 sps:$4 sm:$0xff]   ;;  %v874_v21 = vld [vmem:[%s1127_s18 + $0xe0] ss:$8 sps:$4 sm:$0xff]   ;;  %v877_v23 = vld [vmem:[%s1127_s18 + $0xd0] ss:$8 sps:$4 sm:$0xff]  }
  0x40   : > { %543 = vmatprep.mubr.bf16.mxu0 %v743_v14  ;;  %v878_v24 = vld [vmem:[%s1127_s18 + $0xc4] ss:$8 sps:$4 sm:$0xff]   ;;  %v880_v25 = vld [vmem:[%s1127_s18 + $0xc0] ss:$8 sps:$4 sm:$0xff]   ;;  %v881_v26 = vld [vmem:[%s1127_s18 + $0xb4] ss:$8 sps:$4 sm:$0xff]  }
  0x41   : > { %v883_v27 = vld [vmem:[%s1127_s18 + $0xb0] ss:$8 sps:$4 sm:$0xff]   ;;  %v884_v28 = vld [vmem:[%s1127_s18 + $0xa4] ss:$8 sps:$4 sm:$0xff]   ;;  %v886_v29 = vld [vmem:[%s1127_s18 + $0xa0] ss:$8 sps:$4 sm:$0xff]  }
  0x42   : > { %516 = vmatpush1.bf16.msra.mxu0 %v853_v5  ;;  %v887_v30 = vld [vmem:[%s1127_s18 + $0x94] ss:$8 sps:$4 sm:$0xff]   ;;  %v889_v31 = vld [vmem:[%s1127_s18 + $0x90] ss:$8 sps:$4 sm:$0xff]   ;;  %v890_v32 = vld [vmem:[%s1127_s18 + $0x84] ss:$8 sps:$4 sm:$0xff]  }
  0x43   : > { %517 = vmatprep.subr.bf16.mxu0 %v854_v6  ;;  %v892_v33 = vld [vmem:[%s1127_s18 + $0x80] ss:$8 sps:$4 sm:$0xff]   ;;  %p296_p7 = scmp.lt.s32.totalorder %s740_s26, 3  ;;  %v565_v37 = vsub.s32 0, %v564_v36  ;;  %v569_v38 = vsub.s32 1, %v564_v36 }
  0x44   : > { %v561_v39 = vld [vmem:[%s1133_s6] sm:$0x3] }
  0x45   : > { %s1213_s26 = smov (!%p296_p7, %s740_s26), 3  ;;  %v566_v40 = vrot.slane %v561_v39, %v565_v37  ;;  %v570_v41 = vrot.slane %v561_v39, %v569_v38 }
  0x46   : > { %518 = vmatpush1.bf16.msra.mxu0 %v856_v7  ;;  %s741_s27 = sshll.u32 %s1213_s26, 2 }
  0x47   : > { %519 = vmatprep.subr.bf16.mxu0 %v857_v8  ;;  %s301_s4 = scalar_lea.vmem %s1200_s3, %s741_s27 }
  0x4a   : > { %520 = vmatpush1.bf16.msra.mxu0 %v859_v9 }
  0x4b   : > { %521 = vmatprep.subr.bf16.mxu0 %v860_v10 }
  0x4e   : > { %522 = vmatpush1.bf16.msra.mxu0 %v862_v11 }
  0x4f   : > { %523 = vmatprep.subr.bf16.mxu0 %v863_v12 }
  0x52   : > { %524 = vmatpush1.bf16.msra.mxu0 %v865_v15 }
  0x53   : > { %525 = vmatprep.subr.bf16.mxu0 %v866_v16 }
  0x56   : > { %526 = vmatpush1.bf16.msra.mxu0 %v868_v17 }
  0x57   : > { %527 = vmatprep.subr.bf16.mxu0 %v869_v18 }
  0x5a   : > { %528 = vmatpush2.bf16.msra.mxu0 %v871_v19 }
  0x5b   : > { %529 = vmatprep.subr.bf16.mxu0 %v872_v20 }
  0x5e   : > { %530 = vmatpush2.bf16.msra.mxu0 %v874_v21 }
  0x5f   : > { %531 = vmatprep.subr.bf16.mxu0 %v875_v22 }
  0x62   : > { %532 = vmatpush2.bf16.msra.mxu0 %v877_v23 }
  0x63   : > { %533 = vmatprep.subr.bf16.mxu0 %v878_v24 }
  0x66   : > { %534 = vmatpush2.bf16.msra.mxu0 %v880_v25 }
  0x67   : > { %535 = vmatprep.subr.bf16.mxu0 %v881_v26 }
  0x6a   : > { %536 = vmatpush2.bf16.msra.mxu0 %v883_v27 }
  0x6b   : > { %537 = vmatprep.subr.bf16.mxu0 %v884_v28 }
  0x6e   : > { %538 = vmatpush2.bf16.msra.mxu0 %v886_v29 }
  0x6f   : > { %539 = vmatprep.subr.bf16.mxu0 %v887_v30 }
  0x72   : > { %540 = vmatpush2.bf16.msra.mxu0 %v889_v31 }
  0x73   : > { %541 = vmatprep.subr.bf16.mxu0 %v890_v32 }
  0x76   : > { %542 = vmatpush2.bf16.msra.mxu0 %v892_v33 }
  0x79   : > { %544 = vmatmul.mubr.bf16.vlgmr.msra.gmra.mxu0 %v742_v34 }
 0x139   : > { %v545_v42 = vpop.f32.mrf.mxu0 }
 0x13a   : > { %v573_v44 = vadd.f32 %v566_v40, %v545_v42 }
 0x13b   : > { %v547_v43 = vpop.f32.mrf.mxu0 }
 0x13c   : > { %v574_v45 = vadd.f32 %v570_v41, %v547_v43 }
 0x13d   : > { %v549_v46 = vpop.f32.mrf.mxu0 }
 0x13e   : > { %v781_v47 = vpack.c.bf16 %v574_v45, %v573_v44 }
 0x13f   : > { %v550_v48 = vpop.f32.mrf.mxu0 }
 0x140   : > { %583 = vst [vmem:[%s301_s4] sm:$0xff] %v781_v47 }
 0x141 PF: > { %s19_s17 = sadd.s32 1, %s1005_s17   ;;  %s1205_s12 = smov %s989_s13 }
 0x142   : > { %p16_p9 = scmp.ge.s32.totalorder %s19_s17, 4   ;;  %s1206_s13 = smov %s993_s14 }
 0x143   : > { %s1207_s14 = smov %s1081_s24  ;;  %s1208_s15 = smov %s1001_s16 }
 0x144   : > { %s1209_s16 = smov %s1211_s19  ;;  %18 = sbr.rel (!%p16_p9) target bundleno = 6 (0x6), region = 96 }
 0x149   :  { %614 = vsyncpa [#allocation4], 1 }
 0x14a   :  { %616 = vsyncpa [#allocation4 + $0x1], 1 }
 0x14b   :  { %617 = vsyncpa [#allocation6], 1 }
 0x14c   :  { %619 = vsyncpa [#allocation6 + $0x1], 1 }

// kernel: _lambda_.20
= control target key start
LH: loop header
LB: loop body
LE: loop exit
PB: predicated region body
PF: predicated region fallthrough
CT: control target
= control target key end

     0   :  { %9 = vsyncpa [#allocation5], 0  ;;  %s1554_s0 = inlined_call_operand.vmem [shape: bf16[16,768], index: 0, kind: input, shape index: {}]   ;;  %s1555_s1 = inlined_call_operand.hbm [shape: bf16[768,256], index: 1, kind: input, shape index: {}]   ;;  %s1556_s2 = inlined_call_operand.hbm [shape: f32[1,256], index: 2, kind: input, shape index: {}]   ;;  %s1557_s3 = inlined_call_operand.vmem [shape: bf16[16,256], index: 3, kind: input, shape index: {}]   ;;  %s1558_s4 = inlined_call_operand.vmem [shape: bf16[16,256], index: 4, kind: output, shape index: {}]  }
   0x1   :  { %11 = vsyncpa [#allocation5 + $0x1], 0 }
   0x2   :  { %12 = vsyncpa [#allocation7], 0  ;;  %s1370_s15 = smov 0   ;;  %s1372_s16 = smov 0  }
   0x3   :  { %s1374_s17 = smov 0   ;;  %s1376_s18 = smov 0  }
   0x4   :  { %s1378_s19 = smov 0   ;;  %s1380_s20 = smov 0  }
   0x5 LB: > { %s1007_s21 = sadd.s32 4294967295, %s1337_s20   ;;  %s30_s22 = sadd.s32 1, %s1333_s19  ;;  %s1337_s20 = sphi %s1380_s20, %s18_s20   ;;  %s1333_s19 = sphi %s1378_s19, %s1569_s19   ;;  %s1329_s18 = sphi %s1376_s18, %s1568_s18   ;;  %s1325_s17 = sphi %s1374_s17, %s1567_s17   ;;  %s1321_s16 = sphi %s1372_s16, %s1566_s16   ;;  %s1317_s15 = sphi %s1370_s15, %s1565_s15  }
   0x6   : > { %p31_p0 = scmp.ge.s32.totalorder %s30_s22, 2  ;;  %s46_s23 = sadd.s32 1, %s1325_s17 }
   0x7   : > { %p53_p1 = scmp.ne.s32.totalorder %s1325_s17, %s1321_s16  ;;  %p54_p2 = scmp.eq.s32.totalorder %s1337_s20, 0 }
   0x8   : > { %s1571_s22 = smov (%p31_p0, %s30_s22), 0  ;;  %p87_p4 = scmp.ne.s32.totalorder %s1321_s16, %s1317_s15 }
   0x9   : > { %p1406_p3 = por %p54_p2, %p53_p1  ;;  %s42_s25 = ssub.s32 %s1333_s19, %s1571_s22 }
   0xa   : > { %p1413_p5 = scmp.eq.s32.totalorder %s1007_s21, 0  ;;  %p44_p6 = scmp.eq.s32.totalorder %s42_s25, 0 }
   0xb   : > { %p1008_p7 = scmp.ge.s32.totalorder %s1337_s20, 1  ;;  %p180_p9 = scmp.lt.s32.totalorder %s1337_s20, 3 }
   0xc   : > { %p1420_p8 = por %p1413_p5, %p87_p4  ;;  %s1339_s30 = smov [#allocation6]  }
   0xd   : > { %s1426_s28 = scalar_select %p44_p6, %s1325_s17, %s46_s23  }
   0xe   : > { %s1562_s27 = scalar_select %p1420_p8, 1, 0 }
   0xf   : > { %p1428_p10 = pnand %p1008_p7, %p180_p9  ;;  %s196_s5 = sshll.u32 %s1339_s30, 4  ;;  %s197_s5 = int_to_ptr.vmem [resolvable:$true] %s196_s5 }
  0x10   : > { %s1242_s6 = scalar_lea.vmem %s197_s5, 32  ;;  %p1250_p4 = scmp.lt.s32.totalorder %s197_s5, %s197_s5 }
  0x11   : > { %p1096_p11 = pneg %p1428_p10  ;;  %p1243_p0 = scmp.ne.s32.totalorder %s197_s5, %s1242_s6 }
  0x12   : > { %p1251_p6 = scmp.lt.s32.totalorder %s1242_s6, %s1242_s6 }
  0x13   : > { %p1097_p12 = pnand %p1096_p11, %p1413_p5 }
  0x14   : > { %p1252_p8 = por %p1251_p6, %p1250_p4 }
  0x15   : > { %p1233_p13 = pneg %p1097_p12 }
  0x17   : > { %p1245_p1 = pnand %p1243_p0, %p1233_p13 }
  0x19   : > { %p1246_p2 = pneg %p1245_p1 }
  0x1b   : > { %p1253_p7 = pnand %p1252_p8, %p1246_p2 }
  0x1d   : > { %1256 = shalt.err (!%p1253_p7)
}
  0x1e   : > { %1099 = dma.hbm_to_vmem [thread:$0]  (!%p1097_p12), %s1556_s2, 32, %s197_s5, [#allocation7]  }
  0x1f   : > { %p1011_p9 = scmp.ge.s32.totalorder %s1337_s20, 2 }
  0x21   : > { %218 = sbr.rel (%p1011_p9) target bundleno = 62 (0x3e), region = 24 }
  0x26   : > { %221 = sbr.rel (!%p1406_p3) target bundleno = 45 (0x2d), region = 28  ;;  %s223_s9 = sand.u32 (%p1406_p3), 1, %s1325_s17  }
  0x27   : > { %s1080_s10 = smul.u32 (%p1406_p3), 12, %s1333_s19 }
  0x28   : > { %s1086_s11 = smul.u32 (%p1406_p3), 24, %s223_s9 }
  0x29   : > { %s231_s14 = scalar_lea.vmem (%p1406_p3), %s1554_s0, %s1080_s10 }
  0x2a   : > { %v246_v0 = vld [vmem:[%s231_s14] sm:$0xff] (%p1406_p3)  ;;  %v248_v1 = vld [vmem:[%s231_s14 + $0x18] sm:$0xff] (%p1406_p3)  ;;  %v1013_v2 = vld [vmem:[%s231_s14 + $0x8] sm:$0xf] (%p1406_p3)  ;;  %s225_s15 = scalar_lea.vmem (%p1406_p3), [#allocation3], %s1086_s11 }
  0x2b   : > { %247 = vst [vmem:[%s225_s15] sm:$0xff] %v246_v0  ;;  %249 = vst [vmem:[%s225_s15 + $0xc] sm:$0xff] %v248_v1  ;;  %v1015_v3 = vld [vmem:[%s231_s14 + $0x20] sm:$0xf] }
  0x2c   : > { %1014 = vst [vmem:[%s225_s15 + $0x8] sm:$0xf] %v1013_v2  ;;  %1016 = vst [vmem:[%s225_s15 + $0x14] sm:$0xf] %v1015_v3 }
  0x2d PF: > { %s268_s21 = sand.u32 1, %s1325_s17   ;;  %s1085_s23 = smul.u32 6144, %s1333_s19 }
  0x2e   : > { %s1087_s25 = smul.u32 384, %s268_s21  ;;  %s269_s9 = scalar_lea.sflag [#allocation5], %s268_s21 }
  0x2f   : > { %s281_s6 = scalar_lea.hbm %s1555_s1, %s1085_s23  ;;  %s1340_s11 = smov [#allocation4]  }
  0x30   : > { %s272_s7 = scalar_lea.vmem [#allocation4], %s1087_s25  ;;  %s1273_s12 = sshll.u32 %s1340_s11, 4  ;;  %s1274_s12 = int_to_ptr.vmem [resolvable:$false] %s1273_s12 }
  0x31   : > { %s282_s8 = sshll.u32 %s272_s7, 4  ;;  %s1275_s13 = scalar_lea.vmem %s1274_s12, 12288  ;;  %s283_s8 = int_to_ptr.vmem [resolvable:$true] %s282_s8 }
  0x32   : > { %s1269_s10 = scalar_lea.vmem %s283_s8, 6144  ;;  %p1276_p13 = scmp.lt.s32.totalorder %s283_s8, %s1274_s12 }
  0x33   : > { %p1270_p8 = scmp.ne.s32.totalorder %s283_s8, %s1269_s10  ;;  %p1277_p0 = scmp.lt.s32.totalorder %s1275_s13, %s1269_s10 }
  0x35   : > { %p1271_p11 = pnand %p1270_p8, %p1406_p3  ;;  %p1278_p1 = por %p1277_p0, %p1276_p13 }
  0x37   : > { %p1272_p12 = pneg %p1271_p11 }
  0x39   : > { %p1279_p2 = pnand %p1278_p1, %p1272_p12 }
  0x3b   : > { %1282 = shalt.err (!%p1279_p2)
}
  0x3c   : > { %s1341_s14 = smov 128   ;;  %s1342_s15 = smov 8  }
  0x3d   : > { %1092 = dma.hbm_to_vmem [thread:$0]  (%p1406_p3), %s281_s6, 6144, %s283_s8, %s269_s9, %s1341_s14, %s1341_s14, %s1342_s15  }
  0x3e PF: > { %294 = sbr.rel (%p1428_p10) target bundleno = 366 (0x16e), region = 58  ;;  %s297_s21 = sand.u32 (!%p1428_p10), 1, %s1321_s16  }
  0x3f   : > { %s1088_s23 = smul.u32 (!%p1428_p10), 24, %s297_s21  ;;  %s304_s5 = scalar_lea.sflag (!%p1428_p10), [#allocation5], %s297_s21 }
  0x40   : > { %s1089_s25 = smul.u32 (!%p1428_p10), 384, %s297_s21  ;;  %p1564_p4 = scmp.ne.s32.totalorder (!%p1428_p10), %s1562_s27, 0 }
  0x41   : > { %s1459_s30 = scalar_lea.vmem (!%p1428_p10), [#allocation3], %s1088_s23 }
  0x42   : > { %s1461_s7 = scalar_lea.vmem (!%p1428_p10), [#allocation4], %s1089_s25 }
  0x43   : > { %1308 = dma.done.wait (%p1564_p4), %s304_s5, 6144  }
  0x44   : > { %1310 = vsyncadd (%p1564_p4), %s304_s5, 4294961152 }
  0x45   : > { %1312 = dma.done.wait (%p1413_p5), [#allocation7], 32  }
  0x46   : > { %1314 = vsyncadd (%p1413_p5), [#allocation7], 4294967264  ;;  %p1021_p3 = scmp.ne.s32.totalorder %s1329_s18, 0 }
  0x48   : > { %388 = sbr.rel (%p1021_p3) target bundleno = 80 (0x50), region = 74 }
  0x4d   : > { %v1343_v4 = vmov 0.0  }
  0x4e   : > { %389 = vst [vmem:[#allocation2 + $0x10] sm:$0xff] %v1343_v4  ;;  %390 = vst [vmem:[#allocation2] sm:$0xff] %v1343_v4 }
  0x4f   : > { %391 = vst [vmem:[#allocation2 + $0x18] sm:$0xff] %v1343_v4  ;;  %392 = vst [vmem:[#allocation2 + $0x8] sm:$0xff] %v1343_v4 }
  0x50 PF: > { %v1155_v5 = vld [vmem:[%s1461_s7 + $0x74] ss:$8 sps:$4 sm:$0xff]   ;;  %v1157_v6 = vld [vmem:[%s1461_s7 + $0x70] ss:$8 sps:$4 sm:$0xff]   ;;  %v1344_v7 = vmov 0   ;;  %p1073_p5 = scmp.ne.s32.totalorder %s1329_s18, 1 }
  0x51   : > { %780 = vmatprep.mubr.bf16.mxu1 %v1344_v7  ;;  %705 = vmatprep.subr.bf16.mxu0 %v1155_v5  ;;  %v1158_v8 = vld [vmem:[%s1461_s7 + $0x64] ss:$8 sps:$4 sm:$0xff]   ;;  %v1160_v9 = vld [vmem:[%s1461_s7 + $0x60] ss:$8 sps:$4 sm:$0xff]   ;;  %v1161_v10 = vld [vmem:[%s1461_s7 + $0x54] ss:$8 sps:$4 sm:$0xff]  }
  0x52   : > { %706 = vmatpush1.bf16.msra.mxu0 %v1157_v6  ;;  %v1163_v11 = vld [vmem:[%s1461_s7 + $0x50] ss:$8 sps:$4 sm:$0xff]   ;;  %v1164_v12 = vld [vmem:[%s1461_s7 + $0x44] ss:$8 sps:$4 sm:$0xff]   ;;  %v1176_v13 = vld [vmem:[%s1461_s7 + $0x174] ss:$8 sps:$4 sm:$0xff]  }
  0x53   : > { %707 = vmatprep.subr.bf16.mxu0 %v1158_v8  ;;  %v1178_v14 = vld [vmem:[%s1461_s7 + $0x170] ss:$8 sps:$4 sm:$0xff]   ;;  %v1166_v15 = vld [vmem:[%s1461_s7 + $0x40] ss:$8 sps:$4 sm:$0xff]   ;;  %v1167_v16 = vld [vmem:[%s1461_s7 + $0x34] ss:$8 sps:$4 sm:$0xff]   ;;  %748 = vmatprep.subr.bf16.mxu1 %v1176_v13 }
  0x54   : > { %v1182_v17 = vld [vmem:[%s1461_s7 + $0x164] ss:$8 sps:$4 sm:$0xff]   ;;  %749 = vmatpush1.bf16.msra.mxu1 %v1178_v14  ;;  %v1184_v18 = vld [vmem:[%s1461_s7 + $0x160] ss:$8 sps:$4 sm:$0xff]   ;;  %v1169_v19 = vld [vmem:[%s1461_s7 + $0x30] ss:$8 sps:$4 sm:$0xff]  }
  0x55   : > { %750 = vmatprep.subr.bf16.mxu1 %v1182_v17  ;;  %v1188_v20 = vld [vmem:[%s1461_s7 + $0x154] ss:$8 sps:$4 sm:$0xff]   ;;  %v1170_v21 = vld [vmem:[%s1461_s7 + $0x24] ss:$8 sps:$4 sm:$0xff]   ;;  %v1190_v22 = vld [vmem:[%s1461_s7 + $0x150] ss:$8 sps:$4 sm:$0xff]  }
  0x56   : > { %708 = vmatpush1.bf16.msra.mxu0 %v1160_v9  ;;  %v1194_v23 = vld [vmem:[%s1461_s7 + $0x144] ss:$8 sps:$4 sm:$0xff]   ;;  %v1172_v24 = vld [vmem:[%s1461_s7 + $0x20] ss:$8 sps:$4 sm:$0xff]   ;;  %v1173_v25 = vld [vmem:[%s1461_s7 + $0x14] ss:$8 sps:$4 sm:$0xff]  }
  0x57   : > { %709 = vmatprep.subr.bf16.mxu0 %v1161_v10  ;;  %v1196_v26 = vld [vmem:[%s1461_s7 + $0x140] ss:$8 sps:$4 sm:$0xff]   ;;  %v1200_v27 = vld [vmem:[%s1461_s7 + $0x134] ss:$8 sps:$4 sm:$0xff]   ;;  %v1175_v28 = vld [vmem:[%s1461_s7 + $0x10] ss:$8 sps:$4 sm:$0xff]  }
  0x58   : > { %751 = vmatpush1.bf16.msra.mxu1 %v1184_v18  ;;  %v1179_v29 = vld [vmem:[%s1461_s7 + $0x4] ss:$8 sps:$4 sm:$0xff]   ;;  %v1202_v30 = vld [vmem:[%s1461_s7 + $0x130] ss:$8 sps:$4 sm:$0xff]   ;;  %v1181_v32 = vld [vmem:[%s1461_s7] ss:$8 sps:$4 sm:$0xff]  }
  0x59   : > { %752 = vmatprep.subr.bf16.mxu1 %v1188_v20  ;;  %v1206_v31 = vld [vmem:[%s1461_s7 + $0x124] ss:$8 sps:$4 sm:$0xff]   ;;  %v1185_v33 = vld [vmem:[%s1461_s7 + $0xf4] ss:$8 sps:$4 sm:$0xff]   ;;  %v1208_v34 = vld [vmem:[%s1461_s7 + $0x120] ss:$8 sps:$4 sm:$0xff]  }
  0x5a   : > { %710 = vmatpush1.bf16.msra.mxu0 %v1163_v11  ;;  %v1212_v35 = vld [vmem:[%s1461_s7 + $0x114] ss:$8 sps:$4 sm:$0xff]   ;;  %v1187_v36 = vld [vmem:[%s1461_s7 + $0xf0] ss:$8 sps:$4 sm:$0xff]   ;;  %v1191_v37 = vld [vmem:[%s1461_s7 + $0xe4] ss:$8 sps:$4 sm:$0xff]  }
  0x5b   : > { %711 = vmatprep.subr.bf16.mxu0 %v1164_v12  ;;  %v1214_v38 = vld [vmem:[%s1461_s7 + $0x110] ss:$8 sps:$4 sm:$0xff]   ;;  %v1218_v39 = vld [vmem:[%s1461_s7 + $0x104] ss:$8 sps:$4 sm:$0xff]   ;;  %v1193_v41 = vld [vmem:[%s1461_s7 + $0xe0] ss:$8 sps:$4 sm:$0xff]  }
  0x5c   : > { %753 = vmatpush1.bf16.msra.mxu1 %v1190_v22  ;;  %v1230_v40 = vld [vmem:[%s1459_s30 + $0x4] ss:$12 sps:$4 sm:$0xff]   ;;  %v1224_v46 = vld [vmem:[%s1459_s30 + $0x8] ss:$12 sps:$4 sm:$0xff]   ;;  %v1228_v56 = vld [vmem:[%s1459_s30] ss:$12 sps:$4 sm:$0xff]  }
  0x5d   : > { %754 = vmatprep.subr.bf16.mxu1 %v1194_v23  ;;  %v1197_v42 = vld [vmem:[%s1461_s7 + $0xd4] ss:$8 sps:$4 sm:$0xff]   ;;  %737 = vmatprep.mubr.bf16.mxu0 %v1230_v40  ;;  %v1220_v43 = vld [vmem:[%s1461_s7 + $0x100] ss:$8 sps:$4 sm:$0xff]   ;;  %v1199_v44 = vld [vmem:[%s1461_s7 + $0xd0] ss:$8 sps:$4 sm:$0xff]  }
  0x5e   : > { %712 = vmatpush1.bf16.msra.mxu0 %v1166_v15  ;;  %v1203_v45 = vld [vmem:[%s1461_s7 + $0xc4] ss:$8 sps:$4 sm:$0xff]   ;;  %v1205_v47 = vld [vmem:[%s1461_s7 + $0xc0] ss:$8 sps:$4 sm:$0xff]   ;;  %v1209_v48 = vld [vmem:[%s1461_s7 + $0xb4] ss:$8 sps:$4 sm:$0xff]  }
  0x5f   : > { %713 = vmatprep.subr.bf16.mxu0 %v1167_v16  ;;  %v1211_v49 = vld [vmem:[%s1461_s7 + $0xb0] ss:$8 sps:$4 sm:$0xff]   ;;  %v1215_v50 = vld [vmem:[%s1461_s7 + $0xa4] ss:$8 sps:$4 sm:$0xff]   ;;  %v1217_v51 = vld [vmem:[%s1461_s7 + $0xa0] ss:$8 sps:$4 sm:$0xff]  }
  0x60   : > { %755 = vmatpush1.bf16.msra.mxu1 %v1196_v26  ;;  %v1221_v52 = vld [vmem:[%s1461_s7 + $0x94] ss:$8 sps:$4 sm:$0xff]   ;;  %v1223_v53 = vld [vmem:[%s1461_s7 + $0x90] ss:$8 sps:$4 sm:$0xff]   ;;  %v1225_v54 = vld [vmem:[%s1461_s7 + $0x84] ss:$8 sps:$4 sm:$0xff]  }
  0x61   : > { %756 = vmatprep.subr.bf16.mxu1 %v1200_v27  ;;  %v1227_v55 = vld [vmem:[%s1461_s7 + $0x80] ss:$8 sps:$4 sm:$0xff]   ;;  %v394_v63 = vld [vmem:[#allocation2] sm:$0xff]  ;;  %v396_v8 = vld [vmem:[#allocation2 + $0x8] sm:$0xff] }
  0x62   : > { %714 = vmatpush1.bf16.msra.mxu0 %v1169_v19  ;;  %v393_v59 = vld [vmem:[#allocation2 + $0x10] sm:$0xff]  ;;  %v395_v3 = vld [vmem:[#allocation2 + $0x18] sm:$0xff] }
  0x63   : > { %715 = vmatprep.subr.bf16.mxu0 %v1170_v21 }
  0x64   : > { %757 = vmatpush1.bf16.msra.mxu1 %v1202_v30 }
  0x65   : > { %758 = vmatprep.subr.bf16.mxu1 %v1206_v31 }
  0x66   : > { %716 = vmatpush1.bf16.msra.mxu0 %v1172_v24 }
  0x67   : > { %717 = vmatprep.subr.bf16.mxu0 %v1173_v25 }
  0x68   : > { %759 = vmatpush1.bf16.msra.mxu1 %v1208_v34 }
  0x69   : > { %760 = vmatprep.subr.bf16.mxu1 %v1212_v35 }
  0x6a   : > { %718 = vmatpush1.bf16.msra.mxu0 %v1175_v28 }
  0x6b   : > { %719 = vmatprep.subr.bf16.mxu0 %v1179_v29 }
  0x6c   : > { %761 = vmatpush1.bf16.msra.mxu1 %v1214_v38 }
  0x6d   : > { %762 = vmatprep.subr.bf16.mxu1 %v1218_v39 }
  0x6e   : > { %720 = vmatpush1.bf16.msra.mxu0 %v1181_v32 }
  0x6f   : > { %721 = vmatprep.subr.bf16.mxu0 %v1185_v33 }
  0x70   : > { %763 = vmatpush1.bf16.msra.mxu1 %v1220_v43 }
  0x72   : > { %722 = vmatpush2.bf16.msra.mxu0 %v1187_v36 }
  0x73   : > { %723 = vmatprep.subr.bf16.mxu0 %v1191_v37  ;;  %781 = vmatmul.mubr.bf16.vlgmr.msra.gmra.mxu1 %v1224_v46 }
  0x76   : > { %724 = vmatpush2.bf16.msra.mxu0 %v1193_v41 }
  0x77   : > { %725 = vmatprep.subr.bf16.mxu0 %v1197_v42 }
  0x7a   : > { %726 = vmatpush2.bf16.msra.mxu0 %v1199_v44 }
  0x7b   : > { %727 = vmatprep.subr.bf16.mxu0 %v1203_v45 }
  0x7e   : > { %728 = vmatpush2.bf16.msra.mxu0 %v1205_v47 }
  0x7f   : > { %729 = vmatprep.subr.bf16.mxu0 %v1209_v48 }
  0x82   : > { %730 = vmatpush2.bf16.msra.mxu0 %v1211_v49 }
  0x83   : > { %731 = vmatprep.subr.bf16.mxu0 %v1215_v50 }
  0x86   : > { %732 = vmatpush2.bf16.msra.mxu0 %v1217_v51 }
  0x87   : > { %733 = vmatprep.subr.bf16.mxu0 %v1221_v52 }
  0x8a   : > { %734 = vmatpush2.bf16.msra.mxu0 %v1223_v53 }
  0x8b   : > { %735 = vmatprep.subr.bf16.mxu0 %v1225_v54 }
  0x8e   : > { %736 = vmatpush2.bf16.msra.mxu0 %v1227_v55 }
  0x91   : > { %738 = vmatmul.mubr.bf16.vlgmr.msra.gmra.mxu0 %v1228_v56 }
 0x133   : > { %v782_v57 = vpop.f32.mrf.mxu1 }
 0x135   : > { %v784_v58 = vpop.f32.mrf.mxu1 }
 0x137   : > { %v786_v62 = vpop.f32.mrf.mxu1 }
 0x139   : > { %v788_v7 = vpop.f32.mrf.mxu1 }
 0x151   : > { %v739_v60 = vpop.f32.mrf.mxu0 }
 0x152   : > { %v783_v61 = vadd.f32 %v782_v57, %v739_v60 }
 0x153   : > { %v741_v0 = vpop.f32.mrf.mxu0 }
 0x154   : > { %v791_v1 = vadd.f32 %v783_v61, %v393_v59  ;;  %v785_v2 = vadd.f32 %v784_v58, %v741_v0 }
 0x155   : > { %v743_v4 = vpop.f32.mrf.mxu0 }
 0x156   : > { %795 = vst [vmem:[#allocation2 + $0x10] sm:$0xff] %v791_v1  ;;  %v792_v5 = vadd.f32 %v785_v2, %v394_v63  ;;  %v787_v6 = vadd.f32 %v786_v62, %v743_v4 }
 0x157   : > { %v745_v9 = vpop.f32.mrf.mxu0 }
 0x158   : > { %796 = vst [vmem:[#allocation2] sm:$0xff] %v792_v5  ;;  %v793_v10 = vadd.f32 %v787_v6, %v395_v3  ;;  %v789_v11 = vadd.f32 %v788_v7, %v745_v9  ;;  %802 = sbr.rel (%p1073_p5) target bundleno = 366 (0x16e), region = 78 }
 0x15a   : > { %797 = vst [vmem:[#allocation2 + $0x18] sm:$0xff] %v793_v10  ;;  %v794_v12 = vadd.f32 %v789_v11, %v396_v8 }
 0x15c   : > { %798 = vst [vmem:[#allocation2 + $0x8] sm:$0xff] %v794_v12 }
 0x15d   : > { %v809_v13 = vlaneseq  ;;  %v823_v15 = vld [vmem:[%s1557_s3] sm:$0xff]  ;;  %v807_v16 = vld [vmem:[#allocation6] sm:$0x3]  ;;  %v824_v17 = vld [vmem:[%s1557_s3 + $0x8] sm:$0xff] }
 0x15e   : > { %v803_v18 = vld [vmem:[#allocation2 + $0x10] sm:$0xff]  ;;  %v825_v22 = vunpack.c.l.bf16 %v823_v15  ;;  %v826_v23 = vunpack.c.h.bf16 %v823_v15  ;;  %v827_v28 = vunpack.c.l.bf16 %v824_v17  ;;  %v828_v29 = vunpack.c.h.bf16 %v824_v17 }
 0x15f   : > { %v810_v14 = vshrl.u32 %v809_v13, 7  ;;  %v804_v21 = vld [vmem:[#allocation2] sm:$0xff] }
 0x161   : > { %v811_v19 = vsub.s32 0, %v810_v14  ;;  %v815_v20 = vsub.s32 1, %v810_v14  ;;  %v805_v24 = vld [vmem:[#allocation2 + $0x18] sm:$0xff] }
 0x163   : > { %v806_v25 = vld [vmem:[#allocation2 + $0x8] sm:$0xff]  ;;  %v812_v26 = vrot.slane %v807_v16, %v811_v19  ;;  %v816_v27 = vrot.slane %v807_v16, %v815_v20 }
 0x165   : > { %v819_v30 = vadd.f32 %v812_v26, %v803_v18  ;;  %v820_v31 = vadd.f32 %v816_v27, %v804_v21  ;;  %v821_v32 = vadd.f32 %v812_v26, %v805_v24  ;;  %v822_v33 = vadd.f32 %v816_v27, %v806_v25 }
 0x167   : > { %v829_v34 = vadd.f32 %v825_v22, %v819_v30  ;;  %v830_v35 = vadd.f32 %v826_v23, %v820_v31  ;;  %v831_v36 = vadd.f32 %v827_v28, %v821_v32  ;;  %v832_v37 = vadd.f32 %v828_v29, %v822_v33 }
 0x169   : > { %v833_v38 = vmax.f32 %v829_v34, 0.0  ;;  %v834_v39 = vmax.f32 %v830_v35, 0.0  ;;  %v835_v40 = vmax.f32 %v831_v36, 0.0  ;;  %v836_v41 = vmax.f32 %v832_v37, 0.0 }
 0x16b   : > { %v1083_v42 = vpack.c.bf16 %v834_v39, %v833_v38  ;;  %v1084_v43 = vpack.c.bf16 %v836_v41, %v835_v40 }
 0x16d   : > { %849 = vst [vmem:[%s1558_s4] sm:$0xff] %v1083_v42  ;;  %850 = vst [vmem:[%s1558_s4 + $0x8] sm:$0xff] %v1084_v43 }
 0x16e PF: > { %s18_s20 = sadd.s32 1, %s1337_s20   ;;  %s1565_s15 = smov %s1321_s16 }
 0x16f   : > { %p15_p10 = scmp.ge.s32.totalorder %s18_s20, 4   ;;  %s1566_s16 = smov %s1325_s17 }
 0x170   : > { %s1567_s17 = smov %s1426_s28  ;;  %s1568_s18 = smov %s1333_s19 }
 0x171   : > { %s1569_s19 = smov %s1571_s22  ;;  %17 = sbr.rel (!%p15_p10) target bundleno = 5 (0x5), region = 132 }
 0x176   :  { %884 = vsyncpa [#allocation5], 1 }
 0x177   :  { %886 = vsyncpa [#allocation5 + $0x1], 1 }
 0x178   :  { %887 = vsyncpa [#allocation7], 1 }

// kernel: _lambda_.22
= control target key start
LH: loop header
LB: loop body
LE: loop exit
PB: predicated region body
PF: predicated region fallthrough
CT: control target
= control target key end

     0   :  { %s1587_s0 = inlined_call_operand.vmem [shape: bf16[8,768], index: 0, kind: input, shape index: {}]   ;;  %s1588_s1 = inlined_call_operand.hbm [shape: bf16[768,512], index: 1, kind: input, shape index: {}]   ;;  %s1589_s2 = inlined_call_operand.hbm [shape: f32[1,512], index: 2, kind: input, shape index: {}]   ;;  %s1590_s3 = inlined_call_operand.vmem [shape: bf16[8,512], index: 3, kind: output, shape index: {}]  }
   0x1   :  { %1591 = sst [smem:[#allocation9_spill]] %s1587_s0 }
   0x2   :  { %1592 = sst [smem:[#allocation10_spill]] %s1588_s1 }
   0x3   :  { %1593 = sst [smem:[#allocation11_spill]] %s1590_s3 }
   0x4   :  { %8 = vsyncpa [#allocation4], 0 }
   0x5   :  { %10 = vsyncpa [#allocation4 + $0x1], 0 }
   0x6   :  { %11 = vsyncpa [#allocation6], 0 }
   0x7   :  { %13 = vsyncpa [#allocation6 + $0x1], 0  ;;  %s1307_s12 = smov 0   ;;  %s1309_s13 = smov 0  }
   0x8   :  { %s1311_s14 = smov 0   ;;  %s1313_s15 = smov 0  }
   0x9   :  { %s1315_s16 = smov 0   ;;  %s1317_s17 = smov 0  }
   0xa   :  { %s1319_s18 = smov 0   ;;  %s1321_s19 = smov 0  }
   0xb   :  { %s1323_s20 = smov 0   ;;  %s1325_s21 = smov 0  }
   0xc   :  { %s1327_s22 = smov 0  }
   0xd LB: > { %s31_s23 = sadd.s32 1, %s1270_s20  ;;  %p82_p1 = scmp.ne.s32.totalorder %s1258_s17, %s1254_s16  ;;  %s1278_s22 = sphi %s1327_s22, %s19_s22   ;;  %s1274_s21 = sphi %s1325_s21, %s1616_s21   ;;  %s1270_s20 = sphi %s1323_s20, %s1615_s20   ;;  %s1266_s19 = sphi %s1321_s19, %s1614_s19   ;;  %s1262_s18 = sphi %s1319_s18, %s1613_s18   ;;  %s1258_s17 = sphi %s1317_s17, %s1612_s17   ;;  %s1254_s16 = sphi %s1315_s16, %s1611_s16   ;;  %s1250_s15 = sphi %s1313_s15, %s1610_s15   ;;  %s1246_s14 = sphi %s1311_s14, %s1609_s14   ;;  %s1242_s13 = sphi %s1309_s13, %s1608_s13   ;;  %s1238_s12 = sphi %s1307_s12, %s1607_s12  }
   0xe   : > { %p1364_p0 = scmp.ge.s32.totalorder %s31_s23, 2  ;;  %p83_p2 = scmp.eq.s32.totalorder %s1278_s22, 0 }
   0xf   : > { %p959_p4 = scmp.lt.s32.totalorder %s1278_s22, 4  ;;  %s179_s27 = sand.u32 1, %s1258_s17  }
  0x10   : > { %s1618_s23 = smov (%p1364_p0, %s31_s23), 0  ;;  %p84_p3 = por %p83_p2, %p82_p1 }
  0x11   : > { %s946_s28 = smul.u32 384, %s179_s27  ;;  %s876_s29 = sshll.u32 %s1274_s21, 1 }
  0x12   : > { %s943_s30 = smul.u32 192, %s1270_s20  ;;  %p1385_p5 = pnand %p959_p4, %p84_p3 }
  0x13   : > { %s183_s6 = scalar_lea.vmem [#allocation3], %s946_s28  ;;  %s1596_s1 = sld [smem:[#allocation10_spill]] }
  0x14   : > { %s190_s5 = sadd.s32 %s943_s30, %s876_s29  ;;  %s193_s7 = sshll.u32 %s183_s6, 4  ;;  %s194_s7 = int_to_ptr.vmem [resolvable:$true] %s193_s7 }
  0x15   : > { %s878_s8 = sshll.u32 %s190_s5, 6  ;;  %p882_p6 = scmp.ge.s32.totalorder %s1278_s22, 1 }
  0x16   : > { %s180_s24 = scalar_lea.sflag [#allocation4], %s179_s27  ;;  %p1130_p7 = pneg %p1385_p5 }
  0x17   : > { %s1141_s26 = scalar_lea.vmem %s194_s7, 6144  ;;  %s1280_s0 = smov [#allocation3]  }
  0x18   : > { %p1142_p8 = scmp.ne.s32.totalorder %s194_s7, %s1141_s26  ;;  %s1146_s3 = sshll.u32 %s1280_s0, 4  ;;  %s1147_s3 = int_to_ptr.vmem [resolvable:$false] %s1146_s3 }
  0x19   : > { %s192_s11 = scalar_lea.hbm %s1596_s1, %s878_s8  ;;  %s1148_s29 = scalar_lea.vmem %s1147_s3, 12288 }
  0x1a   : > { %p1144_p9 = pnand %p1142_p8, %p1130_p7  ;;  %p1149_p11 = scmp.lt.s32.totalorder %s194_s7, %s1147_s3 }
  0x1b   : > { %p1150_p12 = scmp.lt.s32.totalorder %s1148_s29, %s1141_s26 }
  0x1c   : > { %p1145_p10 = pneg %p1144_p9 }
  0x1d   : > { %p1151_p13 = por %p1150_p12, %p1149_p11 }
  0x1f   : > { %p1152_p1 = pnand %p1151_p13, %p1145_p10 }
  0x21   : > { %1155 = shalt.err (!%p1152_p1)
}
  0x22   : > { %s1281_s28 = smov 256   ;;  %s1282_s0 = smov 128  }
  0x23   : > { %s1283_s3 = smov 8   ;;  %p220_p3 = scmp.lt.s32.totalorder %s1278_s22, 5 }
  0x24   : > { %955 = dma.hbm_to_vmem [thread:$0]  (!%p1385_p5), %s192_s11, 6144, %s194_s7, %s180_s24, %s1281_s28, %s1282_s0, %s1283_s3  }
  0x25   : > { %p1400_p7 = pnand %p882_p6, %p220_p3  ;;  %s872_s27 = sadd.s32 4294967295, %s1278_s22  }
  0x26   : > { %s34_s30 = sadd.s32 1, %s1274_s21  ;;  %p88_p8 = scmp.ne.s32.totalorder %s1254_s16, %s1250_s15 }
  0x27   : > { %s1620_s30 = smov (!%p1364_p0, %s34_s30), %s1274_s21  ;;  %p1411_p9 = scmp.eq.s32.totalorder %s872_s27, 0 }
  0x28   : > { %p36_p5 = scmp.ge.s32.totalorder %s1620_s30, 2  ;;  %s101_s24 = sadd.s32 1, %s1246_s14 }
  0x29   : > { %p1418_p6 = por %p1411_p9, %p88_p8  ;;  %p108_p10 = scmp.ne.s32.totalorder %s1246_s14, %s1242_s13 }
  0x2a   : > { %s1622_s30 = smov (%p36_p5, %s1620_s30), 0  ;;  %p114_p11 = scmp.ne.s32.totalorder %s1242_s13, %s1238_s12 }
  0x2b   : > { %p1428_p0 = por %p108_p10, %p83_p2  ;;  %s71_s25 = ssub.s32 %s1274_s21, %s1622_s30 }
  0x2c   : > { %s203_s6 = sand.u32 1, %s1246_s14   ;;  %s1601_s7 = ssub.s32 %s1270_s20, %s1618_s23 }
  0x2d   : > { %s72_s8 = sor.u32 %s71_s25, %s1601_s7  ;;  %p99_p12 = scmp.eq.s32.totalorder %s71_s25, 0 }
  0x2e   : > { %p73_p13 = scmp.eq.s32.totalorder %s72_s8, 0  ;;  %p1442_p1 = por %p114_p11, %p1411_p9 }
  0x2f   : > { %s1447_s10 = scalar_select %p99_p12, %s1246_s14, %s101_s24  }
  0x30   : > { %s1603_s11 = sadd.s32 1, %s1258_s17  ;;  %s879_s28 = sshll.u32 %s203_s6, 1 }
  0x31   : > { %s1452_s29 = scalar_select %p73_p13, %s1258_s17, %s1603_s11  }
  0x32   : > { %s944_s0 = sshll.u32 %s1274_s21, 5  ;;  %s207_s1 = scalar_lea.vmem [#allocation5], %s879_s28 }
  0x33   : > { %s213_s27 = scalar_lea.hbm %s1589_s2, %s944_s0  ;;  %s215_s7 = sshll.u32 %s207_s1, 4  ;;  %s216_s7 = int_to_ptr.vmem [resolvable:$true] %s215_s7 }
  0x34   : > { %p1462_p2 = pnand %p959_p4, %p1428_p0  ;;  %s204_s24 = scalar_lea.sflag [#allocation6], %s203_s6 }
  0x35   : > { %s1169_s25 = scalar_lea.vmem %s216_s7, 32  ;;  %s1284_s8 = smov [#allocation5]  }
  0x36   : > { %p1158_p3 = pneg %p1462_p2  ;;  %p1170_p8 = scmp.ne.s32.totalorder %s216_s7, %s1169_s25 }
  0x37   : > { %s1174_s11 = sshll.u32 %s1284_s8, 4  ;;  %s1175_s11 = int_to_ptr.vmem [resolvable:$false] %s1174_s11 }
  0x38   : > { %p1172_p9 = pnand %p1170_p8, %p1158_p3  ;;  %s1176_s28 = scalar_lea.vmem %s1175_s11, 64 }
  0x39   : > { %p1177_p10 = scmp.lt.s32.totalorder %s216_s7, %s1175_s11  ;;  %p1178_p11 = scmp.lt.s32.totalorder %s1176_s28, %s1169_s25 }
  0x3a   : > { %p1173_p5 = pneg %p1172_p9 }
  0x3b   : > { %p1179_p12 = por %p1178_p11, %p1177_p10 }
  0x3d   : > { %p1180_p13 = pnand %p1179_p12, %p1173_p5 }
  0x3f   : > { %1183 = shalt.err (!%p1180_p13)
}
  0x40   : > { %958 = dma.hbm_to_vmem [thread:$0]  (!%p1462_p2), %s213_s27, 32, %s216_s7, %s204_s24  }
  0x41   : > { %224 = sbr.rel (%p1400_p7) target bundleno = 367 (0x16f), region = 32  ;;  %s226_s1 = sand.u32 (!%p1400_p7), 1, %s1254_s16  }
  0x42   : > { %s947_s15 = smul.u32 (!%p1400_p7), 384, %s226_s1  ;;  %s227_s6 = scalar_lea.sflag (!%p1400_p7), [#allocation4], %s226_s1 }
  0x44   : > { %s1473_s0 = scalar_lea.vmem (!%p1400_p7), [#allocation3], %s947_s15 }
  0x46   : > { %1229 = dma.done.wait (%p1418_p6), %s227_s6, 6144  }
  0x47   : > { %1231 = vsyncadd (%p1418_p6), %s227_s6, 4294961152  ;;  %s235_s3 = sand.u32 1, %s1242_s13  }
  0x48   : > { %s1480_s12 = sshll.u32 %s235_s3, 1  ;;  %s236_s26 = scalar_lea.sflag [#allocation6], %s235_s3 }
  0x49   : > { %s239_s27 = scalar_lea.vmem [#allocation5], %s1480_s12 }
  0x4a   : > { %1233 = dma.done.wait (%p1442_p1), %s236_s26, 32  }
  0x4b   : > { %1235 = vsyncadd (%p1442_p1), %s236_s26, 4294967264  ;;  %s280_s7 = smul.u32 3, %s1262_s18  ;;  %s885_s4 = sshll.u32 %s1266_s19, 1 }
  0x4c   : > { %p296_p4 = scmp.lt.s32.totalorder %s885_s4, 3  ;;  %s1605_s11 = sld [smem:[#allocation11_spill]] }
  0x4d   : > { %p283_p7 = scmp.lt.s32.totalorder %s280_s7, 5  ;;  %s1606_s6 = sld [smem:[#allocation9_spill]] }
  0x4e   : > { %s1624_s4 = smov (!%p296_p4, %s885_s4), 3  ;;  %p887_p6 = scmp.ne.s32.totalorder %s1262_s18, 0 }
  0x4f   : > { %s1626_s7 = smov (!%p283_p7, %s280_s7), 5  ;;  %s886_s5 = sshll.u32 %s1624_s4, 2 }
  0x50   : > { %s884_s24 = sshll.u32 %s1626_s7, 2  ;;  %307 = sbr.rel (%p887_p6) target bundleno = 87 (0x57), region = 44 }
  0x52   : > { %s1492_s28 = scalar_lea.vmem %s1605_s11, %s886_s5 }
  0x53   : > { %s1497_s9 = scalar_lea.vmem %s1606_s6, %s884_s24 }
  0x55   : > { %v1285_v0 = vmov 0.0  }
  0x56   : > { %308 = vst [vmem:[#allocation2] sm:$0xff] %v1285_v0  ;;  %309 = vst [vmem:[#allocation2 + $0x8] sm:$0xff] %v1285_v0 }
  0x57 PF: > { %v1053_v1 = vld [vmem:[%s1473_s0 + $0x74] ss:$8 sps:$4 sm:$0xff]   ;;  %v1055_v2 = vld [vmem:[%s1473_s0 + $0x70] ss:$8 sps:$4 sm:$0xff]   ;;  %v1286_v3 = vmov 0   ;;  %p939_p0 = scmp.ne.s32.totalorder %s1262_s18, 1 }
  0x58   : > { %686 = vmatprep.mubr.bf16.mxu1 %v1286_v3  ;;  %613 = vmatprep.subr.bf16.mxu0 %v1053_v1  ;;  %v1056_v4 = vld [vmem:[%s1473_s0 + $0x64] ss:$8 sps:$4 sm:$0xff]   ;;  %v1058_v5 = vld [vmem:[%s1473_s0 + $0x60] ss:$8 sps:$4 sm:$0xff]   ;;  %v1059_v6 = vld [vmem:[%s1473_s0 + $0x54] ss:$8 sps:$4 sm:$0xff]  }
  0x59   : > { %614 = vmatpush1.bf16.msra.mxu0 %v1055_v2  ;;  %v1061_v7 = vld [vmem:[%s1473_s0 + $0x50] ss:$8 sps:$4 sm:$0xff]   ;;  %v1062_v8 = vld [vmem:[%s1473_s0 + $0x44] ss:$8 sps:$4 sm:$0xff]   ;;  %v1074_v9 = vld [vmem:[%s1473_s0 + $0x174] ss:$8 sps:$4 sm:$0xff]  }
  0x5a   : > { %615 = vmatprep.subr.bf16.mxu0 %v1056_v4  ;;  %v1076_v10 = vld [vmem:[%s1473_s0 + $0x170] ss:$8 sps:$4 sm:$0xff]   ;;  %v1064_v11 = vld [vmem:[%s1473_s0 + $0x40] ss:$8 sps:$4 sm:$0xff]   ;;  %v1065_v12 = vld [vmem:[%s1473_s0 + $0x34] ss:$8 sps:$4 sm:$0xff]   ;;  %654 = vmatprep.subr.bf16.mxu1 %v1074_v9 }
  0x5b   : > { %v1080_v13 = vld [vmem:[%s1473_s0 + $0x164] ss:$8 sps:$4 sm:$0xff]   ;;  %655 = vmatpush1.bf16.msra.mxu1 %v1076_v10  ;;  %v1082_v14 = vld [vmem:[%s1473_s0 + $0x160] ss:$8 sps:$4 sm:$0xff]   ;;  %v1067_v15 = vld [vmem:[%s1473_s0 + $0x30] ss:$8 sps:$4 sm:$0xff]  }
  0x5c   : > { %656 = vmatprep.subr.bf16.mxu1 %v1080_v13  ;;  %v1086_v16 = vld [vmem:[%s1473_s0 + $0x154] ss:$8 sps:$4 sm:$0xff]   ;;  %v1068_v17 = vld [vmem:[%s1473_s0 + $0x24] ss:$8 sps:$4 sm:$0xff]   ;;  %v1088_v18 = vld [vmem:[%s1473_s0 + $0x150] ss:$8 sps:$4 sm:$0xff]  }
  0x5d   : > { %616 = vmatpush1.bf16.msra.mxu0 %v1058_v5  ;;  %v1092_v19 = vld [vmem:[%s1473_s0 + $0x144] ss:$8 sps:$4 sm:$0xff]   ;;  %v1070_v20 = vld [vmem:[%s1473_s0 + $0x20] ss:$8 sps:$4 sm:$0xff]   ;;  %v1071_v21 = vld [vmem:[%s1473_s0 + $0x14] ss:$8 sps:$4 sm:$0xff]  }
  0x5e   : > { %617 = vmatprep.subr.bf16.mxu0 %v1059_v6  ;;  %v1094_v22 = vld [vmem:[%s1473_s0 + $0x140] ss:$8 sps:$4 sm:$0xff]   ;;  %v1098_v23 = vld [vmem:[%s1473_s0 + $0x134] ss:$8 sps:$4 sm:$0xff]   ;;  %v1073_v24 = vld [vmem:[%s1473_s0 + $0x10] ss:$8 sps:$4 sm:$0xff]  }
  0x5f   : > { %657 = vmatpush1.bf16.msra.mxu1 %v1082_v14  ;;  %v1077_v25 = vld [vmem:[%s1473_s0 + $0x4] ss:$8 sps:$4 sm:$0xff]   ;;  %v1100_v26 = vld [vmem:[%s1473_s0 + $0x130] ss:$8 sps:$4 sm:$0xff]   ;;  %v1079_v28 = vld [vmem:[%s1473_s0] ss:$8 sps:$4 sm:$0xff]  }
  0x60   : > { %658 = vmatprep.subr.bf16.mxu1 %v1086_v16  ;;  %v1104_v27 = vld [vmem:[%s1473_s0 + $0x124] ss:$8 sps:$4 sm:$0xff]   ;;  %v1083_v29 = vld [vmem:[%s1473_s0 + $0xf4] ss:$8 sps:$4 sm:$0xff]   ;;  %v1106_v30 = vld [vmem:[%s1473_s0 + $0x120] ss:$8 sps:$4 sm:$0xff]  }
  0x61   : > { %618 = vmatpush1.bf16.msra.mxu0 %v1061_v7  ;;  %v1110_v31 = vld [vmem:[%s1473_s0 + $0x114] ss:$8 sps:$4 sm:$0xff]   ;;  %v1085_v32 = vld [vmem:[%s1473_s0 + $0xf0] ss:$8 sps:$4 sm:$0xff]   ;;  %v1089_v33 = vld [vmem:[%s1473_s0 + $0xe4] ss:$8 sps:$4 sm:$0xff]  }
  0x62   : > { %619 = vmatprep.subr.bf16.mxu0 %v1062_v8  ;;  %v312_v34 = vld [vmem:[%s1497_s9] sm:$0xff]  ;;  %v1116_v37 = vld [vmem:[%s1473_s0 + $0x104] ss:$8 sps:$4 sm:$0xff]   ;;  %v1091_v38 = vld [vmem:[%s1473_s0 + $0xe0] ss:$8 sps:$4 sm:$0xff]  }
  0x63   : > { %659 = vmatpush1.bf16.msra.mxu1 %v1088_v18  ;;  %v1112_v35 = vld [vmem:[%s1473_s0 + $0x110] ss:$8 sps:$4 sm:$0xff]   ;;  %v889_v36 = vcombine.high %v312_v34, %v312_v34  ;;  %v1095_v39 = vld [vmem:[%s1473_s0 + $0xd4] ss:$8 sps:$4 sm:$0xff]   ;;  %v1118_v40 = vld [vmem:[%s1473_s0 + $0x100] ss:$8 sps:$4 sm:$0xff]   ;;  %v888_v53 = vcombine.low %v312_v34, %v312_v34 }
  0x64   : > { %660 = vmatprep.subr.bf16.mxu1 %v1092_v19  ;;  %v1097_v41 = vld [vmem:[%s1473_s0 + $0xd0] ss:$8 sps:$4 sm:$0xff]   ;;  %v1101_v42 = vld [vmem:[%s1473_s0 + $0xc4] ss:$8 sps:$4 sm:$0xff]   ;;  %v1103_v44 = vld [vmem:[%s1473_s0 + $0xc0] ss:$8 sps:$4 sm:$0xff]  }
  0x65   : > { %620 = vmatpush1.bf16.msra.mxu0 %v1064_v11  ;;  %645 = vmatprep.mubr.bf16.mxu0 %v889_v36  ;;  %v1122_v43 = vld [vmem:[%s1497_s9 + $0x8] ss:$0 sps:$4 sm:$0xff]   ;;  %v1107_v45 = vld [vmem:[%s1473_s0 + $0xb4] ss:$8 sps:$4 sm:$0xff]   ;;  %v1113_v47 = vld [vmem:[%s1473_s0 + $0xa4] ss:$8 sps:$4 sm:$0xff]  }
  0x66   : > { %621 = vmatprep.subr.bf16.mxu0 %v1065_v12  ;;  %v1109_v46 = vld [vmem:[%s1473_s0 + $0xb0] ss:$8 sps:$4 sm:$0xff]   ;;  %v1115_v48 = vld [vmem:[%s1473_s0 + $0xa0] ss:$8 sps:$4 sm:$0xff]   ;;  %v1119_v49 = vld [vmem:[%s1473_s0 + $0x94] ss:$8 sps:$4 sm:$0xff]  }
  0x67   : > { %661 = vmatpush1.bf16.msra.mxu1 %v1094_v22  ;;  %v1121_v50 = vld [vmem:[%s1473_s0 + $0x90] ss:$8 sps:$4 sm:$0xff]   ;;  %v1123_v51 = vld [vmem:[%s1473_s0 + $0x84] ss:$8 sps:$4 sm:$0xff]   ;;  %v1125_v52 = vld [vmem:[%s1473_s0 + $0x80] ss:$8 sps:$4 sm:$0xff]  }
  0x68   : > { %662 = vmatprep.subr.bf16.mxu1 %v1098_v23  ;;  %v310_v58 = vld [vmem:[#allocation2] sm:$0xff]  ;;  %v311_v61 = vld [vmem:[#allocation2 + $0x8] sm:$0xff] }
  0x69   : > { %622 = vmatpush1.bf16.msra.mxu0 %v1067_v15 }
  0x6a   : > { %623 = vmatprep.subr.bf16.mxu0 %v1068_v17 }
  0x6b   : > { %663 = vmatpush1.bf16.msra.mxu1 %v1100_v26 }
  0x6c   : > { %664 = vmatprep.subr.bf16.mxu1 %v1104_v27 }
  0x6d   : > { %624 = vmatpush1.bf16.msra.mxu0 %v1070_v20 }
  0x6e   : > { %625 = vmatprep.subr.bf16.mxu0 %v1071_v21 }
  0x6f   : > { %665 = vmatpush1.bf16.msra.mxu1 %v1106_v30 }
  0x70   : > { %666 = vmatprep.subr.bf16.mxu1 %v1110_v31 }
  0x71   : > { %626 = vmatpush1.bf16.msra.mxu0 %v1073_v24 }
  0x72   : > { %627 = vmatprep.subr.bf16.mxu0 %v1077_v25 }
  0x73   : > { %667 = vmatpush1.bf16.msra.mxu1 %v1112_v35 }
  0x74   : > { %668 = vmatprep.subr.bf16.mxu1 %v1116_v37 }
  0x75   : > { %628 = vmatpush1.bf16.msra.mxu0 %v1079_v28 }
  0x76   : > { %629 = vmatprep.subr.bf16.mxu0 %v1083_v29 }
  0x77   : > { %669 = vmatpush1.bf16.msra.mxu1 %v1118_v40 }
  0x79   : > { %630 = vmatpush2.bf16.msra.mxu0 %v1085_v32 }
  0x7a   : > { %631 = vmatprep.subr.bf16.mxu0 %v1089_v33  ;;  %687 = vmatmul.mubr.bf16.vlgmr.msra.gmra.mxu1 %v1122_v43 }
  0x7d   : > { %632 = vmatpush2.bf16.msra.mxu0 %v1091_v38 }
  0x7e   : > { %633 = vmatprep.subr.bf16.mxu0 %v1095_v39 }
  0x81   : > { %634 = vmatpush2.bf16.msra.mxu0 %v1097_v41 }
  0x82   : > { %635 = vmatprep.subr.bf16.mxu0 %v1101_v42 }
  0x85   : > { %636 = vmatpush2.bf16.msra.mxu0 %v1103_v44 }
  0x86   : > { %637 = vmatprep.subr.bf16.mxu0 %v1107_v45 }
  0x89   : > { %638 = vmatpush2.bf16.msra.mxu0 %v1109_v46 }
  0x8a   : > { %639 = vmatprep.subr.bf16.mxu0 %v1113_v47 }
  0x8d   : > { %640 = vmatpush2.bf16.msra.mxu0 %v1115_v48 }
  0x8e   : > { %641 = vmatprep.subr.bf16.mxu0 %v1119_v49 }
  0x91   : > { %642 = vmatpush2.bf16.msra.mxu0 %v1121_v50 }
  0x92   : > { %643 = vmatprep.subr.bf16.mxu0 %v1123_v51 }
  0x95   : > { %644 = vmatpush2.bf16.msra.mxu0 %v1125_v52 }
  0x98   : > { %646 = vmatmul.mubr.bf16.vlgmr.msra.gmra.mxu0 %v888_v53 }
 0x13a   : > { %v688_v54 = vpop.f32.mrf.mxu1 }
 0x13c   : > { %v690_v55 = vpop.f32.mrf.mxu1 }
 0x13e   : > { %v692_v56 = vpop.f32.mrf.mxu1 }
 0x140   : > { %v693_v57 = vpop.f32.mrf.mxu1 }
 0x158   : > { %v647_v59 = vpop.f32.mrf.mxu0 }
 0x159   : > { %v689_v60 = vadd.f32 %v688_v54, %v647_v59 }
 0x15a   : > { %v649_v62 = vpop.f32.mrf.mxu0 }
 0x15b   : > { %v695_v63 = vadd.f32 %v689_v60, %v310_v58  ;;  %v691_v0 = vadd.f32 %v690_v55, %v649_v62  ;;  %702 = sbr.rel (%p939_p0) target bundleno = 367 (0x16f), region = 48 }
 0x15c   : > { %v651_v1 = vpop.f32.mrf.mxu0 }
 0x15d   : > { %697 = vst [vmem:[#allocation2] sm:$0xff] %v695_v63  ;;  %v696_v2 = vadd.f32 %v691_v0, %v311_v61 }
 0x15e   : > { %v652_v3 = vpop.f32.mrf.mxu0 }
 0x15f   : > { %698 = vst [vmem:[#allocation2 + $0x8] sm:$0xff] %v696_v2 }
 0x160   : > { %v707_v4 = vlaneseq  ;;  %v705_v6 = vld [vmem:[%s239_s27] sm:$0x3] }
 0x162   : > { %v708_v5 = vshrl.u32 %v707_v4, 7 }
 0x164   : > { %v709_v7 = vsub.s32 0, %v708_v5  ;;  %v713_v8 = vsub.s32 1, %v708_v5  ;;  %v703_v9 = vld [vmem:[#allocation2] sm:$0xff] }
 0x166   : > { %v704_v10 = vld [vmem:[#allocation2 + $0x8] sm:$0xff]  ;;  %v710_v11 = vrot.slane %v705_v6, %v709_v7  ;;  %v714_v12 = vrot.slane %v705_v6, %v713_v8 }
 0x168   : > { %v717_v13 = vadd.f32 %v710_v11, %v703_v9  ;;  %v718_v14 = vadd.f32 %v714_v12, %v704_v10 }
 0x16a   : > { %v719_v15 = vmax.f32 %v717_v13, 0.0  ;;  %v720_v16 = vmax.f32 %v718_v14, 0.0 }
 0x16c   : > { %v945_v17 = vpack.c.bf16 %v720_v16, %v719_v15 }
 0x16e   : > { %729 = vst [vmem:[%s1492_s28] sm:$0xff] %v945_v17 }
 0x16f PF: > { %s19_s22 = sadd.s32 1, %s1278_s22   ;;  %s1607_s12 = smov %s1242_s13 }
 0x170   : > { %p16_p1 = scmp.ge.s32.totalorder %s19_s22, 6   ;;  %s1608_s13 = smov %s1246_s14 }
 0x171   : > { %s1609_s14 = smov %s1447_s10  ;;  %s1610_s15 = smov %s1254_s16 }
 0x172   : > { %s1611_s16 = smov %s1258_s17  ;;  %s1612_s17 = smov %s1452_s29 }
 0x173   : > { %s1613_s18 = smov %s1270_s20  ;;  %s1614_s19 = smov %s1274_s21 }
 0x174   : > { %s1615_s20 = smov %s1618_s23  ;;  %s1616_s21 = smov %s1622_s30 }
 0x175   :  { %18 = sbr.rel (!%p16_p1) target bundleno = 13 (0xd), region = 96 }
 0x17a   :  { %760 = vsyncpa [#allocation4], 1 }
 0x17b   :  { %762 = vsyncpa [#allocation4 + $0x1], 1 }
 0x17c   :  { %763 = vsyncpa [#allocation6], 1 }
 0x17d   :  { %765 = vsyncpa [#allocation6 + $0x1], 1 }

// kernel: _lambda_.23
= control target key start
LH: loop header
LB: loop body
LE: loop exit
PB: predicated region body
PF: predicated region fallthrough
CT: control target
= control target key end

     0   :  { %s2107_s0 = inlined_call_operand.vmem [shape: bf16[8,1536], index: 0, kind: input, shape index: {}]   ;;  %s2108_s1 = inlined_call_operand.vmem [shape: bf16[1536,512], index: 1, kind: input, shape index: {}]   ;;  %s2109_s2 = inlined_call_operand.hbm [shape: f32[1,512], index: 2, kind: input, shape index: {}]   ;;  %s2110_s3 = inlined_call_operand.vmem [shape: bf16[8,512], index: 3, kind: input, shape index: {}]   ;;  %s2111_s4 = inlined_call_operand.vmem [shape: bf16[8,512], index: 4, kind: output, shape index: {}]  }
   0x1   :  { %2113 = sst [smem:[#allocation8_spill]] %s2108_s1 }
   0x2   :  { %9 = vsyncpa [#allocation5], 0 }
   0x3   :  { %11 = vsyncpa [#allocation5 + $0x1], 0  ;;  %s1736_s15 = smov 0   ;;  %s1738_s16 = smov 0  }
   0x4   :  { %s1740_s17 = smov 0   ;;  %s1742_s18 = smov 0  }
   0x5   :  { %s1744_s19 = smov 0   ;;  %s1746_s20 = smov 0  }
   0x6   :  { %s1748_s21 = smov 0   ;;  %s1750_s22 = smov 0  }
   0x7   :  { %s1752_s23 = smov 0   ;;  %s1754_s24 = smov 0  }
   0x8 LB: > { %s1319_s25 = sadd.s32 4294967295, %s1707_s24   ;;  %s29_s26 = sadd.s32 1, %s1699_s22  ;;  %s1707_s24 = sphi %s1754_s24, %s17_s24   ;;  %s1703_s23 = sphi %s1752_s23, %s2128_s23   ;;  %s1699_s22 = sphi %s1750_s22, %s2127_s22   ;;  %s1695_s21 = sphi %s1748_s21, %s2126_s21   ;;  %s1691_s20 = sphi %s1746_s20, %s2125_s20   ;;  %s1687_s19 = sphi %s1744_s19, %s2124_s19   ;;  %s1683_s18 = sphi %s1742_s18, %s2123_s18   ;;  %s1679_s17 = sphi %s1740_s17, %s2122_s17   ;;  %s1675_s16 = sphi %s1738_s16, %s2121_s16   ;;  %s1671_s15 = sphi %s1736_s15, %s2120_s15  }
   0x9   : > { %p30_p0 = scmp.ge.s32.totalorder %s29_s26, 3  ;;  %s32_s27 = sadd.s32 1, %s1703_s23 }
   0xa   : > { %s73_s28 = sadd.s32 1, %s1687_s19  ;;  %p80_p1 = scmp.ne.s32.totalorder %s1687_s19, %s1683_s18 }
   0xb   : > { %s2130_s26 = smov (%p30_p0, %s29_s26), 0  ;;  %s2132_s27 = smov (!%p30_p0, %s32_s27), %s1703_s23 }
   0xc   : > { %s68_s29 = ssub.s32 %s1699_s22, %s2130_s26  ;;  %p81_p2 = scmp.eq.s32.totalorder %s1707_s24, 0 }
   0xd   : > { %p34_p3 = scmp.ge.s32.totalorder %s2132_s27, 2  ;;  %s99_s30 = sadd.s32 1, %s1679_s17 }
   0xe   : > { %p1799_p4 = por %p81_p2, %p80_p1  ;;  %p106_p5 = scmp.ne.s32.totalorder %s1679_s17, %s1675_s16 }
   0xf   : > { %s2134_s27 = smov (%p34_p3, %s2132_s27), 0  ;;  %p112_p7 = scmp.ne.s32.totalorder %s1675_s16, %s1671_s15 }
  0x10   : > { %2115 = sst [smem:[#allocation7_spill]] %s2134_s27  ;;  %p1807_p6 = por %p106_p5, %p81_p2 }
  0x11   : > { %s69_s7 = ssub.s32 %s1703_s23, %s2134_s27  ;;  %p113_p8 = scmp.eq.s32.totalorder %s1319_s25, 0 }
  0x12   : > { %s70_s8 = sor.u32 %s69_s7, %s68_s29  ;;  %p97_p9 = scmp.eq.s32.totalorder %s69_s7, 0 }
  0x13   : > { %p71_p10 = scmp.eq.s32.totalorder %s70_s8, 0  ;;  %p1815_p11 = por %p113_p8, %p112_p7 }
  0x14   : > { %s1820_s10 = scalar_select %p97_p9, %s1679_s17, %s99_s30  }
  0x15   : > { %s1823_s11 = scalar_select %p71_p10, %s1687_s19, %s73_s28  }
  0x16   : > { %p1322_p12 = scmp.ge.s32.totalorder %s1707_s24, 6 }
  0x18   : > { %188 = sbr.rel (%p1322_p12) target bundleno = 86 (0x56), region = 16 }
  0x1d   : > { %204 = sbr.rel (!%p1799_p4) target bundleno = 71 (0x47), region = 24  ;;  %s206_s12 = sand.u32 (%p1799_p4), 1, %s1687_s19  }
  0x1e   : > { %s1325_s13 = sshll.u32 (%p1799_p4), %s1703_s23, 1  ;;  %s1323_s14 = sshll.u32 (%p1799_p4), %s206_s12, 9 }
  0x1f   : > { %s1413_s15 = sshll.u32 (%p1799_p4), %s1699_s22, 8  ;;  %s2118_s1 = sld [smem:[#allocation8_spill]] (%p1799_p4) }
  0x20   : > { %s212_s25 = sadd.s32 (%p1799_p4), %s1413_s15, %s1325_s13  ;;  %s1839_s5 = scalar_lea.vmem (%p1799_p4), [#allocation3], %s1323_s14 }
  0x21   : > { %s1327_s29 = sshll.u32 (%p1799_p4), %s212_s25, 2 }
  0x25   : > { %s1834_s28 = scalar_lea.vmem %s2118_s1, %s1327_s29 }
  0x26   : > { %v369_v0 = vld [vmem:[%s1834_s28] sm:$0xff]  ;;  %v371_v1 = vld [vmem:[%s1834_s28 + $0x10] sm:$0xff] }
  0x27   : > { %v373_v2 = vld [vmem:[%s1834_s28 + $0x20] sm:$0xff]  ;;  %370 = vst [vmem:[%s1839_s5] sm:$0xff] %v369_v0  ;;  %372 = vst [vmem:[%s1839_s5 + $0x8] sm:$0xff] %v371_v1  ;;  %v375_v3 = vld [vmem:[%s1834_s28 + $0x30] sm:$0xff] }
  0x28   : > { %374 = vst [vmem:[%s1839_s5 + $0x10] sm:$0xff] %v373_v2  ;;  %v377_v4 = vld [vmem:[%s1834_s28 + $0x40] sm:$0xff]  ;;  %v379_v5 = vld [vmem:[%s1834_s28 + $0x50] sm:$0xff]  ;;  %376 = vst [vmem:[%s1839_s5 + $0x18] sm:$0xff] %v375_v3 }
  0x29   : > { %378 = vst [vmem:[%s1839_s5 + $0x20] sm:$0xff] %v377_v4  ;;  %380 = vst [vmem:[%s1839_s5 + $0x28] sm:$0xff] %v379_v5  ;;  %v381_v6 = vld [vmem:[%s1834_s28 + $0x60] sm:$0xff]  ;;  %v383_v7 = vld [vmem:[%s1834_s28 + $0x70] sm:$0xff] }
  0x2a   : > { %v385_v8 = vld [vmem:[%s1834_s28 + $0x80] sm:$0xff]  ;;  %382 = vst [vmem:[%s1839_s5 + $0x30] sm:$0xff] %v381_v6  ;;  %384 = vst [vmem:[%s1839_s5 + $0x38] sm:$0xff] %v383_v7  ;;  %v387_v9 = vld [vmem:[%s1834_s28 + $0x90] sm:$0xff] }
  0x2b   : > { %386 = vst [vmem:[%s1839_s5 + $0x40] sm:$0xff] %v385_v8  ;;  %v389_v10 = vld [vmem:[%s1834_s28 + $0xa0] sm:$0xff]  ;;  %v391_v11 = vld [vmem:[%s1834_s28 + $0xb0] sm:$0xff]  ;;  %388 = vst [vmem:[%s1839_s5 + $0x48] sm:$0xff] %v387_v9 }
  0x2c   : > { %390 = vst [vmem:[%s1839_s5 + $0x50] sm:$0xff] %v389_v10  ;;  %392 = vst [vmem:[%s1839_s5 + $0x58] sm:$0xff] %v391_v11  ;;  %v393_v12 = vld [vmem:[%s1834_s28 + $0xc0] sm:$0xff]  ;;  %v395_v13 = vld [vmem:[%s1834_s28 + $0xd0] sm:$0xff] }
  0x2d   : > { %v397_v14 = vld [vmem:[%s1834_s28 + $0xe0] sm:$0xff]  ;;  %394 = vst [vmem:[%s1839_s5 + $0x60] sm:$0xff] %v393_v12  ;;  %396 = vst [vmem:[%s1839_s5 + $0x68] sm:$0xff] %v395_v13  ;;  %v399_v15 = vld [vmem:[%s1834_s28 + $0xf0] sm:$0xff] }
  0x2e   : > { %398 = vst [vmem:[%s1839_s5 + $0x70] sm:$0xff] %v397_v14  ;;  %v401_v16 = vld [vmem:[%s1834_s28 + $0x100] sm:$0xff]  ;;  %v403_v17 = vld [vmem:[%s1834_s28 + $0x110] sm:$0xff]  ;;  %400 = vst [vmem:[%s1839_s5 + $0x78] sm:$0xff] %v399_v15 }
  0x2f   : > { %402 = vst [vmem:[%s1839_s5 + $0x80] sm:$0xff] %v401_v16  ;;  %404 = vst [vmem:[%s1839_s5 + $0x88] sm:$0xff] %v403_v17  ;;  %v405_v18 = vld [vmem:[%s1834_s28 + $0x120] sm:$0xff]  ;;  %v407_v19 = vld [vmem:[%s1834_s28 + $0x130] sm:$0xff] }
  0x30   : > { %v409_v20 = vld [vmem:[%s1834_s28 + $0x140] sm:$0xff]  ;;  %406 = vst [vmem:[%s1839_s5 + $0x90] sm:$0xff] %v405_v18  ;;  %408 = vst [vmem:[%s1839_s5 + $0x98] sm:$0xff] %v407_v19  ;;  %v411_v21 = vld [vmem:[%s1834_s28 + $0x150] sm:$0xff] }
  0x31   : > { %410 = vst [vmem:[%s1839_s5 + $0xa0] sm:$0xff] %v409_v20  ;;  %v413_v22 = vld [vmem:[%s1834_s28 + $0x160] sm:$0xff]  ;;  %v415_v23 = vld [vmem:[%s1834_s28 + $0x170] sm:$0xff]  ;;  %412 = vst [vmem:[%s1839_s5 + $0xa8] sm:$0xff] %v411_v21 }
  0x32   : > { %414 = vst [vmem:[%s1839_s5 + $0xb0] sm:$0xff] %v413_v22  ;;  %416 = vst [vmem:[%s1839_s5 + $0xb8] sm:$0xff] %v415_v23  ;;  %v417_v24 = vld [vmem:[%s1834_s28 + $0x180] sm:$0xff]  ;;  %v419_v25 = vld [vmem:[%s1834_s28 + $0x190] sm:$0xff] }
  0x33   : > { %v421_v26 = vld [vmem:[%s1834_s28 + $0x1a0] sm:$0xff]  ;;  %418 = vst [vmem:[%s1839_s5 + $0xc0] sm:$0xff] %v417_v24  ;;  %420 = vst [vmem:[%s1839_s5 + $0xc8] sm:$0xff] %v419_v25  ;;  %v423_v27 = vld [vmem:[%s1834_s28 + $0x1b0] sm:$0xff] }
  0x34   : > { %422 = vst [vmem:[%s1839_s5 + $0xd0] sm:$0xff] %v421_v26  ;;  %v425_v28 = vld [vmem:[%s1834_s28 + $0x1c0] sm:$0xff]  ;;  %v427_v29 = vld [vmem:[%s1834_s28 + $0x1d0] sm:$0xff]  ;;  %424 = vst [vmem:[%s1839_s5 + $0xd8] sm:$0xff] %v423_v27 }
  0x35   : > { %426 = vst [vmem:[%s1839_s5 + $0xe0] sm:$0xff] %v425_v28  ;;  %428 = vst [vmem:[%s1839_s5 + $0xe8] sm:$0xff] %v427_v29  ;;  %v429_v30 = vld [vmem:[%s1834_s28 + $0x1e0] sm:$0xff]  ;;  %v431_v31 = vld [vmem:[%s1834_s28 + $0x1f0] sm:$0xff] }
  0x36   : > { %v433_v32 = vld [vmem:[%s1834_s28 + $0x200] sm:$0xff]  ;;  %430 = vst [vmem:[%s1839_s5 + $0xf0] sm:$0xff] %v429_v30  ;;  %432 = vst [vmem:[%s1839_s5 + $0xf8] sm:$0xff] %v431_v31  ;;  %v435_v33 = vld [vmem:[%s1834_s28 + $0x210] sm:$0xff] }
  0x37   : > { %434 = vst [vmem:[%s1839_s5 + $0x100] sm:$0xff] %v433_v32  ;;  %v437_v34 = vld [vmem:[%s1834_s28 + $0x220] sm:$0xff]  ;;  %v439_v35 = vld [vmem:[%s1834_s28 + $0x230] sm:$0xff]  ;;  %436 = vst [vmem:[%s1839_s5 + $0x108] sm:$0xff] %v435_v33 }
  0x38   : > { %438 = vst [vmem:[%s1839_s5 + $0x110] sm:$0xff] %v437_v34  ;;  %440 = vst [vmem:[%s1839_s5 + $0x118] sm:$0xff] %v439_v35  ;;  %v441_v36 = vld [vmem:[%s1834_s28 + $0x240] sm:$0xff]  ;;  %v443_v37 = vld [vmem:[%s1834_s28 + $0x250] sm:$0xff] }
  0x39   : > { %v445_v38 = vld [vmem:[%s1834_s28 + $0x260] sm:$0xff]  ;;  %442 = vst [vmem:[%s1839_s5 + $0x120] sm:$0xff] %v441_v36  ;;  %444 = vst [vmem:[%s1839_s5 + $0x128] sm:$0xff] %v443_v37  ;;  %v447_v39 = vld [vmem:[%s1834_s28 + $0x270] sm:$0xff] }
  0x3a   : > { %446 = vst [vmem:[%s1839_s5 + $0x130] sm:$0xff] %v445_v38  ;;  %v449_v40 = vld [vmem:[%s1834_s28 + $0x280] sm:$0xff]  ;;  %v451_v41 = vld [vmem:[%s1834_s28 + $0x290] sm:$0xff]  ;;  %448 = vst [vmem:[%s1839_s5 + $0x138] sm:$0xff] %v447_v39 }
  0x3b   : > { %450 = vst [vmem:[%s1839_s5 + $0x140] sm:$0xff] %v449_v40  ;;  %452 = vst [vmem:[%s1839_s5 + $0x148] sm:$0xff] %v451_v41  ;;  %v453_v42 = vld [vmem:[%s1834_s28 + $0x2a0] sm:$0xff]  ;;  %v455_v43 = vld [vmem:[%s1834_s28 + $0x2b0] sm:$0xff] }
  0x3c   : > { %v457_v44 = vld [vmem:[%s1834_s28 + $0x2c0] sm:$0xff]  ;;  %454 = vst [vmem:[%s1839_s5 + $0x150] sm:$0xff] %v453_v42  ;;  %456 = vst [vmem:[%s1839_s5 + $0x158] sm:$0xff] %v455_v43  ;;  %v459_v45 = vld [vmem:[%s1834_s28 + $0x2d0] sm:$0xff] }
  0x3d   : > { %458 = vst [vmem:[%s1839_s5 + $0x160] sm:$0xff] %v457_v44  ;;  %v461_v46 = vld [vmem:[%s1834_s28 + $0x2e0] sm:$0xff]  ;;  %v463_v47 = vld [vmem:[%s1834_s28 + $0x2f0] sm:$0xff]  ;;  %460 = vst [vmem:[%s1839_s5 + $0x168] sm:$0xff] %v459_v45 }
  0x3e   : > { %462 = vst [vmem:[%s1839_s5 + $0x170] sm:$0xff] %v461_v46  ;;  %464 = vst [vmem:[%s1839_s5 + $0x178] sm:$0xff] %v463_v47  ;;  %v465_v48 = vld [vmem:[%s1834_s28 + $0x300] sm:$0xff]  ;;  %v467_v49 = vld [vmem:[%s1834_s28 + $0x310] sm:$0xff] }
  0x3f   : > { %v469_v50 = vld [vmem:[%s1834_s28 + $0x320] sm:$0xff]  ;;  %466 = vst [vmem:[%s1839_s5 + $0x180] sm:$0xff] %v465_v48  ;;  %468 = vst [vmem:[%s1839_s5 + $0x188] sm:$0xff] %v467_v49  ;;  %v471_v51 = vld [vmem:[%s1834_s28 + $0x330] sm:$0xff] }
  0x40   : > { %470 = vst [vmem:[%s1839_s5 + $0x190] sm:$0xff] %v469_v50  ;;  %v473_v52 = vld [vmem:[%s1834_s28 + $0x340] sm:$0xff]  ;;  %v475_v53 = vld [vmem:[%s1834_s28 + $0x350] sm:$0xff]  ;;  %472 = vst [vmem:[%s1839_s5 + $0x198] sm:$0xff] %v471_v51 }
  0x41   : > { %474 = vst [vmem:[%s1839_s5 + $0x1a0] sm:$0xff] %v473_v52  ;;  %476 = vst [vmem:[%s1839_s5 + $0x1a8] sm:$0xff] %v475_v53  ;;  %v477_v54 = vld [vmem:[%s1834_s28 + $0x360] sm:$0xff]  ;;  %v479_v55 = vld [vmem:[%s1834_s28 + $0x370] sm:$0xff] }
  0x42   : > { %v481_v56 = vld [vmem:[%s1834_s28 + $0x380] sm:$0xff]  ;;  %478 = vst [vmem:[%s1839_s5 + $0x1b0] sm:$0xff] %v477_v54  ;;  %480 = vst [vmem:[%s1839_s5 + $0x1b8] sm:$0xff] %v479_v55  ;;  %v483_v57 = vld [vmem:[%s1834_s28 + $0x390] sm:$0xff] }
  0x43   : > { %482 = vst [vmem:[%s1839_s5 + $0x1c0] sm:$0xff] %v481_v56  ;;  %v485_v58 = vld [vmem:[%s1834_s28 + $0x3a0] sm:$0xff]  ;;  %v487_v59 = vld [vmem:[%s1834_s28 + $0x3b0] sm:$0xff]  ;;  %484 = vst [vmem:[%s1839_s5 + $0x1c8] sm:$0xff] %v483_v57 }
  0x44   : > { %486 = vst [vmem:[%s1839_s5 + $0x1d0] sm:$0xff] %v485_v58  ;;  %488 = vst [vmem:[%s1839_s5 + $0x1d8] sm:$0xff] %v487_v59  ;;  %v489_v60 = vld [vmem:[%s1834_s28 + $0x3c0] sm:$0xff]  ;;  %v491_v61 = vld [vmem:[%s1834_s28 + $0x3d0] sm:$0xff] }
  0x45   : > { %v493_v62 = vld [vmem:[%s1834_s28 + $0x3e0] sm:$0xff]  ;;  %490 = vst [vmem:[%s1839_s5 + $0x1e0] sm:$0xff] %v489_v60  ;;  %492 = vst [vmem:[%s1839_s5 + $0x1e8] sm:$0xff] %v491_v61  ;;  %v495_v63 = vld [vmem:[%s1834_s28 + $0x3f0] sm:$0xff] }
  0x46   : > { %494 = vst [vmem:[%s1839_s5 + $0x1f0] sm:$0xff] %v493_v62  ;;  %496 = vst [vmem:[%s1839_s5 + $0x1f8] sm:$0xff] %v495_v63 }
  0x47 PF: > { %s503_s8 = sand.u32 1, %s1679_s17   ;;  %s1414_s12 = sshll.u32 %s1703_s23, 5 }
  0x48   : > { %s1328_s13 = sshll.u32 %s503_s8, 1  ;;  %s513_s25 = scalar_lea.hbm %s2109_s2, %s1414_s12 }
  0x49   : > { %s507_s29 = scalar_lea.vmem [#allocation4], %s1328_s13  ;;  %s504_s30 = scalar_lea.sflag [#allocation5], %s503_s8 }
  0x4a   : > { %s515_s7 = sshll.u32 %s507_s29, 4  ;;  %s1709_s28 = smov [#allocation4]   ;;  %s516_s7 = int_to_ptr.vmem [resolvable:$true] %s515_s7 }
  0x4b   : > { %s1611_s1 = scalar_lea.vmem %s516_s7, 32  ;;  %s1615_s5 = sshll.u32 %s1709_s28, 4  ;;  %s1616_s5 = int_to_ptr.vmem [resolvable:$false] %s1615_s5 }
  0x4c   : > { %p1612_p13 = scmp.ne.s32.totalorder %s516_s7, %s1611_s1  ;;  %s1617_s27 = scalar_lea.vmem %s1616_s5, 64 }
  0x4d   : > { %p1618_p2 = scmp.lt.s32.totalorder %s516_s7, %s1616_s5  ;;  %p1619_p3 = scmp.lt.s32.totalorder %s1617_s27, %s1611_s1 }
  0x4e   : > { %p1613_p0 = pnand %p1612_p13, %p1807_p6 }
  0x4f   : > { %p1620_p4 = por %p1619_p3, %p1618_p2 }
  0x50   : > { %p1614_p1 = pneg %p1613_p0 }
  0x52   : > { %p1621_p5 = pnand %p1620_p4, %p1614_p1 }
  0x54   : > { %1624 = shalt.err (!%p1621_p5)
}
  0x55   : > { %1416 = dma.hbm_to_vmem [thread:$0]  (%p1807_p6), %s513_s25, 32, %s516_s7, %s504_s30  }
  0x56 PF: > { %p1331_p7 = scmp.ge.s32.totalorder %s1707_s24, 1  ;;  %p533_p8 = scmp.lt.s32.totalorder %s1707_s24, 7 }
  0x58   : > { %p534_p9 = pnand %p1331_p7, %p533_p8 }
  0x59   : > { %s540_s8 = sand.u32 (!%p534_p9), 1, %s1683_s18   ;;  %s546_s12 = sand.u32 (!%p534_p9), 1, %s1675_s16  }
  0x5a   : > { %537 = sbr.rel (%p534_p9) target bundleno = 392 (0x188), region = 70  ;;  %s1332_s13 = sshll.u32 (!%p534_p9), %s540_s8, 9 }
  0x5b   : > { %s1979_s1 = sshll.u32 (!%p534_p9), %s546_s12, 1  ;;  %s1981_s27 = scalar_lea.vmem (!%p534_p9), [#allocation3], %s1332_s13 }
  0x5c   : > { %s547_s6 = scalar_lea.sflag (!%p534_p9), [#allocation5], %s546_s12  ;;  %s550_s14 = scalar_lea.vmem (!%p534_p9), [#allocation4], %s1979_s1 }
  0x5f   : > { %1666 = dma.done.wait (%p1815_p11), %s547_s6, 32  }
  0x60   : > { %1668 = vsyncadd (%p1815_p11), %s547_s6, 4294967264  ;;  %s1334_s15 = sshll.u32 %s1691_s20, 2  ;;  %s1336_s25 = sshll.u32 %s1695_s21, 1 }
  0x61   : > { %p604_p6 = scmp.lt.s32.totalorder %s1334_s15, 11  ;;  %p617_p10 = scmp.lt.s32.totalorder %s1336_s25, 3 }
  0x62   : > { %p1340_p11 = scmp.ne.s32.totalorder %s1691_s20, 0 }
  0x63   : > { %s2136_s15 = smov (!%p604_p6, %s1334_s15), 11  ;;  %s2138_s25 = smov (!%p617_p10, %s1336_s25), 3 }
  0x64   : > { %s1335_s18 = sshll.u32 %s2136_s15, 2  ;;  %s1337_s28 = sshll.u32 %s2138_s25, 2 }
  0x65   : > { %s1993_s30 = scalar_lea.vmem %s2107_s0, %s1335_s18  ;;  %s1998_s9 = scalar_lea.vmem %s2110_s3, %s1337_s28 }
  0x66   : > { %s2003_s21 = scalar_lea.vmem %s2111_s4, %s1337_s28  ;;  %637 = sbr.rel (%p1340_p11) target bundleno = 109 (0x6d), region = 82 }
  0x6b   : > { %v1710_v0 = vmov 0.0  }
  0x6c   : > { %638 = vst [vmem:[#allocation2] sm:$0xff] %v1710_v0  ;;  %639 = vst [vmem:[#allocation2 + $0x8] sm:$0xff] %v1710_v0 }
  0x6d PF: > { %v1499_v1 = vld [vmem:[%s1981_s27 + $0x74] ss:$8 sps:$4 sm:$0xff]   ;;  %v1503_v3 = vld [vmem:[%s1981_s27 + $0x70] ss:$8 sps:$4 sm:$0xff]   ;;  %v1505_v5 = vld [vmem:[%s1981_s27 + $0x64] ss:$8 sps:$4 sm:$0xff]  }
  0x6e   : > { %v1501_v2 = vld [vmem:[%s1981_s27 + $0x174] ss:$8 sps:$4 sm:$0xff]   ;;  %1042 = vmatprep.subr.bf16.mxu0 %v1499_v1  ;;  %v1504_v4 = vld [vmem:[%s1981_s27 + $0x170] ss:$8 sps:$4 sm:$0xff]   ;;  %v1507_v6 = vld [vmem:[%s1981_s27 + $0x164] ss:$8 sps:$4 sm:$0xff]  }
  0x6f   : > { %1083 = vmatprep.subr.bf16.mxu1 %v1501_v2  ;;  %1043 = vmatpush1.bf16.msra.mxu0 %v1503_v3  ;;  %v1509_v7 = vld [vmem:[%s1981_s27 + $0x60] ss:$8 sps:$4 sm:$0xff]   ;;  %v1511_v9 = vld [vmem:[%s1981_s27 + $0x54] ss:$8 sps:$4 sm:$0xff]   ;;  %v1515_v11 = vld [vmem:[%s1981_s27 + $0x50] ss:$8 sps:$4 sm:$0xff]  }
  0x70   : > { %1084 = vmatpush1.bf16.msra.mxu1 %v1504_v4  ;;  %1044 = vmatprep.subr.bf16.mxu0 %v1505_v5  ;;  %v1510_v8 = vld [vmem:[%s1981_s27 + $0x160] ss:$8 sps:$4 sm:$0xff]   ;;  %v1513_v10 = vld [vmem:[%s1981_s27 + $0x154] ss:$8 sps:$4 sm:$0xff]   ;;  %v1516_v12 = vld [vmem:[%s1981_s27 + $0x150] ss:$8 sps:$4 sm:$0xff]  }
  0x71   : > { %1085 = vmatprep.subr.bf16.mxu1 %v1507_v6  ;;  %v1517_v13 = vld [vmem:[%s1981_s27 + $0x44] ss:$8 sps:$4 sm:$0xff]   ;;  %v1521_v15 = vld [vmem:[%s1981_s27 + $0x40] ss:$8 sps:$4 sm:$0xff]   ;;  %v1523_v17 = vld [vmem:[%s1981_s27 + $0x34] ss:$8 sps:$4 sm:$0xff]  }
  0x72   : > { %v1519_v14 = vld [vmem:[%s1981_s27 + $0x144] ss:$8 sps:$4 sm:$0xff]   ;;  %v1522_v16 = vld [vmem:[%s1981_s27 + $0x140] ss:$8 sps:$4 sm:$0xff]   ;;  %v1525_v18 = vld [vmem:[%s1981_s27 + $0x134] ss:$8 sps:$4 sm:$0xff]  }
  0x73   : > { %1045 = vmatpush1.bf16.msra.mxu0 %v1509_v7  ;;  %v1527_v19 = vld [vmem:[%s1981_s27 + $0x30] ss:$8 sps:$4 sm:$0xff]   ;;  %v1529_v21 = vld [vmem:[%s1981_s27 + $0x24] ss:$8 sps:$4 sm:$0xff]   ;;  %v1533_v23 = vld [vmem:[%s1981_s27 + $0x20] ss:$8 sps:$4 sm:$0xff]  }
  0x74   : > { %1086 = vmatpush1.bf16.msra.mxu1 %v1510_v8  ;;  %1046 = vmatprep.subr.bf16.mxu0 %v1511_v9  ;;  %v1528_v20 = vld [vmem:[%s1981_s27 + $0x130] ss:$8 sps:$4 sm:$0xff]   ;;  %v1531_v22 = vld [vmem:[%s1981_s27 + $0x124] ss:$8 sps:$4 sm:$0xff]   ;;  %v1534_v24 = vld [vmem:[%s1981_s27 + $0x120] ss:$8 sps:$4 sm:$0xff]  }
  0x75   : > { %1087 = vmatprep.subr.bf16.mxu1 %v1513_v10  ;;  %v1535_v25 = vld [vmem:[%s1981_s27 + $0x14] ss:$8 sps:$4 sm:$0xff]   ;;  %v1539_v27 = vld [vmem:[%s1981_s27 + $0x10] ss:$8 sps:$4 sm:$0xff]   ;;  %v1541_v29 = vld [vmem:[%s1981_s27 + $0x4] ss:$8 sps:$4 sm:$0xff]  }
  0x76   : > { %v1537_v26 = vld [vmem:[%s1981_s27 + $0x114] ss:$8 sps:$4 sm:$0xff]   ;;  %v1540_v28 = vld [vmem:[%s1981_s27 + $0x110] ss:$8 sps:$4 sm:$0xff]   ;;  %v1543_v30 = vld [vmem:[%s1981_s27 + $0x104] ss:$8 sps:$4 sm:$0xff]  }
  0x77   : > { %1047 = vmatpush1.bf16.msra.mxu0 %v1515_v11  ;;  %v1545_v31 = vld [vmem:[%s1981_s27] ss:$8 sps:$4 sm:$0xff]   ;;  %v1547_v33 = vld [vmem:[%s1981_s27 + $0xf4] ss:$8 sps:$4 sm:$0xff]   ;;  %v1551_v35 = vld [vmem:[%s1981_s27 + $0xf0] ss:$8 sps:$4 sm:$0xff]  }
  0x78   : > { %1088 = vmatpush1.bf16.msra.mxu1 %v1516_v12  ;;  %1048 = vmatprep.subr.bf16.mxu0 %v1517_v13  ;;  %v1546_v32 = vld [vmem:[%s1981_s27 + $0x100] ss:$8 sps:$4 sm:$0xff]   ;;  %v1549_v34 = vld [vmem:[%s1981_s27 + $0x1f4] ss:$8 sps:$4 sm:$0xff]   ;;  %v1552_v36 = vld [vmem:[%s1981_s27 + $0x1f0] ss:$8 sps:$4 sm:$0xff]  }
  0x79   : > { %1089 = vmatprep.subr.bf16.mxu1 %v1519_v14  ;;  %v1553_v37 = vld [vmem:[%s1981_s27 + $0xe4] ss:$8 sps:$4 sm:$0xff]   ;;  %v1557_v39 = vld [vmem:[%s1981_s27 + $0xe0] ss:$8 sps:$4 sm:$0xff]   ;;  %v1559_v41 = vld [vmem:[%s1981_s27 + $0xd4] ss:$8 sps:$4 sm:$0xff]  }
  0x7a   : > { %v1555_v38 = vld [vmem:[%s1981_s27 + $0x1e4] ss:$8 sps:$4 sm:$0xff]   ;;  %v1558_v40 = vld [vmem:[%s1981_s27 + $0x1e0] ss:$8 sps:$4 sm:$0xff]   ;;  %v1561_v42 = vld [vmem:[%s1981_s27 + $0x1d4] ss:$8 sps:$4 sm:$0xff]  }
  0x7b   : > { %1049 = vmatpush1.bf16.msra.mxu0 %v1521_v15  ;;  %v1563_v43 = vld [vmem:[%s1981_s27 + $0xd0] ss:$8 sps:$4 sm:$0xff]   ;;  %v1565_v45 = vld [vmem:[%s1981_s27 + $0xc4] ss:$8 sps:$4 sm:$0xff]   ;;  %v1569_v50 = vld [vmem:[%s1981_s27 + $0xc0] ss:$8 sps:$4 sm:$0xff]  }
  0x7c   : > { %1090 = vmatpush1.bf16.msra.mxu1 %v1522_v16  ;;  %1050 = vmatprep.subr.bf16.mxu0 %v1523_v17  ;;  %v1564_v44 = vld [vmem:[%s1981_s27 + $0x1d0] ss:$8 sps:$4 sm:$0xff]   ;;  %v1567_v46 = vld [vmem:[%s1981_s27 + $0x1c4] ss:$8 sps:$4 sm:$0xff]   ;;  %v1570_v51 = vld [vmem:[%s1981_s27 + $0x1c0] ss:$8 sps:$4 sm:$0xff]  }
  0x7d   : > { %1091 = vmatprep.subr.bf16.mxu1 %v1525_v18  ;;  %v642_v47 = vld [vmem:[%s1993_s30] sm:$0xff]  ;;  %v643_v49 = vld [vmem:[%s1993_s30 + $0x8] sm:$0xff]  ;;  %v1577_v57 = vld [vmem:[%s1981_s27 + $0xa4] ss:$8 sps:$4 sm:$0xff]   ;;  %p1409_p12 = scmp.ne.s32.totalorder %s1691_s20, 2 }
  0x7e   : > { %v1342_v48 = vcombine.high %v642_v47, %v642_v47  ;;  %v1344_v52 = vcombine.high %v643_v49, %v643_v49  ;;  %v1571_v53 = vld [vmem:[%s1981_s27 + $0xb4] ss:$8 sps:$4 sm:$0xff]   ;;  %v1575_v55 = vld [vmem:[%s1981_s27 + $0xb0] ss:$8 sps:$4 sm:$0xff]   ;;  %v1579_v58 = vld [vmem:[%s1981_s27 + $0x1a4] ss:$8 sps:$4 sm:$0xff]   ;;  %v1341_v5 = vcombine.low %v642_v47, %v642_v47  ;;  %v1343_v6 = vcombine.low %v643_v49, %v643_v49 }
  0x7f   : > { %1051 = vmatpush1.bf16.msra.mxu0 %v1527_v19  ;;  %v1573_v54 = vld [vmem:[%s1981_s27 + $0x1b4] ss:$8 sps:$4 sm:$0xff]   ;;  %v1576_v56 = vld [vmem:[%s1981_s27 + $0x1b0] ss:$8 sps:$4 sm:$0xff]   ;;  %v1581_v59 = vld [vmem:[%s1981_s27 + $0xa0] ss:$8 sps:$4 sm:$0xff]  }
  0x80   : > { %1092 = vmatpush1.bf16.msra.mxu1 %v1528_v20  ;;  %1052 = vmatprep.subr.bf16.mxu0 %v1529_v21  ;;  %v1582_v60 = vld [vmem:[%s1981_s27 + $0x1a0] ss:$8 sps:$4 sm:$0xff]   ;;  %v1583_v61 = vld [vmem:[%s1981_s27 + $0x94] ss:$8 sps:$4 sm:$0xff]   ;;  %v1587_v63 = vld [vmem:[%s1981_s27 + $0x90] ss:$8 sps:$4 sm:$0xff]  }
  0x81   : > { %1093 = vmatprep.subr.bf16.mxu1 %v1531_v22  ;;  %1074 = vmatprep.mubr.bf16.mxu0 %v1342_v48  ;;  %v1585_v62 = vld [vmem:[%s1981_s27 + $0x194] ss:$8 sps:$4 sm:$0xff]   ;;  %v1588_v0 = vld [vmem:[%s1981_s27 + $0x190] ss:$8 sps:$4 sm:$0xff]   ;;  %v1589_v1 = vld [vmem:[%s1981_s27 + $0x84] ss:$8 sps:$4 sm:$0xff]  }
  0x82   : > { %1115 = vmatprep.mubr.bf16.mxu1 %v1344_v52  ;;  %v1591_v2 = vld [vmem:[%s1981_s27 + $0x184] ss:$8 sps:$4 sm:$0xff]   ;;  %v1593_v3 = vld [vmem:[%s1981_s27 + $0x80] ss:$8 sps:$4 sm:$0xff]   ;;  %v640_v8 = vld [vmem:[#allocation2] sm:$0xff] }
  0x83   : > { %1053 = vmatpush1.bf16.msra.mxu0 %v1533_v23  ;;  %v1594_v4 = vld [vmem:[%s1981_s27 + $0x180] ss:$8 sps:$4 sm:$0xff]   ;;  %v641_v12 = vld [vmem:[#allocation2 + $0x8] sm:$0xff] }
  0x84   : > { %1094 = vmatpush1.bf16.msra.mxu1 %v1534_v24  ;;  %1054 = vmatprep.subr.bf16.mxu0 %v1535_v25 }
  0x85   : > { %1095 = vmatprep.subr.bf16.mxu1 %v1537_v26 }
  0x87   : > { %1055 = vmatpush1.bf16.msra.mxu0 %v1539_v27 }
  0x88   : > { %1096 = vmatpush1.bf16.msra.mxu1 %v1540_v28  ;;  %1056 = vmatprep.subr.bf16.mxu0 %v1541_v29 }
  0x89   : > { %1097 = vmatprep.subr.bf16.mxu1 %v1543_v30 }
  0x8b   : > { %1057 = vmatpush1.bf16.msra.mxu0 %v1545_v31 }
  0x8c   : > { %1098 = vmatpush1.bf16.msra.mxu1 %v1546_v32  ;;  %1058 = vmatprep.subr.bf16.mxu0 %v1547_v33 }
  0x8d   : > { %1099 = vmatprep.subr.bf16.mxu1 %v1549_v34 }
  0x8f   : > { %1059 = vmatpush2.bf16.msra.mxu0 %v1551_v35 }
  0x90   : > { %1100 = vmatpush2.bf16.msra.mxu1 %v1552_v36  ;;  %1060 = vmatprep.subr.bf16.mxu0 %v1553_v37 }
  0x91   : > { %1101 = vmatprep.subr.bf16.mxu1 %v1555_v38 }
  0x93   : > { %1061 = vmatpush2.bf16.msra.mxu0 %v1557_v39 }
  0x94   : > { %1102 = vmatpush2.bf16.msra.mxu1 %v1558_v40  ;;  %1062 = vmatprep.subr.bf16.mxu0 %v1559_v41 }
  0x95   : > { %1103 = vmatprep.subr.bf16.mxu1 %v1561_v42 }
  0x97   : > { %1063 = vmatpush2.bf16.msra.mxu0 %v1563_v43 }
  0x98   : > { %1104 = vmatpush2.bf16.msra.mxu1 %v1564_v44  ;;  %1064 = vmatprep.subr.bf16.mxu0 %v1565_v45 }
  0x99   : > { %1105 = vmatprep.subr.bf16.mxu1 %v1567_v46 }
  0x9b   : > { %1065 = vmatpush2.bf16.msra.mxu0 %v1569_v50 }
  0x9c   : > { %1106 = vmatpush2.bf16.msra.mxu1 %v1570_v51  ;;  %1066 = vmatprep.subr.bf16.mxu0 %v1571_v53 }
  0x9d   : > { %1107 = vmatprep.subr.bf16.mxu1 %v1573_v54 }
  0x9f   : > { %1067 = vmatpush2.bf16.msra.mxu0 %v1575_v55 }
  0xa0   : > { %1108 = vmatpush2.bf16.msra.mxu1 %v1576_v56  ;;  %1068 = vmatprep.subr.bf16.mxu0 %v1577_v57 }
  0xa1   : > { %1109 = vmatprep.subr.bf16.mxu1 %v1579_v58 }
  0xa3   : > { %1069 = vmatpush2.bf16.msra.mxu0 %v1581_v59 }
  0xa4   : > { %1110 = vmatpush2.bf16.msra.mxu1 %v1582_v60  ;;  %1070 = vmatprep.subr.bf16.mxu0 %v1583_v61 }
  0xa5   : > { %1111 = vmatprep.subr.bf16.mxu1 %v1585_v62 }
  0xa7   : > { %1071 = vmatpush2.bf16.msra.mxu0 %v1587_v63 }
  0xa8   : > { %1112 = vmatpush2.bf16.msra.mxu1 %v1588_v0  ;;  %1072 = vmatprep.subr.bf16.mxu0 %v1589_v1 }
  0xa9   : > { %1113 = vmatprep.subr.bf16.mxu1 %v1591_v2 }
  0xab   : > { %1073 = vmatpush2.bf16.msra.mxu0 %v1593_v3 }
  0xac   : > { %1114 = vmatpush2.bf16.msra.mxu1 %v1594_v4 }
  0xae   : > { %1075 = vmatmul.mubr.bf16.vlgmr.msra.gmra.mxu0 %v1341_v5 }
  0xaf   : > { %1116 = vmatmul.mubr.bf16.vlgmr.msra.gmra.mxu1 %v1343_v6 }
 0x16e   : > { %v1076_v7 = vpop.f32.mrf.mxu0 }
 0x16f   : > { %v1117_v9 = vpop.f32.mrf.mxu1 }
 0x170   : > { %v1118_v10 = vadd.f32 %v1117_v9, %v1076_v7  ;;  %v1078_v11 = vpop.f32.mrf.mxu0 }
 0x171   : > { %v1119_v13 = vpop.f32.mrf.mxu1 }
 0x172   : > { %v1124_v14 = vadd.f32 %v1118_v10, %v640_v8  ;;  %v1120_v15 = vadd.f32 %v1119_v13, %v1078_v11  ;;  %v1080_v16 = vpop.f32.mrf.mxu0  ;;  %1131 = sbr.rel (%p1409_p12) target bundleno = 392 (0x188), region = 86 }
 0x173   : > { %v1121_v17 = vpop.f32.mrf.mxu1 }
 0x174   : > { %1126 = vst [vmem:[#allocation2] sm:$0xff] %v1124_v14  ;;  %v1125_v18 = vadd.f32 %v1120_v15, %v641_v12  ;;  %v1081_v19 = vpop.f32.mrf.mxu0 }
 0x175   : > { %v1122_v20 = vpop.f32.mrf.mxu1 }
 0x176   : > { %1127 = vst [vmem:[#allocation2 + $0x8] sm:$0xff] %v1125_v18 }
 0x177   : > { %v1136_v21 = vlaneseq  ;;  %v1134_v23 = vld [vmem:[%s550_s14] sm:$0x3]  ;;  %v1148_v24 = vld [vmem:[%s1998_s9] sm:$0xff] }
 0x178   : > { %v1149_v31 = vunpack.c.l.bf16 %v1148_v24  ;;  %v1150_v32 = vunpack.c.h.bf16 %v1148_v24 }
 0x179   : > { %v1137_v22 = vshrl.u32 %v1136_v21, 7 }
 0x17b   : > { %v1138_v25 = vsub.s32 0, %v1137_v22  ;;  %v1142_v26 = vsub.s32 1, %v1137_v22  ;;  %v1132_v27 = vld [vmem:[#allocation2] sm:$0xff] }
 0x17d   : > { %v1133_v28 = vld [vmem:[#allocation2 + $0x8] sm:$0xff]  ;;  %v1139_v29 = vrot.slane %v1134_v23, %v1138_v25  ;;  %v1143_v30 = vrot.slane %v1134_v23, %v1142_v26 }
 0x17f   : > { %v1146_v33 = vadd.f32 %v1139_v29, %v1132_v27  ;;  %v1147_v34 = vadd.f32 %v1143_v30, %v1133_v28 }
 0x181   : > { %v1151_v35 = vadd.f32 %v1149_v31, %v1146_v33  ;;  %v1152_v36 = vadd.f32 %v1150_v32, %v1147_v34 }
 0x183   : > { %v1153_v37 = vmax.f32 %v1151_v35, 0.0  ;;  %v1154_v38 = vmax.f32 %v1152_v36, 0.0 }
 0x185   : > { %v1415_v39 = vpack.c.bf16 %v1154_v38, %v1153_v37 }
 0x187   : > { %1163 = vst [vmem:[%s2003_s21] sm:$0xff] %v1415_v39 }
 0x188 PF: > { %s17_s24 = sadd.s32 1, %s1707_s24   ;;  %s2119_s1 = sld [smem:[#allocation7_spill]] }
 0x189   : > { %p14_p13 = scmp.ge.s32.totalorder %s17_s24, 8   ;;  %s2120_s15 = smov %s1675_s16 }
 0x18a   : > { %s2121_s16 = smov %s1679_s17  ;;  %s2122_s17 = smov %s1820_s10 }
 0x18b   : > { %s2123_s18 = smov %s1687_s19  ;;  %s2124_s19 = smov %s1823_s11 }
 0x18c   : > { %s2125_s20 = smov %s1699_s22  ;;  %s2126_s21 = smov %s1703_s23 }
 0x18d   : > { %s2127_s22 = smov %s2130_s26  ;;  %16 = sbr.rel (!%p14_p13) target bundleno = 8 (0x8), region = 136 }
 0x18e   : > { %s2128_s23 = smov %s2119_s1 }
 0x192   :  { %1194 = vsyncpa [#allocation5], 1 }
 0x193   :  { %1196 = vsyncpa [#allocation5 + $0x1], 1 }

// kernel: _lambda_.24
= control target key start
LH: loop header
LB: loop body
LE: loop exit
PB: predicated region body
PF: predicated region fallthrough
CT: control target
= control target key end

     0   :  { %8 = vsyncpa [#allocation4], 0  ;;  %s1463_s0 = inlined_call_operand.vmem [shape: bf16[4,512], index: 0, kind: input, shape index: {}]   ;;  %s1464_s1 = inlined_call_operand.hbm [shape: bf16[512,1024], index: 1, kind: input, shape index: {}]   ;;  %s1465_s2 = inlined_call_operand.vmem [shape: f32[1,1024], index: 2, kind: input, shape index: {}]   ;;  %s1466_s3 = inlined_call_operand.vmem [shape: bf16[4,1024], index: 3, kind: output, shape index: {}]  }
   0x1   :  { %10 = vsyncpa [#allocation4 + $0x1], 0  ;;  %s1289_s12 = smov 0   ;;  %s1291_s13 = smov 0  }
   0x2   :  { %s1293_s14 = smov 0   ;;  %s1295_s15 = smov 0  }
   0x3   :  { %s1297_s16 = smov 0   ;;  %s1299_s17 = smov 0  }
   0x4 LB: > { %s946_s18 = sadd.s32 4294967295, %s1262_s17   ;;  %s31_s19 = sadd.s32 1, %s1258_s16  ;;  %s1262_s17 = sphi %s1299_s17, %s16_s17   ;;  %s1258_s16 = sphi %s1297_s16, %s1474_s16   ;;  %s1254_s15 = sphi %s1295_s15, %s1473_s15   ;;  %s1250_s14 = sphi %s1293_s14, %s1472_s14   ;;  %s1246_s13 = sphi %s1291_s13, %s1471_s13   ;;  %s1242_s12 = sphi %s1289_s12, %s1470_s12  }
   0x5   : > { %p33_p0 = scmp.ge.s32.totalorder %s31_s19, 4  ;;  %s72_s20 = sadd.s32 1, %s1250_s14 }
   0x6   : > { %p79_p1 = scmp.ne.s32.totalorder %s1250_s14, %s1246_s13  ;;  %p80_p2 = scmp.eq.s32.totalorder %s1262_s17, 0 }
   0x7   : > { %s1476_s19 = smov (%p33_p0, %s31_s19), 0  ;;  %p85_p4 = scmp.ne.s32.totalorder %s1246_s13, %s1242_s12 }
   0x8   : > { %p1325_p3 = por %p80_p2, %p79_p1  ;;  %s68_s22 = ssub.s32 %s1258_s16, %s1476_s19 }
   0x9   : > { %p86_p5 = scmp.eq.s32.totalorder %s946_s18, 0  ;;  %p70_p6 = scmp.eq.s32.totalorder %s68_s22, 0 }
   0xa   : > { %p1034_p8 = scmp.lt.s32.totalorder %s1262_s17, 4  ;;  %s176_s25 = sand.u32 1, %s1250_s14  }
   0xb   : > { %p1332_p7 = por %p86_p5, %p85_p4  ;;  %s1027_s26 = sshll.u32 %s1258_s16, 7 }
   0xc   : > { %s1338_s24 = scalar_select %p70_p6, %s1250_s14, %s72_s20  }
   0xd   : > { %s951_s27 = sshll.u32 %s176_s25, 9  ;;  %s189_s30 = scalar_lea.hbm %s1464_s1, %s1027_s26 }
   0xe   : > { %s180_s4 = scalar_lea.vmem [#allocation3], %s951_s27  ;;  %p1347_p9 = pnand %p1034_p8, %p1325_p3 }
   0xf   : > { %s190_s5 = sshll.u32 %s180_s4, 4  ;;  %p954_p10 = scmp.ge.s32.totalorder %s1262_s17, 1  ;;  %s191_s5 = int_to_ptr.vmem [resolvable:$true] %s190_s5 }
  0x10   : > { %s177_s7 = scalar_lea.sflag [#allocation4], %s176_s25  ;;  %p1186_p11 = pneg %p1347_p9 }
  0x11   : > { %s1197_s8 = scalar_lea.vmem %s191_s5, 8192  ;;  %s1264_s9 = smov [#allocation3]  }
  0x12   : > { %p1198_p12 = scmp.ne.s32.totalorder %s191_s5, %s1197_s8  ;;  %s1202_s10 = sshll.u32 %s1264_s9, 4  ;;  %s1203_s10 = int_to_ptr.vmem [resolvable:$false] %s1202_s10 }
  0x13   : > { %s1204_s11 = scalar_lea.vmem %s1203_s10, 16384  ;;  %p1205_p1 = scmp.lt.s32.totalorder %s191_s5, %s1203_s10 }
  0x14   : > { %p1200_p13 = pnand %p1198_p12, %p1186_p11  ;;  %p1206_p2 = scmp.lt.s32.totalorder %s1204_s11, %s1197_s8 }
  0x16   : > { %p1201_p0 = pneg %p1200_p13  ;;  %p1207_p3 = por %p1206_p2, %p1205_p1 }
  0x18   : > { %p1208_p4 = pnand %p1207_p3, %p1201_p0 }
  0x1a   : > { %1211 = shalt.err (!%p1208_p4)
}
  0x1b   : > { %s1265_s12 = smov 512   ;;  %s1266_s18 = smov 128  }
  0x1c   : > { %s1267_s20 = smov 8   ;;  %p206_p5 = scmp.lt.s32.totalorder %s1262_s17, 5 }
  0x1d   : > { %1033 = dma.hbm_to_vmem [thread:$0]  (!%p1347_p9), %s189_s30, 8192, %s191_s5, %s177_s7, %s1265_s12, %s1266_s18, %s1267_s20  }
  0x1e   : > { %p207_p6 = pnand %p954_p10, %p206_p5 }
  0x1f   : > { %s212_s21 = sand.u32 (!%p207_p6), 1, %s1246_s13  }
  0x20   : > { %210 = sbr.rel (%p207_p6) target bundleno = 310 (0x136), region = 32  ;;  %s955_s22 = sshll.u32 (!%p207_p6), %s212_s21, 9 }
  0x21   : > { %s213_s25 = scalar_lea.sflag (!%p207_p6), [#allocation4], %s212_s21  ;;  %s1360_s26 = scalar_lea.vmem (!%p207_p6), [#allocation3], %s955_s22 }
  0x25   : > { %1237 = dma.done.wait (%p1332_p7), %s213_s25, 8192  }
  0x26   : > { %1239 = vsyncadd (%p1332_p7), %s213_s25, 4294959104  ;;  %v1087_v0 = vld [vmem:[%s1360_s26 + $0x74] ss:$8 sps:$4 sm:$0xff]   ;;  %v1091_v2 = vld [vmem:[%s1360_s26 + $0x70] ss:$8 sps:$4 sm:$0xff]   ;;  %v359_v38 = vlaneseq  ;;  %s956_s28 = sshll.u32 %s1254_s15, 1 }
  0x27   : > { %v1089_v1 = vld [vmem:[%s1360_s26 + $0x174] ss:$8 sps:$4 sm:$0xff]   ;;  %696 = vmatprep.subr.bf16.mxu0 %v1087_v0  ;;  %v1092_v3 = vld [vmem:[%s1360_s26 + $0x170] ss:$8 sps:$4 sm:$0xff]   ;;  %v1093_v4 = vld [vmem:[%s1360_s26 + $0x64] ss:$8 sps:$4 sm:$0xff]  }
  0x28   : > { %737 = vmatprep.subr.bf16.mxu1 %v1089_v1  ;;  %697 = vmatpush1.bf16.msra.mxu0 %v1091_v2  ;;  %v1095_v5 = vld [vmem:[%s1360_s26 + $0x164] ss:$8 sps:$4 sm:$0xff]   ;;  %v1097_v6 = vld [vmem:[%s1360_s26 + $0x60] ss:$8 sps:$4 sm:$0xff]   ;;  %v1099_v8 = vld [vmem:[%s1360_s26 + $0x54] ss:$8 sps:$4 sm:$0xff]  }
  0x29   : > { %738 = vmatpush1.bf16.msra.mxu1 %v1092_v3  ;;  %698 = vmatprep.subr.bf16.mxu0 %v1093_v4  ;;  %v1098_v7 = vld [vmem:[%s1360_s26 + $0x160] ss:$8 sps:$4 sm:$0xff]   ;;  %v1101_v9 = vld [vmem:[%s1360_s26 + $0x154] ss:$8 sps:$4 sm:$0xff]   ;;  %v1103_v10 = vld [vmem:[%s1360_s26 + $0x50] ss:$8 sps:$4 sm:$0xff]  }
  0x2a   : > { %739 = vmatprep.subr.bf16.mxu1 %v1095_v5  ;;  %v1104_v11 = vld [vmem:[%s1360_s26 + $0x150] ss:$8 sps:$4 sm:$0xff]   ;;  %v1105_v12 = vld [vmem:[%s1360_s26 + $0x44] ss:$8 sps:$4 sm:$0xff]   ;;  %v1109_v14 = vld [vmem:[%s1360_s26 + $0x40] ss:$8 sps:$4 sm:$0xff]  }
  0x2b   : > { %v1107_v13 = vld [vmem:[%s1360_s26 + $0x144] ss:$8 sps:$4 sm:$0xff]   ;;  %v1110_v15 = vld [vmem:[%s1360_s26 + $0x140] ss:$8 sps:$4 sm:$0xff]   ;;  %v1111_v16 = vld [vmem:[%s1360_s26 + $0x34] ss:$8 sps:$4 sm:$0xff]  }
  0x2c   : > { %699 = vmatpush1.bf16.msra.mxu0 %v1097_v6  ;;  %v1113_v17 = vld [vmem:[%s1360_s26 + $0x134] ss:$8 sps:$4 sm:$0xff]   ;;  %v1115_v18 = vld [vmem:[%s1360_s26 + $0x30] ss:$8 sps:$4 sm:$0xff]   ;;  %v1117_v20 = vld [vmem:[%s1360_s26 + $0x24] ss:$8 sps:$4 sm:$0xff]  }
  0x2d   : > { %740 = vmatpush1.bf16.msra.mxu1 %v1098_v7  ;;  %700 = vmatprep.subr.bf16.mxu0 %v1099_v8  ;;  %v1116_v19 = vld [vmem:[%s1360_s26 + $0x130] ss:$8 sps:$4 sm:$0xff]   ;;  %v1119_v21 = vld [vmem:[%s1360_s26 + $0x124] ss:$8 sps:$4 sm:$0xff]   ;;  %v1121_v22 = vld [vmem:[%s1360_s26 + $0x20] ss:$8 sps:$4 sm:$0xff]  }
  0x2e   : > { %741 = vmatprep.subr.bf16.mxu1 %v1101_v9  ;;  %v1122_v23 = vld [vmem:[%s1360_s26 + $0x120] ss:$8 sps:$4 sm:$0xff]   ;;  %v1123_v24 = vld [vmem:[%s1360_s26 + $0x14] ss:$8 sps:$4 sm:$0xff]   ;;  %v1127_v26 = vld [vmem:[%s1360_s26 + $0x10] ss:$8 sps:$4 sm:$0xff]  }
  0x2f   : > { %v1125_v25 = vld [vmem:[%s1360_s26 + $0x114] ss:$8 sps:$4 sm:$0xff]   ;;  %v1128_v27 = vld [vmem:[%s1360_s26 + $0x110] ss:$8 sps:$4 sm:$0xff]   ;;  %v1129_v28 = vld [vmem:[%s1360_s26 + $0x4] ss:$8 sps:$4 sm:$0xff]  }
  0x30   : > { %701 = vmatpush1.bf16.msra.mxu0 %v1103_v10  ;;  %v1131_v29 = vld [vmem:[%s1360_s26 + $0x104] ss:$8 sps:$4 sm:$0xff]   ;;  %v1133_v30 = vld [vmem:[%s1360_s26] ss:$8 sps:$4 sm:$0xff]   ;;  %v1135_v32 = vld [vmem:[%s1360_s26 + $0xf4] ss:$8 sps:$4 sm:$0xff]  }
  0x31   : > { %742 = vmatpush1.bf16.msra.mxu1 %v1104_v11  ;;  %702 = vmatprep.subr.bf16.mxu0 %v1105_v12  ;;  %v1134_v31 = vld [vmem:[%s1360_s26 + $0x100] ss:$8 sps:$4 sm:$0xff]   ;;  %v1137_v33 = vld [vmem:[%s1360_s26 + $0x1f4] ss:$8 sps:$4 sm:$0xff]   ;;  %v1139_v34 = vld [vmem:[%s1360_s26 + $0xf0] ss:$8 sps:$4 sm:$0xff]  }
  0x32   : > { %743 = vmatprep.subr.bf16.mxu1 %v1107_v13  ;;  %v1140_v35 = vld [vmem:[%s1360_s26 + $0x1f0] ss:$8 sps:$4 sm:$0xff]   ;;  %v1268_v36 = vmov 1983009808   ;;  %v1141_v39 = vld [vmem:[%s1360_s26 + $0xe4] ss:$8 sps:$4 sm:$0xff]  }
  0x33   : > { %v357_v37 = vunpack.c.l.s4 %v1268_v36  ;;  %v1143_v40 = vld [vmem:[%s1360_s26 + $0x1e4] ss:$8 sps:$4 sm:$0xff]   ;;  %v1145_v41 = vld [vmem:[%s1360_s26 + $0xe0] ss:$8 sps:$4 sm:$0xff]   ;;  %v1405_v43 = vshrl.u32 %v359_v38, 7  ;;  %p269_p7 = scmp.lt.s32.totalorder %s956_s28, 7 }
  0x34   : > { %703 = vmatpush1.bf16.msra.mxu0 %v1109_v14  ;;  %v1146_v44 = vld [vmem:[%s1360_s26 + $0x1e0] ss:$8 sps:$4 sm:$0xff]   ;;  %v1147_v45 = vld [vmem:[%s1360_s26 + $0xd4] ss:$8 sps:$4 sm:$0xff]   ;;  %v1151_v47 = vld [vmem:[%s1360_s26 + $0xd0] ss:$8 sps:$4 sm:$0xff]  }
  0x35   : > { %744 = vmatpush1.bf16.msra.mxu1 %v1110_v15  ;;  %704 = vmatprep.subr.bf16.mxu0 %v1111_v16  ;;  %v358_v42 = vunpack.c.0.s8 %v357_v37  ;;  %v1149_v46 = vld [vmem:[%s1360_s26 + $0x1d4] ss:$8 sps:$4 sm:$0xff]   ;;  %v1152_v48 = vld [vmem:[%s1360_s26 + $0x1d0] ss:$8 sps:$4 sm:$0xff]   ;;  %v1153_v50 = vld [vmem:[%s1360_s26 + $0xc4] ss:$8 sps:$4 sm:$0xff]  }
  0x36   : > { %745 = vmatprep.subr.bf16.mxu1 %v1113_v17  ;;  %v1155_v51 = vld [vmem:[%s1360_s26 + $0x1c4] ss:$8 sps:$4 sm:$0xff]   ;;  %v1157_v55 = vld [vmem:[%s1360_s26 + $0xc0] ss:$8 sps:$4 sm:$0xff]   ;;  %v1159_v57 = vld [vmem:[%s1360_s26 + $0xb4] ss:$8 sps:$4 sm:$0xff]  }
  0x37   : > { %v361_v49 = vsub.s32 %v358_v42, %v1405_v43  ;;  %v289_v52 = vld [vmem:[%s1463_s0] sm:$0xff]  ;;  %v1161_v58 = vld [vmem:[%s1360_s26 + $0x1b4] ss:$8 sps:$4 sm:$0xff]   ;;  %v1163_v62 = vld [vmem:[%s1360_s26 + $0xb0] ss:$8 sps:$4 sm:$0xff]   ;;  %s1478_s28 = smov (!%p269_p7, %s956_s28), 7 }
  0x38   : > { %705 = vmatpush1.bf16.msra.mxu0 %v1115_v18  ;;  %v355_v54 = vcombine.high %v289_v52, %v289_v52  ;;  %v1158_v56 = vld [vmem:[%s1360_s26 + $0x1c0] ss:$8 sps:$4 sm:$0xff]   ;;  %v1164_v63 = vld [vmem:[%s1360_s26 + $0x1b0] ss:$8 sps:$4 sm:$0xff]   ;;  %v1165_v0 = vld [vmem:[%s1360_s26 + $0xa4] ss:$8 sps:$4 sm:$0xff]   ;;  %s271_s4 = scalar_lea.vmem %s1465_s2, %s1478_s28 }
  0x39   : > { %746 = vmatpush1.bf16.msra.mxu1 %v1116_v19  ;;  %706 = vmatprep.subr.bf16.mxu0 %v1117_v20  ;;  %v362_v53 = vrot.slane %v289_v52, %v361_v49  ;;  %v1167_v1 = vld [vmem:[%s1360_s26 + $0x1a4] ss:$8 sps:$4 sm:$0xff]   ;;  %v1169_v2 = vld [vmem:[%s1360_s26 + $0xa0] ss:$8 sps:$4 sm:$0xff]   ;;  %v1171_v4 = vld [vmem:[%s1360_s26 + $0x94] ss:$8 sps:$4 sm:$0xff]  }
  0x3a   : > { %747 = vmatprep.subr.bf16.mxu1 %v1119_v21  ;;  %v369_v60 = vrot.slane %v355_v54, %v361_v49  ;;  %v1170_v3 = vld [vmem:[%s1360_s26 + $0x1a0] ss:$8 sps:$4 sm:$0xff]   ;;  %v1173_v5 = vld [vmem:[%s1360_s26 + $0x194] ss:$8 sps:$4 sm:$0xff]   ;;  %v1175_v6 = vld [vmem:[%s1360_s26 + $0x90] ss:$8 sps:$4 sm:$0xff]  }
  0x3b   : > { %v370_v59 = vcombine.high %v362_v53, %v362_v53  ;;  %v1176_v7 = vld [vmem:[%s1360_s26 + $0x190] ss:$8 sps:$4 sm:$0xff]   ;;  %v1177_v8 = vld [vmem:[%s1360_s26 + $0x84] ss:$8 sps:$4 sm:$0xff]   ;;  %v1181_v10 = vld [vmem:[%s1360_s26 + $0x80] ss:$8 sps:$4 sm:$0xff]  }
  0x3c   : > { %707 = vmatpush1.bf16.msra.mxu0 %v1121_v22  ;;  %v371_v61 = vcombine.high %v369_v60, %v369_v60  ;;  %v1179_v9 = vld [vmem:[%s1360_s26 + $0x184] ss:$8 sps:$4 sm:$0xff]   ;;  %v1182_v11 = vld [vmem:[%s1360_s26 + $0x180] ss:$8 sps:$4 sm:$0xff]   ;;  %v792_v12 = vsub.s32 0, %v1405_v43  ;;  %v796_v13 = vsub.s32 1, %v1405_v43 }
  0x3d   : > { %748 = vmatpush1.bf16.msra.mxu1 %v1122_v23  ;;  %708 = vmatprep.subr.bf16.mxu0 %v1123_v24  ;;  %v788_v14 = vld [vmem:[%s271_s4] sm:$0x3]  ;;  %s958_s15 = sshll.u32 %s1478_s28, 1 }
  0x3e   : > { %749 = vmatprep.subr.bf16.mxu1 %v1125_v25  ;;  %728 = vmatprep.mubr.bf16.mxu0 %v370_v59  ;;  %v793_v15 = vrot.slane %v788_v14, %v792_v12  ;;  %v797_v16 = vrot.slane %v788_v14, %v796_v13  ;;  %s281_s7 = scalar_lea.vmem %s1466_s3, %s958_s15 }
  0x3f   : > { %769 = vmatprep.mubr.bf16.mxu1 %v371_v61 }
  0x40   : > { %709 = vmatpush1.bf16.msra.mxu0 %v1127_v26  ;;  %v798_v23 = vcombine.low %v793_v15, %v797_v16 }
  0x41   : > { %750 = vmatpush1.bf16.msra.mxu1 %v1128_v27  ;;  %710 = vmatprep.subr.bf16.mxu0 %v1129_v28 }
  0x42   : > { %751 = vmatprep.subr.bf16.mxu1 %v1131_v29 }
  0x44   : > { %711 = vmatpush1.bf16.msra.mxu0 %v1133_v30 }
  0x45   : > { %752 = vmatpush1.bf16.msra.mxu1 %v1134_v31  ;;  %712 = vmatprep.subr.bf16.mxu0 %v1135_v32 }
  0x46   : > { %753 = vmatprep.subr.bf16.mxu1 %v1137_v33 }
  0x48   : > { %713 = vmatpush2.bf16.msra.mxu0 %v1139_v34 }
  0x49   : > { %754 = vmatpush2.bf16.msra.mxu1 %v1140_v35  ;;  %714 = vmatprep.subr.bf16.mxu0 %v1141_v39 }
  0x4a   : > { %755 = vmatprep.subr.bf16.mxu1 %v1143_v40 }
  0x4c   : > { %715 = vmatpush2.bf16.msra.mxu0 %v1145_v41 }
  0x4d   : > { %756 = vmatpush2.bf16.msra.mxu1 %v1146_v44  ;;  %716 = vmatprep.subr.bf16.mxu0 %v1147_v45 }
  0x4e   : > { %757 = vmatprep.subr.bf16.mxu1 %v1149_v46 }
  0x50   : > { %717 = vmatpush2.bf16.msra.mxu0 %v1151_v47 }
  0x51   : > { %758 = vmatpush2.bf16.msra.mxu1 %v1152_v48  ;;  %718 = vmatprep.subr.bf16.mxu0 %v1153_v50 }
  0x52   : > { %759 = vmatprep.subr.bf16.mxu1 %v1155_v51 }
  0x54   : > { %719 = vmatpush2.bf16.msra.mxu0 %v1157_v55 }
  0x55   : > { %760 = vmatpush2.bf16.msra.mxu1 %v1158_v56  ;;  %720 = vmatprep.subr.bf16.mxu0 %v1159_v57 }
  0x56   : > { %761 = vmatprep.subr.bf16.mxu1 %v1161_v58 }
  0x58   : > { %721 = vmatpush2.bf16.msra.mxu0 %v1163_v62 }
  0x59   : > { %762 = vmatpush2.bf16.msra.mxu1 %v1164_v63  ;;  %722 = vmatprep.subr.bf16.mxu0 %v1165_v0 }
  0x5a   : > { %763 = vmatprep.subr.bf16.mxu1 %v1167_v1 }
  0x5c   : > { %723 = vmatpush2.bf16.msra.mxu0 %v1169_v2 }
  0x5d   : > { %764 = vmatpush2.bf16.msra.mxu1 %v1170_v3  ;;  %724 = vmatprep.subr.bf16.mxu0 %v1171_v4 }
  0x5e   : > { %765 = vmatprep.subr.bf16.mxu1 %v1173_v5 }
  0x60   : > { %725 = vmatpush2.bf16.msra.mxu0 %v1175_v6 }
  0x61   : > { %766 = vmatpush2.bf16.msra.mxu1 %v1176_v7  ;;  %726 = vmatprep.subr.bf16.mxu0 %v1177_v8 }
  0x62   : > { %767 = vmatprep.subr.bf16.mxu1 %v1179_v9 }
  0x64   : > { %727 = vmatpush2.bf16.msra.mxu0 %v1181_v10 }
  0x65   : > { %768 = vmatpush2.bf16.msra.mxu1 %v1182_v11 }
  0x67   : > { %729 = vmatmul.mubr.bf16.vlgmr.msra.gmra.mxu0 %v362_v53 }
  0x68   : > { %770 = vmatmul.mubr.bf16.vlgmr.msra.gmra.mxu1 %v369_v60 }
 0x127   : > { %v730_v17 = vpop.f32.mrf.mxu0 }
 0x128   : > { %v771_v18 = vpop.f32.mrf.mxu1 }
 0x129   : > { %v732_v19 = vpop.f32.mrf.mxu0  ;;  %v772_v21 = vadd.f32 %v771_v18, %v730_v17 }
 0x12a   : > { %v773_v20 = vpop.f32.mrf.mxu1 }
 0x12b   : > { %v774_v22 = vadd.f32 %v773_v20, %v732_v19  ;;  %v734_v24 = vpop.f32.mrf.mxu0 }
 0x12c   : > { %v775_v25 = vpop.f32.mrf.mxu1 }
 0x12d   : > { %v780_v26 = vcombine.low %v772_v21, %v774_v22  ;;  %v735_v27 = vpop.f32.mrf.mxu0 }
 0x12e   : > { %v776_v28 = vpop.f32.mrf.mxu1 }
 0x12f   : > { %v800_v29 = vadd.f32 %v798_v23, %v780_v26 }
 0x131   : > { %v802_v30 = vcombine.high %v800_v29, %v800_v29 }
 0x133   : > { %v1023_v31 = vpack.c.bf16 %v802_v30, %v800_v29 }
 0x135   : > { %1024 = vst.sshfl [vmem:[%s281_s7] sm:$0x33 pattern:$0x76325410] %v1023_v31 }
 0x136 PF: > { %s16_s17 = sadd.s32 1, %s1262_s17   ;;  %s1470_s12 = smov %s1246_s13 }
 0x137   : > { %p13_p8 = scmp.ge.s32.totalorder %s16_s17, 6   ;;  %s1471_s13 = smov %s1250_s14 }
 0x138   : > { %s1472_s14 = smov %s1338_s24  ;;  %s1473_s15 = smov %s1258_s16 }
 0x139   : > { %s1474_s16 = smov %s1476_s19  ;;  %15 = sbr.rel (!%p13_p8) target bundleno = 4 (0x4), region = 86 }
 0x13e   :  { %848 = vsyncpa [#allocation4], 1 }
 0x13f   :  { %850 = vsyncpa [#allocation4 + $0x1], 1 }

// kernel: _lambda_.25
= control target key start
LH: loop header
LB: loop body
LE: loop exit
PB: predicated region body
PF: predicated region fallthrough
CT: control target
= control target key end

     0   :  { %8 = vsyncpa [#allocation4], 0  ;;  %s1545_s0 = inlined_call_operand.vmem [shape: bf16[4,1536], index: 0, kind: input, shape index: {}]   ;;  %s1546_s1 = inlined_call_operand.hbm [shape: bf16[1536,1024], index: 1, kind: input, shape index: {}]   ;;  %s1547_s2 = inlined_call_operand.vmem [shape: f32[1,1024], index: 2, kind: input, shape index: {}]   ;;  %s1548_s3 = inlined_call_operand.vmem [shape: bf16[4,1024], index: 3, kind: output, shape index: {}]  }
   0x1   :  { %10 = vsyncpa [#allocation4 + $0x1], 0  ;;  %s1330_s12 = smov 0   ;;  %s1332_s13 = smov 0  }
   0x2   :  { %s1334_s14 = smov 0   ;;  %s1336_s15 = smov 0  }
   0x3   :  { %s1338_s16 = smov 0   ;;  %s1340_s17 = smov 0  }
   0x4   :  { %s1342_s18 = smov 0   ;;  %s1344_s19 = smov 0  }
   0x5 LB: > { %s948_s20 = sadd.s32 4294967295, %s1302_s19   ;;  %s28_s21 = sadd.s32 1, %s1294_s17  ;;  %s1302_s19 = sphi %s1344_s19, %s16_s19   ;;  %s1298_s18 = sphi %s1342_s18, %s1558_s18   ;;  %s1294_s17 = sphi %s1340_s17, %s1557_s17   ;;  %s1290_s16 = sphi %s1338_s16, %s1556_s16   ;;  %s1286_s15 = sphi %s1336_s15, %s1555_s15   ;;  %s1282_s14 = sphi %s1334_s14, %s1554_s14   ;;  %s1278_s13 = sphi %s1332_s13, %s1553_s13   ;;  %s1274_s12 = sphi %s1330_s12, %s1552_s12  }
   0x6   : > { %p29_p0 = scmp.ge.s32.totalorder %s28_s21, 3  ;;  %s31_s22 = sadd.s32 1, %s1298_s18 }
   0x7   : > { %s72_s23 = sadd.s32 1, %s1282_s14  ;;  %p79_p1 = scmp.ne.s32.totalorder %s1282_s14, %s1278_s13 }
   0x8   : > { %s1560_s21 = smov (%p29_p0, %s28_s21), 0  ;;  %s1562_s22 = smov (!%p29_p0, %s31_s22), %s1298_s18 }
   0x9   : > { %s67_s24 = ssub.s32 %s1294_s17, %s1560_s21  ;;  %p80_p2 = scmp.eq.s32.totalorder %s1302_s19, 0 }
   0xa   : > { %p33_p3 = scmp.ge.s32.totalorder %s1562_s22, 4  ;;  %p85_p4 = scmp.ne.s32.totalorder %s1278_s13, %s1274_s12 }
   0xb   : > { %p1381_p5 = por %p80_p2, %p79_p1  ;;  %p86_p6 = scmp.eq.s32.totalorder %s948_s20, 0 }
   0xc   : > { %s1564_s22 = smov (%p33_p3, %s1562_s22), 0  ;;  %p1041_p8 = scmp.lt.s32.totalorder %s1302_s19, 12 }
   0xd   : > { %p1387_p7 = por %p86_p6, %p85_p4  ;;  %s68_s27 = ssub.s32 %s1298_s18, %s1564_s22 }
   0xe   : > { %s69_s28 = sor.u32 %s68_s27, %s67_s24  ;;  %s176_s29 = sand.u32 1, %s1282_s14  }
   0xf   : > { %p70_p9 = scmp.eq.s32.totalorder %s69_s28, 0  ;;  %s952_s30 = sshll.u32 %s176_s29, 9 }
  0x10   : > { %s954_s4 = sshll.u32 %s1298_s18, 1  ;;  %s1034_s6 = sshll.u32 %s1294_s17, 9 }
  0x11   : > { %s1397_s5 = scalar_select %p70_p9, %s1282_s14, %s72_s23  }
  0x12   : > { %s187_s7 = sadd.s32 %s1034_s6, %s954_s4  ;;  %s180_s8 = scalar_lea.vmem [#allocation3], %s952_s30 }
  0x13   : > { %s190_s9 = sshll.u32 %s180_s8, 4  ;;  %s956_s10 = sshll.u32 %s187_s7, 6  ;;  %s191_s9 = int_to_ptr.vmem [resolvable:$true] %s190_s9 }
  0x14   : > { %s189_s20 = scalar_lea.hbm %s1546_s1, %s956_s10  ;;  %p1407_p10 = pnand %p1041_p8, %p1381_p5 }
  0x15   : > { %s177_s27 = scalar_lea.sflag [#allocation4], %s176_s29  ;;  %s1221_s23 = scalar_lea.vmem %s191_s9, 8192 }
  0x16   : > { %p1210_p11 = pneg %p1407_p10  ;;  %p1222_p12 = scmp.ne.s32.totalorder %s191_s9, %s1221_s23 }
  0x17   : > { %s1304_s28 = smov [#allocation3]  }
  0x18   : > { %p1224_p13 = pnand %p1222_p12, %p1210_p11  ;;  %s1226_s30 = sshll.u32 %s1304_s28, 4  ;;  %s1227_s30 = int_to_ptr.vmem [resolvable:$false] %s1226_s30 }
  0x19   : > { %s1228_s4 = scalar_lea.vmem %s1227_s30, 16384  ;;  %p1229_p1 = scmp.lt.s32.totalorder %s191_s9, %s1227_s30 }
  0x1a   : > { %p1225_p0 = pneg %p1224_p13  ;;  %p1230_p2 = scmp.lt.s32.totalorder %s1228_s4, %s1221_s23 }
  0x1c   : > { %p1231_p3 = por %p1230_p2, %p1229_p1 }
  0x1e   : > { %p1232_p4 = pnand %p1231_p3, %p1225_p0 }
  0x20   : > { %1235 = shalt.err (!%p1232_p4)
}
  0x21   : > { %s1305_s25 = smov 512   ;;  %s1306_s29 = smov 128  }
  0x22   : > { %s1307_s6 = smov 8   ;;  %p957_p5 = scmp.ge.s32.totalorder %s1302_s19, 1 }
  0x23   : > { %1040 = dma.hbm_to_vmem [thread:$0]  (!%p1407_p10), %s189_s20, 8192, %s191_s9, %s177_s27, %s1305_s25, %s1306_s29, %s1307_s6  }
  0x24   : > { %p206_p6 = scmp.lt.s32.totalorder %s1302_s19, 13 }
  0x26   : > { %p207_p8 = pnand %p957_p5, %p206_p6 }
  0x27   : > { %s212_s7 = sand.u32 (!%p207_p8), 1, %s1278_s13  }
  0x28   : > { %210 = sbr.rel (%p207_p8) target bundleno = 343 (0x157), region = 32  ;;  %s958_s8 = sshll.u32 (!%p207_p8), %s212_s7, 9 }
  0x29   : > { %s213_s10 = scalar_lea.sflag (!%p207_p8), [#allocation4], %s212_s7  ;;  %s1418_s11 = scalar_lea.vmem (!%p207_p8), [#allocation3], %s958_s8 }
  0x2d   : > { %1269 = dma.done.wait (%p1387_p7), %s213_s10, 8192  }
  0x2e   : > { %1271 = vsyncadd (%p1387_p7), %s213_s10, 4294959104  ;;  %s959_s12 = sshll.u32 %s1286_s15, 2  ;;  %s961_s9 = sshll.u32 %s1290_s16, 1 }
  0x2f   : > { %p259_p9 = scmp.lt.s32.totalorder %s959_s12, 11  ;;  %p269_p10 = scmp.lt.s32.totalorder %s961_s9, 7 }
  0x30   : > { %p964_p7 = scmp.ne.s32.totalorder %s1286_s15, 0 }
  0x31   : > { %s1566_s12 = smov (!%p259_p9, %s959_s12), 11  ;;  %s1568_s9 = smov (!%p269_p10, %s961_s9), 7 }
  0x32   : > { %s960_s20 = sshll.u32 %s1566_s12, 1  ;;  %s271_s30 = scalar_lea.vmem %s1547_s2, %s1568_s9 }
  0x33   : > { %s1431_s23 = scalar_lea.vmem %s1545_s0, %s960_s20  ;;  %s963_s4 = sshll.u32 %s1568_s9, 1 }
  0x34   : > { %s1441_s29 = scalar_lea.vmem %s1548_s3, %s963_s4  ;;  %286 = sbr.rel (%p964_p7) target bundleno = 59 (0x3b), region = 40 }
  0x39   : > { %v1308_v0 = vmov 0.0  }
  0x3a   : > { %287 = vst [vmem:[#allocation2] sm:$0xff] %v1308_v0 }
  0x3b PF: > { %v1111_v1 = vld [vmem:[%s1418_s11 + $0x74] ss:$8 sps:$4 sm:$0xff]   ;;  %v1115_v3 = vld [vmem:[%s1418_s11 + $0x70] ss:$8 sps:$4 sm:$0xff]   ;;  %v1117_v5 = vld [vmem:[%s1418_s11 + $0x64] ss:$8 sps:$4 sm:$0xff]   ;;  %v359_v39 = vlaneseq }
  0x3c   : > { %v1113_v2 = vld [vmem:[%s1418_s11 + $0x174] ss:$8 sps:$4 sm:$0xff]   ;;  %696 = vmatprep.subr.bf16.mxu0 %v1111_v1  ;;  %v1116_v4 = vld [vmem:[%s1418_s11 + $0x170] ss:$8 sps:$4 sm:$0xff]   ;;  %v1119_v6 = vld [vmem:[%s1418_s11 + $0x164] ss:$8 sps:$4 sm:$0xff]  }
  0x3d   : > { %737 = vmatprep.subr.bf16.mxu1 %v1113_v2  ;;  %697 = vmatpush1.bf16.msra.mxu0 %v1115_v3  ;;  %v1121_v7 = vld [vmem:[%s1418_s11 + $0x60] ss:$8 sps:$4 sm:$0xff]   ;;  %v1123_v9 = vld [vmem:[%s1418_s11 + $0x54] ss:$8 sps:$4 sm:$0xff]   ;;  %v1127_v11 = vld [vmem:[%s1418_s11 + $0x50] ss:$8 sps:$4 sm:$0xff]  }
  0x3e   : > { %738 = vmatpush1.bf16.msra.mxu1 %v1116_v4  ;;  %698 = vmatprep.subr.bf16.mxu0 %v1117_v5  ;;  %v1122_v8 = vld [vmem:[%s1418_s11 + $0x160] ss:$8 sps:$4 sm:$0xff]   ;;  %v1125_v10 = vld [vmem:[%s1418_s11 + $0x154] ss:$8 sps:$4 sm:$0xff]   ;;  %v1128_v12 = vld [vmem:[%s1418_s11 + $0x150] ss:$8 sps:$4 sm:$0xff]  }
  0x3f   : > { %739 = vmatprep.subr.bf16.mxu1 %v1119_v6  ;;  %v1129_v13 = vld [vmem:[%s1418_s11 + $0x44] ss:$8 sps:$4 sm:$0xff]   ;;  %v1133_v15 = vld [vmem:[%s1418_s11 + $0x40] ss:$8 sps:$4 sm:$0xff]   ;;  %v1135_v17 = vld [vmem:[%s1418_s11 + $0x34] ss:$8 sps:$4 sm:$0xff]  }
  0x40   : > { %v1131_v14 = vld [vmem:[%s1418_s11 + $0x144] ss:$8 sps:$4 sm:$0xff]   ;;  %v1134_v16 = vld [vmem:[%s1418_s11 + $0x140] ss:$8 sps:$4 sm:$0xff]   ;;  %v1137_v18 = vld [vmem:[%s1418_s11 + $0x134] ss:$8 sps:$4 sm:$0xff]  }
  0x41   : > { %699 = vmatpush1.bf16.msra.mxu0 %v1121_v7  ;;  %v1139_v19 = vld [vmem:[%s1418_s11 + $0x30] ss:$8 sps:$4 sm:$0xff]   ;;  %v1141_v21 = vld [vmem:[%s1418_s11 + $0x24] ss:$8 sps:$4 sm:$0xff]   ;;  %v1145_v23 = vld [vmem:[%s1418_s11 + $0x20] ss:$8 sps:$4 sm:$0xff]  }
  0x42   : > { %740 = vmatpush1.bf16.msra.mxu1 %v1122_v8  ;;  %700 = vmatprep.subr.bf16.mxu0 %v1123_v9  ;;  %v1140_v20 = vld [vmem:[%s1418_s11 + $0x130] ss:$8 sps:$4 sm:$0xff]   ;;  %v1143_v22 = vld [vmem:[%s1418_s11 + $0x124] ss:$8 sps:$4 sm:$0xff]   ;;  %v1146_v24 = vld [vmem:[%s1418_s11 + $0x120] ss:$8 sps:$4 sm:$0xff]  }
  0x43   : > { %741 = vmatprep.subr.bf16.mxu1 %v1125_v10  ;;  %v1147_v25 = vld [vmem:[%s1418_s11 + $0x14] ss:$8 sps:$4 sm:$0xff]   ;;  %v1151_v27 = vld [vmem:[%s1418_s11 + $0x10] ss:$8 sps:$4 sm:$0xff]   ;;  %v1153_v29 = vld [vmem:[%s1418_s11 + $0x4] ss:$8 sps:$4 sm:$0xff]  }
  0x44   : > { %v1149_v26 = vld [vmem:[%s1418_s11 + $0x114] ss:$8 sps:$4 sm:$0xff]   ;;  %v1152_v28 = vld [vmem:[%s1418_s11 + $0x110] ss:$8 sps:$4 sm:$0xff]   ;;  %v1155_v30 = vld [vmem:[%s1418_s11 + $0x104] ss:$8 sps:$4 sm:$0xff]  }
  0x45   : > { %701 = vmatpush1.bf16.msra.mxu0 %v1127_v11  ;;  %v1157_v31 = vld [vmem:[%s1418_s11] ss:$8 sps:$4 sm:$0xff]   ;;  %v1159_v33 = vld [vmem:[%s1418_s11 + $0xf4] ss:$8 sps:$4 sm:$0xff]   ;;  %v1163_v35 = vld [vmem:[%s1418_s11 + $0xf0] ss:$8 sps:$4 sm:$0xff]  }
  0x46   : > { %742 = vmatpush1.bf16.msra.mxu1 %v1128_v12  ;;  %702 = vmatprep.subr.bf16.mxu0 %v1129_v13  ;;  %v1158_v32 = vld [vmem:[%s1418_s11 + $0x100] ss:$8 sps:$4 sm:$0xff]   ;;  %v1161_v34 = vld [vmem:[%s1418_s11 + $0x1f4] ss:$8 sps:$4 sm:$0xff]   ;;  %v1164_v36 = vld [vmem:[%s1418_s11 + $0x1f0] ss:$8 sps:$4 sm:$0xff]  }
  0x47   : > { %743 = vmatprep.subr.bf16.mxu1 %v1131_v14  ;;  %v1309_v37 = vmov 1983009808   ;;  %v1165_v40 = vld [vmem:[%s1418_s11 + $0xe4] ss:$8 sps:$4 sm:$0xff]   ;;  %v1169_v42 = vld [vmem:[%s1418_s11 + $0xe0] ss:$8 sps:$4 sm:$0xff]  }
  0x48   : > { %v357_v38 = vunpack.c.l.s4 %v1309_v37  ;;  %v1167_v41 = vld [vmem:[%s1418_s11 + $0x1e4] ss:$8 sps:$4 sm:$0xff]   ;;  %v1483_v44 = vshrl.u32 %v359_v39, 7  ;;  %v1170_v45 = vld [vmem:[%s1418_s11 + $0x1e0] ss:$8 sps:$4 sm:$0xff]   ;;  %v289_v53 = vld [vmem:[%s1431_s23] sm:$0xff] }
  0x49   : > { %703 = vmatpush1.bf16.msra.mxu0 %v1133_v15  ;;  %v1171_v46 = vld [vmem:[%s1418_s11 + $0xd4] ss:$8 sps:$4 sm:$0xff]   ;;  %v1175_v48 = vld [vmem:[%s1418_s11 + $0xd0] ss:$8 sps:$4 sm:$0xff]   ;;  %v1177_v51 = vld [vmem:[%s1418_s11 + $0xc4] ss:$8 sps:$4 sm:$0xff]   ;;  %v355_v55 = vcombine.high %v289_v53, %v289_v53 }
  0x4a   : > { %744 = vmatpush1.bf16.msra.mxu1 %v1134_v16  ;;  %704 = vmatprep.subr.bf16.mxu0 %v1135_v17  ;;  %v358_v43 = vunpack.c.0.s8 %v357_v38  ;;  %v1173_v47 = vld [vmem:[%s1418_s11 + $0x1d4] ss:$8 sps:$4 sm:$0xff]   ;;  %v1176_v49 = vld [vmem:[%s1418_s11 + $0x1d0] ss:$8 sps:$4 sm:$0xff]   ;;  %v1179_v52 = vld [vmem:[%s1418_s11 + $0x1c4] ss:$8 sps:$4 sm:$0xff]  }
  0x4b   : > { %745 = vmatprep.subr.bf16.mxu1 %v1137_v18  ;;  %v1181_v56 = vld [vmem:[%s1418_s11 + $0xc0] ss:$8 sps:$4 sm:$0xff]   ;;  %v1183_v58 = vld [vmem:[%s1418_s11 + $0xb4] ss:$8 sps:$4 sm:$0xff]   ;;  %v1187_v63 = vld [vmem:[%s1418_s11 + $0xb0] ss:$8 sps:$4 sm:$0xff]  }
  0x4c   : > { %v361_v50 = vsub.s32 %v358_v43, %v1483_v44  ;;  %v1182_v57 = vld [vmem:[%s1418_s11 + $0x1c0] ss:$8 sps:$4 sm:$0xff]   ;;  %v1185_v59 = vld [vmem:[%s1418_s11 + $0x1b4] ss:$8 sps:$4 sm:$0xff]   ;;  %v1188_v0 = vld [vmem:[%s1418_s11 + $0x1b0] ss:$8 sps:$4 sm:$0xff]  }
  0x4d   : > { %705 = vmatpush1.bf16.msra.mxu0 %v1139_v19  ;;  %v1189_v1 = vld [vmem:[%s1418_s11 + $0xa4] ss:$8 sps:$4 sm:$0xff]   ;;  %v1193_v3 = vld [vmem:[%s1418_s11 + $0xa0] ss:$8 sps:$4 sm:$0xff]   ;;  %v1195_v5 = vld [vmem:[%s1418_s11 + $0x94] ss:$8 sps:$4 sm:$0xff]  }
  0x4e   : > { %746 = vmatpush1.bf16.msra.mxu1 %v1140_v20  ;;  %706 = vmatprep.subr.bf16.mxu0 %v1141_v21  ;;  %v362_v54 = vrot.slane %v289_v53, %v361_v50  ;;  %v369_v61 = vrot.slane %v355_v55, %v361_v50  ;;  %v1191_v2 = vld [vmem:[%s1418_s11 + $0x1a4] ss:$8 sps:$4 sm:$0xff]   ;;  %v1194_v4 = vld [vmem:[%s1418_s11 + $0x1a0] ss:$8 sps:$4 sm:$0xff]   ;;  %v1197_v6 = vld [vmem:[%s1418_s11 + $0x194] ss:$8 sps:$4 sm:$0xff]  }
  0x4f   : > { %747 = vmatprep.subr.bf16.mxu1 %v1143_v22  ;;  %v1199_v7 = vld [vmem:[%s1418_s11 + $0x90] ss:$8 sps:$4 sm:$0xff]   ;;  %v1201_v9 = vld [vmem:[%s1418_s11 + $0x84] ss:$8 sps:$4 sm:$0xff]   ;;  %v1205_v11 = vld [vmem:[%s1418_s11 + $0x80] ss:$8 sps:$4 sm:$0xff]  }
  0x50   : > { %v370_v60 = vcombine.high %v362_v54, %v362_v54  ;;  %v371_v62 = vcombine.high %v369_v61, %v369_v61  ;;  %v1200_v8 = vld [vmem:[%s1418_s11 + $0x190] ss:$8 sps:$4 sm:$0xff]   ;;  %v1203_v10 = vld [vmem:[%s1418_s11 + $0x184] ss:$8 sps:$4 sm:$0xff]   ;;  %v1206_v12 = vld [vmem:[%s1418_s11 + $0x180] ss:$8 sps:$4 sm:$0xff]  }
  0x51   : > { %707 = vmatpush1.bf16.msra.mxu0 %v1145_v23  ;;  %v288_v19 = vld [vmem:[#allocation2] sm:$0xff]  ;;  %p1029_p11 = scmp.ne.s32.totalorder %s1286_s15, 2 }
  0x52   : > { %748 = vmatpush1.bf16.msra.mxu1 %v1146_v24  ;;  %708 = vmatprep.subr.bf16.mxu0 %v1147_v25 }
  0x53   : > { %749 = vmatprep.subr.bf16.mxu1 %v1149_v26  ;;  %728 = vmatprep.mubr.bf16.mxu0 %v370_v60 }
  0x54   : > { %769 = vmatprep.mubr.bf16.mxu1 %v371_v62 }
  0x55   : > { %709 = vmatpush1.bf16.msra.mxu0 %v1151_v27 }
  0x56   : > { %750 = vmatpush1.bf16.msra.mxu1 %v1152_v28  ;;  %710 = vmatprep.subr.bf16.mxu0 %v1153_v29 }
  0x57   : > { %751 = vmatprep.subr.bf16.mxu1 %v1155_v30 }
  0x59   : > { %711 = vmatpush1.bf16.msra.mxu0 %v1157_v31 }
  0x5a   : > { %752 = vmatpush1.bf16.msra.mxu1 %v1158_v32  ;;  %712 = vmatprep.subr.bf16.mxu0 %v1159_v33 }
  0x5b   : > { %753 = vmatprep.subr.bf16.mxu1 %v1161_v34 }
  0x5d   : > { %713 = vmatpush2.bf16.msra.mxu0 %v1163_v35 }
  0x5e   : > { %754 = vmatpush2.bf16.msra.mxu1 %v1164_v36  ;;  %714 = vmatprep.subr.bf16.mxu0 %v1165_v40 }
  0x5f   : > { %755 = vmatprep.subr.bf16.mxu1 %v1167_v41 }
  0x61   : > { %715 = vmatpush2.bf16.msra.mxu0 %v1169_v42 }
  0x62   : > { %756 = vmatpush2.bf16.msra.mxu1 %v1170_v45  ;;  %716 = vmatprep.subr.bf16.mxu0 %v1171_v46 }
  0x63   : > { %757 = vmatprep.subr.bf16.mxu1 %v1173_v47 }
  0x65   : > { %717 = vmatpush2.bf16.msra.mxu0 %v1175_v48 }
  0x66   : > { %758 = vmatpush2.bf16.msra.mxu1 %v1176_v49  ;;  %718 = vmatprep.subr.bf16.mxu0 %v1177_v51 }
  0x67   : > { %759 = vmatprep.subr.bf16.mxu1 %v1179_v52 }
  0x69   : > { %719 = vmatpush2.bf16.msra.mxu0 %v1181_v56 }
  0x6a   : > { %760 = vmatpush2.bf16.msra.mxu1 %v1182_v57  ;;  %720 = vmatprep.subr.bf16.mxu0 %v1183_v58 }
  0x6b   : > { %761 = vmatprep.subr.bf16.mxu1 %v1185_v59 }
  0x6d   : > { %721 = vmatpush2.bf16.msra.mxu0 %v1187_v63 }
  0x6e   : > { %762 = vmatpush2.bf16.msra.mxu1 %v1188_v0  ;;  %722 = vmatprep.subr.bf16.mxu0 %v1189_v1 }
  0x6f   : > { %763 = vmatprep.subr.bf16.mxu1 %v1191_v2 }
  0x71   : > { %723 = vmatpush2.bf16.msra.mxu0 %v1193_v3 }
  0x72   : > { %764 = vmatpush2.bf16.msra.mxu1 %v1194_v4  ;;  %724 = vmatprep.subr.bf16.mxu0 %v1195_v5 }
  0x73   : > { %765 = vmatprep.subr.bf16.mxu1 %v1197_v6 }
  0x75   : > { %725 = vmatpush2.bf16.msra.mxu0 %v1199_v7 }
  0x76   : > { %766 = vmatpush2.bf16.msra.mxu1 %v1200_v8  ;;  %726 = vmatprep.subr.bf16.mxu0 %v1201_v9 }
  0x77   : > { %767 = vmatprep.subr.bf16.mxu1 %v1203_v10 }
  0x79   : > { %727 = vmatpush2.bf16.msra.mxu0 %v1205_v11 }
  0x7a   : > { %768 = vmatpush2.bf16.msra.mxu1 %v1206_v12 }
  0x7c   : > { %729 = vmatmul.mubr.bf16.vlgmr.msra.gmra.mxu0 %v362_v54 }
  0x7d   : > { %770 = vmatmul.mubr.bf16.vlgmr.msra.gmra.mxu1 %v369_v61 }
 0x13c   : > { %v730_v13 = vpop.f32.mrf.mxu0 }
 0x13d   : > { %v771_v14 = vpop.f32.mrf.mxu1 }
 0x13e   : > { %v732_v15 = vpop.f32.mrf.mxu0  ;;  %v772_v17 = vadd.f32 %v771_v14, %v730_v13 }
 0x13f   : > { %v773_v16 = vpop.f32.mrf.mxu1 }
 0x140   : > { %v774_v18 = vadd.f32 %v773_v16, %v732_v15  ;;  %v734_v20 = vpop.f32.mrf.mxu0 }
 0x141   : > { %v775_v21 = vpop.f32.mrf.mxu1 }
 0x142   : > { %v780_v22 = vcombine.low %v772_v17, %v774_v18  ;;  %v735_v23 = vpop.f32.mrf.mxu0  ;;  %787 = sbr.rel (%p1029_p11) target bundleno = 343 (0x157), region = 44 }
 0x143   : > { %v776_v24 = vpop.f32.mrf.mxu1 }
 0x144   : > { %v782_v25 = vadd.f32 %v780_v22, %v288_v19 }
 0x146   : > { %783 = vst [vmem:[#allocation2] sm:$0xff] %v782_v25 }
 0x147   : > { %v789_v26 = vld [vmem:[%s271_s30] sm:$0x3]  ;;  %v793_v27 = vsub.s32 0, %v1483_v44  ;;  %v797_v28 = vsub.s32 1, %v1483_v44 }
 0x149   : > { %v794_v29 = vrot.slane %v789_v26, %v793_v27  ;;  %v798_v30 = vrot.slane %v789_v26, %v797_v28 }
 0x14b   : > { %v799_v32 = vcombine.low %v794_v29, %v798_v30 }
 0x14d   : > { %v788_v31 = vld [vmem:[#allocation2] sm:$0xff] }
 0x14e   : > { %v801_v33 = vadd.f32 %v799_v32, %v788_v31 }
 0x150   : > { %v802_v34 = vmax.f32 %v801_v33, 0.0 }
 0x152   : > { %v804_v35 = vcombine.high %v802_v34, %v802_v34 }
 0x154   : > { %v1030_v36 = vpack.c.bf16 %v804_v35, %v802_v34 }
 0x156   : > { %1031 = vst.sshfl [vmem:[%s1441_s29] sm:$0x33 pattern:$0x76325410] %v1030_v36 }
 0x157 PF: > { %s16_s19 = sadd.s32 1, %s1302_s19   ;;  %s1552_s12 = smov %s1278_s13 }
 0x158   : > { %p13_p12 = scmp.ge.s32.totalorder %s16_s19, 14   ;;  %s1553_s13 = smov %s1282_s14 }
 0x159   : > { %s1554_s14 = smov %s1397_s5  ;;  %s1555_s15 = smov %s1294_s17 }
 0x15a   : > { %s1556_s16 = smov %s1298_s18  ;;  %s1557_s17 = smov %s1560_s21 }
 0x15b   : > { %s1558_s18 = smov %s1564_s22  ;;  %15 = sbr.rel (!%p13_p12) target bundleno = 5 (0x5), region = 86 }
 0x160   :  { %850 = vsyncpa [#allocation4], 1 }
 0x161   :  { %852 = vsyncpa [#allocation4 + $0x1], 1 }

// kernel: _lambda_.26
= control target key start
LH: loop header
LB: loop body
LE: loop exit
PB: predicated region body
PF: predicated region fallthrough
CT: control target
= control target key end

     0   :  { %s1622_s15 = smov 0   ;;  %s1624_s16 = smov 0   ;;  %s1943_s0 = inlined_call_operand.vmem [shape: bf16[4,3072], index: 0, kind: input, shape index: {}]   ;;  %s1944_s1 = inlined_call_operand.vmem [shape: bf16[3072,1024], index: 1, kind: input, shape index: {}]   ;;  %s1945_s2 = inlined_call_operand.vmem [shape: f32[1,1024], index: 2, kind: input, shape index: {}]   ;;  %s1946_s3 = inlined_call_operand.vmem [shape: bf16[4,1024], index: 3, kind: input, shape index: {}]   ;;  %s1947_s4 = inlined_call_operand.vmem [shape: bf16[4,1024], index: 4, kind: output, shape index: {}]  }
   0x1   :  { %s1626_s17 = smov 0   ;;  %s1628_s18 = smov 0  }
   0x2   :  { %s1630_s19 = smov 0   ;;  %s1632_s20 = smov 0  }
   0x3   :  { %s1634_s21 = smov 0  }
   0x4 LB: > { %s26_s22 = sadd.s32 1, %s1585_s19  ;;  %s29_s23 = sadd.s32 1, %s1589_s20  ;;  %s1593_s21 = sphi %s1634_s21, %s14_s21   ;;  %s1589_s20 = sphi %s1632_s20, %s1953_s20   ;;  %s1585_s19 = sphi %s1630_s19, %s1952_s19   ;;  %s1581_s18 = sphi %s1628_s18, %s1951_s18   ;;  %s1577_s17 = sphi %s1626_s17, %s1950_s17   ;;  %s1573_s16 = sphi %s1624_s16, %s1949_s16   ;;  %s1569_s15 = sphi %s1622_s15, %s1948_s15  }
   0x5   : > { %p27_p0 = scmp.ge.s32.totalorder %s26_s22, 6  ;;  %p77_p1 = scmp.ne.s32.totalorder %s1573_s16, %s1569_s15 }
   0x6   : > { %p78_p2 = scmp.eq.s32.totalorder %s1593_s21, 0  ;;  %s70_s27 = sadd.s32 1, %s1573_s16 }
   0x7   : > { %s1955_s22 = smov (%p27_p0, %s26_s22), 0  ;;  %s1957_s23 = smov (!%p27_p0, %s29_s23), %s1589_s20 }
   0x8   : > { %p79_p3 = por %p78_p2, %p77_p1  ;;  %p31_p4 = scmp.ge.s32.totalorder %s1957_s23, 4 }
   0x9   : > { %s65_s24 = ssub.s32 %s1585_s19, %s1955_s22  ;;  %p1298_p6 = scmp.ge.s32.totalorder %s1593_s21, 24 }
   0xa   : > { %s1959_s23 = smov (%p31_p4, %s1957_s23), 0 }
   0xb   : > { %s66_s25 = ssub.s32 %s1589_s20, %s1959_s23  ;;  %185 = sbr.rel (%p1298_p6) target bundleno = 87 (0x57), region = 16 }
   0xc   : > { %s67_s26 = sor.u32 %s66_s25, %s65_s24 }
   0xd   : > { %p68_p5 = scmp.eq.s32.totalorder %s67_s26, 0 }
   0xf   : > { %s1673_s28 = scalar_select %p68_p5, %s1573_s16, %s70_s27  }
  0x10   : > { %201 = sbr.rel (!%p79_p3) target bundleno = 87 (0x57), region = 24  ;;  %s203_s29 = sand.u32 (%p79_p3), 1, %s1573_s16  }
  0x11   : > { %s1301_s30 = sshll.u32 (%p79_p3), %s1589_s20, 1  ;;  %s1299_s5 = sshll.u32 (%p79_p3), %s203_s29, 9 }
  0x12   : > { %s1383_s6 = sshll.u32 (%p79_p3), %s1585_s19, 9  ;;  %s1687_s12 = scalar_lea.vmem (%p79_p3), [#allocation3], %s1299_s5 }
  0x13   : > { %s209_s7 = sadd.s32 (%p79_p3), %s1383_s6, %s1301_s30 }
  0x14   : > { %s1303_s8 = sshll.u32 (%p79_p3), %s209_s7, 2 }
  0x15   : > { %s1682_s11 = scalar_lea.vmem %s1944_s1, %s1303_s8 }
  0x16   : > { %v366_v0 = vld [vmem:[%s1682_s11] sm:$0xff] }
  0x17   : > { %v368_v1 = vld [vmem:[%s1682_s11 + $0x20] sm:$0xff]  ;;  %367 = vst [vmem:[%s1687_s12] sm:$0xff] %v366_v0 }
  0x18   : > { %v370_v2 = vld [vmem:[%s1682_s11 + $0x40] sm:$0xff]  ;;  %369 = vst [vmem:[%s1687_s12 + $0x8] sm:$0xff] %v368_v1 }
  0x19   : > { %371 = vst [vmem:[%s1687_s12 + $0x10] sm:$0xff] %v370_v2  ;;  %v372_v3 = vld [vmem:[%s1682_s11 + $0x60] sm:$0xff] }
  0x1a   : > { %v374_v4 = vld [vmem:[%s1682_s11 + $0x80] sm:$0xff]  ;;  %373 = vst [vmem:[%s1687_s12 + $0x18] sm:$0xff] %v372_v3 }
  0x1b   : > { %v376_v5 = vld [vmem:[%s1682_s11 + $0xa0] sm:$0xff]  ;;  %375 = vst [vmem:[%s1687_s12 + $0x20] sm:$0xff] %v374_v4 }
  0x1c   : > { %377 = vst [vmem:[%s1687_s12 + $0x28] sm:$0xff] %v376_v5  ;;  %v378_v6 = vld [vmem:[%s1682_s11 + $0xc0] sm:$0xff] }
  0x1d   : > { %v380_v7 = vld [vmem:[%s1682_s11 + $0xe0] sm:$0xff]  ;;  %379 = vst [vmem:[%s1687_s12 + $0x30] sm:$0xff] %v378_v6 }
  0x1e   : > { %v382_v8 = vld [vmem:[%s1682_s11 + $0x100] sm:$0xff]  ;;  %381 = vst [vmem:[%s1687_s12 + $0x38] sm:$0xff] %v380_v7 }
  0x1f   : > { %383 = vst [vmem:[%s1687_s12 + $0x40] sm:$0xff] %v382_v8  ;;  %v384_v9 = vld [vmem:[%s1682_s11 + $0x120] sm:$0xff] }
  0x20   : > { %v386_v10 = vld [vmem:[%s1682_s11 + $0x140] sm:$0xff]  ;;  %385 = vst [vmem:[%s1687_s12 + $0x48] sm:$0xff] %v384_v9 }
  0x21   : > { %v388_v11 = vld [vmem:[%s1682_s11 + $0x160] sm:$0xff]  ;;  %387 = vst [vmem:[%s1687_s12 + $0x50] sm:$0xff] %v386_v10 }
  0x22   : > { %389 = vst [vmem:[%s1687_s12 + $0x58] sm:$0xff] %v388_v11  ;;  %v390_v12 = vld [vmem:[%s1682_s11 + $0x180] sm:$0xff] }
  0x23   : > { %v392_v13 = vld [vmem:[%s1682_s11 + $0x1a0] sm:$0xff]  ;;  %391 = vst [vmem:[%s1687_s12 + $0x60] sm:$0xff] %v390_v12 }
  0x24   : > { %v394_v14 = vld [vmem:[%s1682_s11 + $0x1c0] sm:$0xff]  ;;  %393 = vst [vmem:[%s1687_s12 + $0x68] sm:$0xff] %v392_v13 }
  0x25   : > { %395 = vst [vmem:[%s1687_s12 + $0x70] sm:$0xff] %v394_v14  ;;  %v396_v15 = vld [vmem:[%s1682_s11 + $0x1e0] sm:$0xff] }
  0x26   : > { %v398_v16 = vld [vmem:[%s1682_s11 + $0x200] sm:$0xff]  ;;  %397 = vst [vmem:[%s1687_s12 + $0x78] sm:$0xff] %v396_v15 }
  0x27   : > { %v400_v17 = vld [vmem:[%s1682_s11 + $0x220] sm:$0xff]  ;;  %399 = vst [vmem:[%s1687_s12 + $0x80] sm:$0xff] %v398_v16 }
  0x28   : > { %401 = vst [vmem:[%s1687_s12 + $0x88] sm:$0xff] %v400_v17  ;;  %v402_v18 = vld [vmem:[%s1682_s11 + $0x240] sm:$0xff] }
  0x29   : > { %v404_v19 = vld [vmem:[%s1682_s11 + $0x260] sm:$0xff]  ;;  %403 = vst [vmem:[%s1687_s12 + $0x90] sm:$0xff] %v402_v18 }
  0x2a   : > { %v406_v20 = vld [vmem:[%s1682_s11 + $0x280] sm:$0xff]  ;;  %405 = vst [vmem:[%s1687_s12 + $0x98] sm:$0xff] %v404_v19 }
  0x2b   : > { %407 = vst [vmem:[%s1687_s12 + $0xa0] sm:$0xff] %v406_v20  ;;  %v408_v21 = vld [vmem:[%s1682_s11 + $0x2a0] sm:$0xff] }
  0x2c   : > { %v410_v22 = vld [vmem:[%s1682_s11 + $0x2c0] sm:$0xff]  ;;  %409 = vst [vmem:[%s1687_s12 + $0xa8] sm:$0xff] %v408_v21 }
  0x2d   : > { %v412_v23 = vld [vmem:[%s1682_s11 + $0x2e0] sm:$0xff]  ;;  %411 = vst [vmem:[%s1687_s12 + $0xb0] sm:$0xff] %v410_v22 }
  0x2e   : > { %413 = vst [vmem:[%s1687_s12 + $0xb8] sm:$0xff] %v412_v23  ;;  %v414_v24 = vld [vmem:[%s1682_s11 + $0x300] sm:$0xff] }
  0x2f   : > { %v416_v25 = vld [vmem:[%s1682_s11 + $0x320] sm:$0xff]  ;;  %415 = vst [vmem:[%s1687_s12 + $0xc0] sm:$0xff] %v414_v24 }
  0x30   : > { %v418_v26 = vld [vmem:[%s1682_s11 + $0x340] sm:$0xff]  ;;  %417 = vst [vmem:[%s1687_s12 + $0xc8] sm:$0xff] %v416_v25 }
  0x31   : > { %419 = vst [vmem:[%s1687_s12 + $0xd0] sm:$0xff] %v418_v26  ;;  %v420_v27 = vld [vmem:[%s1682_s11 + $0x360] sm:$0xff] }
  0x32   : > { %v422_v28 = vld [vmem:[%s1682_s11 + $0x380] sm:$0xff]  ;;  %421 = vst [vmem:[%s1687_s12 + $0xd8] sm:$0xff] %v420_v27 }
  0x33   : > { %v424_v29 = vld [vmem:[%s1682_s11 + $0x3a0] sm:$0xff]  ;;  %423 = vst [vmem:[%s1687_s12 + $0xe0] sm:$0xff] %v422_v28 }
  0x34   : > { %425 = vst [vmem:[%s1687_s12 + $0xe8] sm:$0xff] %v424_v29  ;;  %v426_v30 = vld [vmem:[%s1682_s11 + $0x3c0] sm:$0xff] }
  0x35   : > { %v428_v31 = vld [vmem:[%s1682_s11 + $0x3e0] sm:$0xff]  ;;  %427 = vst [vmem:[%s1687_s12 + $0xf0] sm:$0xff] %v426_v30 }
  0x36   : > { %v430_v32 = vld [vmem:[%s1682_s11 + $0x400] sm:$0xff]  ;;  %429 = vst [vmem:[%s1687_s12 + $0xf8] sm:$0xff] %v428_v31 }
  0x37   : > { %431 = vst [vmem:[%s1687_s12 + $0x100] sm:$0xff] %v430_v32  ;;  %v432_v33 = vld [vmem:[%s1682_s11 + $0x420] sm:$0xff] }
  0x38   : > { %v434_v34 = vld [vmem:[%s1682_s11 + $0x440] sm:$0xff]  ;;  %433 = vst [vmem:[%s1687_s12 + $0x108] sm:$0xff] %v432_v33 }
  0x39   : > { %v436_v35 = vld [vmem:[%s1682_s11 + $0x460] sm:$0xff]  ;;  %435 = vst [vmem:[%s1687_s12 + $0x110] sm:$0xff] %v434_v34 }
  0x3a   : > { %437 = vst [vmem:[%s1687_s12 + $0x118] sm:$0xff] %v436_v35  ;;  %v438_v36 = vld [vmem:[%s1682_s11 + $0x480] sm:$0xff] }
  0x3b   : > { %v440_v37 = vld [vmem:[%s1682_s11 + $0x4a0] sm:$0xff]  ;;  %439 = vst [vmem:[%s1687_s12 + $0x120] sm:$0xff] %v438_v36 }
  0x3c   : > { %v442_v38 = vld [vmem:[%s1682_s11 + $0x4c0] sm:$0xff]  ;;  %441 = vst [vmem:[%s1687_s12 + $0x128] sm:$0xff] %v440_v37 }
  0x3d   : > { %443 = vst [vmem:[%s1687_s12 + $0x130] sm:$0xff] %v442_v38  ;;  %v444_v39 = vld [vmem:[%s1682_s11 + $0x4e0] sm:$0xff] }
  0x3e   : > { %v446_v40 = vld [vmem:[%s1682_s11 + $0x500] sm:$0xff]  ;;  %445 = vst [vmem:[%s1687_s12 + $0x138] sm:$0xff] %v444_v39 }
  0x3f   : > { %v448_v41 = vld [vmem:[%s1682_s11 + $0x520] sm:$0xff]  ;;  %447 = vst [vmem:[%s1687_s12 + $0x140] sm:$0xff] %v446_v40 }
  0x40   : > { %449 = vst [vmem:[%s1687_s12 + $0x148] sm:$0xff] %v448_v41  ;;  %v450_v42 = vld [vmem:[%s1682_s11 + $0x540] sm:$0xff] }
  0x41   : > { %v452_v43 = vld [vmem:[%s1682_s11 + $0x560] sm:$0xff]  ;;  %451 = vst [vmem:[%s1687_s12 + $0x150] sm:$0xff] %v450_v42 }
  0x42   : > { %v454_v44 = vld [vmem:[%s1682_s11 + $0x580] sm:$0xff]  ;;  %453 = vst [vmem:[%s1687_s12 + $0x158] sm:$0xff] %v452_v43 }
  0x43   : > { %455 = vst [vmem:[%s1687_s12 + $0x160] sm:$0xff] %v454_v44  ;;  %v456_v45 = vld [vmem:[%s1682_s11 + $0x5a0] sm:$0xff] }
  0x44   : > { %v458_v46 = vld [vmem:[%s1682_s11 + $0x5c0] sm:$0xff]  ;;  %457 = vst [vmem:[%s1687_s12 + $0x168] sm:$0xff] %v456_v45 }
  0x45   : > { %v460_v47 = vld [vmem:[%s1682_s11 + $0x5e0] sm:$0xff]  ;;  %459 = vst [vmem:[%s1687_s12 + $0x170] sm:$0xff] %v458_v46 }
  0x46   : > { %461 = vst [vmem:[%s1687_s12 + $0x178] sm:$0xff] %v460_v47  ;;  %v462_v48 = vld [vmem:[%s1682_s11 + $0x600] sm:$0xff] }
  0x47   : > { %v464_v49 = vld [vmem:[%s1682_s11 + $0x620] sm:$0xff]  ;;  %463 = vst [vmem:[%s1687_s12 + $0x180] sm:$0xff] %v462_v48 }
  0x48   : > { %v466_v50 = vld [vmem:[%s1682_s11 + $0x640] sm:$0xff]  ;;  %465 = vst [vmem:[%s1687_s12 + $0x188] sm:$0xff] %v464_v49 }
  0x49   : > { %467 = vst [vmem:[%s1687_s12 + $0x190] sm:$0xff] %v466_v50  ;;  %v468_v51 = vld [vmem:[%s1682_s11 + $0x660] sm:$0xff] }
  0x4a   : > { %v470_v52 = vld [vmem:[%s1682_s11 + $0x680] sm:$0xff]  ;;  %469 = vst [vmem:[%s1687_s12 + $0x198] sm:$0xff] %v468_v51 }
  0x4b   : > { %v472_v53 = vld [vmem:[%s1682_s11 + $0x6a0] sm:$0xff]  ;;  %471 = vst [vmem:[%s1687_s12 + $0x1a0] sm:$0xff] %v470_v52 }
  0x4c   : > { %473 = vst [vmem:[%s1687_s12 + $0x1a8] sm:$0xff] %v472_v53  ;;  %v474_v54 = vld [vmem:[%s1682_s11 + $0x6c0] sm:$0xff] }
  0x4d   : > { %v476_v55 = vld [vmem:[%s1682_s11 + $0x6e0] sm:$0xff]  ;;  %475 = vst [vmem:[%s1687_s12 + $0x1b0] sm:$0xff] %v474_v54 }
  0x4e   : > { %v478_v56 = vld [vmem:[%s1682_s11 + $0x700] sm:$0xff]  ;;  %477 = vst [vmem:[%s1687_s12 + $0x1b8] sm:$0xff] %v476_v55 }
  0x4f   : > { %479 = vst [vmem:[%s1687_s12 + $0x1c0] sm:$0xff] %v478_v56  ;;  %v480_v57 = vld [vmem:[%s1682_s11 + $0x720] sm:$0xff] }
  0x50   : > { %v482_v58 = vld [vmem:[%s1682_s11 + $0x740] sm:$0xff]  ;;  %481 = vst [vmem:[%s1687_s12 + $0x1c8] sm:$0xff] %v480_v57 }
  0x51   : > { %v484_v59 = vld [vmem:[%s1682_s11 + $0x760] sm:$0xff]  ;;  %483 = vst [vmem:[%s1687_s12 + $0x1d0] sm:$0xff] %v482_v58 }
  0x52   : > { %485 = vst [vmem:[%s1687_s12 + $0x1d8] sm:$0xff] %v484_v59  ;;  %v486_v60 = vld [vmem:[%s1682_s11 + $0x780] sm:$0xff] }
  0x53   : > { %v488_v61 = vld [vmem:[%s1682_s11 + $0x7a0] sm:$0xff]  ;;  %487 = vst [vmem:[%s1687_s12 + $0x1e0] sm:$0xff] %v486_v60 }
  0x54   : > { %v490_v62 = vld [vmem:[%s1682_s11 + $0x7c0] sm:$0xff]  ;;  %489 = vst [vmem:[%s1687_s12 + $0x1e8] sm:$0xff] %v488_v61 }
  0x55   : > { %491 = vst [vmem:[%s1687_s12 + $0x1f0] sm:$0xff] %v490_v62  ;;  %v492_v63 = vld [vmem:[%s1682_s11 + $0x7e0] sm:$0xff] }
  0x56   : > { %493 = vst [vmem:[%s1687_s12 + $0x1f8] sm:$0xff] %v492_v63 }
  0x57 PF: > { %p1304_p7 = scmp.ge.s32.totalorder %s1593_s21, 1  ;;  %p519_p8 = scmp.lt.s32.totalorder %s1593_s21, 25 }
  0x59   : > { %p520_p9 = pnand %p1304_p7, %p519_p8 }
  0x5a   : > { %s526_s13 = sand.u32 (!%p520_p9), 1, %s1569_s15   ;;  %s1306_s14 = sshll.u32 (!%p520_p9), %s1577_s17, 2 }
  0x5b   : > { %523 = sbr.rel (%p520_p9) target bundleno = 393 (0x189), region = 70  ;;  %s1305_s24 = sshll.u32 (!%p520_p9), %s526_s13, 9 }
  0x5c   : > { %p580_p10 = scmp.lt.s32.totalorder (!%p520_p9), %s1306_s14, 23  ;;  %s1308_s25 = sshll.u32 (!%p520_p9), %s1581_s18, 1 }
  0x5d   : > { %p590_p11 = scmp.lt.s32.totalorder (!%p520_p9), %s1308_s25, 7  ;;  %s1841_s13 = scalar_lea.vmem (!%p520_p9), [#allocation3], %s1305_s24 }
  0x5e   : > { %p1313_p12 = scmp.ne.s32.totalorder (!%p520_p9), %s1577_s17, 0 }
  0x60   : > { %s1961_s14 = smov (!%p580_p10, %s1306_s14), 23  ;;  %s1963_s25 = smov (!%p590_p11, %s1308_s25), 7 }
  0x61   : > { %s1307_s26 = sshll.u32 %s1961_s14, 1  ;;  %s592_s15 = scalar_lea.vmem %s1945_s2, %s1963_s25 }
  0x62   : > { %s1822_s30 = scalar_lea.vmem %s1943_s0, %s1307_s26  ;;  %s1310_s7 = sshll.u32 %s1963_s25, 1 }
  0x63   : > { %s1834_s18 = scalar_lea.vmem %s1946_s3, %s1310_s7  ;;  %s1839_s12 = scalar_lea.vmem %s1947_s4, %s1310_s7 }
  0x64   : > { %617 = sbr.rel (%p1313_p12) target bundleno = 107 (0x6b), region = 78 }
  0x69   : > { %v1595_v0 = vmov 0.0  }
  0x6a   : > { %618 = vst [vmem:[#allocation2] sm:$0xff] %v1595_v0 }
  0x6b PF: > { %v1442_v1 = vld [vmem:[%s1841_s13 + $0x74] ss:$8 sps:$4 sm:$0xff]   ;;  %v1446_v3 = vld [vmem:[%s1841_s13 + $0x70] ss:$8 sps:$4 sm:$0xff]   ;;  %v1448_v5 = vld [vmem:[%s1841_s13 + $0x64] ss:$8 sps:$4 sm:$0xff]   ;;  %v690_v39 = vlaneseq }
  0x6c   : > { %v1444_v2 = vld [vmem:[%s1841_s13 + $0x174] ss:$8 sps:$4 sm:$0xff]   ;;  %1027 = vmatprep.subr.bf16.mxu0 %v1442_v1  ;;  %v1447_v4 = vld [vmem:[%s1841_s13 + $0x170] ss:$8 sps:$4 sm:$0xff]   ;;  %v1450_v6 = vld [vmem:[%s1841_s13 + $0x164] ss:$8 sps:$4 sm:$0xff]  }
  0x6d   : > { %1068 = vmatprep.subr.bf16.mxu1 %v1444_v2  ;;  %1028 = vmatpush1.bf16.msra.mxu0 %v1446_v3  ;;  %v1452_v7 = vld [vmem:[%s1841_s13 + $0x60] ss:$8 sps:$4 sm:$0xff]   ;;  %v1454_v9 = vld [vmem:[%s1841_s13 + $0x54] ss:$8 sps:$4 sm:$0xff]   ;;  %v1458_v11 = vld [vmem:[%s1841_s13 + $0x50] ss:$8 sps:$4 sm:$0xff]  }
  0x6e   : > { %1069 = vmatpush1.bf16.msra.mxu1 %v1447_v4  ;;  %1029 = vmatprep.subr.bf16.mxu0 %v1448_v5  ;;  %v1453_v8 = vld [vmem:[%s1841_s13 + $0x160] ss:$8 sps:$4 sm:$0xff]   ;;  %v1456_v10 = vld [vmem:[%s1841_s13 + $0x154] ss:$8 sps:$4 sm:$0xff]   ;;  %v1459_v12 = vld [vmem:[%s1841_s13 + $0x150] ss:$8 sps:$4 sm:$0xff]  }
  0x6f   : > { %1070 = vmatprep.subr.bf16.mxu1 %v1450_v6  ;;  %v1460_v13 = vld [vmem:[%s1841_s13 + $0x44] ss:$8 sps:$4 sm:$0xff]   ;;  %v1464_v15 = vld [vmem:[%s1841_s13 + $0x40] ss:$8 sps:$4 sm:$0xff]   ;;  %v1466_v17 = vld [vmem:[%s1841_s13 + $0x34] ss:$8 sps:$4 sm:$0xff]  }
  0x70   : > { %v1462_v14 = vld [vmem:[%s1841_s13 + $0x144] ss:$8 sps:$4 sm:$0xff]   ;;  %v1465_v16 = vld [vmem:[%s1841_s13 + $0x140] ss:$8 sps:$4 sm:$0xff]   ;;  %v1468_v18 = vld [vmem:[%s1841_s13 + $0x134] ss:$8 sps:$4 sm:$0xff]  }
  0x71   : > { %1030 = vmatpush1.bf16.msra.mxu0 %v1452_v7  ;;  %v1470_v19 = vld [vmem:[%s1841_s13 + $0x30] ss:$8 sps:$4 sm:$0xff]   ;;  %v1472_v21 = vld [vmem:[%s1841_s13 + $0x24] ss:$8 sps:$4 sm:$0xff]   ;;  %v1476_v23 = vld [vmem:[%s1841_s13 + $0x20] ss:$8 sps:$4 sm:$0xff]  }
  0x72   : > { %1071 = vmatpush1.bf16.msra.mxu1 %v1453_v8  ;;  %1031 = vmatprep.subr.bf16.mxu0 %v1454_v9  ;;  %v1471_v20 = vld [vmem:[%s1841_s13 + $0x130] ss:$8 sps:$4 sm:$0xff]   ;;  %v1474_v22 = vld [vmem:[%s1841_s13 + $0x124] ss:$8 sps:$4 sm:$0xff]   ;;  %v1477_v24 = vld [vmem:[%s1841_s13 + $0x120] ss:$8 sps:$4 sm:$0xff]  }
  0x73   : > { %1072 = vmatprep.subr.bf16.mxu1 %v1456_v10  ;;  %v1478_v25 = vld [vmem:[%s1841_s13 + $0x14] ss:$8 sps:$4 sm:$0xff]   ;;  %v1482_v27 = vld [vmem:[%s1841_s13 + $0x10] ss:$8 sps:$4 sm:$0xff]   ;;  %v1484_v29 = vld [vmem:[%s1841_s13 + $0x4] ss:$8 sps:$4 sm:$0xff]  }
  0x74   : > { %v1480_v26 = vld [vmem:[%s1841_s13 + $0x114] ss:$8 sps:$4 sm:$0xff]   ;;  %v1483_v28 = vld [vmem:[%s1841_s13 + $0x110] ss:$8 sps:$4 sm:$0xff]   ;;  %v1486_v30 = vld [vmem:[%s1841_s13 + $0x104] ss:$8 sps:$4 sm:$0xff]  }
  0x75   : > { %1032 = vmatpush1.bf16.msra.mxu0 %v1458_v11  ;;  %v1488_v31 = vld [vmem:[%s1841_s13] ss:$8 sps:$4 sm:$0xff]   ;;  %v1490_v33 = vld [vmem:[%s1841_s13 + $0xf4] ss:$8 sps:$4 sm:$0xff]   ;;  %v1494_v35 = vld [vmem:[%s1841_s13 + $0xf0] ss:$8 sps:$4 sm:$0xff]  }
  0x76   : > { %1073 = vmatpush1.bf16.msra.mxu1 %v1459_v12  ;;  %1033 = vmatprep.subr.bf16.mxu0 %v1460_v13  ;;  %v1489_v32 = vld [vmem:[%s1841_s13 + $0x100] ss:$8 sps:$4 sm:$0xff]   ;;  %v1492_v34 = vld [vmem:[%s1841_s13 + $0x1f4] ss:$8 sps:$4 sm:$0xff]   ;;  %v1495_v36 = vld [vmem:[%s1841_s13 + $0x1f0] ss:$8 sps:$4 sm:$0xff]  }
  0x77   : > { %1074 = vmatprep.subr.bf16.mxu1 %v1462_v14  ;;  %v1596_v37 = vmov 1983009808   ;;  %v1496_v40 = vld [vmem:[%s1841_s13 + $0xe4] ss:$8 sps:$4 sm:$0xff]   ;;  %v1500_v42 = vld [vmem:[%s1841_s13 + $0xe0] ss:$8 sps:$4 sm:$0xff]  }
  0x78   : > { %v688_v38 = vunpack.c.l.s4 %v1596_v37  ;;  %v1498_v41 = vld [vmem:[%s1841_s13 + $0x1e4] ss:$8 sps:$4 sm:$0xff]   ;;  %v1883_v44 = vshrl.u32 %v690_v39, 7  ;;  %v1501_v45 = vld [vmem:[%s1841_s13 + $0x1e0] ss:$8 sps:$4 sm:$0xff]   ;;  %v620_v53 = vld [vmem:[%s1822_s30] sm:$0xff] }
  0x79   : > { %1034 = vmatpush1.bf16.msra.mxu0 %v1464_v15  ;;  %v1502_v46 = vld [vmem:[%s1841_s13 + $0xd4] ss:$8 sps:$4 sm:$0xff]   ;;  %v1506_v48 = vld [vmem:[%s1841_s13 + $0xd0] ss:$8 sps:$4 sm:$0xff]   ;;  %v1508_v51 = vld [vmem:[%s1841_s13 + $0xc4] ss:$8 sps:$4 sm:$0xff]   ;;  %v686_v55 = vcombine.high %v620_v53, %v620_v53 }
  0x7a   : > { %1075 = vmatpush1.bf16.msra.mxu1 %v1465_v16  ;;  %1035 = vmatprep.subr.bf16.mxu0 %v1466_v17  ;;  %v689_v43 = vunpack.c.0.s8 %v688_v38  ;;  %v1504_v47 = vld [vmem:[%s1841_s13 + $0x1d4] ss:$8 sps:$4 sm:$0xff]   ;;  %v1507_v49 = vld [vmem:[%s1841_s13 + $0x1d0] ss:$8 sps:$4 sm:$0xff]   ;;  %v1510_v52 = vld [vmem:[%s1841_s13 + $0x1c4] ss:$8 sps:$4 sm:$0xff]  }
  0x7b   : > { %1076 = vmatprep.subr.bf16.mxu1 %v1468_v18  ;;  %v1512_v56 = vld [vmem:[%s1841_s13 + $0xc0] ss:$8 sps:$4 sm:$0xff]   ;;  %v1514_v58 = vld [vmem:[%s1841_s13 + $0xb4] ss:$8 sps:$4 sm:$0xff]   ;;  %v1518_v63 = vld [vmem:[%s1841_s13 + $0xb0] ss:$8 sps:$4 sm:$0xff]  }
  0x7c   : > { %v692_v50 = vsub.s32 %v689_v43, %v1883_v44  ;;  %v1513_v57 = vld [vmem:[%s1841_s13 + $0x1c0] ss:$8 sps:$4 sm:$0xff]   ;;  %v1516_v59 = vld [vmem:[%s1841_s13 + $0x1b4] ss:$8 sps:$4 sm:$0xff]   ;;  %v1519_v0 = vld [vmem:[%s1841_s13 + $0x1b0] ss:$8 sps:$4 sm:$0xff]  }
  0x7d   : > { %1036 = vmatpush1.bf16.msra.mxu0 %v1470_v19  ;;  %v1520_v1 = vld [vmem:[%s1841_s13 + $0xa4] ss:$8 sps:$4 sm:$0xff]   ;;  %v1524_v3 = vld [vmem:[%s1841_s13 + $0xa0] ss:$8 sps:$4 sm:$0xff]   ;;  %v1526_v5 = vld [vmem:[%s1841_s13 + $0x94] ss:$8 sps:$4 sm:$0xff]  }
  0x7e   : > { %1077 = vmatpush1.bf16.msra.mxu1 %v1471_v20  ;;  %1037 = vmatprep.subr.bf16.mxu0 %v1472_v21  ;;  %v693_v54 = vrot.slane %v620_v53, %v692_v50  ;;  %v700_v61 = vrot.slane %v686_v55, %v692_v50  ;;  %v1522_v2 = vld [vmem:[%s1841_s13 + $0x1a4] ss:$8 sps:$4 sm:$0xff]   ;;  %v1525_v4 = vld [vmem:[%s1841_s13 + $0x1a0] ss:$8 sps:$4 sm:$0xff]   ;;  %v1528_v6 = vld [vmem:[%s1841_s13 + $0x194] ss:$8 sps:$4 sm:$0xff]  }
  0x7f   : > { %1078 = vmatprep.subr.bf16.mxu1 %v1474_v22  ;;  %v1530_v7 = vld [vmem:[%s1841_s13 + $0x90] ss:$8 sps:$4 sm:$0xff]   ;;  %v1532_v9 = vld [vmem:[%s1841_s13 + $0x84] ss:$8 sps:$4 sm:$0xff]   ;;  %v1536_v11 = vld [vmem:[%s1841_s13 + $0x80] ss:$8 sps:$4 sm:$0xff]  }
  0x80   : > { %v701_v60 = vcombine.high %v693_v54, %v693_v54  ;;  %v702_v62 = vcombine.high %v700_v61, %v700_v61  ;;  %v1531_v8 = vld [vmem:[%s1841_s13 + $0x190] ss:$8 sps:$4 sm:$0xff]   ;;  %v1534_v10 = vld [vmem:[%s1841_s13 + $0x184] ss:$8 sps:$4 sm:$0xff]   ;;  %v1537_v12 = vld [vmem:[%s1841_s13 + $0x180] ss:$8 sps:$4 sm:$0xff]  }
  0x81   : > { %1038 = vmatpush1.bf16.msra.mxu0 %v1476_v23  ;;  %v619_v19 = vld [vmem:[#allocation2] sm:$0xff]  ;;  %p1378_p13 = scmp.ne.s32.totalorder %s1577_s17, 5 }
  0x82   : > { %1079 = vmatpush1.bf16.msra.mxu1 %v1477_v24  ;;  %1039 = vmatprep.subr.bf16.mxu0 %v1478_v25 }
  0x83   : > { %1080 = vmatprep.subr.bf16.mxu1 %v1480_v26  ;;  %1059 = vmatprep.mubr.bf16.mxu0 %v701_v60 }
  0x84   : > { %1100 = vmatprep.mubr.bf16.mxu1 %v702_v62 }
  0x85   : > { %1040 = vmatpush1.bf16.msra.mxu0 %v1482_v27 }
  0x86   : > { %1081 = vmatpush1.bf16.msra.mxu1 %v1483_v28  ;;  %1041 = vmatprep.subr.bf16.mxu0 %v1484_v29 }
  0x87   : > { %1082 = vmatprep.subr.bf16.mxu1 %v1486_v30 }
  0x89   : > { %1042 = vmatpush1.bf16.msra.mxu0 %v1488_v31 }
  0x8a   : > { %1083 = vmatpush1.bf16.msra.mxu1 %v1489_v32  ;;  %1043 = vmatprep.subr.bf16.mxu0 %v1490_v33 }
  0x8b   : > { %1084 = vmatprep.subr.bf16.mxu1 %v1492_v34 }
  0x8d   : > { %1044 = vmatpush2.bf16.msra.mxu0 %v1494_v35 }
  0x8e   : > { %1085 = vmatpush2.bf16.msra.mxu1 %v1495_v36  ;;  %1045 = vmatprep.subr.bf16.mxu0 %v1496_v40 }
  0x8f   : > { %1086 = vmatprep.subr.bf16.mxu1 %v1498_v41 }
  0x91   : > { %1046 = vmatpush2.bf16.msra.mxu0 %v1500_v42 }
  0x92   : > { %1087 = vmatpush2.bf16.msra.mxu1 %v1501_v45  ;;  %1047 = vmatprep.subr.bf16.mxu0 %v1502_v46 }
  0x93   : > { %1088 = vmatprep.subr.bf16.mxu1 %v1504_v47 }
  0x95   : > { %1048 = vmatpush2.bf16.msra.mxu0 %v1506_v48 }
  0x96   : > { %1089 = vmatpush2.bf16.msra.mxu1 %v1507_v49  ;;  %1049 = vmatprep.subr.bf16.mxu0 %v1508_v51 }
  0x97   : > { %1090 = vmatprep.subr.bf16.mxu1 %v1510_v52 }
  0x99   : > { %1050 = vmatpush2.bf16.msra.mxu0 %v1512_v56 }
  0x9a   : > { %1091 = vmatpush2.bf16.msra.mxu1 %v1513_v57  ;;  %1051 = vmatprep.subr.bf16.mxu0 %v1514_v58 }
  0x9b   : > { %1092 = vmatprep.subr.bf16.mxu1 %v1516_v59 }
  0x9d   : > { %1052 = vmatpush2.bf16.msra.mxu0 %v1518_v63 }
  0x9e   : > { %1093 = vmatpush2.bf16.msra.mxu1 %v1519_v0  ;;  %1053 = vmatprep.subr.bf16.mxu0 %v1520_v1 }
  0x9f   : > { %1094 = vmatprep.subr.bf16.mxu1 %v1522_v2 }
  0xa1   : > { %1054 = vmatpush2.bf16.msra.mxu0 %v1524_v3 }
  0xa2   : > { %1095 = vmatpush2.bf16.msra.mxu1 %v1525_v4  ;;  %1055 = vmatprep.subr.bf16.mxu0 %v1526_v5 }
  0xa3   : > { %1096 = vmatprep.subr.bf16.mxu1 %v1528_v6 }
  0xa5   : > { %1056 = vmatpush2.bf16.msra.mxu0 %v1530_v7 }
  0xa6   : > { %1097 = vmatpush2.bf16.msra.mxu1 %v1531_v8  ;;  %1057 = vmatprep.subr.bf16.mxu0 %v1532_v9 }
  0xa7   : > { %1098 = vmatprep.subr.bf16.mxu1 %v1534_v10 }
  0xa9   : > { %1058 = vmatpush2.bf16.msra.mxu0 %v1536_v11 }
  0xaa   : > { %1099 = vmatpush2.bf16.msra.mxu1 %v1537_v12 }
  0xac   : > { %1060 = vmatmul.mubr.bf16.vlgmr.msra.gmra.mxu0 %v693_v54 }
  0xad   : > { %1101 = vmatmul.mubr.bf16.vlgmr.msra.gmra.mxu1 %v700_v61 }
 0x16c   : > { %v1061_v13 = vpop.f32.mrf.mxu0 }
 0x16d   : > { %v1102_v14 = vpop.f32.mrf.mxu1 }
 0x16e   : > { %v1063_v15 = vpop.f32.mrf.mxu0  ;;  %v1103_v17 = vadd.f32 %v1102_v14, %v1061_v13 }
 0x16f   : > { %v1104_v16 = vpop.f32.mrf.mxu1 }
 0x170   : > { %v1105_v18 = vadd.f32 %v1104_v16, %v1063_v15  ;;  %v1065_v20 = vpop.f32.mrf.mxu0 }
 0x171   : > { %v1106_v21 = vpop.f32.mrf.mxu1 }
 0x172   : > { %v1111_v22 = vcombine.low %v1103_v17, %v1105_v18  ;;  %v1066_v23 = vpop.f32.mrf.mxu0  ;;  %1118 = sbr.rel (%p1378_p13) target bundleno = 393 (0x189), region = 82 }
 0x173   : > { %v1107_v24 = vpop.f32.mrf.mxu1 }
 0x174   : > { %v1113_v25 = vadd.f32 %v1111_v22, %v619_v19 }
 0x176   : > { %1114 = vst [vmem:[#allocation2] sm:$0xff] %v1113_v25 }
 0x177   : > { %v1120_v26 = vld [vmem:[%s592_s15] sm:$0x3]  ;;  %v1124_v27 = vsub.s32 0, %v1883_v44  ;;  %v1128_v28 = vsub.s32 1, %v1883_v44 }
 0x178   : > { %v1133_v29 = vld [vmem:[%s1834_s18] sm:$0xf] }
 0x179   : > { %v1125_v30 = vrot.slane %v1120_v26, %v1124_v27  ;;  %v1129_v31 = vrot.slane %v1120_v26, %v1128_v28  ;;  %v1134_v34 = vunpack.c.l.bf16 %v1133_v29 }
 0x17b   : > { %v1130_v33 = vcombine.low %v1125_v30, %v1129_v31 }
 0x17d   : > { %v1119_v32 = vld [vmem:[#allocation2] sm:$0xff] }
 0x17e   : > { %v1132_v35 = vadd.f32 %v1130_v33, %v1119_v32 }
 0x180   : > { %v1135_v36 = vadd.f32 %v1134_v34, %v1132_v35 }
 0x182   : > { %v1136_v37 = vmax.f32 %v1135_v36, 0.0 }
 0x184   : > { %v1138_v38 = vcombine.high %v1136_v37, %v1136_v37 }
 0x186   : > { %v1379_v39 = vpack.c.bf16 %v1138_v38, %v1136_v37 }
 0x188   : > { %1380 = vst.sshfl [vmem:[%s1839_s12] sm:$0x33 pattern:$0x76325410] %v1379_v39 }
 0x189 PF: > { %s14_s21 = sadd.s32 1, %s1593_s21   ;;  %s1948_s15 = smov %s1573_s16 }
 0x18a   : > { %p11_p0 = scmp.ge.s32.totalorder %s14_s21, 26   ;;  %s1949_s16 = smov %s1673_s28 }
 0x18b   : > { %s1950_s17 = smov %s1585_s19  ;;  %s1951_s18 = smov %s1589_s20 }
 0x18c   : > { %s1952_s19 = smov %s1955_s22  ;;  %s1953_s20 = smov %s1959_s23 }
 0x18d   :  { %13 = sbr.rel (!%p11_p0) target bundleno = 4 (0x4), region = 126 }

// kernel: _lambda_.27
= control target key start
LH: loop header
LB: loop body
LE: loop exit
PB: predicated region body
PF: predicated region fallthrough
CT: control target
= control target key end

     0   :  { %10 = vsyncpa [#allocation4], 0  ;;  %v1029_v29 = vmov 1983009808   ;;  %v40_v31 = vlaneseq  ;;  %vm120_vm0 = vcmask 1041408   ;;  %vm322_vm1 = vcmask 1041409   ;;  %s1520_s0 = inlined_call_operand.vmem [shape: bf16[2,2,1024], index: 0, kind: input, shape index: {}]   ;;  %s1521_s1 = inlined_call_operand.vmem [shape: f32[1024,10], index: 1, kind: input, shape index: {}]   ;;  %s1522_s2 = inlined_call_operand.vmem [shape: f32[1,10], index: 2, kind: input, shape index: {}]   ;;  %s1523_s3 = inlined_call_operand.hbm [shape: f32[2,10], index: 3, kind: output, shape index: {0}]   ;;  %s1524_s4 = inlined_call_operand.hbm [shape: f32[2,1024], index: 4, kind: output, shape index: {1}]  }
   0x1   :  { %v383_v0 = vld [vmem:[%s1521_s1 + $0xf8] sm:$0xff]  ;;  %v382_v2 = vld [vmem:[%s1521_s1 + $0xf0] sm:$0xff]  ;;  %v381_v6 = vld [vmem:[%s1521_s1 + $0xe8] sm:$0xff]  ;;  %v38_v30 = vunpack.c.l.s4 %v1029_v29  ;;  %vm324_vm2 = vcmask 1043459  }
   0x2   :  { %v367_v1 = vld [vmem:[%s1521_s1 + $0x78] sm:$0xff]  ;;  %842 = vmatprep.subr.mxu0 %v383_v0  ;;  %v366_v4 = vld [vmem:[%s1521_s1 + $0x70] sm:$0xff]  ;;  %v365_v8 = vld [vmem:[%s1521_s1 + $0x68] sm:$0xff]  ;;  %v41_v41 = vshrl.u32 %v40_v31, 7 }
   0x3   :  { %v415_v3 = vld [vmem:[%s1521_s1 + $0x1f8] sm:$0xff]  ;;  %843 = vmatpush3.msra.mxu0 %v367_v1  ;;  %v414_v7 = vld [vmem:[%s1521_s1 + $0x1f0] sm:$0xff]  ;;  %v413_v10 = vld [vmem:[%s1521_s1 + $0x1e8] sm:$0xff]  ;;  %v39_v40 = vunpack.c.0.s8 %v38_v30 }
   0x4   :  { %v399_v5 = vld [vmem:[%s1521_s1 + $0x178] sm:$0xff]  ;;  %877 = vmatprep.subr.mxu1 %v415_v3  ;;  %844 = vmatprep.subr.mxu0 %v382_v2  ;;  %v398_v9 = vld [vmem:[%s1521_s1 + $0x170] sm:$0xff]  ;;  %v380_v11 = vld [vmem:[%s1521_s1 + $0xe0] sm:$0xff] }
   0x5   :  { %878 = vmatpush3.msra.mxu1 %v399_v5  ;;  %845 = vmatpush3.msra.mxu0 %v366_v4  ;;  %v397_v12 = vld [vmem:[%s1521_s1 + $0x168] sm:$0xff]  ;;  %v364_v13 = vld [vmem:[%s1521_s1 + $0x60] sm:$0xff]  ;;  %v379_v15 = vld [vmem:[%s1521_s1 + $0xd8] sm:$0xff]  ;;  %v1195_v51 = vsub.s32 %v39_v40, %v41_v41 }
   0x6   :  { %879 = vmatprep.subr.mxu1 %v414_v7  ;;  %846 = vmatprep.subr.mxu0 %v381_v6  ;;  %v412_v14 = vld [vmem:[%s1521_s1 + $0x1e0] sm:$0xff]  ;;  %v363_v17 = vld [vmem:[%s1521_s1 + $0x58] sm:$0xff]  ;;  %v378_v19 = vld [vmem:[%s1521_s1 + $0xd0] sm:$0xff] }
   0x7   :  { %880 = vmatpush3.msra.mxu1 %v398_v9  ;;  %847 = vmatpush3.msra.mxu0 %v365_v8  ;;  %v396_v16 = vld [vmem:[%s1521_s1 + $0x160] sm:$0xff]  ;;  %v411_v18 = vld [vmem:[%s1521_s1 + $0x1d8] sm:$0xff]  ;;  %v362_v21 = vld [vmem:[%s1521_s1 + $0x50] sm:$0xff] }
   0x8   :  { %881 = vmatprep.subr.mxu1 %v413_v10  ;;  %848 = vmatprep.subr.mxu0 %v380_v11  ;;  %v395_v20 = vld [vmem:[%s1521_s1 + $0x158] sm:$0xff]  ;;  %v410_v22 = vld [vmem:[%s1521_s1 + $0x1d0] sm:$0xff]  ;;  %v377_v23 = vld [vmem:[%s1521_s1 + $0xc8] sm:$0xff] }
   0x9   :  { %882 = vmatpush3.msra.mxu1 %v397_v12  ;;  %849 = vmatpush3.msra.mxu0 %v364_v13  ;;  %v394_v24 = vld [vmem:[%s1521_s1 + $0x150] sm:$0xff]  ;;  %v361_v25 = vld [vmem:[%s1521_s1 + $0x48] sm:$0xff]  ;;  %v376_v27 = vld [vmem:[%s1521_s1 + $0xc0] sm:$0xff] }
   0xa   :  { %883 = vmatprep.subr.mxu1 %v412_v14  ;;  %850 = vmatprep.subr.mxu0 %v379_v15  ;;  %v409_v26 = vld [vmem:[%s1521_s1 + $0x1c8] sm:$0xff]  ;;  %v360_v32 = vld [vmem:[%s1521_s1 + $0x40] sm:$0xff]  ;;  %v375_v34 = vld [vmem:[%s1521_s1 + $0xb8] sm:$0xff] }
   0xb   :  { %884 = vmatpush3.msra.mxu1 %v396_v16  ;;  %851 = vmatpush3.msra.mxu0 %v363_v17  ;;  %v393_v28 = vld [vmem:[%s1521_s1 + $0x148] sm:$0xff]  ;;  %v408_v33 = vld [vmem:[%s1521_s1 + $0x1c0] sm:$0xff]  ;;  %v359_v36 = vld [vmem:[%s1521_s1 + $0x38] sm:$0xff] }
   0xc   :  { %885 = vmatprep.subr.mxu1 %v411_v18  ;;  %852 = vmatprep.subr.mxu0 %v378_v19  ;;  %v392_v35 = vld [vmem:[%s1521_s1 + $0x140] sm:$0xff]  ;;  %v407_v37 = vld [vmem:[%s1521_s1 + $0x1b8] sm:$0xff]  ;;  %v374_v38 = vld [vmem:[%s1521_s1 + $0xb0] sm:$0xff] }
   0xd   :  { %886 = vmatpush3.msra.mxu1 %v395_v20  ;;  %853 = vmatpush3.msra.mxu0 %v362_v21  ;;  %v391_v39 = vld [vmem:[%s1521_s1 + $0x138] sm:$0xff]  ;;  %v358_v42 = vld [vmem:[%s1521_s1 + $0x30] sm:$0xff]  ;;  %v373_v44 = vld [vmem:[%s1521_s1 + $0xa8] sm:$0xff] }
   0xe   :  { %887 = vmatprep.subr.mxu1 %v410_v22  ;;  %854 = vmatprep.subr.mxu0 %v377_v23  ;;  %v406_v43 = vld [vmem:[%s1521_s1 + $0x1b0] sm:$0xff]  ;;  %v357_v46 = vld [vmem:[%s1521_s1 + $0x28] sm:$0xff]  ;;  %v372_v48 = vld [vmem:[%s1521_s1 + $0xa0] sm:$0xff] }
   0xf   :  { %888 = vmatpush3.msra.mxu1 %v394_v24  ;;  %855 = vmatpush3.msra.mxu0 %v361_v25  ;;  %v390_v45 = vld [vmem:[%s1521_s1 + $0x130] sm:$0xff]  ;;  %v405_v47 = vld [vmem:[%s1521_s1 + $0x1a8] sm:$0xff]  ;;  %v26_v50 = vld [vmem:[%s1520_s0] sm:$0xff] }
  0x10   :  { %889 = vmatprep.subr.mxu1 %v409_v26  ;;  %856 = vmatprep.subr.mxu0 %v376_v27  ;;  %v389_v49 = vld [vmem:[%s1521_s1 + $0x128] sm:$0xff]  ;;  %v356_v52 = vld [vmem:[%s1521_s1 + $0x20] sm:$0xff]  ;;  %v28_v55 = vunpack.c.l.bf16 %v26_v50  ;;  %v1206_v56 = vunpack.c.h.bf16 %v26_v50  ;;  %v371_v57 = vld [vmem:[%s1521_s1 + $0x98] sm:$0xff] }
  0x11   :  { %890 = vmatpush3.msra.mxu1 %v393_v28  ;;  %857 = vmatpush3.msra.mxu0 %v360_v32  ;;  %v404_v53 = vld [vmem:[%s1521_s1 + $0x1a0] sm:$0xff]  ;;  %v27_v54 = vld [vmem:[%s1520_s0 + $0x8] sm:$0xff]  ;;  %v355_v60 = vld [vmem:[%s1521_s1 + $0x18] sm:$0xff] }
  0x12   :  { %891 = vmatprep.subr.mxu1 %v408_v33  ;;  %858 = vmatprep.subr.mxu0 %v375_v34  ;;  %v388_v58 = vld [vmem:[%s1521_s1 + $0x120] sm:$0xff]  ;;  %v30_v59 = vunpack.c.l.bf16 %v27_v54  ;;  %v403_v61 = vld [vmem:[%s1521_s1 + $0x198] sm:$0xff]  ;;  %v36_v62 = vcombine.high %v28_v55, %v28_v55  ;;  %v43_v63 = vrot.slane %v28_v55, %v1195_v51  ;;  %v370_v0 = vld [vmem:[%s1521_s1 + $0x90] sm:$0xff]  ;;  %v1227_v2 = vunpack.c.h.bf16 %v27_v54 }
  0x13   :  { %892 = vmatpush3.msra.mxu1 %v392_v35  ;;  %859 = vmatpush3.msra.mxu0 %v359_v36  ;;  %v387_v1 = vld [vmem:[%s1521_s1 + $0x118] sm:$0xff]  ;;  %v53_v5 = vcombine.high %v1206_v56, %v1206_v56  ;;  %v354_v6 = vld [vmem:[%s1521_s1 + $0x10] sm:$0xff]  ;;  %v1242_v11 = vrot.slane %v1206_v56, %v1195_v51  ;;  %v369_v12 = vld [vmem:[%s1521_s1 + $0x88] sm:$0xff] }
  0x14   :  { %893 = vmatprep.subr.mxu1 %v407_v37  ;;  %860 = vmatprep.subr.mxu0 %v374_v38  ;;  %v70_v3 = vcombine.high %v30_v59, %v30_v59  ;;  %v77_v4 = vrot.slane %v30_v59, %v1195_v51  ;;  %v402_v7 = vld [vmem:[%s1521_s1 + $0x190] sm:$0xff]  ;;  %v50_v8 = vrot.slane %v36_v62, %v1195_v51  ;;  %v121_v10 = vsel %vm120_vm0, %v43_v63, 0.0  ;;  %v353_v18 = vld [vmem:[%s1521_s1 + $0x8] sm:$0xff]  ;;  %v368_v24 = vld [vmem:[%s1521_s1 + $0x80] sm:$0xff] }
  0x15   :  { %894 = vmatpush3.msra.mxu1 %v391_v39  ;;  %861 = vmatpush3.msra.mxu0 %v358_v42  ;;  %v51_v9 = vcombine.high %v43_v63, %v43_v63  ;;  %v386_v13 = vld [vmem:[%s1521_s1 + $0x110] sm:$0xff]  ;;  %v122_v16 = vrot.slane %v121_v10, 4  ;;  %v401_v19 = vld [vmem:[%s1521_s1 + $0x188] sm:$0xff]  ;;  %v352_v30 = vld [vmem:[%s1521_s1] sm:$0xff] }
  0x16   :  { %895 = vmatprep.subr.mxu1 %v406_v43  ;;  %862 = vmatprep.subr.mxu0 %v373_v44  ;;  %v84_v14 = vrot.slane %v70_v3, %v1195_v51  ;;  %v85_v15 = vcombine.high %v77_v4, %v77_v4  ;;  %v177_v17 = vsel %vm120_vm0, %v77_v4, 0.0  ;;  %v52_v20 = vcombine.high %v50_v8, %v50_v8  ;;  %v385_v25 = vld [vmem:[%s1521_s1 + $0x108] sm:$0xff]  ;;  %v400_v35 = vld [vmem:[%s1521_s1 + $0x180] sm:$0xff]  ;;  %v447_v40 = vld [vmem:[%s1521_s1 + $0x2f8] sm:$0xff] }
  0x17   :  { %896 = vmatpush3.msra.mxu1 %v390_v45  ;;  %863 = vmatpush3.msra.mxu0 %v357_v46  ;;  %v128_v21 = vsel %vm120_vm0, %v51_v9, 0.0  ;;  %v135_v22 = vsel %vm120_vm0, %v50_v8, 0.0  ;;  %v178_v23 = vrot.slane %v177_v17, 4  ;;  %v123_v27 = vadd.f32 %v122_v16, %v121_v10  ;;  %v384_v41 = vld [vmem:[%s1521_s1 + $0x100] sm:$0xff]  ;;  %v479_v46 = vld [vmem:[%s1521_s1 + $0x3f8] sm:$0xff] }
  0x18   :  { %897 = vmatprep.subr.mxu1 %v405_v47  ;;  %864 = vmatprep.subr.mxu0 %v372_v48  ;;  %v86_v26 = vcombine.high %v84_v14, %v84_v14  ;;  %v129_v28 = vrot.slane %v128_v21, 4  ;;  %v136_v29 = vrot.slane %v135_v22, 4  ;;  %v142_v31 = vsel %vm120_vm0, %v52_v20, 0.0 }
  0x19   :  { %898 = vmatpush3.msra.mxu1 %v389_v49  ;;  %865 = vmatpush3.msra.mxu0 %v356_v52  ;;  %v179_v32 = vadd.f32 %v178_v23, %v177_v17  ;;  %v184_v33 = vsel %vm120_vm0, %v85_v15, 0.0  ;;  %v191_v34 = vsel %vm120_vm0, %v84_v14, 0.0  ;;  %v124_v36 = vrot.slane %v123_v27, 2 }
  0x1a   :  { %899 = vmatprep.subr.mxu1 %v404_v53  ;;  %866 = vmatprep.subr.mxu0 %v371_v57  ;;  %v130_v37 = vadd.f32 %v129_v28, %v128_v21  ;;  %v137_v38 = vadd.f32 %v136_v29, %v135_v22  ;;  %v143_v39 = vrot.slane %v142_v31, 4  ;;  %v185_v43 = vrot.slane %v184_v33, 4 }
  0x1b   :  { %900 = vmatpush3.msra.mxu1 %v388_v58  ;;  %867 = vmatpush3.msra.mxu0 %v355_v60  ;;  %v180_v42 = vrot.slane %v179_v32, 2  ;;  %v192_v44 = vrot.slane %v191_v34, 4  ;;  %v198_v45 = vsel %vm120_vm0, %v86_v26, 0.0  ;;  %v125_v47 = vadd.f32 %v124_v36, %v123_v27 }
  0x1c   :  { %901 = vmatprep.subr.mxu1 %v403_v61  ;;  %868 = vmatprep.subr.mxu0 %v370_v0  ;;  %v131_v48 = vrot.slane %v130_v37, 2  ;;  %v138_v49 = vrot.slane %v137_v38, 2  ;;  %v144_v50 = vadd.f32 %v143_v39, %v142_v31  ;;  %v186_v53 = vadd.f32 %v185_v43, %v184_v33 }
  0x1d   :  { %902 = vmatpush3.msra.mxu1 %v387_v1  ;;  %869 = vmatpush3.msra.mxu0 %v354_v6  ;;  %v181_v52 = vadd.f32 %v180_v42, %v179_v32  ;;  %v193_v54 = vadd.f32 %v192_v44, %v191_v34  ;;  %v199_v55 = vrot.slane %v198_v45, 4  ;;  %v126_v57 = vrot.slane %v125_v47, 1 }
  0x1e   :  { %903 = vmatprep.subr.mxu1 %v402_v7  ;;  %870 = vmatprep.subr.mxu0 %v369_v12  ;;  %v132_v58 = vadd.f32 %v131_v48, %v130_v37  ;;  %v139_v59 = vadd.f32 %v138_v49, %v137_v38  ;;  %v145_v60 = vrot.slane %v144_v50, 2  ;;  %v187_v62 = vrot.slane %v186_v53, 2 }
  0x1f   :  { %904 = vmatpush3.msra.mxu1 %v386_v13  ;;  %871 = vmatpush3.msra.mxu0 %v353_v18  ;;  %v182_v61 = vrot.slane %v181_v52, 1  ;;  %v194_v63 = vrot.slane %v193_v54, 2  ;;  %v200_v0 = vadd.f32 %v199_v55, %v198_v45  ;;  %v127_v1 = vadd.f32 %v126_v57, %v125_v47 }
  0x20   :  { %905 = vmatprep.subr.mxu1 %v401_v19  ;;  %872 = vmatprep.subr.mxu0 %v368_v24  ;;  %v133_v3 = vrot.slane %v132_v58, 1  ;;  %v140_v4 = vrot.slane %v139_v59, 1  ;;  %v146_v6 = vadd.f32 %v145_v60, %v144_v50  ;;  %v188_v7 = vadd.f32 %v187_v62, %v186_v53 }
  0x21   :  { %906 = vmatpush3.msra.mxu1 %v385_v25  ;;  %873 = vmatpush3.msra.mxu0 %v352_v30  ;;  %v195_v8 = vadd.f32 %v194_v63, %v193_v54  ;;  %v201_v9 = vrot.slane %v200_v0, 2  ;;  %v67_v10 = vrot.slane %v53_v5, %v1195_v51  ;;  %v183_v15 = vadd.f32 %v182_v61, %v181_v52 }
  0x22   :  { %907 = vmatprep.subr.mxu1 %v400_v35  ;;  %912 = vmatprep.subr.mxu0 %v447_v40  ;;  %v134_v12 = vadd.f32 %v133_v3, %v132_v58  ;;  %v141_v13 = vadd.f32 %v140_v4, %v139_v59  ;;  %v147_v14 = vrot.slane %v146_v6, 1  ;;  %v189_v16 = vrot.slane %v188_v7, 1 }
  0x23   :  { %908 = vmatpush3.msra.mxu1 %v384_v41  ;;  %v196_v17 = vrot.slane %v195_v8, 1  ;;  %v202_v18 = vadd.f32 %v201_v9, %v200_v0  ;;  %v68_v19 = vcombine.high %v1242_v11, %v1242_v11  ;;  %v87_v22 = vcombine.high %v1227_v2, %v1227_v2 }
  0x24   :  { %947 = vmatprep.subr.mxu1 %v479_v46  ;;  %v148_v20 = vadd.f32 %v147_v14, %v146_v6  ;;  %v249_v21 = vcombine.low %v127_v1, %v134_v12  ;;  %v94_v23 = vrot.slane %v1227_v2, %v1195_v51  ;;  %v190_v56 = vadd.f32 %v189_v16, %v188_v7 }
  0x25   :  { %v197_v5 = vadd.f32 %v196_v17, %v195_v8  ;;  %v203_v24 = vrot.slane %v202_v18, 1  ;;  %v149_v25 = vsel %vm120_vm0, %v1242_v11, 0.0  ;;  %v69_v28 = vcombine.high %v67_v10, %v67_v10 }
  0x26   :  { %v250_v26 = vcombine.low %v141_v13, %v148_v20  ;;  %v257_v27 = vrot.slane %v249_v21, %v1195_v51  ;;  %v101_v29 = vrot.slane %v87_v22, %v1195_v51  ;;  %v283_v31 = vcombine.low %v183_v15, %v190_v56 }
  0x27   :  { %v204_v30 = vadd.f32 %v203_v24, %v202_v18  ;;  %v150_v32 = vrot.slane %v149_v25, 4  ;;  %v156_v33 = vsel %vm120_vm0, %v68_v19, 0.0 }
  0x28   :  { %11 = vsyncpa [#allocation6], 0  ;;  %v264_v2 = vrot.slane %v250_v26, %v1195_v51  ;;  %v102_v34 = vcombine.high %v94_v23, %v94_v23  ;;  %v157_v35 = vrot.slane %v156_v33, 4  ;;  %v163_v11 = vsel %vm120_vm0, %v67_v10, 0.0  ;;  %s1030_s9 = smov [#allocation5]  }
  0x29   :  { %v284_v36 = vcombine.low %v197_v5, %v204_v30  ;;  %v291_v37 = vrot.slane %v283_v31, %v1195_v51  ;;  %v151_v38 = vadd.f32 %v150_v32, %v149_v25  ;;  %v164_v39 = vrot.slane %v163_v11, 4  ;;  %s829_s10 = sshll.u32 %s1030_s9, 4  ;;  %s830_s10 = int_to_ptr.vmem [resolvable:$true] %s829_s10 }
  0x2a   :  { %v265_v40 = vcombine.low %v257_v27, %v264_v2  ;;  %v158_v41 = vadd.f32 %v157_v35, %v156_v33  ;;  %v170_v42 = vsel %vm120_vm0, %v69_v28, 0.0  ;;  %v205_v43 = vsel %vm120_vm0, %v94_v23, 0.0  ;;  %s985_s11 = scalar_lea.vmem %s830_s10, 256  ;;  %p990_p1 = scmp.lt.s32.totalorder %s830_s10, %s830_s10 }
  0x2b   :  { %v298_v44 = vrot.slane %v284_v36, %v1195_v51  ;;  %v152_v45 = vrot.slane %v151_v38, 2  ;;  %v165_v46 = vadd.f32 %v164_v39, %v163_v11  ;;  %v171_v47 = vrot.slane %v170_v42, 4  ;;  %v431_v36 = vld [vmem:[%s1521_s1 + $0x278] sm:$0xff]  ;;  %p986_p0 = scmp.ne.s32.totalorder %s830_s10, %s985_s11  ;;  %p991_p2 = scmp.lt.s32.totalorder %s985_s11, %s985_s11 }
  0x2c   :  { %v159_v48 = vrot.slane %v158_v41, 2  ;;  %v206_v49 = vrot.slane %v205_v43, 4  ;;  %v212_v50 = vsel %vm120_vm0, %v102_v34, 0.0  ;;  %v219_v52 = vsel %vm120_vm0, %v101_v29, 0.0 }
  0x2d   :  { %v299_v53 = vcombine.low %v291_v37, %v298_v44  ;;  %v153_v54 = vadd.f32 %v152_v45, %v151_v38  ;;  %v166_v55 = vrot.slane %v165_v46, 2  ;;  %v172_v57 = vadd.f32 %v171_v47, %v170_v42  ;;  %v446_v38 = vld [vmem:[%s1521_s1 + $0x2f0] sm:$0xff]  ;;  %p992_p3 = por %p991_p2, %p990_p1 }
  0x2e   :  { %v160_v58 = vadd.f32 %v159_v48, %v158_v41  ;;  %v207_v59 = vadd.f32 %v206_v49, %v205_v43  ;;  %v213_v60 = vrot.slane %v212_v50, 4  ;;  %v220_v61 = vrot.slane %v219_v52, 4  ;;  %v463_v41 = vld [vmem:[%s1521_s1 + $0x378] sm:$0xff]  ;;  %v445_v43 = vld [vmem:[%s1521_s1 + $0x2e8] sm:$0xff]  ;;  %v478_v44 = vld [vmem:[%s1521_s1 + $0x3f0] sm:$0xff] }
  0x2f   :  { %v321_v62 = vrot.slane %v299_v53, 7  ;;  %vm326_vm3 = vcmask 1045509   ;;  %v167_v63 = vadd.f32 %v166_v55, %v165_v46  ;;  %v173_v0 = vrot.slane %v172_v57, 2  ;;  %v429_v49 = vld [vmem:[%s1521_s1 + $0x268] sm:$0xff]  ;;  %v428_v55 = vld [vmem:[%s1521_s1 + $0x260] sm:$0xff]  ;;  %p993_p4 = pnand %p992_p3, %p986_p0 }
  0x30   :  { %v103_v1 = vcombine.high %v101_v29, %v101_v29  ;;  %v208_v3 = vrot.slane %v207_v59, 2  ;;  %v214_v4 = vadd.f32 %v213_v60, %v212_v50  ;;  %v221_v6 = vadd.f32 %v220_v61, %v219_v52  ;;  %v462_v50 = vld [vmem:[%s1521_s1 + $0x370] sm:$0xff]  ;;  %v444_v52 = vld [vmem:[%s1521_s1 + $0x2e0] sm:$0xff]  ;;  %v477_v53 = vld [vmem:[%s1521_s1 + $0x3e8] sm:$0xff] }
  0x31   :  { %v323_v7 = vsel %vm322_vm1, %v321_v62, %v265_v40  ;;  %vm328_vm4 = vcmask 1047559   ;;  %v154_v8 = vrot.slane %v153_v54, 1  ;;  %v174_v9 = vadd.f32 %v173_v0, %v172_v57  ;;  %v430_v40 = vld [vmem:[%s1521_s1 + $0x270] sm:$0xff]  ;;  %v461_v57 = vld [vmem:[%s1521_s1 + $0x368] sm:$0xff]  ;;  %v476_v60 = vld [vmem:[%s1521_s1 + $0x3e0] sm:$0xff] }
  0x32   :  { %v325_v10 = vsel %vm324_vm2, %v321_v62, %v323_v7  ;;  %v161_v12 = vrot.slane %v160_v58, 1  ;;  %v209_v13 = vadd.f32 %v208_v3, %v207_v59  ;;  %v215_v14 = vrot.slane %v214_v4, 2  ;;  %v443_v59 = vld [vmem:[%s1521_s1 + $0x2d8] sm:$0xff]  ;;  %v442_v3 = vld [vmem:[%s1521_s1 + $0x2d0] sm:$0xff] }
  0x33   :  { %v327_v15 = vsel %vm326_vm3, %v321_v62, %v325_v10  ;;  %v168_v16 = vrot.slane %v167_v63, 1  ;;  %v175_v17 = vrot.slane %v174_v9, 1  ;;  %v222_v18 = vrot.slane %v221_v6, 2  ;;  %v427_v0 = vld [vmem:[%s1521_s1 + $0x258] sm:$0xff]  ;;  %v426_v7 = vld [vmem:[%s1521_s1 + $0x250] sm:$0xff] }
  0x34   :  { %v329_v19 = vsel %vm328_vm4, %v321_v62, %v327_v15  ;;  %v210_v20 = vrot.slane %v209_v13, 1  ;;  %v216_v21 = vadd.f32 %v215_v14, %v214_v4  ;;  %v226_v22 = vsel %vm120_vm0, %v103_v1, 0.0  ;;  %v460_v1 = vld [vmem:[%s1521_s1 + $0x360] sm:$0xff]  ;;  %v475_v4 = vld [vmem:[%s1521_s1 + $0x3d8] sm:$0xff]  ;;  %v474_v10 = vld [vmem:[%s1521_s1 + $0x3d0] sm:$0xff] }
  0x35   :  { %v348_v23 = vmul.f32 0.5, %v329_v19  ;;  %v223_v56 = vadd.f32 %v222_v18, %v221_v6  ;;  %v227_v5 = vrot.slane %v226_v22, 4  ;;  %v155_v24 = vadd.f32 %v154_v8, %v153_v54  ;;  %v459_v8 = vld [vmem:[%s1521_s1 + $0x358] sm:$0xff]  ;;  %v425_v14 = vld [vmem:[%s1521_s1 + $0x248] sm:$0xff]  ;;  %v458_v15 = vld [vmem:[%s1521_s1 + $0x350] sm:$0xff] }
  0x36   :  { %v217_v25 = vrot.slane %v216_v21, 1  ;;  %v162_v28 = vadd.f32 %v161_v12, %v160_v58  ;;  %v169_v30 = vadd.f32 %v168_v16, %v167_v63  ;;  %v176_v31 = vadd.f32 %v175_v17, %v174_v9  ;;  %v441_v9 = vld [vmem:[%s1521_s1 + $0x2c8] sm:$0xff]  ;;  %v440_v16 = vld [vmem:[%s1521_s1 + $0x2c0] sm:$0xff] }
  0x37   :  { %v496_v26 = vrot.slane %v348_v23, %v1195_v51  ;;  %350 = vst [vmem:[#allocation5] sm:$0xff] %v348_v23  ;;  %v489_v27 = vcombine.high %v348_v23, %v348_v23  ;;  %v228_v29 = vadd.f32 %v227_v5, %v226_v22  ;;  %v211_v32 = vadd.f32 %v210_v20, %v209_v13  ;;  %v473_v17 = vld [vmem:[%s1521_s1 + $0x3c8] sm:$0xff]  ;;  %v424_v19 = vld [vmem:[%s1521_s1 + $0x240] sm:$0xff] }
  0x38   :  { %v224_v33 = vrot.slane %v223_v56, 1  ;;  %v218_v35 = vadd.f32 %v217_v25, %v216_v21  ;;  %v266_v42 = vcombine.low %v155_v24, %v162_v28  ;;  %v267_v47 = vcombine.low %v169_v30, %v176_v31  ;;  %v457_v20 = vld [vmem:[%s1521_s1 + $0x348] sm:$0xff]  ;;  %v439_v21 = vld [vmem:[%s1521_s1 + $0x2b8] sm:$0xff]  ;;  %v472_v22 = vld [vmem:[%s1521_s1 + $0x3c0] sm:$0xff] }
  0x39   :  { %v504_v2 = vcombine.high %v496_v26, %v496_v26  ;;  %v503_v34 = vrot.slane %v489_v27, %v1195_v51  ;;  %v229_v11 = vrot.slane %v228_v29, 2  ;;  %v456_v5 = vld [vmem:[%s1521_s1 + $0x340] sm:$0xff]  ;;  %v438_v25 = vld [vmem:[%s1521_s1 + $0x2b0] sm:$0xff]  ;;  %v437_v31 = vld [vmem:[%s1521_s1 + $0x2a8] sm:$0xff] }
  0x3a   :  { %v225_v45 = vadd.f32 %v224_v33, %v223_v56  ;;  %v300_v48 = vcombine.low %v211_v32, %v218_v35  ;;  %v274_v58 = vrot.slane %v266_v42, %v1195_v51  ;;  %v281_v61 = vrot.slane %v267_v47, %v1195_v51  ;;  %v423_v56 = vld [vmem:[%s1521_s1 + $0x238] sm:$0xff]  ;;  %v422_v28 = vld [vmem:[%s1521_s1 + $0x230] sm:$0xff]  ;;  %v436_v35 = vld [vmem:[%s1521_s1 + $0x2a0] sm:$0xff] }
  0x3b   :  { %595 = vmatprep.mubr.f32.mxu0 %v504_v2  ;;  %v505_v37 = vcombine.high %v503_v34, %v503_v34  ;;  %v230_v39 = vadd.f32 %v229_v11, %v228_v29  ;;  %v455_v29 = vld [vmem:[%s1521_s1 + $0x338] sm:$0xff]  ;;  %v470_v32 = vld [vmem:[%s1521_s1 + $0x3b0] sm:$0xff]  ;;  %v421_v2 = vld [vmem:[%s1521_s1 + $0x228] sm:$0xff] }
  0x3c   :  { %596 = vmatmul.mubr.f32.vlgmr.msra.gmra.mxu0 %v496_v26  ;;  %v308_v63 = vrot.slane %v300_v48, %v1195_v51  ;;  %v282_v12 = vcombine.low %v274_v58, %v281_v61  ;;  %v471_v26 = vld [vmem:[%s1521_s1 + $0x3b8] sm:$0xff]  ;;  %v469_v11 = vld [vmem:[%s1521_s1 + $0x3a8] sm:$0xff]  ;;  %v452_v42 = vld [vmem:[%s1521_s1 + $0x320] sm:$0xff] }
  0x3d   :  { %913 = vmatpush3.msra.mxu0 %v431_v36  ;;  %665 = vmatprep.mubr.f32.mxu1 %v505_v37  ;;  %v231_v46 = vrot.slane %v230_v39, 1  ;;  %v420_v36 = vld [vmem:[%s1521_s1 + $0x220] sm:$0xff]  ;;  %v453_v37 = vld [vmem:[%s1521_s1 + $0x328] sm:$0xff]  ;;  %v451_v47 = vld [vmem:[%s1521_s1 + $0x318] sm:$0xff] }
  0x3e   :  { %914 = vmatprep.subr.mxu0 %v446_v38  ;;  %666 = vmatmul.mubr.f32.vlgmr.msra.gmra.mxu1 %v503_v34  ;;  %v454_v34 = vld [vmem:[%s1521_s1 + $0x330] sm:$0xff]  ;;  %v435_v38 = vld [vmem:[%s1521_s1 + $0x298] sm:$0xff]  ;;  %v433_v48 = vld [vmem:[%s1521_s1 + $0x288] sm:$0xff] }
  0x3f   :  { %915 = vmatpush3.msra.mxu0 %v430_v40  ;;  %948 = vmatpush3.msra.mxu1 %v463_v41  ;;  %v232_v54 = vadd.f32 %v231_v46, %v230_v39  ;;  %v468_v39 = vld [vmem:[%s1521_s1 + $0x3a0] sm:$0xff]  ;;  %v419_v41 = vld [vmem:[%s1521_s1 + $0x218] sm:$0xff]  ;;  %v418_v46 = vld [vmem:[%s1521_s1 + $0x210] sm:$0xff] }
  0x40   :  { %916 = vmatprep.subr.mxu0 %v445_v43  ;;  %949 = vmatprep.subr.mxu1 %v478_v44  ;;  %v434_v43 = vld [vmem:[%s1521_s1 + $0x290] sm:$0xff]  ;;  %v467_v44 = vld [vmem:[%s1521_s1 + $0x398] sm:$0xff]  ;;  %v449_v58 = vld [vmem:[%s1521_s1 + $0x308] sm:$0xff] }
  0x41   :  { %917 = vmatpush3.msra.mxu0 %v429_v49  ;;  %950 = vmatpush3.msra.mxu1 %v462_v50  ;;  %v301_v62 = vcombine.low %v225_v45, %v232_v54  ;;  %v466_v49 = vld [vmem:[%s1521_s1 + $0x390] sm:$0xff]  ;;  %v432_v54 = vld [vmem:[%s1521_s1 + $0x280] sm:$0xff] }
  0x42   :  { %918 = vmatprep.subr.mxu0 %v444_v52  ;;  %951 = vmatprep.subr.mxu1 %v477_v53  ;;  %v417_v52 = vld [vmem:[%s1521_s1 + $0x208] sm:$0xff]  ;;  %v450_v53 = vld [vmem:[%s1521_s1 + $0x310] sm:$0xff]  ;;  %v448_v61 = vld [vmem:[%s1521_s1 + $0x300] sm:$0xff] }
  0x43   :  { %919 = vmatpush3.msra.mxu0 %v428_v55  ;;  %952 = vmatpush3.msra.mxu1 %v461_v57  ;;  %v315_v6 = vrot.slane %v301_v62, %v1195_v51  ;;  %v416_v57 = vld [vmem:[%s1521_s1 + $0x200] sm:$0xff] }
  0x44   :  { %920 = vmatprep.subr.mxu0 %v443_v59  ;;  %953 = vmatprep.subr.mxu1 %v476_v60  ;;  %v464_v60 = vld [vmem:[%s1521_s1 + $0x380] sm:$0xff] }
  0x45   :  { %921 = vmatpush3.msra.mxu0 %v427_v0  ;;  %954 = vmatpush3.msra.mxu1 %v460_v1  ;;  %v316_v13 = vcombine.low %v308_v63, %v315_v6 }
  0x46   :  { %922 = vmatprep.subr.mxu0 %v442_v3  ;;  %955 = vmatprep.subr.mxu1 %v475_v4 }
  0x47   :  { %923 = vmatpush3.msra.mxu0 %v426_v7  ;;  %956 = vmatpush3.msra.mxu1 %v459_v8  ;;  %v332_v18 = vrot.slane %v316_v13, 7 }
  0x48   :  { %924 = vmatprep.subr.mxu0 %v441_v9  ;;  %957 = vmatprep.subr.mxu1 %v474_v10 }
  0x49   :  { %925 = vmatpush3.msra.mxu0 %v425_v14  ;;  %958 = vmatpush3.msra.mxu1 %v458_v15  ;;  %v333_v23 = vsel %vm322_vm1, %v332_v18, %v282_v12 }
  0x4a   :  { %926 = vmatprep.subr.mxu0 %v440_v16  ;;  %959 = vmatprep.subr.mxu1 %v473_v17  ;;  %v334_v24 = vsel %vm324_vm2, %v332_v18, %v333_v23 }
  0x4b   :  { %927 = vmatpush3.msra.mxu0 %v424_v19  ;;  %960 = vmatpush3.msra.mxu1 %v457_v20  ;;  %v335_v27 = vsel %vm326_vm3, %v332_v18, %v334_v24 }
  0x4c   :  { %928 = vmatprep.subr.mxu0 %v439_v21  ;;  %961 = vmatprep.subr.mxu1 %v472_v22  ;;  %v336_v30 = vsel %vm328_vm4, %v332_v18, %v335_v27 }
  0x4d   :  { %929 = vmatpush3.msra.mxu0 %v423_v56  ;;  %962 = vmatpush3.msra.mxu1 %v456_v5  ;;  %v349_v33 = vmul.f32 0.5, %v336_v30 }
  0x4e   :  { %930 = vmatprep.subr.mxu0 %v438_v25  ;;  %963 = vmatprep.subr.mxu1 %v471_v26 }
  0x4f   :  { %931 = vmatpush3.msra.mxu0 %v422_v28  ;;  %964 = vmatpush3.msra.mxu1 %v455_v29  ;;  %351 = vst [vmem:[#allocation5 + $0x8] sm:$0xff] %v349_v33  ;;  %v506_v40 = vcombine.high %v349_v33, %v349_v33  ;;  %v513_v45 = vrot.slane %v349_v33, %v1195_v51 }
  0x50   :  { %932 = vmatprep.subr.mxu0 %v437_v31  ;;  %965 = vmatprep.subr.mxu1 %v470_v32 }
  0x51   :  { %933 = vmatpush3.msra.mxu0 %v421_v2  ;;  %966 = vmatpush3.msra.mxu1 %v454_v34  ;;  %v520_v50 = vrot.slane %v506_v40, %v1195_v51  ;;  %v465_v51 = vld [vmem:[%s1521_s1 + $0x388] sm:$0xff]  ;;  %v521_v55 = vcombine.high %v513_v45, %v513_v45 }
  0x52   :  { %934 = vmatprep.subr.mxu0 %v436_v35  ;;  %967 = vmatprep.subr.mxu1 %v469_v11 }
  0x53   :  { %935 = vmatpush3.msra.mxu0 %v420_v36  ;;  %968 = vmatpush3.msra.mxu1 %v453_v37  ;;  %v522_v59 = vcombine.high %v520_v50, %v520_v50 }
  0x54   :  { %936 = vmatprep.subr.mxu0 %v435_v38  ;;  %969 = vmatprep.subr.mxu1 %v468_v39 }
  0x55   :  { %937 = vmatpush3.msra.mxu0 %v419_v41  ;;  %970 = vmatpush3.msra.mxu1 %v452_v42 }
  0x56   :  { %938 = vmatprep.subr.mxu0 %v434_v43  ;;  %971 = vmatprep.subr.mxu1 %v467_v44 }
  0x57   :  { %939 = vmatpush3.msra.mxu0 %v418_v46  ;;  %972 = vmatpush3.msra.mxu1 %v451_v47 }
  0x58   :  { %940 = vmatprep.subr.mxu0 %v433_v48  ;;  %973 = vmatprep.subr.mxu1 %v466_v49 }
  0x59   :  { %941 = vmatpush3.msra.mxu0 %v417_v52  ;;  %974 = vmatpush3.msra.mxu1 %v450_v53 }
  0x5a   :  { %942 = vmatprep.subr.mxu0 %v432_v54  ;;  %975 = vmatprep.subr.mxu1 %v465_v51 }
  0x5b   :  { %943 = vmatpush3.msra.mxu0 %v416_v57  ;;  %735 = vmatprep.mubr.f32.mxu0 %v521_v55 }
  0x5c   :  { %976 = vmatpush3.msra.mxu1 %v449_v58  ;;  %736 = vmatmul.mubr.f32.vlgmr.msra.gmra.mxu0 %v513_v45 }
  0x5d   :  { %977 = vmatprep.subr.mxu1 %v464_v60  ;;  %805 = vmatprep.mubr.f32.mxu1 %v522_v59 }
  0x5e   :  { %978 = vmatpush3.msra.mxu1 %v448_v61 }
  0x5f   :  { %806 = vmatmul.mubr.f32.vlgmr.msra.gmra.mxu1 %v520_v50 }
  0x60   :  { %996 = shalt.err (!%p993_p4)
}
  0x61   :  { %832 = dma.vmem_to_hbm [thread:$0]  %s830_s10, 256, %s1524_s4, [#allocation6]   ;;  %v841_v3 = vld [vmem:[%s1522_s2] ss:$0 sm:$0xff]  ;;  %vm811_vm5 = vcmask 74752  }
  0x62   :  { %s1031_s0 = smov [#allocation3]  }
  0x63   :  { %s819_s4 = sshll.u32 %s1031_s0, 4  ;;  %s820_s4 = int_to_ptr.vmem [resolvable:$true] %s819_s4 }
  0x64   :  { %s1005_s15 = scalar_lea.vmem %s820_s4, 32  ;;  %p1010_p6 = scmp.lt.s32.totalorder %s820_s4, %s820_s4 }
  0x65   :  { %p1006_p5 = scmp.ne.s32.totalorder %s820_s4, %s1005_s15  ;;  %p1011_p7 = scmp.lt.s32.totalorder %s1005_s15, %s1005_s15 }
  0x67   :  { %p1012_p8 = por %p1011_p7, %p1010_p6 }
  0x69   :  { %p1013_p9 = pnand %p1012_p8, %p1006_p5 }
  0xfc   :  { %v874_v62 = vpop.f32.mrf.mxu0 }
  0xfe   :  { %v875_v63 = vpop.f32.mrf.mxu0  ;;  %v909_v0 = vpop.f32.mrf.mxu1 }
  0xff   :  { %v876_v1 = vadd.f32 %v875_v63, %v874_v62 }
 0x100   :  { %v910_v4 = vpop.f32.mrf.mxu1 }
 0x101   :  { %v598_v6 = vadd.f32 %v876_v1, %v841_v3  ;;  %v911_v7 = vadd.f32 %v910_v4, %v909_v0 }
 0x103   :  { %v668_v10 = vadd.f32 %v911_v7, %v598_v6 }
 0x11c   :  { %v944_v8 = vpop.f32.mrf.mxu0 }
 0x11e   :  { %v945_v9 = vpop.f32.mrf.mxu0 }
 0x11f   :  { %v946_v12 = vadd.f32 %v945_v9, %v944_v8  ;;  %v979_v13 = vpop.f32.mrf.mxu1 }
 0x121   :  { %v738_v14 = vadd.f32 %v946_v12, %v668_v10  ;;  %v980_v15 = vpop.f32.mrf.mxu1 }
 0x122   :  { %v981_v16 = vadd.f32 %v980_v15, %v979_v13 }
 0x124   :  { %v808_v17 = vadd.f32 %v981_v16, %v738_v14 }
 0x126   :  { %812 = vst.msk [vmem:[#allocation3] sm:$0x3] %vm811_vm5, %v808_v17 }
 0x127   :  { %1016 = shalt.err (!%p1013_p9)
}
 0x128   :  { %822 = dma.vmem_to_hbm [thread:$0]  %s820_s4, 32, %s1523_s3, [#allocation4]  }
 0x129   :  { %1025 = dma.done.wait [#allocation4], 32  }
 0x12a   :  { %1026 = vsyncadd [#allocation4], 4294967264 }
 0x12b   :  { %1027 = dma.done.wait [#allocation6], 256  }
 0x12c   :  { %1028 = vsyncadd [#allocation6], 4294967040 }
 0x12d   :  { %839 = vsyncpa [#allocation4], 1 }
 0x12e   :  { %840 = vsyncpa [#allocation6], 1 }

</bundles_post_ra>
